<compile_context>
chip_gen: v5e
topology: v5e:2x2
jax: 0.10.0
libtpu: 0.0.40
codegen_flags: <defaults>
</compile_context>

<pallas_src>
import functools

import jax
import jax.numpy as jnp
from jax.experimental import pallas as pl
from jax.experimental.pallas import tpu as pltpu

TAU = 2.0            # LIF membrane time constant (init_tau=2.0 default)
V_TH = 1.0           # LIF firing threshold
BN_EPS = 1e-5
VOTING_SIZE = 10
VMEM_LIMIT = 32 * 1024 * 1024   # safe on v5e/v6e/v7x scoped VMEM

# conv2 flattened-padded-image geometry (14x14 valid region, padding=1)
CONV2_WP = 16        # padded width  (14 + 1 + 1)
CONV2_HP = 19        # padded height (14 + 1 top + 4 bottom, so every tap offset
                     #                p_out + 2*16 + 2 stays in-bounds)
CONV2_LP = CONV2_HP * CONV2_WP   # 304 flattened padded rows per image
CONV2_P = CONV2_WP * CONV2_WP    # 256 output positions per image (16x16 grid)


# ----------------------------------------------------------------------------
# static tiling helpers
# ----------------------------------------------------------------------------
def _round_up(x, m):
    return (x + m - 1) // m * m


def _largest_divisor_leq(n, cap):
    for d in range(min(n, cap), 0, -1):
        if n % d == 0:
            return d
    return 1


def _choose_k_tile(k, cap):
    """Largest divisor of k that is <= cap, preferring multiples of 128."""
    if k <= cap:
        return k
    best, best128 = 1, 0
    for d in range(1, cap + 1):
        if k % d == 0:
            best = d
            if d % 128 == 0:
                best128 = d
    return best128 if best128 else best


# ----------------------------------------------------------------------------
# Pallas kernels
# ----------------------------------------------------------------------------
def _matmul_lif_kernel(x_ref, w_ref, scale_ref, shift_ref, o_ref, acc_ref):
    """spike( (x @ w) * scale + shift ), K-tiled with an f32 VMEM accumulator.

    1/tau is already folded into scale/shift, so the LIF step is just the
    threshold compare.  Spikes are emitted as exact 0/1 bf16."""
    k = pl.program_id(2)

    @pl.when(k == 0)
    def _init():
        acc_ref[...] = jnp.zeros_like(acc_ref)

    acc_ref[...] += jnp.dot(x_ref[...], w_ref[...],
                            preferred_element_type=jnp.float32)

    @pl.when(k == pl.num_programs(2) - 1)
    def _finalize():
        y = acc_ref[...] * scale_ref[...] + shift_ref[...]
        o_ref[...] = (y >= V_TH).astype(o_ref.dtype)


def _conv3x3_lif_kernel(x_ref, w_ref, scale_ref, shift_ref, o_ref, *, wp):
    """3x3 conv (as 9 shifted matmuls) + folded BN + LIF for one image.

    x_ref: (1, LP, Cin) bf16 zero-padded flattened image (row stride = wp).
    w_ref: (9, Cin, Cout) bf16, tap order kh*3+kw.
    o_ref: (1, P, Cout) bf16, P = wp*wp padded output grid (interior is valid).
    No im2col buffer ever touches HBM."""
    p = o_ref.shape[1]
    cout = o_ref.shape[2]
    acc = jnp.zeros((p, cout), jnp.float32)
    for kh in range(3):
        for kw in range(3):
            off = kh * wp + kw
            acc = acc + jnp.dot(x_ref[0, off:off + p, :],
                                w_ref[kh * 3 + kw],
                                preferred_element_type=jnp.float32)
    y = acc * scale_ref[...] + shift_ref[...]
    o_ref[0] = (y >= V_TH).astype(o_ref.dtype)


def _maxpool_kernel(x_ref, o_ref):
    # x block: (tr, 2, Wo, 2C): rows of (even-h, odd-h) x (even-w | odd-w lanes)
    x = x_ref[...]
    C = o_ref.shape[-1]
    m = jnp.maximum(x[:, 0], x[:, 1])                 # reduce over h-parity
    o_ref[...] = jnp.maximum(m[..., :C], m[..., C:])  # reduce over w-parity
    # TODO(synk): for very small C, a lane-dense (rows, Wo*C) store layout would
    #             improve lane utilization; left as-is to avoid in-kernel relayout.


def _fc_lif_vote_kernel(x_ref, w_ref, shift_ref, v_ref, o_ref):
    """fc4 + LIF + VotingLayer(10) fused.

    Spikes are exact 0/1 bf16 and the voting matrix is 0/1 bf16 (fast MXU path);
    the 1/voting_size average is applied in f32 afterwards."""
    y = jnp.dot(x_ref[...], w_ref[...], preferred_element_type=jnp.float32)
    y = y * (1.0 / TAU) + shift_ref[...]
    spk = (y >= V_TH).astype(jnp.bfloat16)
    votes = jnp.dot(spk, v_ref[...], preferred_element_type=jnp.float32)
    o_ref[...] = votes * (1.0 / VOTING_SIZE)


# ----------------------------------------------------------------------------
# Pallas wrappers
# ----------------------------------------------------------------------------
def fused_matmul_lif(x, w, scale, shift, *, tm_cap=512, tn_cap=512, tk_cap=1024):
    """spike( (x @ w) * scale + shift ), tiled over (M, N, K); bf16 spikes out."""
    M, K = x.shape
    Kw, N = w.shape
    assert K == Kw
    # pad-to-tile: tm multiple of 16 (bf16 sublane packing), tn multiple of 128
    tm = min(tm_cap, _round_up(M, 16))
    M_pad = _round_up(M, tm)
    tn = min(tn_cap, _round_up(N, 128))
    N_pad = _round_up(N, tn)
    tk = _choose_k_tile(K, tk_cap)   # divides K exactly (no K padding)

    if M_pad != M:
        x = jnp.pad(x, ((0, M_pad - M), (0, 0)))
    if N_pad != N:
        w = jnp.pad(w, ((0, 0), (0, N_pad - N)))
        scale = jnp.pad(scale, ((0, 0), (0, N_pad - N)))
        shift = jnp.pad(shift, ((0, 0), (0, N_pad - N)))

    grid = (M_pad // tm, N_pad // tn, K // tk)
    out = pl.pallas_call(
        _matmul_lif_kernel,
        out_shape=jax.ShapeDtypeStruct((M_pad, N_pad), jnp.bfloat16),
        grid=grid,
        in_specs=[
            pl.BlockSpec((tm, tk), lambda i, j, k: (i, k)),
            pl.BlockSpec((tk, tn), lambda i, j, k: (k, j)),
            pl.BlockSpec((1, tn), lambda i, j, k: (0, j)),
            pl.BlockSpec((1, tn), lambda i, j, k: (0, j)),
        ],
        out_specs=pl.BlockSpec((tm, tn), lambda i, j, k: (i, j)),
        scratch_shapes=[pltpu.VMEM((tm, tn), jnp.float32)],
        compiler_params=pltpu.CompilerParams(
            dimension_semantics=("parallel", "parallel", "arbitrary"),
            vmem_limit_bytes=VMEM_LIMIT),
    )(x, w, scale, shift)
    if M_pad != M or N_pad != N:
        out = out[:M, :N]
    return out


def conv3x3_bn_lif(x_nhwc, w9, scale, shift):
    """conv2 (3x3, padding=1) + folded BN + LIF on a (N, 14, 14, C) spike map.

    The 9 kernel taps are accumulated inside the kernel as shifted windows of a
    flattened zero-padded image (row stride 16), eliminating the 9x im2col HBM
    round-trip.  Only the top-left 14x14 of the returned 16x16 grid is valid."""
    Nb, H, W, Cin = x_nhwc.shape
    assert (H, W) == (14, 14)
    Cout = w9.shape[-1]
    # single zero-pad: 1 left/top, 1 right, 4 bottom -> (N, 19, 16, C) -> flatten
    xp = jnp.pad(x_nhwc, ((0, 0), (1, CONV2_HP - 1 - H), (1, 1), (0, 0)))
    xf = xp.reshape(Nb, CONV2_LP, Cin)

    out = pl.pallas_call(
        functools.partial(_conv3x3_lif_kernel, wp=CONV2_WP),
        out_shape=jax.ShapeDtypeStruct((Nb, CONV2_P, Cout), jnp.bfloat16),
        grid=(Nb,),
        in_specs=[
            pl.BlockSpec((1, CONV2_LP, Cin), lambda n: (n, 0, 0)),
            pl.BlockSpec((9, Cin, Cout), lambda n: (0, 0, 0)),
            pl.BlockSpec((1, Cout), lambda n: (0, 0)),
            pl.BlockSpec((1, Cout), lambda n: (0, 0)),
        ],
        out_specs=pl.BlockSpec((1, CONV2_P, Cout), lambda n: (n, 0, 0)),
        compiler_params=pltpu.CompilerParams(
            dimension_semantics=("parallel",),
            vmem_limit_bytes=VMEM_LIMIT),
    )(xf, w9, scale, shift)
    # 16x16 grid -> valid 14x14 region (pool windows never touch the garbage)
    return out.reshape(Nb, CONV2_WP, CONV2_WP, Cout)[:, :H, :W, :]


def maxpool2x2(x_nhwc, row_cap=512):
    """MaxPool2d(2, 2) on NHWC via the free (N*Ho, 2, Wo, 2C) view (no strided
    slabs materialized in HBM).  Requires even H, W (28 / 14 here)."""
    N, H, W, C = x_nhwc.shape
    Ho, Wo = H // 2, W // 2
    rows = N * Ho
    x5 = x_nhwc.reshape(rows, 2, Wo, 2 * C)
    tr = _largest_divisor_leq(rows, row_cap)
    out = pl.pallas_call(
        _maxpool_kernel,
        out_shape=jax.ShapeDtypeStruct((rows, Wo, C), x_nhwc.dtype),
        grid=(rows // tr,),
        in_specs=[pl.BlockSpec((tr, 2, Wo, 2 * C), lambda i: (i, 0, 0, 0))],
        out_specs=pl.BlockSpec((tr, Wo, C), lambda i: (i, 0, 0)),
        compiler_params=pltpu.CompilerParams(
            dimension_semantics=("parallel",),
            vmem_limit_bytes=VMEM_LIMIT),
    )(x5)
    return out.reshape(N, Ho, Wo, C)


def fc_lif_vote(x, w_p, shift_p, v_p, *, num_classes=10, tm_cap=128):
    """fc4 -> LIF -> VotingLayer(10) fused.  Weights arrive pre-padded (lanes
    multiple of 128) from prepare_params.  Returns f32 (M, num_classes)."""
    M, K = x.shape
    Kw, Np = w_p.shape
    assert K == Kw
    Gp = v_p.shape[1]
    m16 = _round_up(M, 16)
    # keep >=2 grid tiles when M allows it (v7x megacore), never below 16 rows
    tm = max(16, min(tm_cap, _round_up(max(m16 // 2, 1), 16)))
    M_pad = _round_up(M, tm)
    x_p = jnp.pad(x, ((0, M_pad - M), (0, 0))) if M_pad != M else x

    out = pl.pallas_call(
        _fc_lif_vote_kernel,
        out_shape=jax.ShapeDtypeStruct((M_pad, Gp), jnp.float32),
        grid=(M_pad // tm,),
        in_specs=[
            pl.BlockSpec((tm, K), lambda i: (i, 0)),
            pl.BlockSpec((K, Np), lambda i: (0, 0)),
            pl.BlockSpec((1, Np), lambda i: (0, 0)),
            pl.BlockSpec((Np, Gp), lambda i: (0, 0)),
        ],
        out_specs=pl.BlockSpec((tm, Gp), lambda i: (i, 0)),
        compiler_params=pltpu.CompilerParams(
            dimension_semantics=("parallel",),
            vmem_limit_bytes=VMEM_LIMIT),
    )(x_p, w_p, shift_p, v_p)
    return out[:M, :num_classes]


# ----------------------------------------------------------------------------
# Glue: im2col (conv1 only), BN folding, one-time parameter prep
# ----------------------------------------------------------------------------
def im2col_3x3(x_nhwc):
    """3x3, padding=1 patches; row r = (n, h, w), col order (kh, kw, cin).
    Only used for conv1 (C_in=1), where the 9x inflation is negligible."""
    N, H, W, C = x_nhwc.shape
    xp = jnp.pad(x_nhwc, ((0, 0), (1, 1), (1, 1), (0, 0)))
    cols = []
    for di in range(3):
        for dj in range(3):
            cols.append(xp[:, di:di + H, dj:dj + W, :])
    return jnp.concatenate(cols, axis=-1).reshape(N * H * W, 9 * C)


def fold_bn_lif(gamma, beta, mean, var):
    """Eval-mode BN fold, with the LIF 1/tau decay folded in as well."""
    scale = gamma / jnp.sqrt(var + BN_EPS)
    shift = beta - mean * scale
    return (scale / TAU).reshape(1, -1), (shift / TAU).reshape(1, -1)


def prepare_params(params, channels):
    """One-time layout / cast / BN+1/tau fold of PyTorch-shaped parameters.

    Hoisted out of the per-step forward so the ~77 MB/step of weight transpose
    and f32->bf16 cast traffic is not repeated every SNN timestep."""
    C = channels
    prep = {}
    # conv1: (C, 1, 3, 3) -> (9, C) bf16, row order (kh, kw)
    prep['w1'] = jnp.transpose(params['conv1_w'], (2, 3, 1, 0)) \
        .reshape(9, C).astype(jnp.bfloat16)
    prep['s1'], prep['sh1'] = fold_bn_lif(params['bn1_g'], params['bn1_b'],
                                          params['bn1_m'], params['bn1_v'])
    # conv2: (C, C, 3, 3) -> (9, C, C) bf16, tap order kh*3+kw, (cin, cout)
    prep['w2'] = jnp.transpose(params['conv2_w'], (2, 3, 1, 0)) \
        .reshape(9, C, C).astype(jnp.bfloat16)
    prep['s2'], prep['sh2'] = fold_bn_lif(params['bn2_g'], params['bn2_b'],
                                          params['bn2_m'], params['bn2_v'])
    # fc3: PyTorch flatten(1) on NCHW has col order (c, h, w); re-order the
    # weight rows to (h, w, c) so the NHWC flatten feeds it directly.
    w3 = params['fc3_w'].reshape(2048, C, 7, 7)
    w3 = jnp.transpose(w3, (2, 3, 1, 0)).reshape(49 * C, 2048)
    prep['w3'] = w3.astype(jnp.bfloat16)
    prep['s3'] = jnp.full((1, 2048), 1.0 / TAU, jnp.float32)
    prep['sh3'] = (params['fc3_b'].astype(jnp.float32) / TAU).reshape(1, 2048)
    # fc4 (+ voting): pre-padded to 128 lanes; voting matrix kept 0/1 in bf16
    # (the 1/voting_size scale is applied in f32 inside the kernel).
    n4 = params['fc4_w'].shape[0]                       # 100
    n4p = _round_up(n4, 128)
    g = n4 // VOTING_SIZE
    gp = _round_up(g, 128)
    w4 = params['fc4_w'].T.astype(jnp.bfloat16)         # (2048, 100)
    prep['w4'] = jnp.pad(w4, ((0, 0), (0, n4p - n4)))
    sh4 = (params['fc4_b'].astype(jnp.float32) / TAU).reshape(1, n4)
    prep['sh4'] = jnp.pad(sh4, ((0, 0), (0, n4p - n4)))
    vote = (jnp.arange(n4)[:, None] // VOTING_SIZE ==
            jnp.arange(g)[None, :]).astype(jnp.bfloat16)
    prep['vote'] = jnp.pad(vote, ((0, n4p - n4), (0, gp - g)))
    return prep


def make_params(key, channels):
    """PyTorch-shaped deterministic synthetic parameters."""
    C = channels
    ks = jax.random.split(key, 16)
    p = {}
    p['conv1_w'] = jax.random.normal(ks[0], (C, 1, 3, 3), jnp.float32) * 0.6
    p['bn1_g'] = 1.0 + 0.1 * jax.random.normal(ks[1], (C,), jnp.float32)
    p['bn1_b'] = 0.1 * jax.random.normal(ks[2], (C,), jnp.float32)
    p['bn1_m'] = 0.05 * jax.random.normal(ks[3], (C,), jnp.float32)
    p['bn1_v'] = jnp.abs(1.0 + 0.1 * jax.random.normal(ks[4], (C,), jnp.float32))
    p['conv2_w'] = jax.random.normal(ks[5], (C, C, 3, 3), jnp.float32) * 0.3
    p['bn2_g'] = 1.0 + 0.1 * jax.random.normal(ks[6], (C,), jnp.float32)
    p['bn2_b'] = 0.1 * jax.random.normal(ks[7], (C,), jnp.float32)
    p['bn2_m'] = 0.05 * jax.random.normal(ks[8], (C,), jnp.float32)
    p['bn2_v'] = jnp.abs(1.0 + 0.1 * jax.random.normal(ks[9], (C,), jnp.float32))
    p['fc3_w'] = jax.random.normal(ks[10], (2048, C * 7 * 7), jnp.float32) * 0.12
    p['fc3_b'] = 0.1 * jax.random.normal(ks[11], (2048,), jnp.float32)
    p['fc4_w'] = jax.random.normal(ks[12], (100, 2048), jnp.float32) * 0.08
    p['fc4_b'] = 0.1 * jax.random.normal(ks[13], (100,), jnp.float32)
    return p


# ----------------------------------------------------------------------------
# Forward pass (single timestep, eval-mode BN / Dropout)
# ----------------------------------------------------------------------------
@jax.jit
def mnist_net_forward(x_nchw, prep):
    C = prep['w2'].shape[-1]
    # NCHW -> NHWC, bf16 activations (spikes are exact 0/1 in bf16)
    x = jnp.transpose(x_nchw, (0, 2, 3, 1)).astype(jnp.bfloat16)   # (N,28,28,1)
    Nb, H, W, _ = x.shape

    # conv1 -> bn1 -> sn1 (fused matmul+LIF kernel; K=9 left unpadded) -> pool1
    p1 = im2col_3x3(x)                                             # (N*784, 9)
    y = fused_matmul_lif(p1, prep['w1'], prep['s1'], prep['sh1'])  # (N*784, C)
    y = maxpool2x2(y.reshape(Nb, H, W, C))                         # (N,14,14,C)

    # conv2 -> bn2 -> sn2 (single fused kernel, no im2col) -> pool2
    y = conv3x3_bn_lif(y, prep['w2'], prep['s2'], prep['sh2'])     # (N,14,14,C)
    y = maxpool2x2(y)                                              # (N,7,7,C)
    y = y.reshape(Nb, 49 * C)      # NHWC flatten; w3 rows pre-permuted to match

    # dp3 (eval: identity) -> fc3 -> sn3 (K-tiled fused kernel)
    y = fused_matmul_lif(y, prep['w3'], prep['s3'], prep['sh3'])   # (N, 2048)

    # dp4 (eval: identity) -> fc4 -> sn4 -> VotingLayer(10) (single fused kernel)
    return fc_lif_vote(y, prep['w4'], prep['sh4'], prep['vote'])   # (N, 10) f32


if __name__ == "__main__":
    key = jax.random.PRNGKey(0)
    k_in, k_par = jax.random.split(key)

    batch = 2
    channels = 8            # small stand-in for the default 128
    # MNIST-shaped input (must be 28x28 so that channels*7*7 matches fc3)
    x = jax.random.normal(k_in, (batch, 1, 28, 28), dtype=jnp.float32)

    params = make_params(k_par, channels)
    prep = prepare_params(params, channels)        # one-time weight prep
    out = mnist_net_forward(x, prep)
    out = jax.block_until_ready(out)

    assert out.shape == (batch, 10), out.shape
    assert out.dtype == jnp.float32
    print("KERNEL_OK")
</pallas_src>

<mosaic_0001>
module attributes {stable_mosaic.version = 11 : i64} {
  func.func @_matmul_lif_kernel(%arg0: i32, %arg1: i32, %arg2: i32, %arg3: memref<512x9xbf16, #tpu.memory_space<vmem>>, %arg4: memref<9x128xbf16, #tpu.memory_space<vmem>>, %arg5: memref<1x128xf32, #tpu.memory_space<vmem>>, %arg6: memref<1x128xf32, #tpu.memory_space<vmem>>, %arg7: memref<512x128xbf16, #tpu.memory_space<vmem>>, %arg8: memref<512x128xf32, #tpu.memory_space<vmem>>) attributes {dimension_semantics = [#tpu.dimension_semantics<parallel>, #tpu.dimension_semantics<parallel>, #tpu.dimension_semantics<arbitrary>], iteration_bounds = array<i64: 4, 1, 1>, scalar_prefetch = 0 : i64, scratch_operands = 1 : i64, tpu.core_type = #tpu.core_type<tc>, window_params = [{transform_indices = @transform_0, window_bounds = array<i64: 512, 9>}, {transform_indices = @transform_1, window_bounds = array<i64: 9, 128>}, {transform_indices = @transform_2, window_bounds = array<i64: 1, 128>}, {transform_indices = @transform_3, window_bounds = array<i64: 1, 128>}, {transform_indices = @transform_4, window_bounds = array<i64: 512, 128>}]} {
    %c0_i32 = arith.constant 0 : i32
    %0 = arith.cmpi eq, %arg2, %c0_i32 : i32
    %1 = arith.extui %0 : i1 to i32
    %c0_i32_0 = arith.constant 0 : i32
    %2 = arith.cmpi ne, %1, %c0_i32_0 : i32
    scf.if %2 {
      %cst_10 = arith.constant 0.000000e+00 : f32
      %12 = vector.broadcast %cst_10 : f32 to vector<512x128xf32>
      %c0_11 = arith.constant 0 : index
      %c0_12 = arith.constant 0 : index
      %13 = vector.load %arg8[%c0_11, %c0_12] : memref<512x128xf32, #tpu.memory_space<vmem>>, vector<512x128xf32>
      tpu.vector_store %arg8[%c0_11, %c0_12], %12 {strides = array<i32>} : memref<512x128xf32, #tpu.memory_space<vmem>>, vector<512x128xf32>,
    } else {
    }
    %c0 = arith.constant 0 : index
    %c0_1 = arith.constant 0 : index
    %3 = vector.load %arg8[%c0, %c0_1] : memref<512x128xf32, #tpu.memory_space<vmem>>, vector<512x128xf32>
    %c0_2 = arith.constant 0 : index
    %c0_3 = arith.constant 0 : index
    %4 = vector.load %arg3[%c0_2, %c0_3] : memref<512x9xbf16, #tpu.memory_space<vmem>>, vector<512x9xbf16>
    %c0_4 = arith.constant 0 : index
    %c0_5 = arith.constant 0 : index
    %5 = vector.load %arg4[%c0_4, %c0_5] : memref<9x128xbf16, #tpu.memory_space<vmem>>, vector<9x128xbf16>
    %cst = arith.constant dense<0.000000e+00> : vector<512x128xf32>
    %6 = tpu.matmul %4, %5, %cst {dimension_numbers = #tpu.dot_dimension_numbers<[1], [0], [0], [1], [0, 0, 1, 1], [], []>} : vector<512x9xbf16>, vector<9x128xbf16>, vector<512x128xf32> -> vector<512x128xf32>
    %7 = arith.addf %3, %6 : vector<512x128xf32>
    %c0_6 = arith.constant 0 : index
    %c0_7 = arith.constant 0 : index
    %8 = vector.load %arg8[%c0_6, %c0_7] : memref<512x128xf32, #tpu.memory_space<vmem>>, vector<512x128xf32>
    tpu.vector_store %arg8[%c0_6, %c0_7], %7 {strides = array<i32>} : memref<512x128xf32, #tpu.memory_space<vmem>>, vector<512x128xf32>,
    %c0_i32_8 = arith.constant 0 : i32
    %9 = arith.cmpi eq, %arg2, %c0_i32_8 : i32
    %10 = arith.extui %9 : i1 to i32
    %c0_i32_9 = arith.constant 0 : i32
    %11 = arith.cmpi ne, %10, %c0_i32_9 : i32
    scf.if %11 {
      %c0_10 = arith.constant 0 : index
      %c0_11 = arith.constant 0 : index
      %12 = vector.load %arg8[%c0_10, %c0_11] : memref<512x128xf32, #tpu.memory_space<vmem>>, vector<512x128xf32>
      %c0_12 = arith.constant 0 : index
      %c0_13 = arith.constant 0 : index
      %13 = vector.load %arg5[%c0_12, %c0_13] : memref<1x128xf32, #tpu.memory_space<vmem>>, vector<1x128xf32>
      %14 = vector.broadcast %13 : vector<1x128xf32> to vector<512x128xf32>
      %15 = arith.mulf %12, %14 : vector<512x128xf32>
      %c0_14 = arith.constant 0 : index
      %c0_15 = arith.constant 0 : index
      %16 = vector.load %arg6[%c0_14, %c0_15] : memref<1x128xf32, #tpu.memory_space<vmem>>, vector<1x128xf32>
      %17 = vector.broadcast %16 : vector<1x128xf32> to vector<512x128xf32>
      %18 = arith.addf %15, %17 : vector<512x128xf32>
      %cst_16 = arith.constant 1.000000e+00 : f32
      %19 = vector.broadcast %cst_16 : f32 to vector<512x128xf32>
      %20 = arith.cmpf oge, %18, %19 : vector<512x128xf32>
      %21 = arith.extui %20 : vector<512x128xi1> to vector<512x128xi32>
      %22 = arith.sitofp %21 : vector<512x128xi32> to vector<512x128xf32>
      %23 = arith.truncf %22 : vector<512x128xf32> to vector<512x128xbf16>
      %c0_17 = arith.constant 0 : index
      %c0_18 = arith.constant 0 : index
      %24 = vector.load %arg7[%c0_17, %c0_18] : memref<512x128xbf16, #tpu.memory_space<vmem>>, vector<512x128xbf16>
      tpu.vector_store %arg7[%c0_17, %c0_18], %23 {strides = array<i32>} : memref<512x128xbf16, #tpu.memory_space<vmem>>, vector<512x128xbf16>,
    } else {
    }
    return
  }
  func.func @transform_0(%arg0: i32, %arg1: i32, %arg2: i32) -> (i32, i32) {
    %c0_i32 = arith.constant 0 : i32
    return %arg0, %arg2 : i32, i32
  }
  func.func @transform_1(%arg0: i32, %arg1: i32, %arg2: i32) -> (i32, i32) {
    %c0_i32 = arith.constant 0 : i32
    return %arg2, %arg1 : i32, i32
  }
  func.func @transform_2(%arg0: i32, %arg1: i32, %arg2: i32) -> (i32, i32) {
    %c0_i32 = arith.constant 0 : i32
    %c0_i32_0 = arith.constant 0 : i32
    return %c0_i32, %arg1 : i32, i32
  }
  func.func @transform_3(%arg0: i32, %arg1: i32, %arg2: i32) -> (i32, i32) {
    %c0_i32 = arith.constant 0 : i32
    %c0_i32_0 = arith.constant 0 : i32
    return %c0_i32, %arg1 : i32, i32
  }
  func.func @transform_4(%arg0: i32, %arg1: i32, %arg2: i32) -> (i32, i32) {
    %c0_i32 = arith.constant 0 : i32
    return %arg0, %arg1 : i32, i32
  }
}

module attributes {stable_mosaic.version = 11 : i64} {
  func.func @_maxpool_kernel(%arg0: i32, %arg1: memref<28x2x14x16xbf16, #tpu.memory_space<vmem>>, %arg2: memref<28x14x8xbf16, #tpu.memory_space<vmem>>) attributes {dimension_semantics = [#tpu.dimension_semantics<parallel>], iteration_bounds = array<i64: 1>, scalar_prefetch = 0 : i64, scratch_operands = 0 : i64, tpu.core_type = #tpu.core_type<tc>, window_params = [{transform_indices = @transform_0, window_bounds = array<i64: 28, 2, 14, 16>}, {transform_indices = @transform_1, window_bounds = array<i64: 28, 14, 8>}]} {
    %c0 = arith.constant 0 : index
    %c0_0 = arith.constant 0 : index
    %c0_1 = arith.constant 0 : index
    %c0_2 = arith.constant 0 : index
    %0 = vector.load %arg1[%c0, %c0_0, %c0_1, %c0_2] : memref<28x2x14x16xbf16, #tpu.memory_space<vmem>>, vector<28x2x14x16xbf16>
    %1 = vector.extract_strided_slice %0 {offsets = [0, 0, 0, 0], sizes = [28, 1, 14, 16], strides = [1, 1, 1, 1]} : vector<28x2x14x16xbf16> to vector<28x1x14x16xbf16>
    %2 = vector.shape_cast %1 : vector<28x1x14x16xbf16> to vector<28x14x16xbf16>
    %3 = vector.extract_strided_slice %0 {offsets = [0, 1, 0, 0], sizes = [28, 1, 14, 16], strides = [1, 1, 1, 1]} : vector<28x2x14x16xbf16> to vector<28x1x14x16xbf16>
    %4 = vector.shape_cast %3 : vector<28x1x14x16xbf16> to vector<28x14x16xbf16>
    %5 = arith.maximumf %2, %4 : vector<28x14x16xbf16>
    %6 = vector.extract_strided_slice %5 {offsets = [0, 0, 0], sizes = [28, 14, 8], strides = [1, 1, 1]} : vector<28x14x16xbf16> to vector<28x14x8xbf16>
    %7 = vector.extract_strided_slice %5 {offsets = [0, 0, 8], sizes = [28, 14, 8], strides = [1, 1, 1]} : vector<28x14x16xbf16> to vector<28x14x8xbf16>
    %8 = arith.maximumf %6, %7 : vector<28x14x8xbf16>
    %c0_3 = arith.constant 0 : index
    %c0_4 = arith.constant 0 : index
    %c0_5 = arith.constant 0 : index
    %9 = vector.load %arg2[%c0_3, %c0_4, %c0_5] : memref<28x14x8xbf16, #tpu.memory_space<vmem>>, vector<28x14x8xbf16>
    tpu.vector_store %arg2[%c0_3, %c0_4, %c0_5], %8 {strides = array<i32>} : memref<28x14x8xbf16, #tpu.memory_space<vmem>>, vector<28x14x8xbf16>,
    return
  }
  func.func @transform_0(%arg0: i32) -> (i32, i32, i32, i32) {
    %c0_i32 = arith.constant 0 : i32
    %c0_i32_0 = arith.constant 0 : i32
    %c0_i32_1 = arith.constant 0 : i32
    %c0_i32_2 = arith.constant 0 : i32
    return %arg0, %c0_i32, %c0_i32_0, %c0_i32_1 : i32, i32, i32, i32
  }
  func.func @transform_1(%arg0: i32) -> (i32, i32, i32) {
    %c0_i32 = arith.constant 0 : i32
    %c0_i32_0 = arith.constant 0 : i32
    %c0_i32_1 = arith.constant 0 : i32
    return %arg0, %c0_i32, %c0_i32_0 : i32, i32, i32
  }
}

module attributes {stable_mosaic.version = 11 : i64} {
  func.func @_conv3x3_lif_kernel(%arg0: i32, %arg1: memref<1x304x8xbf16, #tpu.memory_space<vmem>>, %arg2: memref<9x8x8xbf16, #tpu.memory_space<vmem>>, %arg3: memref<1x8xf32, #tpu.memory_space<vmem>>, %arg4: memref<1x8xf32, #tpu.memory_space<vmem>>, %arg5: memref<1x256x8xbf16, #tpu.memory_space<vmem>>) attributes {dimension_semantics = [#tpu.dimension_semantics<parallel>], iteration_bounds = array<i64: 2>, scalar_prefetch = 0 : i64, scratch_operands = 0 : i64, tpu.core_type = #tpu.core_type<tc>, window_params = [{transform_indices = @transform_0, window_bounds = array<i64: 1, 304, 8>}, {pipeline_mode = #tpu.pipeline_mode<synchronous>, transform_indices = @transform_1, window_bounds = array<i64: 9, 8, 8>}, {pipeline_mode = #tpu.pipeline_mode<synchronous>, transform_indices = @transform_2, window_bounds = array<i64: 1, 8>}, {pipeline_mode = #tpu.pipeline_mode<synchronous>, transform_indices = @transform_3, window_bounds = array<i64: 1, 8>}, {transform_indices = @transform_4, window_bounds = array<i64: 1, 256, 8>}]} {
    %cst = arith.constant 0.000000e+00 : f32
    %0 = vector.broadcast %cst : f32 to vector<256x8xf32>
    %c0 = arith.constant 0 : index
    %c0_0 = arith.constant 0 : index
    %c0_1 = arith.constant 0 : index
    %1 = vector.load %arg1[%c0, %c0_0, %c0_1] : memref<1x304x8xbf16, #tpu.memory_space<vmem>>, vector<1x256x8xbf16>
    %2 = vector.shape_cast %1 : vector<1x256x8xbf16> to vector<256x8xbf16>
    %c0_2 = arith.constant 0 : index
    %c0_3 = arith.constant 0 : index
    %c0_4 = arith.constant 0 : index
    %3 = vector.load %arg2[%c0_2, %c0_3, %c0_4] : memref<9x8x8xbf16, #tpu.memory_space<vmem>>, vector<1x8x8xbf16>
    %4 = vector.shape_cast %3 : vector<1x8x8xbf16> to vector<8x8xbf16>
    %cst_5 = arith.constant dense<0.000000e+00> : vector<256x8xf32>
    %5 = tpu.matmul %2, %4, %cst_5 {dimension_numbers = #tpu.dot_dimension_numbers<[1], [0], [0], [1], [0, 0, 1, 1], [], []>} : vector<256x8xbf16>, vector<8x8xbf16>, vector<256x8xf32> -> vector<256x8xf32>
    %6 = arith.addf %0, %5 : vector<256x8xf32>
    %c0_6 = arith.constant 0 : index
    %c1 = arith.constant 1 : index
    %c0_7 = arith.constant 0 : index
    %7 = vector.load %arg1[%c0_6, %c1, %c0_7] : memref<1x304x8xbf16, #tpu.memory_space<vmem>>, vector<1x256x8xbf16>
    %8 = vector.shape_cast %7 : vector<1x256x8xbf16> to vector<256x8xbf16>
    %c1_8 = arith.constant 1 : index
    %c0_9 = arith.constant 0 : index
    %c0_10 = arith.constant 0 : index
    %9 = vector.load %arg2[%c1_8, %c0_9, %c0_10] : memref<9x8x8xbf16, #tpu.memory_space<vmem>>, vector<1x8x8xbf16>
    %10 = vector.shape_cast %9 : vector<1x8x8xbf16> to vector<8x8xbf16>
    %cst_11 = arith.constant dense<0.000000e+00> : vector<256x8xf32>
    %11 = tpu.matmul %8, %10, %cst_11 {dimension_numbers = #tpu.dot_dimension_numbers<[1], [0], [0], [1], [0, 0, 1, 1], [], []>} : vector<256x8xbf16>, vector<8x8xbf16>, vector<256x8xf32> -> vector<256x8xf32>
    %12 = arith.addf %6, %11 : vector<256x8xf32>
    %c0_12 = arith.constant 0 : index
    %c2 = arith.constant 2 : index
    %c0_13 = arith.constant 0 : index
    %13 = vector.load %arg1[%c0_12, %c2, %c0_13] : memref<1x304x8xbf16, #tpu.memory_space<vmem>>, vector<1x256x8xbf16>
    %14 = vector.shape_cast %13 : vector<1x256x8xbf16> to vector<256x8xbf16>
    %c2_14 = arith.constant 2 : index
    %c0_15 = arith.constant 0 : index
    %c0_16 = arith.constant 0 : index
    %15 = vector.load %arg2[%c2_14, %c0_15, %c0_16] : memref<9x8x8xbf16, #tpu.memory_space<vmem>>, vector<1x8x8xbf16>
    %16 = vector.shape_cast %15 : vector<1x8x8xbf16> to vector<8x8xbf16>
    %cst_17 = arith.constant dense<0.000000e+00> : vector<256x8xf32>
    %17 = tpu.matmul %14, %16, %cst_17 {dimension_numbers = #tpu.dot_dimension_numbers<[1], [0], [0], [1], [0, 0, 1, 1], [], []>} : vector<256x8xbf16>, vector<8x8xbf16>, vector<256x8xf32> -> vector<256x8xf32>
    %18 = arith.addf %12, %17 : vector<256x8xf32>
    %c0_18 = arith.constant 0 : index
    %c16 = arith.constant 16 : index
    %c0_19 = arith.constant 0 : index
    %19 = vector.load %arg1[%c0_18, %c16, %c0_19] : memref<1x304x8xbf16, #tpu.memory_space<vmem>>, vector<1x256x8xbf16>
    %20 = vector.shape_cast %19 : vector<1x256x8xbf16> to vector<256x8xbf16>
    %c3 = arith.constant 3 : index
    %c0_20 = arith.constant 0 : index
    %c0_21 = arith.constant 0 : index
    %21 = vector.load %arg2[%c3, %c0_20, %c0_21] : memref<9x8x8xbf16, #tpu.memory_space<vmem>>, vector<1x8x8xbf16>
    %22 = vector.shape_cast %21 : vector<1x8x8xbf16> to vector<8x8xbf16>
    %cst_22 = arith.constant dense<0.000000e+00> : vector<256x8xf32>
    %23 = tpu.matmul %20, %22, %cst_22 {dimension_numbers = #tpu.dot_dimension_numbers<[1], [0], [0], [1], [0, 0, 1, 1], [], []>} : vector<256x8xbf16>, vector<8x8xbf16>, vector<256x8xf32> -> vector<256x8xf32>
    %24 = arith.addf %18, %23 : vector<256x8xf32>
    %c0_23 = arith.constant 0 : index
    %c17 = arith.constant 17 : index
    %c0_24 = arith.constant 0 : index
    %25 = vector.load %arg1[%c0_23, %c17, %c0_24] : memref<1x304x8xbf16, #tpu.memory_space<vmem>>, vector<1x256x8xbf16>
    %26 = vector.shape_cast %25 : vector<1x256x8xbf16> to vector<256x8xbf16>
    %c4 = arith.constant 4 : index
    %c0_25 = arith.constant 0 : index
    %c0_26 = arith.constant 0 : index
    %27 = vector.load %arg2[%c4, %c0_25, %c0_26] : memref<9x8x8xbf16, #tpu.memory_space<vmem>>, vector<1x8x8xbf16>
    %28 = vector.shape_cast %27 : vector<1x8x8xbf16> to vector<8x8xbf16>
    %cst_27 = arith.constant dense<0.000000e+00> : vector<256x8xf32>
    %29 = tpu.matmul %26, %28, %cst_27 {dimension_numbers = #tpu.dot_dimension_numbers<[1], [0], [0], [1], [0, 0, 1, 1], [], []>} : vector<256x8xbf16>, vector<8x8xbf16>, vector<256x8xf32> -> vector<256x8xf32>
    %30 = arith.addf %24, %29 : vector<256x8xf32>
    %c0_28 = arith.constant 0 : index
    %c18 = arith.constant 18 : index
    %c0_29 = arith.constant 0 : index
    %31 = vector.load %arg1[%c0_28, %c18, %c0_29] : memref<1x304x8xbf16, #tpu.memory_space<vmem>>, vector<1x256x8xbf16>
    %32 = vector.shape_cast %31 : vector<1x256x8xbf16> to vector<256x8xbf16>
    %c5 = arith.constant 5 : index
    %c0_30 = arith.constant 0 : index
    %c0_31 = arith.constant 0 : index
    %33 = vector.load %arg2[%c5, %c0_30, %c0_31] : memref<9x8x8xbf16, #tpu.memory_space<vmem>>, vector<1x8x8xbf16>
    %34 = vector.shape_cast %33 : vector<1x8x8xbf16> to vector<8x8xbf16>
    %cst_32 = arith.constant dense<0.000000e+00> : vector<256x8xf32>
    %35 = tpu.matmul %32, %34, %cst_32 {dimension_numbers = #tpu.dot_dimension_numbers<[1], [0], [0], [1], [0, 0, 1, 1], [], []>} : vector<256x8xbf16>, vector<8x8xbf16>, vector<256x8xf32> -> vector<256x8xf32>
    %36 = arith.addf %30, %35 : vector<256x8xf32>
    %c0_33 = arith.constant 0 : index
    %c32 = arith.constant 32 : index
    %c0_34 = arith.constant 0 : index
    %37 = vector.load %arg1[%c0_33, %c32, %c0_34] : memref<1x304x8xbf16, #tpu.memory_space<vmem>>, vector<1x256x8xbf16>
    %38 = vector.shape_cast %37 : vector<1x256x8xbf16> to vector<256x8xbf16>
    %c6 = arith.constant 6 : index
    %c0_35 = arith.constant 0 : index
    %c0_36 = arith.constant 0 : index
    %39 = vector.load %arg2[%c6, %c0_35, %c0_36] : memref<9x8x8xbf16, #tpu.memory_space<vmem>>, vector<1x8x8xbf16>
    %40 = vector.shape_cast %39 : vector<1x8x8xbf16> to vector<8x8xbf16>
    %cst_37 = arith.constant dense<0.000000e+00> : vector<256x8xf32>
    %41 = tpu.matmul %38, %40, %cst_37 {dimension_numbers = #tpu.dot_dimension_numbers<[1], [0], [0], [1], [0, 0, 1, 1], [], []>} : vector<256x8xbf16>, vector<8x8xbf16>, vector<256x8xf32> -> vector<256x8xf32>
    %42 = arith.addf %36, %41 : vector<256x8xf32>
    %c0_38 = arith.constant 0 : index
    %c33 = arith.constant 33 : index
    %c0_39 = arith.constant 0 : index
    %43 = vector.load %arg1[%c0_38, %c33, %c0_39] : memref<1x304x8xbf16, #tpu.memory_space<vmem>>, vector<1x256x8xbf16>
    %44 = vector.shape_cast %43 : vector<1x256x8xbf16> to vector<256x8xbf16>
    %c7 = arith.constant 7 : index
    %c0_40 = arith.constant 0 : index
    %c0_41 = arith.constant 0 : index
    %45 = vector.load %arg2[%c7, %c0_40, %c0_41] : memref<9x8x8xbf16, #tpu.memory_space<vmem>>, vector<1x8x8xbf16>
    %46 = vector.shape_cast %45 : vector<1x8x8xbf16> to vector<8x8xbf16>
    %cst_42 = arith.constant dense<0.000000e+00> : vector<256x8xf32>
    %47 = tpu.matmul %44, %46, %cst_42 {dimension_numbers = #tpu.dot_dimension_numbers<[1], [0], [0], [1], [0, 0, 1, 1], [], []>} : vector<256x8xbf16>, vector<8x8xbf16>, vector<256x8xf32> -> vector<256x8xf32>
    %48 = arith.addf %42, %47 : vector<256x8xf32>
    %c0_43 = arith.constant 0 : index
    %c34 = arith.constant 34 : index
    %c0_44 = arith.constant 0 : index
    %49 = vector.load %arg1[%c0_43, %c34, %c0_44] : memref<1x304x8xbf16, #tpu.memory_space<vmem>>, vector<1x256x8xbf16>
    %50 = vector.shape_cast %49 : vector<1x256x8xbf16> to vector<256x8xbf16>
    %c8 = arith.constant 8 : index
    %c0_45 = arith.constant 0 : index
    %c0_46 = arith.constant 0 : index
    %51 = vector.load %arg2[%c8, %c0_45, %c0_46] : memref<9x8x8xbf16, #tpu.memory_space<vmem>>, vector<1x8x8xbf16>
    %52 = vector.shape_cast %51 : vector<1x8x8xbf16> to vector<8x8xbf16>
    %cst_47 = arith.constant dense<0.000000e+00> : vector<256x8xf32>
    %53 = tpu.matmul %50, %52, %cst_47 {dimension_numbers = #tpu.dot_dimension_numbers<[1], [0], [0], [1], [0, 0, 1, 1], [], []>} : vector<256x8xbf16>, vector<8x8xbf16>, vector<256x8xf32> -> vector<256x8xf32>
    %54 = arith.addf %48, %53 : vector<256x8xf32>
    %c0_48 = arith.constant 0 : index
    %c0_49 = arith.constant 0 : index
    %55 = vector.load %arg3[%c0_48, %c0_49] : memref<1x8xf32, #tpu.memory_space<vmem>>, vector<1x8xf32>
    %56 = vector.broadcast %55 : vector<1x8xf32> to vector<256x8xf32>
    %57 = arith.mulf %54, %56 : vector<256x8xf32>
    %c0_50 = arith.constant 0 : index
    %c0_51 = arith.constant 0 : index
    %58 = vector.load %arg4[%c0_50, %c0_51] : memref<1x8xf32, #tpu.memory_space<vmem>>, vector<1x8xf32>
    %59 = vector.broadcast %58 : vector<1x8xf32> to vector<256x8xf32>
    %60 = arith.addf %57, %59 : vector<256x8xf32>
    %cst_52 = arith.constant 1.000000e+00 : f32
    %61 = vector.broadcast %cst_52 : f32 to vector<256x8xf32>
    %62 = arith.cmpf oge, %60, %61 : vector<256x8xf32>
    %63 = arith.extui %62 : vector<256x8xi1> to vector<256x8xi32>
    %64 = arith.sitofp %63 : vector<256x8xi32> to vector<256x8xf32>
    %65 = arith.truncf %64 : vector<256x8xf32> to vector<256x8xbf16>
    %c0_53 = arith.constant 0 : index
    %c0_54 = arith.constant 0 : index
    %c0_55 = arith.constant 0 : index
    %66 = vector.load %arg5[%c0_53, %c0_54, %c0_55] : memref<1x256x8xbf16, #tpu.memory_space<vmem>>, vector<1x256x8xbf16>
    %67 = vector.shape_cast %66 : vector<1x256x8xbf16> to vector<256x8xbf16>
    %68 = vector.shape_cast %65 : vector<256x8xbf16> to vector<1x256x8xbf16>
    tpu.vector_store %arg5[%c0_53, %c0_54, %c0_55], %68 {strides = array<i32>} : memref<1x256x8xbf16, #tpu.memory_space<vmem>>, vector<1x256x8xbf16>,
    return
  }
  func.func @transform_0(%arg0: i32) -> (i32, i32, i32) {
    %c0_i32 = arith.constant 0 : i32
    %c0_i32_0 = arith.constant 0 : i32
    %c0_i32_1 = arith.constant 0 : i32
    return %arg0, %c0_i32, %c0_i32_0 : i32, i32, i32
  }
  func.func @transform_1(%arg0: i32) -> (i32, i32, i32) {
    %c0_i32 = arith.constant 0 : i32
    %c0_i32_0 = arith.constant 0 : i32
    %c0_i32_1 = arith.constant 0 : i32
    %c0_i32_2 = arith.constant 0 : i32
    return %c0_i32, %c0_i32_0, %c0_i32_1 : i32, i32, i32
  }
  func.func @transform_2(%arg0: i32) -> (i32, i32) {
    %c0_i32 = arith.constant 0 : i32
    %c0_i32_0 = arith.constant 0 : i32
    %c0_i32_1 = arith.constant 0 : i32
    return %c0_i32, %c0_i32_0 : i32, i32
  }
  func.func @transform_3(%arg0: i32) -> (i32, i32) {
    %c0_i32 = arith.constant 0 : i32
    %c0_i32_0 = arith.constant 0 : i32
    %c0_i32_1 = arith.constant 0 : i32
    return %c0_i32, %c0_i32_0 : i32, i32
  }
  func.func @transform_4(%arg0: i32) -> (i32, i32, i32) {
    %c0_i32 = arith.constant 0 : i32
    %c0_i32_0 = arith.constant 0 : i32
    %c0_i32_1 = arith.constant 0 : i32
    return %arg0, %c0_i32, %c0_i32_0 : i32, i32, i32
  }
}

module attributes {stable_mosaic.version = 11 : i64} {
  func.func @_maxpool_kernel(%arg0: i32, %arg1: memref<14x2x7x16xbf16, #tpu.memory_space<vmem>>, %arg2: memref<14x7x8xbf16, #tpu.memory_space<vmem>>) attributes {dimension_semantics = [#tpu.dimension_semantics<parallel>], iteration_bounds = array<i64: 1>, scalar_prefetch = 0 : i64, scratch_operands = 0 : i64, tpu.core_type = #tpu.core_type<tc>, window_params = [{transform_indices = @transform_0, window_bounds = array<i64: 14, 2, 7, 16>}, {transform_indices = @transform_1, window_bounds = array<i64: 14, 7, 8>}]} {
    %c0 = arith.constant 0 : index
    %c0_0 = arith.constant 0 : index
    %c0_1 = arith.constant 0 : index
    %c0_2 = arith.constant 0 : index
    %0 = vector.load %arg1[%c0, %c0_0, %c0_1, %c0_2] : memref<14x2x7x16xbf16, #tpu.memory_space<vmem>>, vector<14x2x7x16xbf16>
    %1 = vector.extract_strided_slice %0 {offsets = [0, 0, 0, 0], sizes = [14, 1, 7, 16], strides = [1, 1, 1, 1]} : vector<14x2x7x16xbf16> to vector<14x1x7x16xbf16>
    %2 = vector.shape_cast %1 : vector<14x1x7x16xbf16> to vector<14x7x16xbf16>
    %3 = vector.extract_strided_slice %0 {offsets = [0, 1, 0, 0], sizes = [14, 1, 7, 16], strides = [1, 1, 1, 1]} : vector<14x2x7x16xbf16> to vector<14x1x7x16xbf16>
    %4 = vector.shape_cast %3 : vector<14x1x7x16xbf16> to vector<14x7x16xbf16>
    %5 = arith.maximumf %2, %4 : vector<14x7x16xbf16>
    %6 = vector.extract_strided_slice %5 {offsets = [0, 0, 0], sizes = [14, 7, 8], strides = [1, 1, 1]} : vector<14x7x16xbf16> to vector<14x7x8xbf16>
    %7 = vector.extract_strided_slice %5 {offsets = [0, 0, 8], sizes = [14, 7, 8], strides = [1, 1, 1]} : vector<14x7x16xbf16> to vector<14x7x8xbf16>
    %8 = arith.maximumf %6, %7 : vector<14x7x8xbf16>
    %c0_3 = arith.constant 0 : index
    %c0_4 = arith.constant 0 : index
    %c0_5 = arith.constant 0 : index
    %9 = vector.load %arg2[%c0_3, %c0_4, %c0_5] : memref<14x7x8xbf16, #tpu.memory_space<vmem>>, vector<14x7x8xbf16>
    tpu.vector_store %arg2[%c0_3, %c0_4, %c0_5], %8 {strides = array<i32>} : memref<14x7x8xbf16, #tpu.memory_space<vmem>>, vector<14x7x8xbf16>,
    return
  }
  func.func @transform_0(%arg0: i32) -> (i32, i32, i32, i32) {
    %c0_i32 = arith.constant 0 : i32
    %c0_i32_0 = arith.constant 0 : i32
    %c0_i32_1 = arith.constant 0 : i32
    %c0_i32_2 = arith.constant 0 : i32
    return %arg0, %c0_i32, %c0_i32_0, %c0_i32_1 : i32, i32, i32, i32
  }
  func.func @transform_1(%arg0: i32) -> (i32, i32, i32) {
    %c0_i32 = arith.constant 0 : i32
    %c0_i32_0 = arith.constant 0 : i32
    %c0_i32_1 = arith.constant 0 : i32
    return %arg0, %c0_i32, %c0_i32_0 : i32, i32, i32
  }
}

module attributes {stable_mosaic.version = 11 : i64} {
  func.func @_matmul_lif_kernel(%arg0: i32, %arg1: i32, %arg2: i32, %arg3: memref<16x392xbf16, #tpu.memory_space<vmem>>, %arg4: memref<392x512xbf16, #tpu.memory_space<vmem>>, %arg5: memref<1x512xf32, #tpu.memory_space<vmem>>, %arg6: memref<1x512xf32, #tpu.memory_space<vmem>>, %arg7: memref<16x512xbf16, #tpu.memory_space<vmem>>, %arg8: memref<16x512xf32, #tpu.memory_space<vmem>>) attributes {dimension_semantics = [#tpu.dimension_semantics<parallel>, #tpu.dimension_semantics<parallel>, #tpu.dimension_semantics<arbitrary>], iteration_bounds = array<i64: 1, 4, 1>, scalar_prefetch = 0 : i64, scratch_operands = 1 : i64, tpu.core_type = #tpu.core_type<tc>, window_params = [{transform_indices = @transform_0, window_bounds = array<i64: 16, 392>}, {transform_indices = @transform_1, window_bounds = array<i64: 392, 512>}, {transform_indices = @transform_2, window_bounds = array<i64: 1, 512>}, {transform_indices = @transform_3, window_bounds = array<i64: 1, 512>}, {transform_indices = @transform_4, window_bounds = array<i64: 16, 512>}]} {
    %c0_i32 = arith.constant 0 : i32
    %0 = arith.cmpi eq, %arg2, %c0_i32 : i32
    %1 = arith.extui %0 : i1 to i32
    %c0_i32_0 = arith.constant 0 : i32
    %2 = arith.cmpi ne, %1, %c0_i32_0 : i32
    scf.if %2 {
      %cst_10 = arith.constant 0.000000e+00 : f32
      %12 = vector.broadcast %cst_10 : f32 to vector<16x512xf32>
      %c0_11 = arith.constant 0 : index
      %c0_12 = arith.constant 0 : index
      %13 = vector.load %arg8[%c0_11, %c0_12] : memref<16x512xf32, #tpu.memory_space<vmem>>, vector<16x512xf32>
      tpu.vector_store %arg8[%c0_11, %c0_12], %12 {strides = array<i32>} : memref<16x512xf32, #tpu.memory_space<vmem>>, vector<16x512xf32>,
    } else {
    }
    %c0 = arith.constant 0 : index
    %c0_1 = arith.constant 0 : index
    %3 = vector.load %arg8[%c0, %c0_1] : memref<16x512xf32, #tpu.memory_space<vmem>>, vector<16x512xf32>
    %c0_2 = arith.constant 0 : index
    %c0_3 = arith.constant 0 : index
    %4 = vector.load %arg3[%c0_2, %c0_3] : memref<16x392xbf16, #tpu.memory_space<vmem>>, vector<16x392xbf16>
    %c0_4 = arith.constant 0 : index
    %c0_5 = arith.constant 0 : index
    %5 = vector.load %arg4[%c0_4, %c0_5] : memref<392x512xbf16, #tpu.memory_space<vmem>>, vector<392x512xbf16>
    %cst = arith.constant dense<0.000000e+00> : vector<16x512xf32>
    %6 = tpu.matmul %4, %5, %cst {dimension_numbers = #tpu.dot_dimension_numbers<[1], [0], [0], [1], [0, 0, 1, 1], [], []>} : vector<16x392xbf16>, vector<392x512xbf16>, vector<16x512xf32> -> vector<16x512xf32>
    %7 = arith.addf %3, %6 : vector<16x512xf32>
    %c0_6 = arith.constant 0 : index
    %c0_7 = arith.constant 0 : index
    %8 = vector.load %arg8[%c0_6, %c0_7] : memref<16x512xf32, #tpu.memory_space<vmem>>, vector<16x512xf32>
    tpu.vector_store %arg8[%c0_6, %c0_7], %7 {strides = array<i32>} : memref<16x512xf32, #tpu.memory_space<vmem>>, vector<16x512xf32>,
    %c0_i32_8 = arith.constant 0 : i32
    %9 = arith.cmpi eq, %arg2, %c0_i32_8 : i32
    %10 = arith.extui %9 : i1 to i32
    %c0_i32_9 = arith.constant 0 : i32
    %11 = arith.cmpi ne, %10, %c0_i32_9 : i32
    scf.if %11 {
      %c0_10 = arith.constant 0 : index
      %c0_11 = arith.constant 0 : index
      %12 = vector.load %arg8[%c0_10, %c0_11] : memref<16x512xf32, #tpu.memory_space<vmem>>, vector<16x512xf32>
      %c0_12 = arith.constant 0 : index
      %c0_13 = arith.constant 0 : index
      %13 = vector.load %arg5[%c0_12, %c0_13] : memref<1x512xf32, #tpu.memory_space<vmem>>, vector<1x512xf32>
      %14 = vector.broadcast %13 : vector<1x512xf32> to vector<16x512xf32>
      %15 = arith.mulf %12, %14 : vector<16x512xf32>
      %c0_14 = arith.constant 0 : index
      %c0_15 = arith.constant 0 : index
      %16 = vector.load %arg6[%c0_14, %c0_15] : memref<1x512xf32, #tpu.memory_space<vmem>>, vector<1x512xf32>
      %17 = vector.broadcast %16 : vector<1x512xf32> to vector<16x512xf32>
      %18 = arith.addf %15, %17 : vector<16x512xf32>
      %cst_16 = arith.constant 1.000000e+00 : f32
      %19 = vector.broadcast %cst_16 : f32 to vector<16x512xf32>
      %20 = arith.cmpf oge, %18, %19 : vector<16x512xf32>
      %21 = arith.extui %20 : vector<16x512xi1> to vector<16x512xi32>
      %22 = arith.sitofp %21 : vector<16x512xi32> to vector<16x512xf32>
      %23 = arith.truncf %22 : vector<16x512xf32> to vector<16x512xbf16>
      %c0_17 = arith.constant 0 : index
      %c0_18 = arith.constant 0 : index
      %24 = vector.load %arg7[%c0_17, %c0_18] : memref<16x512xbf16, #tpu.memory_space<vmem>>, vector<16x512xbf16>
      tpu.vector_store %arg7[%c0_17, %c0_18], %23 {strides = array<i32>} : memref<16x512xbf16, #tpu.memory_space<vmem>>, vector<16x512xbf16>,
    } else {
    }
    return
  }
  func.func @transform_0(%arg0: i32, %arg1: i32, %arg2: i32) -> (i32, i32) {
    %c0_i32 = arith.constant 0 : i32
    return %arg0, %arg2 : i32, i32
  }
  func.func @transform_1(%arg0: i32, %arg1: i32, %arg2: i32) -> (i32, i32) {
    %c0_i32 = arith.constant 0 : i32
    return %arg2, %arg1 : i32, i32
  }
  func.func @transform_2(%arg0: i32, %arg1: i32, %arg2: i32) -> (i32, i32) {
    %c0_i32 = arith.constant 0 : i32
    %c0_i32_0 = arith.constant 0 : i32
    return %c0_i32, %arg1 : i32, i32
  }
  func.func @transform_3(%arg0: i32, %arg1: i32, %arg2: i32) -> (i32, i32) {
    %c0_i32 = arith.constant 0 : i32
    %c0_i32_0 = arith.constant 0 : i32
    return %c0_i32, %arg1 : i32, i32
  }
  func.func @transform_4(%arg0: i32, %arg1: i32, %arg2: i32) -> (i32, i32) {
    %c0_i32 = arith.constant 0 : i32
    return %arg0, %arg1 : i32, i32
  }
}

module attributes {stable_mosaic.version = 11 : i64} {
  func.func @_fc_lif_vote_kernel(%arg0: i32, %arg1: memref<16x2048xbf16, #tpu.memory_space<vmem>>, %arg2: memref<2048x128xbf16, #tpu.memory_space<vmem>>, %arg3: memref<1x128xf32, #tpu.memory_space<vmem>>, %arg4: memref<128x128xbf16, #tpu.memory_space<vmem>>, %arg5: memref<16x128xf32, #tpu.memory_space<vmem>>) attributes {dimension_semantics = [#tpu.dimension_semantics<parallel>], iteration_bounds = array<i64: 1>, scalar_prefetch = 0 : i64, scratch_operands = 0 : i64, tpu.core_type = #tpu.core_type<tc>, window_params = [{transform_indices = @transform_0, window_bounds = array<i64: 16, 2048>}, {pipeline_mode = #tpu.pipeline_mode<synchronous>, transform_indices = @transform_1, window_bounds = array<i64: 2048, 128>}, {pipeline_mode = #tpu.pipeline_mode<synchronous>, transform_indices = @transform_2, window_bounds = array<i64: 1, 128>}, {pipeline_mode = #tpu.pipeline_mode<synchronous>, transform_indices = @transform_3, window_bounds = array<i64: 128, 128>}, {transform_indices = @transform_4, window_bounds = array<i64: 16, 128>}]} {
    %c0 = arith.constant 0 : index
    %c0_0 = arith.constant 0 : index
    %0 = vector.load %arg1[%c0, %c0_0] : memref<16x2048xbf16, #tpu.memory_space<vmem>>, vector<16x2048xbf16>
    %c0_1 = arith.constant 0 : index
    %c0_2 = arith.constant 0 : index
    %1 = vector.load %arg2[%c0_1, %c0_2] : memref<2048x128xbf16, #tpu.memory_space<vmem>>, vector<2048x128xbf16>
    %cst = arith.constant dense<0.000000e+00> : vector<16x128xf32>
    %2 = tpu.matmul %0, %1, %cst {dimension_numbers = #tpu.dot_dimension_numbers<[1], [0], [0], [1], [0, 0, 1, 1], [], []>} : vector<16x2048xbf16>, vector<2048x128xbf16>, vector<16x128xf32> -> vector<16x128xf32>
    %cst_3 = arith.constant 5.000000e-01 : f32
    %3 = vector.broadcast %cst_3 : f32 to vector<16x128xf32>
    %4 = arith.mulf %2, %3 : vector<16x128xf32>
    %c0_4 = arith.constant 0 : index
    %c0_5 = arith.constant 0 : index
    %5 = vector.load %arg3[%c0_4, %c0_5] : memref<1x128xf32, #tpu.memory_space<vmem>>, vector<1x128xf32>
    %6 = vector.broadcast %5 : vector<1x128xf32> to vector<16x128xf32>
    %7 = arith.addf %4, %6 : vector<16x128xf32>
    %cst_6 = arith.constant 1.000000e+00 : f32
    %8 = vector.broadcast %cst_6 : f32 to vector<16x128xf32>
    %9 = arith.cmpf oge, %7, %8 : vector<16x128xf32>
    %10 = arith.extui %9 : vector<16x128xi1> to vector<16x128xi32>
    %11 = arith.sitofp %10 : vector<16x128xi32> to vector<16x128xf32>
    %12 = arith.truncf %11 : vector<16x128xf32> to vector<16x128xbf16>
    %c0_7 = arith.constant 0 : index
    %c0_8 = arith.constant 0 : index
    %13 = vector.load %arg4[%c0_7, %c0_8] : memref<128x128xbf16, #tpu.memory_space<vmem>>, vector<128x128xbf16>
    %cst_9 = arith.constant dense<0.000000e+00> : vector<16x128xf32>
    %14 = tpu.matmul %12, %13, %cst_9 {dimension_numbers = #tpu.dot_dimension_numbers<[1], [0], [0], [1], [0, 0, 1, 1], [], []>} : vector<16x128xbf16>, vector<128x128xbf16>, vector<16x128xf32> -> vector<16x128xf32>
    %cst_10 = arith.constant 1.000000e-01 : f32
    %15 = vector.broadcast %cst_10 : f32 to vector<16x128xf32>
    %16 = arith.mulf %14, %15 : vector<16x128xf32>
    %c0_11 = arith.constant 0 : index
    %c0_12 = arith.constant 0 : index
    %17 = vector.load %arg5[%c0_11, %c0_12] : memref<16x128xf32, #tpu.memory_space<vmem>>, vector<16x128xf32>
    tpu.vector_store %arg5[%c0_11, %c0_12], %16 {strides = array<i32>} : memref<16x128xf32, #tpu.memory_space<vmem>>, vector<16x128xf32>,
    return
  }
  func.func @transform_0(%arg0: i32) -> (i32, i32) {
    %c0_i32 = arith.constant 0 : i32
    %c0_i32_0 = arith.constant 0 : i32
    return %arg0, %c0_i32 : i32, i32
  }
  func.func @transform_1(%arg0: i32) -> (i32, i32) {
    %c0_i32 = arith.constant 0 : i32
    %c0_i32_0 = arith.constant 0 : i32
    %c0_i32_1 = arith.constant 0 : i32
    return %c0_i32, %c0_i32_0 : i32, i32
  }
  func.func @transform_2(%arg0: i32) -> (i32, i32) {
    %c0_i32 = arith.constant 0 : i32
    %c0_i32_0 = arith.constant 0 : i32
    %c0_i32_1 = arith.constant 0 : i32
    return %c0_i32, %c0_i32_0 : i32, i32
  }
  func.func @transform_3(%arg0: i32) -> (i32, i32) {
    %c0_i32 = arith.constant 0 : i32
    %c0_i32_0 = arith.constant 0 : i32
    %c0_i32_1 = arith.constant 0 : i32
    return %c0_i32, %c0_i32_0 : i32, i32
  }
  func.func @transform_4(%arg0: i32) -> (i32, i32) {
    %c0_i32 = arith.constant 0 : i32
    %c0_i32_0 = arith.constant 0 : i32
    return %arg0, %c0_i32 : i32, i32
  }
}

</mosaic_0001>

<bundles_post_ra>
// kernel: mnist_net_forward.7
= control target key start
LH: loop header
LB: loop body
LE: loop exit
PB: predicated region body
PF: predicated region fallthrough
CT: control target
= control target key end

     0   :  { %s939_s27 = smov 120   ;;  %vm738_vm0 = vcmask 59392   ;;  %vm736_vm1 = vcmask 60416   ;;  %s1762_s0 = inlined_call_operand.vmem [shape: bf16[28,2,14,16], index: 0, kind: input, shape index: {}]   ;;  %s1763_s1 = inlined_call_operand.vmem [shape: bf16[28,14,8], index: 1, kind: output, shape index: {}]  }
   0x1   :  { %v8_v0 = vld [vmem:[%s1762_s0] sm:$0xf]  ;;  %v9_v1 = vld [vmem:[%s1762_s0 + $0x4] sm:$0x7]  ;;  %v10_v2 = vld [vmem:[%s1762_s0 + $0x8] sm:$0xf] }
   0x2   :  { %v11_v3 = vld [vmem:[%s1762_s0 + $0xc] sm:$0x7]  ;;  %v120_v4 = vunpack.c.l.bf16 %v8_v0  ;;  %v121_v5 = vunpack.c.l.bf16 %v9_v1  ;;  %v176_v6 = vunpack.c.l.bf16 %v10_v2  ;;  %v16_v7 = vld [vmem:[%s1762_s0 + $0x20] sm:$0xf]  ;;  %v17_v8 = vld [vmem:[%s1762_s0 + $0x24] sm:$0x7] }
   0x3   :  { %v177_v9 = vunpack.c.l.bf16 %v11_v3  ;;  %v18_v10 = vld [vmem:[%s1762_s0 + $0x28] sm:$0xf]  ;;  %v19_v11 = vld [vmem:[%s1762_s0 + $0x2c] sm:$0x7]  ;;  %v124_v12 = vunpack.c.l.bf16 %v16_v7  ;;  %v125_v13 = vunpack.c.l.bf16 %v17_v8  ;;  %v12_v14 = vld [vmem:[%s1762_s0 + $0x10] sm:$0xf] }
   0x4   :  { %v977_v15 = vmax.f32 %v120_v4, %v176_v6  ;;  %v180_v16 = vunpack.c.l.bf16 %v18_v10  ;;  %v181_v17 = vunpack.c.l.bf16 %v19_v11  ;;  %v13_v18 = vld [vmem:[%s1762_s0 + $0x14] sm:$0x7]  ;;  %v14_v19 = vld [vmem:[%s1762_s0 + $0x18] sm:$0xf]  ;;  %v15_v20 = vld [vmem:[%s1762_s0 + $0x1c] sm:$0x7]  ;;  %v122_v21 = vunpack.c.l.bf16 %v12_v14 }
   0x5   :  { %v988_v22 = vmax.f32 %v121_v5, %v177_v9  ;;  %v123_v23 = vunpack.c.l.bf16 %v13_v18  ;;  %v178_v24 = vunpack.c.l.bf16 %v14_v19  ;;  %v179_v25 = vunpack.c.l.bf16 %v15_v20  ;;  %v20_v26 = vld [vmem:[%s1762_s0 + $0x30] sm:$0xf]  ;;  %v21_v27 = vld [vmem:[%s1762_s0 + $0x34] sm:$0x7]  ;;  %v22_v28 = vld [vmem:[%s1762_s0 + $0x38] sm:$0xf] }
   0x6   :  { %v999_v29 = vmax.f32 %v124_v12, %v180_v16  ;;  %v1001_v30 = vmax.f32 %v125_v13, %v181_v17  ;;  %v23_v31 = vld [vmem:[%s1762_s0 + $0x3c] sm:$0x7]  ;;  %v126_v32 = vunpack.c.l.bf16 %v20_v26  ;;  %v127_v35 = vunpack.c.l.bf16 %v21_v27  ;;  %v32_v36 = vld [vmem:[%s1762_s0 + $0x60] sm:$0xf]  ;;  %v33_v39 = vld [vmem:[%s1762_s0 + $0x64] sm:$0x7] }
   0x7   :  { %v1006_v33 = vmax.f32 %v122_v21, %v178_v24  ;;  %v1008_v34 = vmax.f32 %v123_v23, %v179_v25  ;;  %v182_v37 = vunpack.c.l.bf16 %v22_v28  ;;  %v183_v38 = vunpack.c.l.bf16 %v23_v31  ;;  %v34_v40 = vld [vmem:[%s1762_s0 + $0x68] sm:$0xf]  ;;  %v35_v42 = vld [vmem:[%s1762_s0 + $0x6c] sm:$0x7]  ;;  %v36_v44 = vld [vmem:[%s1762_s0 + $0x70] sm:$0xf] }
   0x8   :  { %v132_v43 = vunpack.c.l.bf16 %v32_v36  ;;  %v799_v45 = vpack.i.bf16 %v988_v22, %v977_v15  ;;  %v37_v47 = vld [vmem:[%s1762_s0 + $0x74] sm:$0x7]  ;;  %v38_v48 = vld [vmem:[%s1762_s0 + $0x78] sm:$0xf]  ;;  %v809_v49 = vpack.i.bf16 %v1001_v30, %v999_v29  ;;  %v133_v50 = vunpack.c.l.bf16 %v33_v39  ;;  %v39_v52 = vld [vmem:[%s1762_s0 + $0x7c] sm:$0x7] }
   0x9   :  { %v1019_v41 = vmax.f32 %v126_v32, %v182_v37  ;;  %v1029_v46 = vmax.f32 %v127_v35, %v183_v38  ;;  %v188_v51 = vunpack.c.l.bf16 %v34_v40  ;;  %v44_v53 = vld [vmem:[%s1762_s0 + $0x90] sm:$0xf]  ;;  %v804_v54 = vpack.i.bf16 %v1008_v34, %v1006_v33  ;;  %v45_v57 = vld [vmem:[%s1762_s0 + $0x94] sm:$0x7]  ;;  %v46_v58 = vld [vmem:[%s1762_s0 + $0x98] sm:$0xf] }
   0xa   :  { %800 = vrot.lane.b32.xlu0 %v799_v45, %s939_s27  ;;  %v189_v55 = vunpack.c.l.bf16 %v35_v42  ;;  %v134_v56 = vunpack.c.l.bf16 %v36_v44  ;;  %810 = vrot.lane.b32.xlu1 %v809_v49, %s939_s27  ;;  %v135_v60 = vunpack.c.l.bf16 %v37_v47  ;;  %v190_v61 = vunpack.c.l.bf16 %v38_v48  ;;  %v47_v62 = vld [vmem:[%s1762_s0 + $0x9c] sm:$0x7]  ;;  %v24_v2 = vld [vmem:[%s1762_s0 + $0x40] sm:$0xf] }
   0xb   :  { %v1055_v59 = vmax.f32 %v132_v43, %v188_v51  ;;  %v191_v0 = vunpack.c.l.bf16 %v39_v52  ;;  %v138_v1 = vunpack.c.l.bf16 %v44_v53  ;;  %v139_v4 = vunpack.c.l.bf16 %v45_v57  ;;  %v25_v6 = vld [vmem:[%s1762_s0 + $0x44] sm:$0x7]  ;;  %v26_v10 = vld [vmem:[%s1762_s0 + $0x48] sm:$0xf]  ;;  %v27_v11 = vld [vmem:[%s1762_s0 + $0x4c] sm:$0x7] }
   0xc   :  { %v1060_v63 = vmax.f32 %v133_v50, %v189_v55  ;;  %v1065_v3 = vmax.f32 %v134_v56, %v190_v61  ;;  %v194_v5 = vunpack.c.l.bf16 %v46_v58  ;;  %v814_v7 = vpack.i.bf16 %v1029_v46, %v1019_v41  ;;  %v48_v14 = vld [vmem:[%s1762_s0 + $0xa0] sm:$0xf]  ;;  %v49_v18 = vld [vmem:[%s1762_s0 + $0xa4] sm:$0x7]  ;;  %v50_v21 = vld [vmem:[%s1762_s0 + $0xa8] sm:$0xf] }
   0xd   :  { %v1072_v8 = vmax.f32 %v135_v60, %v191_v0  ;;  %v195_v9 = vunpack.c.l.bf16 %v47_v62  ;;  %v128_v13 = vunpack.c.l.bf16 %v24_v2  ;;  %v129_v17 = vunpack.c.l.bf16 %v25_v6  ;;  %v51_v23 = vld [vmem:[%s1762_s0 + $0xac] sm:$0x7]  ;;  %v56_v25 = vld [vmem:[%s1762_s0 + $0xc0] sm:$0xf]  ;;  %v57_v26 = vld [vmem:[%s1762_s0 + $0xc4] sm:$0x7] }
   0xe   :  { %v1080_v12 = vmax.f32 %v138_v1, %v194_v5  ;;  %v184_v19 = vunpack.c.l.bf16 %v26_v10  ;;  %v185_v20 = vunpack.c.l.bf16 %v27_v11  ;;  %v140_v24 = vunpack.c.l.bf16 %v48_v14  ;;  %v58_v35 = vld [vmem:[%s1762_s0 + $0xc8] sm:$0xf]  ;;  %v59_v39 = vld [vmem:[%s1762_s0 + $0xcc] sm:$0x7]  ;;  %v28_v40 = vld [vmem:[%s1762_s0 + $0x50] sm:$0xf] }
   0xf   :  { %v1085_v16 = vmax.f32 %v139_v4, %v195_v9  ;;  %v829_v27 = vpack.i.bf16 %v1060_v63, %v1055_v59  ;;  %v141_v32 = vunpack.c.l.bf16 %v49_v18  ;;  %v834_v36 = vpack.i.bf16 %v1072_v8, %v1065_v3  ;;  %v29_v44 = vld [vmem:[%s1762_s0 + $0x54] sm:$0x7]  ;;  %v30_v49 = vld [vmem:[%s1762_s0 + $0x58] sm:$0xf]  ;;  %v31_v50 = vld [vmem:[%s1762_s0 + $0x5c] sm:$0x7] }
  0x10   :  { %v1106_v28 = vmax.f32 %v128_v13, %v184_v19  ;;  %v1108_v31 = vmax.f32 %v129_v17, %v185_v20  ;;  %v196_v37 = vunpack.c.l.bf16 %v50_v21  ;;  %v197_v38 = vunpack.c.l.bf16 %v51_v23  ;;  %v60_v53 = vld [vmem:[%s1762_s0 + $0xd0] sm:$0xf]  ;;  %v61_v56 = vld [vmem:[%s1762_s0 + $0xd4] sm:$0x7]  ;;  %v62_v62 = vld [vmem:[%s1762_s0 + $0xd8] sm:$0xf] }
  0x11   :  { %v144_v42 = vunpack.c.l.bf16 %v56_v25  ;;  %v145_v43 = vunpack.c.l.bf16 %v57_v26  ;;  %v200_v48 = vunpack.c.l.bf16 %v58_v35  ;;  %v201_v51 = vunpack.c.l.bf16 %v59_v39  ;;  %v63_v0 = vld [vmem:[%s1762_s0 + $0xdc] sm:$0x7]  ;;  %v68_v2 = vld [vmem:[%s1762_s0 + $0xf0] sm:$0xf]  ;;  %v70_v9 = vld [vmem:[%s1762_s0 + $0xf8] sm:$0xf] }
  0x12   :  { %805 = vrot.lane.b32.xlu0 %v804_v54, %s939_s27  ;;  %815 = vrot.lane.b32.xlu1 %v814_v7, %s939_s27  ;;  %v1124_v45 = vmax.f32 %v140_v24, %v196_v37  ;;  %v1126_v47 = vmax.f32 %v141_v32, %v197_v38  ;;  %v130_v52 = vunpack.c.l.bf16 %v28_v40  ;;  %v131_v55 = vunpack.c.l.bf16 %v29_v44  ;;  %v69_v7 = vld [vmem:[%s1762_s0 + $0xf4] sm:$0x7]  ;;  %v71_v17 = vld [vmem:[%s1762_s0 + $0xfc] sm:$0x7] }
  0x13   :  { %v1137_v54 = vmax.f32 %v144_v42, %v200_v48  ;;  %v819_v57 = vpack.i.bf16 %v1108_v31, %v1106_v28  ;;  %v1144_v58 = vmax.f32 %v145_v43, %v201_v51  ;;  %v186_v60 = vunpack.c.l.bf16 %v30_v49  ;;  %v40_v19 = vld [vmem:[%s1762_s0 + $0x80] sm:$0xf]  ;;  %v41_v25 = vld [vmem:[%s1762_s0 + $0x84] sm:$0x7]  ;;  %v42_v26 = vld [vmem:[%s1762_s0 + $0x88] sm:$0xf] }
  0x14   :  { %v187_v61 = vunpack.c.l.bf16 %v31_v50  ;;  %v146_v1 = vunpack.c.l.bf16 %v60_v53  ;;  %v147_v6 = vunpack.c.l.bf16 %v61_v56  ;;  %v844_v10 = vpack.i.bf16 %v1085_v16, %v1080_v12  ;;  %v43_v32 = vld [vmem:[%s1762_s0 + $0x8c] sm:$0x7]  ;;  %v72_v37 = vld [vmem:[%s1762_s0 + $0x100] sm:$0xf]  ;;  %v73_v38 = vld [vmem:[%s1762_s0 + $0x104] sm:$0x7] }
  0x15   :  { %820 = vrot.lane.b32.xlu2 %v819_v57, %s939_s27  ;;  %v1158_v4 = vmax.f32 %v130_v52, %v186_v60  ;;  %v849_v11 = vpack.i.bf16 %v1126_v47, %v1124_v45  ;;  %v202_v13 = vunpack.c.l.bf16 %v62_v62  ;;  %v203_v14 = vunpack.c.l.bf16 %v63_v0  ;;  %v74_v44 = vld [vmem:[%s1762_s0 + $0x108] sm:$0xf]  ;;  %v75_v49 = vld [vmem:[%s1762_s0 + $0x10c] sm:$0x7]  ;;  %v80_v50 = vld [vmem:[%s1762_s0 + $0x120] sm:$0xf] }
  0x16   :  { %v1160_v5 = vmax.f32 %v131_v55, %v187_v61  ;;  %v150_v18 = vunpack.c.l.bf16 %v68_v2  ;;  %v151_v23 = vunpack.c.l.bf16 %v69_v7  ;;  %v206_v24 = vunpack.c.l.bf16 %v70_v9  ;;  %v81_v55 = vld [vmem:[%s1762_s0 + $0x124] sm:$0x7]  ;;  %v82_v56 = vld [vmem:[%s1762_s0 + $0x128] sm:$0xf]  ;;  %v83_v0 = vld [vmem:[%s1762_s0 + $0x12c] sm:$0x7] }
  0x17   :  { %v1178_v20 = vmax.f32 %v146_v1, %v202_v13  ;;  %v1180_v21 = vmax.f32 %v147_v6, %v203_v14  ;;  %v137_v42 = vunpack.c.l.bf16 %v41_v25  ;;  %v192_v43 = vunpack.c.l.bf16 %v42_v26  ;;  %v52_v6 = vld [vmem:[%s1762_s0 + $0xb0] sm:$0xf]  ;;  %v54_v13 = vld [vmem:[%s1762_s0 + $0xb8] sm:$0xf] }
  0x18   :  { %v1191_v35 = vmax.f32 %v150_v18, %v206_v24  ;;  %v824_v39 = vpack.i.bf16 %v1160_v5, %v1158_v4  ;;  %v193_v48 = vunpack.c.l.bf16 %v43_v32  ;;  %v152_v52 = vunpack.c.l.bf16 %v72_v37  ;;  %v55_v18 = vld [vmem:[%s1762_s0 + $0xbc] sm:$0x7]  ;;  %v84_v24 = vld [vmem:[%s1762_s0 + $0x130] sm:$0xf]  ;;  %v85_v32 = vld [vmem:[%s1762_s0 + $0x134] sm:$0x7] }
  0x19   :  { %v153_v53 = vunpack.c.l.bf16 %v73_v38  ;;  %v859_v57 = vpack.i.bf16 %v1144_v58, %v1137_v54  ;;  %v864_v60 = vpack.i.bf16 %v1180_v21, %v1178_v20  ;;  %v208_v62 = vunpack.c.l.bf16 %v74_v44  ;;  %v92_v44 = vld [vmem:[%s1762_s0 + $0x150] sm:$0xf] }
  0x1a   :  { %830 = vrot.lane.b32.xlu0 %v829_v27, %s939_s27  ;;  %835 = vrot.lane.b32.xlu1 %v834_v36, %s939_s27  ;;  %v207_v27 = vunpack.c.l.bf16 %v71_v17  ;;  %v136_v36 = vunpack.c.l.bf16 %v40_v19  ;;  %v1227_v61 = vmax.f32 %v137_v42, %v193_v48  ;;  %v209_v1 = vunpack.c.l.bf16 %v75_v49  ;;  %v93_v48 = vld [vmem:[%s1762_s0 + $0x154] sm:$0x7] }
  0x1b   :  { %v156_v2 = vunpack.c.l.bf16 %v80_v50  ;;  %v1235_v7 = vmax.f32 %v152_v52, %v208_v62  ;;  %v157_v9 = vunpack.c.l.bf16 %v81_v55  ;;  %v213_v17 = vunpack.c.l.bf16 %v83_v0  ;;  %v94_v55 = vld [vmem:[%s1762_s0 + $0x158] sm:$0xf]  ;;  %v64_v62 = vld [vmem:[%s1762_s0 + $0xe0] sm:$0xf] }
  0x1c   :  { %v1201_v40 = vmax.f32 %v151_v23, %v207_v27  ;;  %v1215_v51 = vmax.f32 %v136_v36, %v192_v43  ;;  %v1243_v14 = vmax.f32 %v153_v53, %v209_v1  ;;  %v142_v23 = vunpack.c.l.bf16 %v52_v6  ;;  %v86_v36 = vld [vmem:[%s1762_s0 + $0x138] sm:$0xf]  ;;  %v65_v6 = vld [vmem:[%s1762_s0 + $0xe4] sm:$0x7] }
  0x1d   :  { %825 = vrot.lane.b32.xlu2 %v824_v39, %s939_s27  ;;  %v1253_v25 = vmax.f32 %v157_v9, %v213_v17  ;;  %v198_v27 = vunpack.c.l.bf16 %v54_v13  ;;  %v199_v38 = vunpack.c.l.bf16 %v55_v18  ;;  %v87_v39 = vld [vmem:[%s1762_s0 + $0x13c] sm:$0x7]  ;;  %v158_v43 = vunpack.c.l.bf16 %v84_v24  ;;  %v66_v9 = vld [vmem:[%s1762_s0 + $0xe8] sm:$0xf]  ;;  %v67_v13 = vld [vmem:[%s1762_s0 + $0xec] sm:$0x7] }
  0x1e   :  { %v839_v37 = vpack.i.bf16 %v1227_v61, %v1215_v51  ;;  %v874_v49 = vpack.i.bf16 %v1201_v40, %v1191_v35  ;;  %v159_v52 = vunpack.c.l.bf16 %v85_v32  ;;  %v214_v53 = vunpack.c.l.bf16 %v86_v36  ;;  %v97_v32 = vld [vmem:[%s1762_s0 + $0x164] sm:$0x7]  ;;  %v98_v36 = vld [vmem:[%s1762_s0 + $0x168] sm:$0xf] }
  0x1f   :  { %v1268_v42 = vmax.f32 %v142_v23, %v198_v27  ;;  %v162_v1 = vunpack.c.l.bf16 %v92_v44  ;;  %v148_v18 = vunpack.c.l.bf16 %v64_v62  ;;  %v96_v23 = vld [vmem:[%s1762_s0 + $0x160] sm:$0xf]  ;;  %v204_v27 = vunpack.c.l.bf16 %v66_v9 }
  0x20   :  { %v1292_v0 = vmax.f32 %v158_v43, %v214_v53  ;;  %v99_v43 = vld [vmem:[%s1762_s0 + $0x16c] sm:$0x7]  ;;  %v165_v53 = vunpack.c.l.bf16 %v97_v32  ;;  %v79_v32 = vld [vmem:[%s1762_s0 + $0x11c] sm:$0x7] }
  0x21   :  { %v1325_v44 = vmax.f32 %v148_v18, %v204_v27 }
  0x22   :  { %845 = vrot.lane.b32.xlu0 %v844_v10, %s939_s27  ;;  %850 = vrot.lane.b32.xlu1 %v849_v11, %s939_s27  ;;  %v212_v10 = vunpack.c.l.bf16 %v82_v56  ;;  %v53_v11 = vld [vmem:[%s1762_s0 + $0xb4] sm:$0x7]  ;;  %v879_v56 = vpack.i.bf16 %v1243_v14, %v1235_v7 }
  0x23   :  { %v143_v26 = vunpack.c.l.bf16 %v53_v11  ;;  %v218_v11 = vunpack.c.l.bf16 %v94_v55  ;;  %v220_v55 = vunpack.c.l.bf16 %v98_v36  ;;  %v108_v36 = vld [vmem:[%s1762_s0 + $0x190] sm:$0xf] }
  0x24   :  { %v1248_v19 = vmax.f32 %v156_v2, %v212_v10  ;;  %v163_v2 = vunpack.c.l.bf16 %v93_v48  ;;  %v164_v48 = vunpack.c.l.bf16 %v96_v23 }
  0x25   :  { %840 = vrot.lane.b32.xlu2 %v839_v37, %s939_s27  ;;  %v1279_v50 = vmax.f32 %v143_v26, %v199_v38  ;;  %v1308_v24 = vmax.f32 %v162_v1, %v218_v11  ;;  %v149_v26 = vunpack.c.l.bf16 %v65_v6  ;;  %v221_v1 = vunpack.c.l.bf16 %v99_v43  ;;  %v76_v11 = vld [vmem:[%s1762_s0 + $0x110] sm:$0xf] }
  0x26   :  { %v1346_v6 = vmax.f32 %v164_v48, %v220_v55  ;;  %v109_v48 = vld [vmem:[%s1762_s0 + $0x194] sm:$0x7] }
  0x27   :  { %1772 = vst [vmem:[#allocation2_spill] sm:$0xff] %v1308_v24  ;;  %v854_v37 = vpack.i.bf16 %v1279_v50, %v1268_v42 }
  0x28   :  { %1774 = vst [vmem:[#allocation4_spill] sm:$0xff] %v1346_v6 }
  0x2a   :  { %860 = vrot.lane.b32.xlu0 %v859_v57, %s939_s27  ;;  %865 = vrot.lane.b32.xlu1 %v864_v60, %s939_s27  ;;  %v215_v57 = vunpack.c.l.bf16 %v87_v39  ;;  %v95_v60 = vld [vmem:[%s1762_s0 + $0x15c] sm:$0x7]  ;;  %v205_v39 = vunpack.c.l.bf16 %v67_v13  ;;  %v77_v13 = vld [vmem:[%s1762_s0 + $0x114] sm:$0x7] }
  0x2b   :  { %v219_v17 = vunpack.c.l.bf16 %v95_v60  ;;  %v889_v60 = vpack.i.bf16 %v1253_v25, %v1248_v19  ;;  %v155_v43 = vunpack.c.l.bf16 %v77_v13 }
  0x2c   :  { %v1300_v10 = vmax.f32 %v159_v52, %v215_v57  ;;  %v104_v52 = vld [vmem:[%s1762_s0 + $0x180] sm:$0xf]  ;;  %v105_v57 = vld [vmem:[%s1762_s0 + $0x184] sm:$0x7] }
  0x2d   :  { %v1319_v38 = vmax.f32 %v163_v2, %v219_v17  ;;  %855 = vrot.lane.b32.xlu2 %v854_v37, %s939_s27  ;;  %v107_v2 = vld [vmem:[%s1762_s0 + $0x18c] sm:$0x7]  ;;  %v168_v9 = vunpack.c.l.bf16 %v104_v52  ;;  %v1354_v17 = vmax.f32 %v165_v53, %v221_v1  ;;  %v169_v18 = vunpack.c.l.bf16 %v105_v57  ;;  %v110_v52 = vld [vmem:[%s1762_s0 + $0x198] sm:$0xf] }
  0x2e   :  { %v894_v62 = vpack.i.bf16 %v1300_v10, %v1292_v0  ;;  %v225_v27 = vunpack.c.l.bf16 %v107_v2  ;;  %v211_v1 = vunpack.c.l.bf16 %v79_v32  ;;  %v170_v2 = vunpack.c.l.bf16 %v108_v36  ;;  %v119_v32 = vld [vmem:[%s1762_s0 + $0x1bc] sm:$0x7] }
  0x2f   :  { %1773 = vst [vmem:[#allocation3_spill] sm:$0xff] %v1319_v38  ;;  %v226_v13 = vunpack.c.l.bf16 %v110_v52  ;;  %v909_v36 = vpack.i.bf16 %v1354_v17, %v1346_v6  ;;  %v88_v52 = vld [vmem:[%s1762_s0 + $0x140] sm:$0xf]  ;;  %v231_v6 = vunpack.c.l.bf16 %v119_v32 }
  0x30   :  { %1775 = vst [vmem:[#allocation5_spill] sm:$0xff] %v1354_v17  ;;  %v1376_v55 = vmax.f32 %v169_v18, %v225_v27  ;;  %v117_v18 = vld [vmem:[%s1762_s0 + $0x1b4] sm:$0x7] }
  0x32   :  { %875 = vrot.lane.b32.xlu0 %v874_v49, %s939_s27  ;;  %880 = vrot.lane.b32.xlu1 %v879_v56, %s939_s27  ;;  %v1331_v49 = vmax.f32 %v149_v26, %v205_v39  ;;  %v106_v56 = vld [vmem:[%s1762_s0 + $0x188] sm:$0xf]  ;;  %v78_v26 = vld [vmem:[%s1762_s0 + $0x118] sm:$0xf]  ;;  %v154_v39 = vunpack.c.l.bf16 %v76_v11  ;;  %1777 = vst [vmem:[#allocation7_spill] sm:$0xff] %v1376_v55  ;;  %v171_v11 = vunpack.c.l.bf16 %v109_v48 }
  0x33   :  { %v224_v23 = vunpack.c.l.bf16 %v106_v56  ;;  %v210_v57 = vunpack.c.l.bf16 %v78_v26  ;;  %v111_v56 = vld [vmem:[%s1762_s0 + $0x19c] sm:$0x7]  ;;  %v1396_v26 = vmax.f32 %v155_v43, %v211_v1  ;;  %v90_v1 = vld [vmem:[%s1762_s0 + $0x148] sm:$0xf] }
  0x34   :  { %v869_v53 = vpack.i.bf16 %v1331_v49, %v1325_v44  ;;  %v227_v27 = vunpack.c.l.bf16 %v111_v56  ;;  %v89_v56 = vld [vmem:[%s1762_s0 + $0x144] sm:$0x7]  ;;  %v216_v32 = vunpack.c.l.bf16 %v90_v1  ;;  %v112_v1 = vld [vmem:[%s1762_s0 + $0x1a0] sm:$0xf] }
  0x35   :  { %v1365_v37 = vmax.f32 %v168_v9, %v224_v23  ;;  %v116_v9 = vld [vmem:[%s1762_s0 + $0x1b0] sm:$0xf]  ;;  %v904_v23 = vpack.i.bf16 %v1319_v38, %v1308_v24 }
  0x36   :  { %870 = vrot.lane.b32.xlu2 %v869_v53, %s939_s27  ;;  %v174_v48 = vunpack.c.l.bf16 %v116_v9  ;;  %v1408_v53 = vmax.f32 %v171_v11, %v227_v27  ;;  %v160_v9 = vunpack.c.l.bf16 %v88_v52  ;;  %v100_v11 = vld [vmem:[%s1762_s0 + $0x170] sm:$0xf]  ;;  %v161_v27 = vunpack.c.l.bf16 %v89_v56  ;;  %v102_v52 = vld [vmem:[%s1762_s0 + $0x178] sm:$0xf] }
  0x37   :  { %1776 = vst [vmem:[#allocation6_spill] sm:$0xff] %v1365_v37 }
  0x3a   :  { %890 = vrot.lane.b32.xlu0 %v889_v60, %s939_s27  ;;  %895 = vrot.lane.b32.xlu1 %v894_v62, %s939_s27  ;;  %v1386_v60 = vmax.f32 %v154_v39, %v210_v57  ;;  %v118_v62 = vld [vmem:[%s1762_s0 + $0x1b8] sm:$0xf]  ;;  %v1403_v39 = vmax.f32 %v170_v2, %v226_v13  ;;  %v175_v57 = vunpack.c.l.bf16 %v117_v18  ;;  %v91_v2 = vld [vmem:[%s1762_s0 + $0x14c] sm:$0x7] }
  0x3b   :  { %v230_v43 = vunpack.c.l.bf16 %v118_v62  ;;  %v101_v13 = vld [vmem:[%s1762_s0 + $0x174] sm:$0x7]  ;;  %v217_v24 = vunpack.c.l.bf16 %v91_v2  ;;  %v113_v2 = vld [vmem:[%s1762_s0 + $0x1a4] sm:$0x7] }
  0x3c   :  { %1778 = vst [vmem:[#allocation8_spill] sm:$0xff] %v1403_v39  ;;  %v1428_v62 = vmax.f32 %v175_v57, %v231_v6  ;;  %v884_v17 = vpack.i.bf16 %v1396_v26, %v1386_v60  ;;  %v166_v6 = vunpack.c.l.bf16 %v100_v11  ;;  %v167_v57 = vunpack.c.l.bf16 %v101_v13  ;;  %v114_v11 = vld [vmem:[%s1762_s0 + $0x1a8] sm:$0xf] }
  0x3d   :  { %v1426_v18 = vmax.f32 %v174_v48, %v230_v43  ;;  %v1439_v48 = vmax.f32 %v160_v9, %v216_v32  ;;  %v919_v43 = vpack.i.bf16 %v1376_v55, %v1365_v37  ;;  %v1444_v56 = vmax.f32 %v161_v27, %v217_v24 }
  0x3e   :  { %885 = vrot.lane.b32.xlu2 %v884_v17, %s939_s27  ;;  %v115_v17 = vld [vmem:[%s1762_s0 + $0x1ac] sm:$0x7]  ;;  %v924_v24 = vpack.i.bf16 %v1408_v53, %v1403_v39  ;;  %v172_v32 = vunpack.c.l.bf16 %v112_v1  ;;  %v228_v37 = vunpack.c.l.bf16 %v114_v11 }
  0x3f   :  { %1779 = vst [vmem:[#allocation9_spill] sm:$0xff] %v1426_v18  ;;  %v229_v55 = vunpack.c.l.bf16 %v115_v17 }
  0x40   :  { %v1469_v38 = vmax.f32 %v172_v32, %v228_v37 }
  0x42   :  { %905 = vrot.lane.b32.xlu0 %v904_v23, %s939_s27  ;;  %910 = vrot.lane.b32.xlu1 %v909_v36, %s939_s27  ;;  %v103_v23 = vld [vmem:[%s1762_s0 + $0x17c] sm:$0x7]  ;;  %v222_v36 = vunpack.c.l.bf16 %v102_v52  ;;  %v173_v52 = vunpack.c.l.bf16 %v113_v2 }
  0x43   :  { %v223_v9 = vunpack.c.l.bf16 %v103_v23  ;;  %v899_v23 = vpack.i.bf16 %v1444_v56, %v1439_v48 }
  0x44   :  { %v1460_v13 = vmax.f32 %v166_v6, %v222_v36  ;;  %v1471_v39 = vmax.f32 %v173_v52, %v229_v55  ;;  %v934_v6 = vpack.i.bf16 %v1428_v62, %v1426_v18 }
  0x45   :  { %v1462_v27 = vmax.f32 %v167_v57, %v223_v9 }
  0x46   :  { %900 = vrot.lane.b32.xlu2 %v899_v23, %s939_s27 }
  0x47   :  { %v914_v57 = vpack.i.bf16 %v1462_v27, %v1460_v13 }
  0x4a   :  { %920 = vrot.lane.b32.xlu0 %v919_v43, %s939_s27  ;;  %925 = vrot.lane.b32.xlu1 %v924_v24, %s939_s27  ;;  %v929_v43 = vpack.i.bf16 %v1471_v39, %v1469_v38 }
  0x4e   :  { %915 = vrot.lane.b32.xlu2 %v914_v57, %s939_s27 }
  0x52   :  { %935 = vrot.lane.b32.xlu0 %v934_v6, %s939_s27 }
  0x56   :  { %930 = vrot.lane.b32.xlu2 %v929_v43, %s939_s27 }
  0x6f   :  { %v821_v36 = vpop.permute.xlu2 %820 }
  0x70   :  { %v823_v37 = vunpack.i.h.bf16 %v821_v36  ;;  %v822_v1 = vunpack.i.l.bf16 %v821_v36 }
  0x72   :  { %v633_v55 = vmax.f32 %v1108_v31, %v823_v37  ;;  %v632_v2 = vmax.f32 %v1106_v28, %v822_v1 }
  0x74   :  { %v689_v9 = vpack.c.bf16 %v633_v55, %v633_v55  ;;  %v688_v11 = vpack.c.bf16 %v632_v2, %v632_v2 }
  0x76   :  { %747 = vst.msk [vmem:[%s1763_s1 + $0x24] sm:$0x7] %vm738_vm0, %v689_v9 }
  0x77   :  { %746 = vst.msk [vmem:[%s1763_s1 + $0x20] sm:$0xf] %vm736_vm1, %v688_v11  ;;  %v826_v52 = vpop.permute.xlu2 %825 }
  0x78   :  { %v828_v6 = vunpack.i.h.bf16 %v826_v52  ;;  %v827_v57 = vunpack.i.l.bf16 %v826_v52 }
  0x7a   :  { %v635_v55 = vmax.f32 %v1160_v5, %v828_v6  ;;  %v634_v2 = vmax.f32 %v1158_v4, %v827_v57 }
  0x7c   :  { %v801_v17 = vpop.permute.xlu0 %800  ;;  %v811_v31 = vpop.permute.xlu1 %810 }
  0x7d   :  { %v803_v24 = vunpack.i.h.bf16 %v801_v17  ;;  %v802_v32 = vunpack.i.l.bf16 %v801_v17  ;;  %v813_v28 = vunpack.i.h.bf16 %v811_v31  ;;  %v812_v23 = vunpack.i.l.bf16 %v811_v31 }
  0x7f   :  { %v625_v43 = vmax.f32 %v988_v22, %v803_v24  ;;  %v624_v36 = vmax.f32 %v977_v15, %v802_v32  ;;  %v629_v37 = vmax.f32 %v1001_v30, %v813_v28  ;;  %v628_v1 = vmax.f32 %v999_v29, %v812_v23  ;;  %v841_v31 = vpop.permute.xlu2 %840 }
  0x80   :  { %v691_v22 = vpack.c.bf16 %v635_v55, %v635_v55  ;;  %v690_v29 = vpack.c.bf16 %v634_v2, %v634_v2  ;;  %v843_v23 = vunpack.i.h.bf16 %v841_v31  ;;  %v842_v6 = vunpack.i.l.bf16 %v841_v31 }
  0x81   :  { %v681_v9 = vpack.c.bf16 %v625_v43, %v625_v43  ;;  %v680_v11 = vpack.c.bf16 %v624_v36, %v624_v36  ;;  %v685_v17 = vpack.c.bf16 %v629_v37, %v629_v37  ;;  %v684_v18 = vpack.c.bf16 %v628_v1, %v628_v1 }
  0x82   :  { %749 = vst.msk [vmem:[%s1763_s1 + $0x2c] sm:$0x7] %vm738_vm0, %v691_v22  ;;  %v640_v36 = vmax.f32 %v1215_v51, %v842_v6 }
  0x83   :  { %739 = vst.msk [vmem:[%s1763_s1 + $0x4] sm:$0x7] %vm738_vm0, %v681_v9 }
  0x84   :  { %737 = vst.msk [vmem:[%s1763_s1] sm:$0xf] %vm736_vm1, %v680_v11  ;;  %v806_v15 = vpop.permute.xlu0 %805  ;;  %v816_v5 = vpop.permute.xlu1 %815 }
  0x85   :  { %743 = vst.msk [vmem:[%s1763_s1 + $0x14] sm:$0x7] %vm738_vm0, %v685_v17  ;;  %v808_v30 = vunpack.i.h.bf16 %v806_v15  ;;  %v807_v4 = vunpack.i.l.bf16 %v806_v15  ;;  %v818_v24 = vunpack.i.h.bf16 %v816_v5  ;;  %v817_v32 = vunpack.i.l.bf16 %v816_v5 }
  0x86   :  { %742 = vst.msk [vmem:[%s1763_s1 + $0x10] sm:$0xf] %vm736_vm1, %v684_v18 }
  0x87   :  { %v627_v52 = vmax.f32 %v1008_v34, %v808_v30  ;;  %v626_v28 = vmax.f32 %v1006_v33, %v807_v4  ;;  %748 = vst.msk [vmem:[%s1763_s1 + $0x28] sm:$0xf] %vm736_vm1, %v690_v29  ;;  %v631_v18 = vmax.f32 %v1029_v46, %v818_v24  ;;  %v630_v57 = vmax.f32 %v1019_v41, %v817_v32  ;;  %v856_v17 = vpop.permute.xlu2 %855 }
  0x88   :  { %v641_v33 = vmax.f32 %v1227_v61, %v843_v23  ;;  %v696_v46 = vpack.c.bf16 %v640_v36, %v640_v36  ;;  %v858_v29 = vunpack.i.h.bf16 %v856_v17  ;;  %v857_v30 = vunpack.i.l.bf16 %v856_v17 }
  0x89   :  { %v683_v43 = vpack.c.bf16 %v627_v52, %v627_v52  ;;  %v682_v34 = vpack.c.bf16 %v626_v28, %v626_v28  ;;  %v687_v37 = vpack.c.bf16 %v631_v18, %v631_v18  ;;  %v686_v1 = vpack.c.bf16 %v630_v57, %v630_v57 }
  0x8a   :  { %v697_v55 = vpack.c.bf16 %v641_v33, %v641_v33  ;;  %754 = vst.msk [vmem:[%s1763_s1 + $0x40] sm:$0xf] %vm736_vm1, %v696_v46  ;;  %v646_v32 = vmax.f32 %v1268_v42, %v857_v30 }
  0x8b   :  { %741 = vst.msk [vmem:[%s1763_s1 + $0xc] sm:$0x7] %vm738_vm0, %v683_v43 }
  0x8c   :  { %740 = vst.msk [vmem:[%s1763_s1 + $0x8] sm:$0xf] %vm736_vm1, %v682_v34  ;;  %v831_v41 = vpop.permute.xlu0 %830  ;;  %v836_v2 = vpop.permute.xlu1 %835 }
  0x8d   :  { %745 = vst.msk [vmem:[%s1763_s1 + $0x1c] sm:$0x7] %vm738_vm0, %v687_v37  ;;  %v833_v51 = vunpack.i.h.bf16 %v831_v41  ;;  %v832_v61 = vunpack.i.l.bf16 %v831_v41  ;;  %v838_v9 = vunpack.i.h.bf16 %v836_v2  ;;  %v837_v11 = vunpack.i.l.bf16 %v836_v2 }
  0x8e   :  { %744 = vst.msk [vmem:[%s1763_s1 + $0x18] sm:$0xf] %vm736_vm1, %v686_v1 }
  0x8f   :  { %v637_v22 = vmax.f32 %v1060_v63, %v833_v51  ;;  %v636_v15 = vmax.f32 %v1055_v59, %v832_v61  ;;  %755 = vst.msk [vmem:[%s1763_s1 + $0x44] sm:$0x7] %vm738_vm0, %v697_v55  ;;  %v639_v4 = vmax.f32 %v1072_v8, %v838_v9  ;;  %v638_v5 = vmax.f32 %v1065_v3, %v837_v11 }
  0x90   :  { %v647_v59 = vmax.f32 %v1279_v50, %v858_v29  ;;  %v702_v8 = vpack.c.bf16 %v646_v32, %v646_v32  ;;  %v871_v57 = vpop.permute.xlu2 %870 }
  0x91   :  { %v693_v24 = vpack.c.bf16 %v637_v22, %v637_v22  ;;  %v692_v63 = vpack.c.bf16 %v636_v15, %v636_v15  ;;  %v695_v31 = vpack.c.bf16 %v639_v4, %v639_v4  ;;  %v694_v52 = vpack.c.bf16 %v638_v5, %v638_v5 }
  0x92   :  { %v703_v28 = vpack.c.bf16 %v647_v59, %v647_v59  ;;  %v873_v33 = vunpack.i.h.bf16 %v871_v57  ;;  %v872_v36 = vunpack.i.l.bf16 %v871_v57  ;;  %760 = vst.msk [vmem:[%s1763_s1 + $0x58] sm:$0xf] %vm736_vm1, %v702_v8 }
  0x93   :  { %751 = vst.msk [vmem:[%s1763_s1 + $0x34] sm:$0x7] %vm738_vm0, %v693_v24 }
  0x94   :  { %750 = vst.msk [vmem:[%s1763_s1 + $0x30] sm:$0xf] %vm736_vm1, %v692_v63  ;;  %v846_v3 = vpop.permute.xlu0 %845  ;;  %v851_v23 = vpop.permute.xlu1 %850  ;;  %v652_v41 = vmax.f32 %v1325_v44, %v872_v36 }
  0x95   :  { %753 = vst.msk [vmem:[%s1763_s1 + $0x3c] sm:$0x7] %vm738_vm0, %v695_v31  ;;  %v848_v42 = vunpack.i.h.bf16 %v846_v3  ;;  %v847_v50 = vunpack.i.l.bf16 %v846_v3  ;;  %v853_v6 = vunpack.i.h.bf16 %v851_v23  ;;  %v852_v18 = vunpack.i.l.bf16 %v851_v23 }
  0x96   :  { %752 = vst.msk [vmem:[%s1763_s1 + $0x38] sm:$0xf] %vm736_vm1, %v694_v52 }
  0x97   :  { %v643_v43 = vmax.f32 %v1085_v16, %v848_v42  ;;  %v642_v34 = vmax.f32 %v1080_v12, %v847_v50  ;;  %761 = vst.msk [vmem:[%s1763_s1 + $0x5c] sm:$0x7] %vm738_vm0, %v703_v28  ;;  %v645_v37 = vmax.f32 %v1126_v47, %v853_v6  ;;  %v644_v1 = vmax.f32 %v1124_v45, %v852_v18 }
  0x98   :  { %v653_v12 = vmax.f32 %v1331_v49, %v873_v33  ;;  %v708_v47 = vpack.c.bf16 %v652_v41, %v652_v41  ;;  %v886_v15 = vpop.permute.xlu2 %885 }
  0x99   :  { %v699_v55 = vpack.c.bf16 %v643_v43, %v643_v43  ;;  %v698_v16 = vpack.c.bf16 %v642_v34, %v642_v34  ;;  %v701_v46 = vpack.c.bf16 %v645_v37, %v645_v37  ;;  %v700_v51 = vpack.c.bf16 %v644_v1, %v644_v1 }
  0x9a   :  { %v709_v61 = vpack.c.bf16 %v653_v12, %v653_v12  ;;  %766 = vst.msk [vmem:[%s1763_s1 + $0x70] sm:$0xf] %vm736_vm1, %v708_v47  ;;  %v888_v4 = vunpack.i.h.bf16 %v886_v15  ;;  %v887_v5 = vunpack.i.l.bf16 %v886_v15 }
  0x9b   :  { %757 = vst.msk [vmem:[%s1763_s1 + $0x4c] sm:$0x7] %vm738_vm0, %v699_v55 }
  0x9c   :  { %756 = vst.msk [vmem:[%s1763_s1 + $0x48] sm:$0xf] %vm736_vm1, %v698_v16  ;;  %v861_v45 = vpop.permute.xlu0 %860  ;;  %v866_v2 = vpop.permute.xlu1 %865  ;;  %v659_v59 = vmax.f32 %v1396_v26, %v888_v4  ;;  %v658_v32 = vmax.f32 %v1386_v60, %v887_v5  ;;  %v1781_v4 = vld [vmem:[#allocation2_spill] sm:$0xff] }
  0x9d   :  { %759 = vst.msk [vmem:[%s1763_s1 + $0x54] sm:$0x7] %vm738_vm0, %v701_v46  ;;  %v863_v44 = vunpack.i.h.bf16 %v861_v45  ;;  %v862_v49 = vunpack.i.l.bf16 %v861_v45  ;;  %v868_v9 = vunpack.i.h.bf16 %v866_v2  ;;  %v867_v11 = vunpack.i.l.bf16 %v866_v2 }
  0x9e   :  { %758 = vst.msk [vmem:[%s1763_s1 + $0x50] sm:$0xf] %vm736_vm1, %v700_v51  ;;  %v714_v31 = vpack.c.bf16 %v658_v32, %v658_v32 }
  0x9f   :  { %v649_v17 = vmax.f32 %v1144_v58, %v863_v44  ;;  %v648_v22 = vmax.f32 %v1137_v54, %v862_v49  ;;  %767 = vst.msk [vmem:[%s1763_s1 + $0x74] sm:$0x7] %vm738_vm0, %v709_v61  ;;  %v651_v29 = vmax.f32 %v1180_v21, %v868_v9  ;;  %v650_v30 = vmax.f32 %v1178_v20, %v867_v11 }
  0xa0   :  { %v715_v21 = vpack.c.bf16 %v659_v59, %v659_v59  ;;  %v901_v50 = vpop.permute.xlu2 %900  ;;  %772 = vst.msk [vmem:[%s1763_s1 + $0x88] sm:$0xf] %vm736_vm1, %v714_v31 }
  0xa1   :  { %v705_v58 = vpack.c.bf16 %v649_v17, %v649_v17  ;;  %v704_v24 = vpack.c.bf16 %v648_v22, %v648_v22  ;;  %v707_v54 = vpack.c.bf16 %v651_v29, %v651_v29  ;;  %v706_v63 = vpack.c.bf16 %v650_v30, %v650_v30  ;;  %v1780_v29 = vld [vmem:[#allocation3_spill] sm:$0xff] }
  0xa2   :  { %773 = vst.msk [vmem:[%s1763_s1 + $0x8c] sm:$0x7] %vm738_vm0, %v715_v21  ;;  %v903_v18 = vunpack.i.h.bf16 %v901_v50  ;;  %v902_v57 = vunpack.i.l.bf16 %v901_v50 }
  0xa3   :  { %763 = vst.msk [vmem:[%s1763_s1 + $0x64] sm:$0x7] %vm738_vm0, %v705_v58 }
  0xa4   :  { %762 = vst.msk [vmem:[%s1763_s1 + $0x60] sm:$0xf] %vm736_vm1, %v704_v24  ;;  %v876_v20 = vpop.permute.xlu0 %875  ;;  %v881_v52 = vpop.permute.xlu1 %880  ;;  %v665_v33 = vmax.f32 %v1444_v56, %v903_v18  ;;  %v664_v36 = vmax.f32 %v1439_v48, %v902_v57  ;;  %v1782_v24 = vld [vmem:[#allocation5_spill] sm:$0xff]  ;;  %v1784_v18 = vld [vmem:[#allocation7_spill] sm:$0xff] }
  0xa5   :  { %765 = vst.msk [vmem:[%s1763_s1 + $0x6c] sm:$0x7] %vm738_vm0, %v707_v54  ;;  %v878_v26 = vunpack.i.h.bf16 %v876_v20  ;;  %v877_v60 = vunpack.i.l.bf16 %v876_v20  ;;  %v883_v28 = vunpack.i.h.bf16 %v881_v52  ;;  %v882_v3 = vunpack.i.l.bf16 %v881_v52 }
  0xa6   :  { %764 = vst.msk [vmem:[%s1763_s1 + $0x68] sm:$0xf] %vm736_vm1, %v706_v63  ;;  %v720_v37 = vpack.c.bf16 %v664_v36, %v664_v36  ;;  %v1783_v63 = vld [vmem:[#allocation4_spill] sm:$0xff] }
  0xa7   :  { %v655_v8 = vmax.f32 %v1201_v40, %v878_v26  ;;  %v654_v42 = vmax.f32 %v1191_v35, %v877_v60  ;;  %v657_v23 = vmax.f32 %v1243_v14, %v883_v28  ;;  %v656_v6 = vmax.f32 %v1235_v7, %v882_v3 }
  0xa8   :  { %v721_v14 = vpack.c.bf16 %v665_v33, %v665_v33  ;;  %v916_v46 = vpop.permute.xlu2 %915  ;;  %778 = vst.msk [vmem:[%s1763_s1 + $0xa0] sm:$0xf] %vm736_vm1, %v720_v37 }
  0xa9   :  { %v711_v40 = vpack.c.bf16 %v655_v8, %v655_v8  ;;  %v710_v43 = vpack.c.bf16 %v654_v42, %v654_v42  ;;  %v713_v35 = vpack.c.bf16 %v657_v23, %v657_v23  ;;  %v712_v34 = vpack.c.bf16 %v656_v6, %v656_v6 }
  0xaa   :  { %779 = vst.msk [vmem:[%s1763_s1 + $0xa4] sm:$0x7] %vm738_vm0, %v721_v14  ;;  %v918_v45 = vunpack.i.h.bf16 %v916_v46  ;;  %v917_v47 = vunpack.i.l.bf16 %v916_v46 }
  0xab   :  { %769 = vst.msk [vmem:[%s1763_s1 + $0x7c] sm:$0x7] %vm738_vm0, %v711_v40  ;;  %v1785_v40 = vld [vmem:[#allocation6_spill] sm:$0xff] }
  0xac   :  { %768 = vst.msk [vmem:[%s1763_s1 + $0x78] sm:$0xf] %vm736_vm1, %v710_v43  ;;  %v891_v7 = vpop.permute.xlu0 %890  ;;  %v896_v1 = vpop.permute.xlu1 %895  ;;  %v671_v2 = vmax.f32 %v1462_v27, %v918_v45  ;;  %v670_v9 = vmax.f32 %v1460_v13, %v917_v47 }
  0xad   :  { %771 = vst.msk [vmem:[%s1763_s1 + $0x84] sm:$0x7] %vm738_vm0, %v713_v35  ;;  %v893_v56 = vunpack.i.h.bf16 %v891_v7  ;;  %v892_v48 = vunpack.i.l.bf16 %v891_v7  ;;  %v898_v55 = vunpack.i.h.bf16 %v896_v1  ;;  %v897_v16 = vunpack.i.l.bf16 %v896_v1 }
  0xae   :  { %770 = vst.msk [vmem:[%s1763_s1 + $0x80] sm:$0xf] %vm736_vm1, %v712_v34  ;;  %v726_v11 = vpack.c.bf16 %v670_v9, %v670_v9  ;;  %v1786_v34 = vld [vmem:[#allocation8_spill] sm:$0xff] }
  0xaf   :  { %v661_v12 = vmax.f32 %v1253_v25, %v893_v56  ;;  %v660_v41 = vmax.f32 %v1248_v19, %v892_v48  ;;  %v663_v51 = vmax.f32 %v1300_v10, %v898_v55  ;;  %v662_v61 = vmax.f32 %v1292_v0, %v897_v16  ;;  %v1787_v55 = vld [vmem:[#allocation9_spill] sm:$0xff] }
  0xb0   :  { %v727_v10 = vpack.c.bf16 %v671_v2, %v671_v2  ;;  %v931_v58 = vpop.permute.xlu2 %930  ;;  %784 = vst.msk [vmem:[%s1763_s1 + $0xb8] sm:$0xf] %vm736_vm1, %v726_v11 }
  0xb1   :  { %v717_v25 = vpack.c.bf16 %v661_v12, %v661_v12  ;;  %v716_v44 = vpack.c.bf16 %v660_v41, %v660_v41  ;;  %v719_v19 = vpack.c.bf16 %v663_v51, %v663_v51  ;;  %v718_v49 = vpack.c.bf16 %v662_v61, %v662_v61 }
  0xb2   :  { %785 = vst.msk [vmem:[%s1763_s1 + $0xbc] sm:$0x7] %vm738_vm0, %v727_v10  ;;  %v933_v32 = vunpack.i.h.bf16 %v931_v58  ;;  %v932_v20 = vunpack.i.l.bf16 %v931_v58 }
  0xb3   :  { %775 = vst.msk [vmem:[%s1763_s1 + $0x94] sm:$0x7] %vm738_vm0, %v717_v25 }
  0xb4   :  { %774 = vst.msk [vmem:[%s1763_s1 + $0x90] sm:$0xf] %vm736_vm1, %v716_v44  ;;  %v906_v0 = vpop.permute.xlu0 %905  ;;  %v911_v17 = vpop.permute.xlu1 %910  ;;  %v677_v52 = vmax.f32 %v1471_v39, %v933_v32  ;;  %v676_v28 = vmax.f32 %v1469_v38, %v932_v20 }
  0xb5   :  { %777 = vst.msk [vmem:[%s1763_s1 + $0x9c] sm:$0x7] %vm738_vm0, %v719_v19  ;;  %v908_v27 = vunpack.i.h.bf16 %v906_v0  ;;  %v907_v13 = vunpack.i.l.bf16 %v906_v0  ;;  %v913_v22 = vunpack.i.h.bf16 %v911_v17  ;;  %v912_v15 = vunpack.i.l.bf16 %v911_v17 }
  0xb6   :  { %776 = vst.msk [vmem:[%s1763_s1 + $0x98] sm:$0xf] %vm736_vm1, %v718_v49  ;;  %v733_v8 = vpack.c.bf16 %v677_v52, %v677_v52  ;;  %v732_v42 = vpack.c.bf16 %v676_v28, %v676_v28 }
  0xb7   :  { %v667_v30 = vmax.f32 %v1780_v29, %v908_v27  ;;  %v666_v5 = vmax.f32 %v1781_v4, %v907_v13  ;;  %v669_v54 = vmax.f32 %v1782_v24, %v913_v22  ;;  %v668_v59 = vmax.f32 %v1783_v63, %v912_v15 }
  0xb8   :  { %791 = vst.msk [vmem:[%s1763_s1 + $0xd4] sm:$0x7] %vm738_vm0, %v733_v8 }
  0xb9   :  { %v723_v21 = vpack.c.bf16 %v667_v30, %v667_v30  ;;  %v722_v31 = vpack.c.bf16 %v666_v5, %v666_v5  ;;  %v725_v26 = vpack.c.bf16 %v669_v54, %v669_v54  ;;  %v724_v60 = vpack.c.bf16 %v668_v59, %v668_v59  ;;  %790 = vst.msk [vmem:[%s1763_s1 + $0xd0] sm:$0xf] %vm736_vm1, %v732_v42 }
  0xbb   :  { %781 = vst.msk [vmem:[%s1763_s1 + $0xac] sm:$0x7] %vm738_vm0, %v723_v21 }
  0xbc   :  { %780 = vst.msk [vmem:[%s1763_s1 + $0xa8] sm:$0xf] %vm736_vm1, %v722_v31  ;;  %v921_v3 = vpop.permute.xlu0 %920  ;;  %v926_v50 = vpop.permute.xlu1 %925 }
  0xbd   :  { %783 = vst.msk [vmem:[%s1763_s1 + $0xb4] sm:$0x7] %vm738_vm0, %v725_v26  ;;  %v923_v39 = vunpack.i.h.bf16 %v921_v3  ;;  %v922_v38 = vunpack.i.l.bf16 %v921_v3  ;;  %v928_v23 = vunpack.i.h.bf16 %v926_v50  ;;  %v927_v6 = vunpack.i.l.bf16 %v926_v50 }
  0xbe   :  { %782 = vst.msk [vmem:[%s1763_s1 + $0xb0] sm:$0xf] %vm736_vm1, %v724_v60 }
  0xbf   :  { %v673_v57 = vmax.f32 %v1784_v18, %v923_v39  ;;  %v672_v43 = vmax.f32 %v1785_v40, %v922_v38  ;;  %v675_v35 = vmax.f32 %v1408_v53, %v928_v23  ;;  %v674_v33 = vmax.f32 %v1786_v34, %v927_v6 }
  0xc1   :  { %v729_v36 = vpack.c.bf16 %v673_v57, %v673_v57  ;;  %v728_v7 = vpack.c.bf16 %v672_v43, %v672_v43  ;;  %v731_v14 = vpack.c.bf16 %v675_v35, %v675_v35  ;;  %v730_v37 = vpack.c.bf16 %v674_v33, %v674_v33 }
  0xc3   :  { %787 = vst.msk [vmem:[%s1763_s1 + $0xc4] sm:$0x7] %vm738_vm0, %v729_v36 }
  0xc4   :  { %786 = vst.msk [vmem:[%s1763_s1 + $0xc0] sm:$0xf] %vm736_vm1, %v728_v7  ;;  %v936_v56 = vpop.permute.xlu0 %935 }
  0xc5   :  { %789 = vst.msk [vmem:[%s1763_s1 + $0xcc] sm:$0x7] %vm738_vm0, %v731_v14  ;;  %v938_v53 = vunpack.i.h.bf16 %v936_v56  ;;  %v937_v48 = vunpack.i.l.bf16 %v936_v56 }
  0xc6   :  { %788 = vst.msk [vmem:[%s1763_s1 + $0xc8] sm:$0xf] %vm736_vm1, %v730_v37 }
  0xc7   :  { %v679_v1 = vmax.f32 %v1428_v62, %v938_v53  ;;  %v678_v16 = vmax.f32 %v1787_v55, %v937_v48 }
  0xc9   :  { %v735_v12 = vpack.c.bf16 %v679_v1, %v679_v1  ;;  %v734_v41 = vpack.c.bf16 %v678_v16, %v678_v16 }
  0xcb   :  { %793 = vst.msk [vmem:[%s1763_s1 + $0xdc] sm:$0x7] %vm738_vm0, %v735_v12 }
  0xcc   :  { %792 = vst.msk [vmem:[%s1763_s1 + $0xd8] sm:$0xf] %vm736_vm1, %v734_v41 }

// kernel: mnist_net_forward.6
= control target key start
LH: loop header
LB: loop body
LE: loop exit
PB: predicated region body
PF: predicated region fallthrough
CT: control target
= control target key end

     0   :  { %s2195_s15 = smov 0   ;;  %s2197_s16 = smov 0   ;;  %s2543_s0 = inlined_call_operand.vmem [shape: bf16[2048,9], index: 0, kind: input, shape index: {}]   ;;  %s2544_s1 = inlined_call_operand.vmem [shape: bf16[9,128], index: 1, kind: input, shape index: {}]   ;;  %s2545_s2 = inlined_call_operand.vmem [shape: f32[1,128], index: 2, kind: input, shape index: {}]   ;;  %s2546_s3 = inlined_call_operand.vmem [shape: f32[1,128], index: 3, kind: input, shape index: {}]   ;;  %s2547_s4 = inlined_call_operand.vmem [shape: bf16[2048,128], index: 4, kind: output, shape index: {}]  }
   0x1   :  { %s2199_s17 = smov 0  }
   0x2 LB: > { %s33_s18 = sadd.s32 1, %s2162_s16  ;;  %p1718_p0 = scmp.ge.s32.totalorder %s2166_s17, 1  ;;  %s2166_s17 = sphi %s2199_s17, %s14_s17   ;;  %s2162_s16 = sphi %s2197_s16, %s2549_s16   ;;  %s2158_s15 = sphi %s2195_s15, %s2548_s15  }
   0x3   : > { %p35_p1 = scmp.ge.s32.totalorder %s33_s18, 4  ;;  %p221_p2 = scmp.lt.s32.totalorder %s2166_s17, 5 }
   0x5   : > { %s2551_s18 = smov (%p35_p1, %s33_s18), 0  ;;  %p222_p3 = pnand %p1718_p0, %p221_p2 }
   0x6   : > { %s1719_s23 = sshll.u32 (!%p222_p3), %s2158_s15, 6 }
   0x7   : > { %225 = sbr.rel (%p222_p3) target bundleno = 284 (0x11c), region = 36  ;;  %p268_p4 = scmp.lt.s32.totalorder (!%p222_p3), %s1719_s23, 255 }
   0xc   : > { %v1853_v0 = vld [vmem:[%s2544_s1] sm:$0xf]  ;;  %v1985_v1 = vld [vmem:[%s2544_s1] sm:$0x10]  ;;  %vm761_vm0 = vcmask 1043456   ;;  %vm762_vm1 = vcmask 1044480  }
   0xd   : > { %v1854_v2 = vor.u32 %v1985_v1, %v1853_v0  ;;  %v2168_v3 = vmov 65535   ;;  %s2553_s23 = smov (!%p268_p4, %s1719_s23), 255  ;;  %vm664_vm2 = vcmask 72704   ;;  %v2296_v39 = vld [vmem:[%s2545_s2] ss:$0 sm:$0xff]  ;;  %v2169_v59 = vmov 0.0  }
   0xe   : > { %v763_v4 = vsel %vm761_vm0, 4294967295, %v2168_v3  ;;  %s1720_s24 = sshll.u32 %s2553_s23, 2  ;;  %v2302_v43 = vld [vmem:[%s2546_s3] ss:$0 sm:$0xff] }
   0xf   : > { %v764_v5 = vsel %vm762_vm1, %v763_v4, 0  ;;  %s2227_s27 = scalar_lea.vmem %s2543_s0, %s1720_s24  ;;  %s2322_s8 = scalar_lea.vmem %s2547_s4, %s1720_s24 }
  0x10   : > { %v766_v6 = vand.u32 %v1854_v2, %v764_v5  ;;  %v1953_v7 = vld [vmem:[%s2227_s27] sm:$0xff]  ;;  %v1954_v11 = vld [vmem:[%s2227_s27 + $0x8] sm:$0xff]  ;;  %v1955_v15 = vld [vmem:[%s2227_s27 + $0x10] sm:$0xff] }
  0x11   : > { %v1961_v8 = vld [vmem:[%s2227_s27 + $0x40] sm:$0xff]  ;;  %v1962_v12 = vld [vmem:[%s2227_s27 + $0x48] sm:$0xff]  ;;  %v1963_v16 = vld [vmem:[%s2227_s27 + $0x50] sm:$0xff] }
  0x12   : > { %775 = vmatpush.bf16.msra.mxu0 %v766_v6  ;;  %2113 = vmatpush.bf16.msra.mxu1 %v766_v6  ;;  %v1969_v9 = vld [vmem:[%s2227_s27 + $0x80] sm:$0xff]  ;;  %v1970_v13 = vld [vmem:[%s2227_s27 + $0x88] sm:$0xff]  ;;  %v1971_v17 = vld [vmem:[%s2227_s27 + $0x90] sm:$0xff] }
  0x13   : > { %2114 = vmatpush.bf16.msra.mxu2 %v766_v6  ;;  %2115 = vmatpush.bf16.msra.mxu3 %v766_v6  ;;  %v1977_v10 = vld [vmem:[%s2227_s27 + $0xc0] sm:$0xff]  ;;  %v1978_v14 = vld [vmem:[%s2227_s27 + $0xc8] sm:$0xff]  ;;  %v1979_v18 = vld [vmem:[%s2227_s27 + $0xd0] sm:$0xff] }
  0x14   : > { %v1956_v19 = vld [vmem:[%s2227_s27 + $0x18] sm:$0xff]  ;;  %v1957_v23 = vld [vmem:[%s2227_s27 + $0x20] sm:$0xff]  ;;  %v1958_v27 = vld [vmem:[%s2227_s27 + $0x28] sm:$0xff] }
  0x15   : > { %1855 = vmatmul.msk.bf16.vlgmr.msra.gmra.mxu0 %vm664_vm2, %v1953_v7  ;;  %1863 = vmatmul.msk.bf16.vlgmr.msra.gmra.mxu1 %vm664_vm2, %v1961_v8  ;;  %v1964_v20 = vld [vmem:[%s2227_s27 + $0x58] sm:$0xff]  ;;  %v1965_v24 = vld [vmem:[%s2227_s27 + $0x60] sm:$0xff]  ;;  %v1966_v28 = vld [vmem:[%s2227_s27 + $0x68] sm:$0xff] }
  0x16   : > { %1871 = vmatmul.msk.bf16.vlgmr.msra.gmra.mxu2 %vm664_vm2, %v1969_v9  ;;  %1879 = vmatmul.msk.bf16.vlgmr.msra.gmra.mxu3 %vm664_vm2, %v1977_v10  ;;  %v1972_v21 = vld [vmem:[%s2227_s27 + $0x98] sm:$0xff]  ;;  %v1973_v25 = vld [vmem:[%s2227_s27 + $0xa0] sm:$0xff]  ;;  %v1974_v29 = vld [vmem:[%s2227_s27 + $0xa8] sm:$0xff] }
  0x17   : > { %v1980_v22 = vld [vmem:[%s2227_s27 + $0xd8] sm:$0xff]  ;;  %v1981_v26 = vld [vmem:[%s2227_s27 + $0xe0] sm:$0xff]  ;;  %v1982_v30 = vld [vmem:[%s2227_s27 + $0xe8] sm:$0xff] }
  0x18   : > { %v1959_v31 = vld [vmem:[%s2227_s27 + $0x30] sm:$0xff]  ;;  %v1960_v35 = vld [vmem:[%s2227_s27 + $0x38] sm:$0xff] }
  0x19   : > { %v1967_v32 = vld [vmem:[%s2227_s27 + $0x70] sm:$0xff]  ;;  %v1968_v36 = vld [vmem:[%s2227_s27 + $0x78] sm:$0xff] }
  0x1a   : > { %v1975_v33 = vld [vmem:[%s2227_s27 + $0xb0] sm:$0xff]  ;;  %v1976_v37 = vld [vmem:[%s2227_s27 + $0xb8] sm:$0xff] }
  0x1b   : > { %v1983_v34 = vld [vmem:[%s2227_s27 + $0xf0] sm:$0xff]  ;;  %v1984_v38 = vld [vmem:[%s2227_s27 + $0xf8] sm:$0xff] }
  0x25   : > { %1856 = vmatmul.msk.bf16.gmra.mxu0 %vm664_vm2, %v1954_v11  ;;  %1864 = vmatmul.msk.bf16.gmra.mxu1 %vm664_vm2, %v1962_v12 }
  0x26   : > { %1872 = vmatmul.msk.bf16.gmra.mxu2 %vm664_vm2, %v1970_v13  ;;  %1880 = vmatmul.msk.bf16.gmra.mxu3 %vm664_vm2, %v1978_v14 }
  0x35   : > { %1857 = vmatmul.msk.bf16.gmra.mxu0 %vm664_vm2, %v1955_v15  ;;  %1865 = vmatmul.msk.bf16.gmra.mxu1 %vm664_vm2, %v1963_v16 }
  0x36   : > { %1873 = vmatmul.msk.bf16.gmra.mxu2 %vm664_vm2, %v1971_v17  ;;  %1881 = vmatmul.msk.bf16.gmra.mxu3 %vm664_vm2, %v1979_v18 }
  0x45   : > { %1858 = vmatmul.msk.bf16.gmra.mxu0 %vm664_vm2, %v1956_v19  ;;  %1866 = vmatmul.msk.bf16.gmra.mxu1 %vm664_vm2, %v1964_v20 }
  0x46   : > { %1874 = vmatmul.msk.bf16.gmra.mxu2 %vm664_vm2, %v1972_v21  ;;  %1882 = vmatmul.msk.bf16.gmra.mxu3 %vm664_vm2, %v1980_v22 }
  0x55   : > { %1859 = vmatmul.msk.bf16.gmra.mxu0 %vm664_vm2, %v1957_v23  ;;  %1867 = vmatmul.msk.bf16.gmra.mxu1 %vm664_vm2, %v1965_v24 }
  0x56   : > { %1875 = vmatmul.msk.bf16.gmra.mxu2 %vm664_vm2, %v1973_v25  ;;  %1883 = vmatmul.msk.bf16.gmra.mxu3 %vm664_vm2, %v1981_v26 }
  0x65   : > { %1860 = vmatmul.msk.bf16.gmra.mxu0 %vm664_vm2, %v1958_v27  ;;  %1868 = vmatmul.msk.bf16.gmra.mxu1 %vm664_vm2, %v1966_v28 }
  0x66   : > { %1876 = vmatmul.msk.bf16.gmra.mxu2 %vm664_vm2, %v1974_v29  ;;  %1884 = vmatmul.msk.bf16.gmra.mxu3 %vm664_vm2, %v1982_v30 }
  0x75   : > { %1861 = vmatmul.msk.bf16.gmra.mxu0 %vm664_vm2, %v1959_v31  ;;  %1869 = vmatmul.msk.bf16.gmra.mxu1 %vm664_vm2, %v1967_v32 }
  0x76   : > { %1877 = vmatmul.msk.bf16.gmra.mxu2 %vm664_vm2, %v1975_v33  ;;  %1885 = vmatmul.msk.bf16.gmra.mxu3 %vm664_vm2, %v1983_v34 }
  0x85   : > { %1862 = vmatmul.msk.bf16.gmra.mxu0 %vm664_vm2, %v1960_v35  ;;  %1870 = vmatmul.msk.bf16.gmra.mxu1 %vm664_vm2, %v1968_v36 }
  0x86   : > { %1878 = vmatmul.msk.bf16.gmra.mxu2 %vm664_vm2, %v1976_v37  ;;  %1886 = vmatmul.msk.bf16.gmra.mxu3 %vm664_vm2, %v1984_v38 }
  0x92   : > { %v777_v40 = vpop.f32.mrf.mxu0  ;;  %v817_v41 = vpop.f32.mrf.mxu1 }
  0x93   : > { %v1136_v42 = vmul.f32 %v2296_v39, %v777_v40  ;;  %v1152_v44 = vmul.f32 %v2296_v39, %v817_v41 }
  0x95   : > { %v1204_v45 = vadd.f32 %v2302_v43, %v1136_v42  ;;  %v1220_v46 = vadd.f32 %v2302_v43, %v1152_v44 }
  0x97   : > { %vm1268_vm3 = vcmp.ge.f32.partialorder %v1204_v45, 1.0  ;;  %vm1284_vm4 = vcmp.ge.f32.partialorder %v1220_v46, 1.0 }
  0x98   : > { %v1887_v60 = vsel %vm1268_vm3, 1.0, %v2169_v59  ;;  %v1903_v61 = vsel %vm1284_vm4, 1.0, %v2169_v59 }
  0x99   : > { %v857_v47 = vpop.f32.mrf.mxu2  ;;  %v897_v48 = vpop.f32.mrf.mxu3 }
  0x9a   : > { %v779_v49 = vpop.f32.mrf.mxu0  ;;  %v819_v50 = vpop.f32.mrf.mxu1  ;;  %v1168_v51 = vmul.f32 %v2296_v39, %v857_v47  ;;  %v1184_v52 = vmul.f32 %v2296_v39, %v897_v48 }
  0x9b   : > { %v1137_v53 = vmul.f32 %v2296_v39, %v779_v49  ;;  %v1153_v54 = vmul.f32 %v2296_v39, %v819_v50 }
  0x9c   : > { %v1236_v57 = vadd.f32 %v2302_v43, %v1168_v51  ;;  %v1252_v58 = vadd.f32 %v2302_v43, %v1184_v52 }
  0x9d   : > { %v1205_v55 = vadd.f32 %v2302_v43, %v1137_v53  ;;  %v1221_v56 = vadd.f32 %v2302_v43, %v1153_v54 }
  0x9e   : > { %vm1300_vm7 = vcmp.ge.f32.partialorder %v1236_v57, 1.0  ;;  %vm1316_vm8 = vcmp.ge.f32.partialorder %v1252_v58, 1.0 }
  0x9f   : > { %vm1269_vm5 = vcmp.ge.f32.partialorder %v1205_v55, 1.0  ;;  %vm1285_vm6 = vcmp.ge.f32.partialorder %v1221_v56, 1.0  ;;  %v1919_v12 = vsel %vm1300_vm7, 1.0, %v2169_v59  ;;  %v1935_v13 = vsel %vm1316_vm8, 1.0, %v2169_v59 }
  0xa0   : > { %v1888_v62 = vsel %vm1269_vm5, 1.0, %v2169_v59  ;;  %v1904_v63 = vsel %vm1285_vm6, 1.0, %v2169_v59 }
  0xa1   : > { %v1987_v0 = vpack.c.bf16 %v1888_v62, %v1887_v60  ;;  %v2011_v1 = vpack.c.bf16 %v1904_v63, %v1903_v61  ;;  %v859_v2 = vpop.f32.mrf.mxu2  ;;  %v899_v3 = vpop.f32.mrf.mxu3 }
  0xa2   : > { %v1169_v4 = vmul.f32 %v2296_v39, %v859_v2  ;;  %v1185_v5 = vmul.f32 %v2296_v39, %v899_v3  ;;  %v782_v6 = vpop.f32.mrf.mxu0  ;;  %v822_v7 = vpop.f32.mrf.mxu1 }
  0xa3   : > { %1988 = vst [vmem:[%s2322_s8] sm:$0xff] %v1987_v0   ;;  %v1138_v10 = vmul.f32 %v2296_v39, %v782_v6  ;;  %v1154_v11 = vmul.f32 %v2296_v39, %v822_v7 }
  0xa4   : > { %2089 = vst [vmem:[%s2322_s8 + $0x40] sm:$0xff] %v2011_v1   ;;  %v1237_v8 = vadd.f32 %v2302_v43, %v1169_v4  ;;  %v1253_v9 = vadd.f32 %v2302_v43, %v1185_v5 }
  0xa5   : > { %v1206_v18 = vadd.f32 %v2302_v43, %v1138_v10  ;;  %v1222_v19 = vadd.f32 %v2302_v43, %v1154_v11 }
  0xa6   : > { %vm1301_vm9 = vcmp.ge.f32.partialorder %v1237_v8, 1.0  ;;  %vm1317_vm10 = vcmp.ge.f32.partialorder %v1253_v9, 1.0 }
  0xa7   : > { %v1920_v14 = vsel %vm1301_vm9, 1.0, %v2169_v59  ;;  %v1936_v15 = vsel %vm1317_vm10, 1.0, %v2169_v59  ;;  %vm1270_vm11 = vcmp.ge.f32.partialorder %v1206_v18, 1.0  ;;  %vm1286_vm12 = vcmp.ge.f32.partialorder %v1222_v19, 1.0 }
  0xa8   : > { %v2035_v16 = vpack.c.bf16 %v1920_v14, %v1919_v12  ;;  %v2059_v17 = vpack.c.bf16 %v1936_v15, %v1935_v13  ;;  %v1889_v30 = vsel %vm1270_vm11, 1.0, %v2169_v59  ;;  %v1905_v31 = vsel %vm1286_vm12, 1.0, %v2169_v59 }
  0xa9   : > { %v862_v20 = vpop.f32.mrf.mxu2  ;;  %v902_v21 = vpop.f32.mrf.mxu3 }
  0xaa   : > { %2097 = vst [vmem:[%s2322_s8 + $0x80] sm:$0xff] %v2035_v16   ;;  %v784_v22 = vpop.f32.mrf.mxu0  ;;  %v824_v23 = vpop.f32.mrf.mxu1  ;;  %v1170_v26 = vmul.f32 %v2296_v39, %v862_v20  ;;  %v1186_v27 = vmul.f32 %v2296_v39, %v902_v21 }
  0xab   : > { %2105 = vst [vmem:[%s2322_s8 + $0xc0] sm:$0xff] %v2059_v17   ;;  %v1139_v24 = vmul.f32 %v2296_v39, %v784_v22  ;;  %v1155_v25 = vmul.f32 %v2296_v39, %v824_v23 }
  0xac   : > { %v1238_v32 = vadd.f32 %v2302_v43, %v1170_v26  ;;  %v1254_v33 = vadd.f32 %v2302_v43, %v1186_v27 }
  0xad   : > { %v1207_v28 = vadd.f32 %v2302_v43, %v1139_v24  ;;  %v1223_v29 = vadd.f32 %v2302_v43, %v1155_v25 }
  0xae   : > { %vm1302_vm15 = vcmp.ge.f32.partialorder %v1238_v32, 1.0  ;;  %vm1318_vm0 = vcmp.ge.f32.partialorder %v1254_v33, 1.0 }
  0xaf   : > { %vm1271_vm13 = vcmp.ge.f32.partialorder %v1207_v28, 1.0  ;;  %vm1287_vm14 = vcmp.ge.f32.partialorder %v1223_v29, 1.0  ;;  %v1921_v50 = vsel %vm1302_vm15, 1.0, %v2169_v59  ;;  %v1937_v51 = vsel %vm1318_vm0, 1.0, %v2169_v59 }
  0xb0   : > { %v1890_v34 = vsel %vm1271_vm13, 1.0, %v2169_v59  ;;  %v1906_v35 = vsel %vm1287_vm14, 1.0, %v2169_v59 }
  0xb1   : > { %v1990_v36 = vpack.c.bf16 %v1890_v34, %v1889_v30  ;;  %v2014_v37 = vpack.c.bf16 %v1906_v35, %v1905_v31  ;;  %v864_v38 = vpop.f32.mrf.mxu2  ;;  %v904_v40 = vpop.f32.mrf.mxu3 }
  0xb2   : > { %v1171_v41 = vmul.f32 %v2296_v39, %v864_v38  ;;  %v1187_v42 = vmul.f32 %v2296_v39, %v904_v40  ;;  %v787_v44 = vpop.f32.mrf.mxu0  ;;  %v827_v45 = vpop.f32.mrf.mxu1 }
  0xb3   : > { %2082 = vst [vmem:[%s2322_s8 + $0x8] sm:$0xff] %v1990_v36   ;;  %v1140_v48 = vmul.f32 %v2296_v39, %v787_v44  ;;  %v1156_v49 = vmul.f32 %v2296_v39, %v827_v45 }
  0xb4   : > { %2090 = vst [vmem:[%s2322_s8 + $0x48] sm:$0xff] %v2014_v37   ;;  %v1239_v46 = vadd.f32 %v2302_v43, %v1171_v41  ;;  %v1255_v47 = vadd.f32 %v2302_v43, %v1187_v42 }
  0xb5   : > { %v1208_v56 = vadd.f32 %v2302_v43, %v1140_v48  ;;  %v1224_v57 = vadd.f32 %v2302_v43, %v1156_v49 }
  0xb6   : > { %vm1303_vm1 = vcmp.ge.f32.partialorder %v1239_v46, 1.0  ;;  %vm1319_vm2 = vcmp.ge.f32.partialorder %v1255_v47, 1.0 }
  0xb7   : > { %v1922_v52 = vsel %vm1303_vm1, 1.0, %v2169_v59  ;;  %v1938_v53 = vsel %vm1319_vm2, 1.0, %v2169_v59  ;;  %vm1272_vm3 = vcmp.ge.f32.partialorder %v1208_v56, 1.0  ;;  %vm1288_vm4 = vcmp.ge.f32.partialorder %v1224_v57, 1.0 }
  0xb8   : > { %v2038_v54 = vpack.c.bf16 %v1922_v52, %v1921_v50  ;;  %v2062_v55 = vpack.c.bf16 %v1938_v53, %v1937_v51  ;;  %v1891_v7 = vsel %vm1272_vm3, 1.0, %v2169_v59  ;;  %v1907_v8 = vsel %vm1288_vm4, 1.0, %v2169_v59 }
  0xb9   : > { %v867_v58 = vpop.f32.mrf.mxu2  ;;  %v907_v60 = vpop.f32.mrf.mxu3 }
  0xba   : > { %2098 = vst [vmem:[%s2322_s8 + $0x88] sm:$0xff] %v2038_v54   ;;  %v789_v61 = vpop.f32.mrf.mxu0  ;;  %v829_v62 = vpop.f32.mrf.mxu1  ;;  %v1172_v63 = vmul.f32 %v2296_v39, %v867_v58  ;;  %v1188_v0 = vmul.f32 %v2296_v39, %v907_v60 }
  0xbb   : > { %2106 = vst [vmem:[%s2322_s8 + $0xc8] sm:$0xff] %v2062_v55   ;;  %v1141_v1 = vmul.f32 %v2296_v39, %v789_v61  ;;  %v1157_v2 = vmul.f32 %v2296_v39, %v829_v62 }
  0xbc   : > { %v1240_v5 = vadd.f32 %v2302_v43, %v1172_v63  ;;  %v1256_v6 = vadd.f32 %v2302_v43, %v1188_v0 }
  0xbd   : > { %v1209_v3 = vadd.f32 %v2302_v43, %v1141_v1  ;;  %v1225_v4 = vadd.f32 %v2302_v43, %v1157_v2 }
  0xbe   : > { %vm1304_vm7 = vcmp.ge.f32.partialorder %v1240_v5, 1.0  ;;  %vm1320_vm8 = vcmp.ge.f32.partialorder %v1256_v6, 1.0 }
  0xbf   : > { %vm1273_vm5 = vcmp.ge.f32.partialorder %v1209_v3, 1.0  ;;  %vm1289_vm6 = vcmp.ge.f32.partialorder %v1225_v4, 1.0  ;;  %v1923_v23 = vsel %vm1304_vm7, 1.0, %v2169_v59  ;;  %v1939_v24 = vsel %vm1320_vm8, 1.0, %v2169_v59 }
  0xc0   : > { %v1892_v9 = vsel %vm1273_vm5, 1.0, %v2169_v59  ;;  %v1908_v10 = vsel %vm1289_vm6, 1.0, %v2169_v59 }
  0xc1   : > { %v1993_v11 = vpack.c.bf16 %v1892_v9, %v1891_v7  ;;  %v2017_v12 = vpack.c.bf16 %v1908_v10, %v1907_v8  ;;  %v869_v13 = vpop.f32.mrf.mxu2  ;;  %v909_v14 = vpop.f32.mrf.mxu3 }
  0xc2   : > { %v1173_v15 = vmul.f32 %v2296_v39, %v869_v13  ;;  %v1189_v16 = vmul.f32 %v2296_v39, %v909_v14  ;;  %v792_v17 = vpop.f32.mrf.mxu0  ;;  %v832_v18 = vpop.f32.mrf.mxu1 }
  0xc3   : > { %2083 = vst [vmem:[%s2322_s8 + $0x10] sm:$0xff] %v1993_v11   ;;  %v1142_v21 = vmul.f32 %v2296_v39, %v792_v17  ;;  %v1158_v22 = vmul.f32 %v2296_v39, %v832_v18 }
  0xc4   : > { %2091 = vst [vmem:[%s2322_s8 + $0x50] sm:$0xff] %v2017_v12   ;;  %v1241_v19 = vadd.f32 %v2302_v43, %v1173_v15  ;;  %v1257_v20 = vadd.f32 %v2302_v43, %v1189_v16 }
  0xc5   : > { %v1210_v29 = vadd.f32 %v2302_v43, %v1142_v21  ;;  %v1226_v30 = vadd.f32 %v2302_v43, %v1158_v22 }
  0xc6   : > { %vm1305_vm9 = vcmp.ge.f32.partialorder %v1241_v19, 1.0  ;;  %vm1321_vm10 = vcmp.ge.f32.partialorder %v1257_v20, 1.0 }
  0xc7   : > { %v1924_v25 = vsel %vm1305_vm9, 1.0, %v2169_v59  ;;  %v1940_v26 = vsel %vm1321_vm10, 1.0, %v2169_v59  ;;  %vm1274_vm11 = vcmp.ge.f32.partialorder %v1210_v29, 1.0  ;;  %vm1290_vm12 = vcmp.ge.f32.partialorder %v1226_v30, 1.0 }
  0xc8   : > { %v2041_v27 = vpack.c.bf16 %v1924_v25, %v1923_v23  ;;  %v2065_v28 = vpack.c.bf16 %v1940_v26, %v1939_v24  ;;  %v1893_v42 = vsel %vm1274_vm11, 1.0, %v2169_v59  ;;  %v1909_v44 = vsel %vm1290_vm12, 1.0, %v2169_v59 }
  0xc9   : > { %v872_v31 = vpop.f32.mrf.mxu2  ;;  %v912_v32 = vpop.f32.mrf.mxu3 }
  0xca   : > { %2099 = vst [vmem:[%s2322_s8 + $0x90] sm:$0xff] %v2041_v27   ;;  %v794_v33 = vpop.f32.mrf.mxu0  ;;  %v834_v34 = vpop.f32.mrf.mxu1  ;;  %v1174_v37 = vmul.f32 %v2296_v39, %v872_v31  ;;  %v1190_v38 = vmul.f32 %v2296_v39, %v912_v32 }
  0xcb   : > { %2107 = vst [vmem:[%s2322_s8 + $0xd0] sm:$0xff] %v2065_v28   ;;  %v1143_v35 = vmul.f32 %v2296_v39, %v794_v33  ;;  %v1159_v36 = vmul.f32 %v2296_v39, %v834_v34 }
  0xcc   : > { %v1242_v45 = vadd.f32 %v2302_v43, %v1174_v37  ;;  %v1258_v46 = vadd.f32 %v2302_v43, %v1190_v38 }
  0xcd   : > { %v1211_v40 = vadd.f32 %v2302_v43, %v1143_v35  ;;  %v1227_v41 = vadd.f32 %v2302_v43, %v1159_v36 }
  0xce   : > { %vm1306_vm15 = vcmp.ge.f32.partialorder %v1242_v45, 1.0  ;;  %vm1322_vm0 = vcmp.ge.f32.partialorder %v1258_v46, 1.0 }
  0xcf   : > { %vm1275_vm13 = vcmp.ge.f32.partialorder %v1211_v40, 1.0  ;;  %vm1291_vm14 = vcmp.ge.f32.partialorder %v1227_v41, 1.0  ;;  %v1925_v62 = vsel %vm1306_vm15, 1.0, %v2169_v59  ;;  %v1941_v63 = vsel %vm1322_vm0, 1.0, %v2169_v59 }
  0xd0   : > { %v1894_v47 = vsel %vm1275_vm13, 1.0, %v2169_v59  ;;  %v1910_v48 = vsel %vm1291_vm14, 1.0, %v2169_v59 }
  0xd1   : > { %v1996_v49 = vpack.c.bf16 %v1894_v47, %v1893_v42  ;;  %v2020_v50 = vpack.c.bf16 %v1910_v48, %v1909_v44  ;;  %v874_v51 = vpop.f32.mrf.mxu2  ;;  %v914_v52 = vpop.f32.mrf.mxu3 }
  0xd2   : > { %v1175_v53 = vmul.f32 %v2296_v39, %v874_v51  ;;  %v1191_v54 = vmul.f32 %v2296_v39, %v914_v52  ;;  %v797_v55 = vpop.f32.mrf.mxu0  ;;  %v837_v56 = vpop.f32.mrf.mxu1 }
  0xd3   : > { %2084 = vst [vmem:[%s2322_s8 + $0x18] sm:$0xff] %v1996_v49   ;;  %v1144_v60 = vmul.f32 %v2296_v39, %v797_v55  ;;  %v1160_v61 = vmul.f32 %v2296_v39, %v837_v56 }
  0xd4   : > { %2092 = vst [vmem:[%s2322_s8 + $0x58] sm:$0xff] %v2020_v50   ;;  %v1243_v57 = vadd.f32 %v2302_v43, %v1175_v53  ;;  %v1259_v58 = vadd.f32 %v2302_v43, %v1191_v54 }
  0xd5   : > { %v1212_v4 = vadd.f32 %v2302_v43, %v1144_v60  ;;  %v1228_v5 = vadd.f32 %v2302_v43, %v1160_v61 }
  0xd6   : > { %vm1307_vm1 = vcmp.ge.f32.partialorder %v1243_v57, 1.0  ;;  %vm1323_vm2 = vcmp.ge.f32.partialorder %v1259_v58, 1.0 }
  0xd7   : > { %v1926_v0 = vsel %vm1307_vm1, 1.0, %v2169_v59  ;;  %v1942_v1 = vsel %vm1323_vm2, 1.0, %v2169_v59  ;;  %vm1276_vm3 = vcmp.ge.f32.partialorder %v1212_v4, 1.0  ;;  %vm1292_vm4 = vcmp.ge.f32.partialorder %v1228_v5, 1.0 }
  0xd8   : > { %v2044_v2 = vpack.c.bf16 %v1926_v0, %v1925_v62  ;;  %v2068_v3 = vpack.c.bf16 %v1942_v1, %v1941_v63  ;;  %v1895_v18 = vsel %vm1276_vm3, 1.0, %v2169_v59  ;;  %v1911_v19 = vsel %vm1292_vm4, 1.0, %v2169_v59 }
  0xd9   : > { %v877_v6 = vpop.f32.mrf.mxu2  ;;  %v917_v7 = vpop.f32.mrf.mxu3 }
  0xda   : > { %2100 = vst [vmem:[%s2322_s8 + $0x98] sm:$0xff] %v2044_v2   ;;  %v799_v8 = vpop.f32.mrf.mxu0  ;;  %v839_v9 = vpop.f32.mrf.mxu1  ;;  %v1176_v10 = vmul.f32 %v2296_v39, %v877_v6  ;;  %v1192_v11 = vmul.f32 %v2296_v39, %v917_v7 }
  0xdb   : > { %2108 = vst [vmem:[%s2322_s8 + $0xd8] sm:$0xff] %v2068_v3   ;;  %v1145_v12 = vmul.f32 %v2296_v39, %v799_v8  ;;  %v1161_v13 = vmul.f32 %v2296_v39, %v839_v9 }
  0xdc   : > { %v1244_v16 = vadd.f32 %v2302_v43, %v1176_v10  ;;  %v1260_v17 = vadd.f32 %v2302_v43, %v1192_v11 }
  0xdd   : > { %v1213_v14 = vadd.f32 %v2302_v43, %v1145_v12  ;;  %v1229_v15 = vadd.f32 %v2302_v43, %v1161_v13 }
  0xde   : > { %vm1308_vm7 = vcmp.ge.f32.partialorder %v1244_v16, 1.0  ;;  %vm1324_vm8 = vcmp.ge.f32.partialorder %v1260_v17, 1.0 }
  0xdf   : > { %vm1277_vm5 = vcmp.ge.f32.partialorder %v1213_v14, 1.0  ;;  %vm1293_vm6 = vcmp.ge.f32.partialorder %v1229_v15, 1.0  ;;  %v1927_v34 = vsel %vm1308_vm7, 1.0, %v2169_v59  ;;  %v1943_v35 = vsel %vm1324_vm8, 1.0, %v2169_v59 }
  0xe0   : > { %v1896_v20 = vsel %vm1277_vm5, 1.0, %v2169_v59  ;;  %v1912_v21 = vsel %vm1293_vm6, 1.0, %v2169_v59 }
  0xe1   : > { %v1999_v22 = vpack.c.bf16 %v1896_v20, %v1895_v18  ;;  %v2023_v23 = vpack.c.bf16 %v1912_v21, %v1911_v19  ;;  %v879_v24 = vpop.f32.mrf.mxu2  ;;  %v919_v25 = vpop.f32.mrf.mxu3 }
  0xe2   : > { %v1177_v26 = vmul.f32 %v2296_v39, %v879_v24  ;;  %v1193_v27 = vmul.f32 %v2296_v39, %v919_v25  ;;  %v802_v28 = vpop.f32.mrf.mxu0  ;;  %v842_v29 = vpop.f32.mrf.mxu1 }
  0xe3   : > { %2085 = vst [vmem:[%s2322_s8 + $0x20] sm:$0xff] %v1999_v22   ;;  %v1146_v32 = vmul.f32 %v2296_v39, %v802_v28  ;;  %v1162_v33 = vmul.f32 %v2296_v39, %v842_v29 }
  0xe4   : > { %2093 = vst [vmem:[%s2322_s8 + $0x60] sm:$0xff] %v2023_v23   ;;  %v1245_v30 = vadd.f32 %v2302_v43, %v1177_v26  ;;  %v1261_v31 = vadd.f32 %v2302_v43, %v1193_v27 }
  0xe5   : > { %v1214_v41 = vadd.f32 %v2302_v43, %v1146_v32  ;;  %v1230_v42 = vadd.f32 %v2302_v43, %v1162_v33 }
  0xe6   : > { %vm1309_vm9 = vcmp.ge.f32.partialorder %v1245_v30, 1.0  ;;  %vm1325_vm10 = vcmp.ge.f32.partialorder %v1261_v31, 1.0 }
  0xe7   : > { %v1928_v36 = vsel %vm1309_vm9, 1.0, %v2169_v59  ;;  %v1944_v37 = vsel %vm1325_vm10, 1.0, %v2169_v59  ;;  %vm1278_vm11 = vcmp.ge.f32.partialorder %v1214_v41, 1.0  ;;  %vm1294_vm12 = vcmp.ge.f32.partialorder %v1230_v42, 1.0 }
  0xe8   : > { %v2047_v38 = vpack.c.bf16 %v1928_v36, %v1927_v34  ;;  %v2071_v40 = vpack.c.bf16 %v1944_v37, %v1943_v35  ;;  %v1897_v54 = vsel %vm1278_vm11, 1.0, %v2169_v59  ;;  %v1913_v55 = vsel %vm1294_vm12, 1.0, %v2169_v59 }
  0xe9   : > { %v882_v44 = vpop.f32.mrf.mxu2  ;;  %v922_v45 = vpop.f32.mrf.mxu3 }
  0xea   : > { %2101 = vst [vmem:[%s2322_s8 + $0xa0] sm:$0xff] %v2047_v38   ;;  %v804_v46 = vpop.f32.mrf.mxu0  ;;  %v844_v47 = vpop.f32.mrf.mxu1  ;;  %v1178_v50 = vmul.f32 %v2296_v39, %v882_v44  ;;  %v1194_v51 = vmul.f32 %v2296_v39, %v922_v45 }
  0xeb   : > { %2109 = vst [vmem:[%s2322_s8 + $0xe0] sm:$0xff] %v2071_v40   ;;  %v1147_v48 = vmul.f32 %v2296_v39, %v804_v46  ;;  %v1163_v49 = vmul.f32 %v2296_v39, %v844_v47 }
  0xec   : > { %v1246_v56 = vadd.f32 %v2302_v43, %v1178_v50  ;;  %v1262_v57 = vadd.f32 %v2302_v43, %v1194_v51 }
  0xed   : > { %v1215_v52 = vadd.f32 %v2302_v43, %v1147_v48  ;;  %v1231_v53 = vadd.f32 %v2302_v43, %v1163_v49 }
  0xee   : > { %vm1310_vm15 = vcmp.ge.f32.partialorder %v1246_v56, 1.0  ;;  %vm1326_vm0 = vcmp.ge.f32.partialorder %v1262_v57, 1.0 }
  0xef   : > { %vm1279_vm13 = vcmp.ge.f32.partialorder %v1215_v52, 1.0  ;;  %vm1295_vm14 = vcmp.ge.f32.partialorder %v1231_v53, 1.0  ;;  %v1929_v9 = vsel %vm1310_vm15, 1.0, %v2169_v59  ;;  %v1945_v10 = vsel %vm1326_vm0, 1.0, %v2169_v59 }
  0xf0   : > { %v1898_v58 = vsel %vm1279_vm13, 1.0, %v2169_v59  ;;  %v1914_v60 = vsel %vm1295_vm14, 1.0, %v2169_v59 }
  0xf1   : > { %v2002_v61 = vpack.c.bf16 %v1898_v58, %v1897_v54  ;;  %v2026_v62 = vpack.c.bf16 %v1914_v60, %v1913_v55  ;;  %v884_v63 = vpop.f32.mrf.mxu2  ;;  %v924_v0 = vpop.f32.mrf.mxu3 }
  0xf2   : > { %v1179_v1 = vmul.f32 %v2296_v39, %v884_v63  ;;  %v1195_v2 = vmul.f32 %v2296_v39, %v924_v0  ;;  %v807_v3 = vpop.f32.mrf.mxu0  ;;  %v847_v4 = vpop.f32.mrf.mxu1 }
  0xf3   : > { %2086 = vst [vmem:[%s2322_s8 + $0x28] sm:$0xff] %v2002_v61   ;;  %v1148_v7 = vmul.f32 %v2296_v39, %v807_v3  ;;  %v1164_v8 = vmul.f32 %v2296_v39, %v847_v4 }
  0xf4   : > { %2094 = vst [vmem:[%s2322_s8 + $0x68] sm:$0xff] %v2026_v62   ;;  %v1247_v5 = vadd.f32 %v2302_v43, %v1179_v1  ;;  %v1263_v6 = vadd.f32 %v2302_v43, %v1195_v2 }
  0xf5   : > { %v1216_v15 = vadd.f32 %v2302_v43, %v1148_v7  ;;  %v1232_v16 = vadd.f32 %v2302_v43, %v1164_v8 }
  0xf6   : > { %vm1311_vm1 = vcmp.ge.f32.partialorder %v1247_v5, 1.0  ;;  %vm1327_vm2 = vcmp.ge.f32.partialorder %v1263_v6, 1.0 }
  0xf7   : > { %v1930_v11 = vsel %vm1311_vm1, 1.0, %v2169_v59  ;;  %v1946_v12 = vsel %vm1327_vm2, 1.0, %v2169_v59  ;;  %vm1280_vm3 = vcmp.ge.f32.partialorder %v1216_v15, 1.0  ;;  %vm1296_vm4 = vcmp.ge.f32.partialorder %v1232_v16, 1.0 }
  0xf8   : > { %v2050_v13 = vpack.c.bf16 %v1930_v11, %v1929_v9  ;;  %v2074_v14 = vpack.c.bf16 %v1946_v12, %v1945_v10  ;;  %v1899_v29 = vsel %vm1280_vm3, 1.0, %v2169_v59  ;;  %v1915_v30 = vsel %vm1296_vm4, 1.0, %v2169_v59 }
  0xf9   : > { %v887_v17 = vpop.f32.mrf.mxu2  ;;  %v927_v18 = vpop.f32.mrf.mxu3 }
  0xfa   : > { %2102 = vst [vmem:[%s2322_s8 + $0xa8] sm:$0xff] %v2050_v13   ;;  %v809_v19 = vpop.f32.mrf.mxu0  ;;  %v849_v20 = vpop.f32.mrf.mxu1  ;;  %v1180_v21 = vmul.f32 %v2296_v39, %v887_v17  ;;  %v1196_v22 = vmul.f32 %v2296_v39, %v927_v18 }
  0xfb   : > { %2110 = vst [vmem:[%s2322_s8 + $0xe8] sm:$0xff] %v2074_v14   ;;  %v1149_v23 = vmul.f32 %v2296_v39, %v809_v19  ;;  %v1165_v24 = vmul.f32 %v2296_v39, %v849_v20 }
  0xfc   : > { %v1248_v27 = vadd.f32 %v2302_v43, %v1180_v21  ;;  %v1264_v28 = vadd.f32 %v2302_v43, %v1196_v22 }
  0xfd   : > { %v1217_v25 = vadd.f32 %v2302_v43, %v1149_v23  ;;  %v1233_v26 = vadd.f32 %v2302_v43, %v1165_v24 }
  0xfe   : > { %vm1312_vm7 = vcmp.ge.f32.partialorder %v1248_v27, 1.0  ;;  %vm1328_vm8 = vcmp.ge.f32.partialorder %v1264_v28, 1.0 }
  0xff   : > { %vm1281_vm5 = vcmp.ge.f32.partialorder %v1217_v25, 1.0  ;;  %vm1297_vm6 = vcmp.ge.f32.partialorder %v1233_v26, 1.0  ;;  %v1931_v47 = vsel %vm1312_vm7, 1.0, %v2169_v59  ;;  %v1947_v48 = vsel %vm1328_vm8, 1.0, %v2169_v59 }
 0x100   : > { %v1900_v31 = vsel %vm1281_vm5, 1.0, %v2169_v59  ;;  %v1916_v32 = vsel %vm1297_vm6, 1.0, %v2169_v59 }
 0x101   : > { %v2005_v33 = vpack.c.bf16 %v1900_v31, %v1899_v29  ;;  %v2029_v34 = vpack.c.bf16 %v1916_v32, %v1915_v30  ;;  %v889_v35 = vpop.f32.mrf.mxu2  ;;  %v929_v36 = vpop.f32.mrf.mxu3 }
 0x102   : > { %v1181_v37 = vmul.f32 %v2296_v39, %v889_v35  ;;  %v1197_v38 = vmul.f32 %v2296_v39, %v929_v36  ;;  %v812_v40 = vpop.f32.mrf.mxu0  ;;  %v852_v41 = vpop.f32.mrf.mxu1 }
 0x103   : > { %2087 = vst [vmem:[%s2322_s8 + $0x30] sm:$0xff] %v2005_v33   ;;  %v1150_v45 = vmul.f32 %v2296_v39, %v812_v40  ;;  %v1166_v46 = vmul.f32 %v2296_v39, %v852_v41 }
 0x104   : > { %2095 = vst [vmem:[%s2322_s8 + $0x70] sm:$0xff] %v2029_v34   ;;  %v1249_v42 = vadd.f32 %v2302_v43, %v1181_v37  ;;  %v1265_v44 = vadd.f32 %v2302_v43, %v1197_v38 }
 0x105   : > { %v1218_v53 = vadd.f32 %v2302_v43, %v1150_v45  ;;  %v1234_v54 = vadd.f32 %v2302_v43, %v1166_v46 }
 0x106   : > { %vm1313_vm9 = vcmp.ge.f32.partialorder %v1249_v42, 1.0  ;;  %vm1329_vm10 = vcmp.ge.f32.partialorder %v1265_v44, 1.0 }
 0x107   : > { %v1932_v49 = vsel %vm1313_vm9, 1.0, %v2169_v59  ;;  %v1948_v50 = vsel %vm1329_vm10, 1.0, %v2169_v59  ;;  %vm1282_vm11 = vcmp.ge.f32.partialorder %v1218_v53, 1.0  ;;  %vm1298_vm12 = vcmp.ge.f32.partialorder %v1234_v54, 1.0 }
 0x108   : > { %v2053_v51 = vpack.c.bf16 %v1932_v49, %v1931_v47  ;;  %v2077_v52 = vpack.c.bf16 %v1948_v50, %v1947_v48  ;;  %v1901_v2 = vsel %vm1282_vm11, 1.0, %v2169_v59  ;;  %v1917_v3 = vsel %vm1298_vm12, 1.0, %v2169_v59 }
 0x109   : > { %v892_v55 = vpop.f32.mrf.mxu2  ;;  %v932_v56 = vpop.f32.mrf.mxu3 }
 0x10a   : > { %2103 = vst [vmem:[%s2322_s8 + $0xb0] sm:$0xff] %v2053_v51   ;;  %v814_v57 = vpop.f32.mrf.mxu0  ;;  %v854_v58 = vpop.f32.mrf.mxu1  ;;  %v1182_v62 = vmul.f32 %v2296_v39, %v892_v55  ;;  %v1198_v63 = vmul.f32 %v2296_v39, %v932_v56 }
 0x10b   : > { %2111 = vst [vmem:[%s2322_s8 + $0xf0] sm:$0xff] %v2077_v52   ;;  %v1151_v60 = vmul.f32 %v2296_v39, %v814_v57  ;;  %v1167_v61 = vmul.f32 %v2296_v39, %v854_v58 }
 0x10c   : > { %v1250_v4 = vadd.f32 %v2302_v43, %v1182_v62  ;;  %v1266_v5 = vadd.f32 %v2302_v43, %v1198_v63 }
 0x10d   : > { %v1219_v0 = vadd.f32 %v2302_v43, %v1151_v60  ;;  %v1235_v1 = vadd.f32 %v2302_v43, %v1167_v61 }
 0x10e   : > { %vm1314_vm15 = vcmp.ge.f32.partialorder %v1250_v4, 1.0  ;;  %vm1330_vm0 = vcmp.ge.f32.partialorder %v1266_v5, 1.0 }
 0x10f   : > { %vm1283_vm13 = vcmp.ge.f32.partialorder %v1219_v0, 1.0  ;;  %vm1299_vm14 = vcmp.ge.f32.partialorder %v1235_v1, 1.0  ;;  %v1933_v16 = vsel %vm1314_vm15, 1.0, %v2169_v59  ;;  %v1949_v17 = vsel %vm1330_vm0, 1.0, %v2169_v59 }
 0x110   : > { %v1902_v6 = vsel %vm1283_vm13, 1.0, %v2169_v59  ;;  %v1918_v7 = vsel %vm1299_vm14, 1.0, %v2169_v59 }
 0x111   : > { %v2008_v8 = vpack.c.bf16 %v1902_v6, %v1901_v2  ;;  %v2032_v9 = vpack.c.bf16 %v1918_v7, %v1917_v3  ;;  %v894_v10 = vpop.f32.mrf.mxu2  ;;  %v934_v11 = vpop.f32.mrf.mxu3 }
 0x112   : > { %v1183_v12 = vmul.f32 %v2296_v39, %v894_v10  ;;  %v1199_v13 = vmul.f32 %v2296_v39, %v934_v11 }
 0x113   : > { %2088 = vst [vmem:[%s2322_s8 + $0x38] sm:$0xff] %v2008_v8  }
 0x114   : > { %2096 = vst [vmem:[%s2322_s8 + $0x78] sm:$0xff] %v2032_v9   ;;  %v1251_v14 = vadd.f32 %v2302_v43, %v1183_v12  ;;  %v1267_v15 = vadd.f32 %v2302_v43, %v1199_v13 }
 0x116   : > { %vm1315_vm1 = vcmp.ge.f32.partialorder %v1251_v14, 1.0  ;;  %vm1331_vm2 = vcmp.ge.f32.partialorder %v1267_v15, 1.0 }
 0x117   : > { %v1934_v18 = vsel %vm1315_vm1, 1.0, %v2169_v59  ;;  %v1950_v19 = vsel %vm1331_vm2, 1.0, %v2169_v59 }
 0x118   : > { %v2056_v39 = vpack.c.bf16 %v1934_v18, %v1933_v16  ;;  %v2080_v20 = vpack.c.bf16 %v1950_v19, %v1949_v17 }
 0x11a   : > { %2104 = vst [vmem:[%s2322_s8 + $0xb8] sm:$0xff] %v2056_v39  }
 0x11b   : > { %2112 = vst [vmem:[%s2322_s8 + $0xf8] sm:$0xff] %v2080_v20  }
 0x11c PF: > { %s14_s17 = sadd.s32 1, %s2166_s17   ;;  %s2548_s15 = smov %s2162_s16 }
 0x11d   : > { %p11_p5 = scmp.ge.s32.totalorder %s14_s17, 6   ;;  %s2549_s16 = smov %s2551_s18 }
 0x11f   :  { %13 = sbr.rel (!%p11_p5) target bundleno = 2 (0x2), region = 83 }

// kernel: mnist_net_forward.9
= control target key start
LH: loop header
LB: loop body
LE: loop exit
PB: predicated region body
PF: predicated region fallthrough
CT: control target
= control target key end

     0   :  { %s344_s30 = smov 120   ;;  %vm190_vm0 = vcmask 60416   ;;  %vm191_vm1 = vsmask.f32 3328  ;;  %s553_s0 = inlined_call_operand.vmem [shape: bf16[14,2,7,16], index: 0, kind: input, shape index: {}]   ;;  %s554_s1 = inlined_call_operand.vmem [shape: bf16[14,7,8], index: 1, kind: output, shape index: {}]  }
   0x1   :  { %v240_v0 = vld [vmem:[%s553_s0] sm:$0xff]   ;;  %v295_v1 = vld [vmem:[%s553_s0 + $0x8] sm:$0xff]   ;;  %v296_v8 = vld [vmem:[%s553_s0 + $0x10] sm:$0xff]  }
   0x2   :  { %v298_v2 = vld [vmem:[%s553_s0 + $0x20] sm:$0xff]   ;;  %v241_v3 = vunpack.c.l.bf16 %v240_v0  ;;  %v242_v4 = vunpack.c.h.bf16 %v240_v0  ;;  %v245_v5 = vunpack.c.l.bf16 %v295_v1  ;;  %v246_v6 = vunpack.c.h.bf16 %v295_v1  ;;  %v299_v7 = vld [vmem:[%s553_s0 + $0x28] sm:$0xff]   ;;  %v297_v9 = vld [vmem:[%s553_s0 + $0x18] sm:$0xff]  }
   0x3   :  { %v257_v10 = vunpack.c.l.bf16 %v298_v2  ;;  %v258_v11 = vunpack.c.h.bf16 %v298_v2  ;;  %v261_v12 = vunpack.c.l.bf16 %v299_v7  ;;  %v262_v13 = vunpack.c.h.bf16 %v299_v7  ;;  %v300_v14 = vld [vmem:[%s553_s0 + $0x30] sm:$0xff]   ;;  %v301_v23 = vld [vmem:[%s553_s0 + $0x38] sm:$0xff]   ;;  %v306_v28 = vld [vmem:[%s553_s0 + $0x60] sm:$0xff]  }
   0x4   :  { %v376_v15 = vmax.f32 %v241_v3, %v242_v4  ;;  %v378_v16 = vmax.f32 %v245_v5, %v246_v6  ;;  %v249_v17 = vunpack.c.l.bf16 %v296_v8  ;;  %v250_v18 = vunpack.c.h.bf16 %v296_v8  ;;  %v307_v31 = vld [vmem:[%s553_s0 + $0x68] sm:$0xff]   ;;  %v302_v32 = vld [vmem:[%s553_s0 + $0x40] sm:$0xff]   ;;  %v304_v43 = vld [vmem:[%s553_s0 + $0x50] sm:$0xff]  }
   0x5   :  { %v380_v19 = vmax.f32 %v257_v10, %v258_v11  ;;  %v382_v20 = vmax.f32 %v261_v12, %v262_v13  ;;  %v253_v21 = vunpack.c.l.bf16 %v297_v9  ;;  %v254_v22 = vunpack.c.h.bf16 %v297_v9  ;;  %v303_v39 = vld [vmem:[%s553_s0 + $0x48] sm:$0xff]   ;;  %v305_v47 = vld [vmem:[%s553_s0 + $0x58] sm:$0xff]   ;;  %v217_v4 = vld [vmem:[%s554_s1 + $0x20] sm:$0xf] }
   0x6   :  { %v387_v24 = vmax.f32 %v249_v17, %v250_v18  ;;  %v265_v25 = vunpack.c.l.bf16 %v300_v14  ;;  %v266_v27 = vunpack.c.h.bf16 %v300_v14  ;;  %v269_v29 = vunpack.c.l.bf16 %v301_v23  ;;  %v220_v5 = vld [vmem:[%s554_s1 + $0x24] sm:$0xf]  ;;  %vm433_vm2 = vmand %vm190_vm0, %vm191_vm1 }
   0x7   :  { %v389_v26 = vmax.f32 %v253_v21, %v254_v22  ;;  %v270_v30 = vunpack.c.h.bf16 %v301_v23  ;;  %v309_v33 = vpack.i.bf16 %v378_v16, %v376_v15  ;;  %v289_v35 = vunpack.c.l.bf16 %v306_v28  ;;  %v223_v21 = vld [vmem:[%s554_s1 + $0x28] sm:$0xf]  ;;  %v226_v22 = vld [vmem:[%s554_s1 + $0x2c] sm:$0xf] }
   0x8   :  { %v402_v34 = vmax.f32 %v265_v25, %v266_v27  ;;  %v319_v36 = vpack.i.bf16 %v382_v20, %v380_v19  ;;  %v290_v38 = vunpack.c.h.bf16 %v306_v28  ;;  %v293_v40 = vunpack.c.l.bf16 %v307_v31 }
   0x9   :  { %v406_v37 = vmax.f32 %v269_v29, %v270_v30  ;;  %310 = vrot.lane.b32.xlu0 %v309_v33, %s344_s30  ;;  %v294_v41 = vunpack.c.h.bf16 %v307_v31  ;;  %v273_v42 = vunpack.c.l.bf16 %v302_v32  ;;  %v314_v44 = vpack.i.bf16 %v389_v26, %v387_v24 }
   0xa   :  { %320 = vrot.lane.b32.xlu1 %v319_v36, %s344_s30  ;;  %v416_v45 = vmax.f32 %v289_v35, %v290_v38  ;;  %v274_v46 = vunpack.c.h.bf16 %v302_v32  ;;  %v277_v49 = vunpack.c.l.bf16 %v303_v39  ;;  %v278_v50 = vunpack.c.h.bf16 %v303_v39  ;;  %v193_v38 = vld [vmem:[%s554_s1] sm:$0xf]  ;;  %v196_v39 = vld [vmem:[%s554_s1 + $0x4] sm:$0xf] }
   0xb   :  { %v421_v48 = vmax.f32 %v293_v40, %v294_v41  ;;  %v281_v52 = vunpack.c.l.bf16 %v304_v43  ;;  %v282_v54 = vunpack.c.h.bf16 %v304_v43  ;;  %v285_v55 = vunpack.c.l.bf16 %v305_v47  ;;  %v208_v43 = vld [vmem:[%s554_s1 + $0x14] sm:$0xf] }
   0xc   :  { %v72_v51 = vmax.f32 %v273_v42, %v274_v46  ;;  %v73_v53 = vmax.f32 %v277_v49, %v278_v50  ;;  %v324_v56 = vpack.i.bf16 %v406_v37, %v402_v34  ;;  %v286_v57 = vunpack.c.h.bf16 %v305_v47  ;;  %v205_v42 = vld [vmem:[%s554_s1 + $0x10] sm:$0xf] }
   0xd   :  { %v74_v58 = vmax.f32 %v281_v52, %v282_v54  ;;  %v339_v61 = vpack.i.bf16 %v421_v48, %v416_v45 }
   0xe   :  { %v75_v59 = vmax.f32 %v285_v55, %v286_v57  ;;  %v329_v60 = vpack.i.bf16 %v73_v53, %v72_v51 }
  0x10   :  { %330 = vrot.lane.b32.xlu2 %v329_v60, %s344_s30  ;;  %v334_v62 = vpack.i.bf16 %v75_v59, %v74_v58 }
  0x11   :  { %315 = vrot.lane.b32.xlu0 %v314_v44, %s344_s30 }
  0x12   :  { %325 = vrot.lane.b32.xlu1 %v324_v56, %s344_s30 }
  0x18   :  { %335 = vrot.lane.b32.xlu2 %v334_v62, %s344_s30 }
  0x19   :  { %340 = vrot.lane.b32.xlu0 %v339_v61, %s344_s30 }
  0x6a   :  { %v331_v63 = vpop.permute.xlu2 %330 }
  0x6b   :  { %v333_v0 = vunpack.i.h.bf16 %v331_v63  ;;  %v332_v1 = vunpack.i.l.bf16 %v331_v63 }
  0x6d   :  { %v171_v2 = vmax.f32 %v73_v53, %v333_v0  ;;  %v170_v3 = vmax.f32 %v72_v51, %v332_v1 }
  0x6f   :  { %v185_v6 = vpack.c.bf16 %v171_v2, %v171_v2  ;;  %v184_v7 = vpack.c.bf16 %v170_v3, %v170_v3 }
  0x71   :  { %v221_v9 = vsel %vm433_vm2, %v185_v6, %v220_v5  ;;  %v218_v10 = vsel %vm433_vm2, %v184_v7, %v217_v4 }
  0x72   :  { %222 = vst [vmem:[%s554_s1 + $0x24] sm:$0xf] %v221_v9  ;;  %v336_v11 = vpop.permute.xlu2 %335 }
  0x73   :  { %219 = vst [vmem:[%s554_s1 + $0x20] sm:$0xf] %v218_v10  ;;  %v338_v12 = vunpack.i.h.bf16 %v336_v11  ;;  %v337_v13 = vunpack.i.l.bf16 %v336_v11  ;;  %v229_v10 = vld [vmem:[%s554_s1 + $0x30] sm:$0xf]  ;;  %v232_v11 = vld [vmem:[%s554_s1 + $0x34] sm:$0xf] }
  0x75   :  { %v173_v14 = vmax.f32 %v75_v59, %v338_v12  ;;  %v172_v17 = vmax.f32 %v74_v58, %v337_v13  ;;  %v199_v58 = vld [vmem:[%s554_s1 + $0x8] sm:$0xf]  ;;  %v202_v59 = vld [vmem:[%s554_s1 + $0xc] sm:$0xf] }
  0x77   :  { %v187_v28 = vpack.c.bf16 %v173_v14, %v173_v14  ;;  %v186_v29 = vpack.c.bf16 %v172_v17, %v172_v17 }
  0x79   :  { %v227_v35 = vsel %vm433_vm2, %v187_v28, %v226_v22  ;;  %v224_v36 = vsel %vm433_vm2, %v186_v29, %v223_v21 }
  0x7a   :  { %228 = vst [vmem:[%s554_s1 + $0x2c] sm:$0xf] %v227_v35 }
  0x7b   :  { %v311_v18 = vpop.permute.xlu0 %310  ;;  %225 = vst [vmem:[%s554_s1 + $0x28] sm:$0xf] %v224_v36 }
  0x7c   :  { %v313_v23 = vunpack.i.h.bf16 %v311_v18  ;;  %v312_v25 = vunpack.i.l.bf16 %v311_v18  ;;  %v321_v27 = vpop.permute.xlu1 %320 }
  0x7d   :  { %v323_v30 = vunpack.i.h.bf16 %v321_v27  ;;  %v322_v31 = vunpack.i.l.bf16 %v321_v27 }
  0x7e   :  { %v163_v32 = vmax.f32 %v378_v16, %v313_v23  ;;  %v162_v33 = vmax.f32 %v376_v15, %v312_v25 }
  0x7f   :  { %v167_v40 = vmax.f32 %v382_v20, %v323_v30  ;;  %v166_v16 = vmax.f32 %v380_v19, %v322_v31 }
  0x80   :  { %v177_v15 = vpack.c.bf16 %v163_v32, %v163_v32  ;;  %v176_v41 = vpack.c.bf16 %v162_v33, %v162_v33 }
  0x81   :  { %v181_v20 = vpack.c.bf16 %v167_v40, %v167_v40  ;;  %v180_v19 = vpack.c.bf16 %v166_v16, %v166_v16 }
  0x82   :  { %v197_v44 = vsel %vm433_vm2, %v177_v15, %v196_v39  ;;  %v194_v46 = vsel %vm433_vm2, %v176_v41, %v193_v38 }
  0x83   :  { %198 = vst [vmem:[%s554_s1 + $0x4] sm:$0xf] %v197_v44  ;;  %v209_v47 = vsel %vm433_vm2, %v181_v20, %v208_v43  ;;  %v206_v49 = vsel %vm433_vm2, %v180_v19, %v205_v42  ;;  %v316_v50 = vpop.permute.xlu0 %315 }
  0x84   :  { %195 = vst [vmem:[%s554_s1] sm:$0xf] %v194_v46  ;;  %v318_v51 = vunpack.i.h.bf16 %v316_v50  ;;  %v317_v52 = vunpack.i.l.bf16 %v316_v50  ;;  %v326_v53 = vpop.permute.xlu1 %325 }
  0x85   :  { %210 = vst [vmem:[%s554_s1 + $0x14] sm:$0xf] %v209_v47  ;;  %v328_v54 = vunpack.i.h.bf16 %v326_v53  ;;  %v327_v55 = vunpack.i.l.bf16 %v326_v53 }
  0x86   :  { %207 = vst [vmem:[%s554_s1 + $0x10] sm:$0xf] %v206_v49  ;;  %v165_v56 = vmax.f32 %v389_v26, %v318_v51  ;;  %v164_v57 = vmax.f32 %v387_v24, %v317_v52  ;;  %v211_v26 = vld [vmem:[%s554_s1 + $0x18] sm:$0xf]  ;;  %v214_v24 = vld [vmem:[%s554_s1 + $0x1c] sm:$0xf] }
  0x87   :  { %v169_v60 = vmax.f32 %v406_v37, %v328_v54  ;;  %v168_v61 = vmax.f32 %v402_v34, %v327_v55 }
  0x88   :  { %v179_v62 = vpack.c.bf16 %v165_v56, %v165_v56  ;;  %v178_v63 = vpack.c.bf16 %v164_v57, %v164_v57 }
  0x89   :  { %v183_v0 = vpack.c.bf16 %v169_v60, %v169_v60  ;;  %v182_v1 = vpack.c.bf16 %v168_v61, %v168_v61 }
  0x8a   :  { %v203_v2 = vsel %vm433_vm2, %v179_v62, %v202_v59  ;;  %v200_v37 = vsel %vm433_vm2, %v178_v63, %v199_v58 }
  0x8b   :  { %204 = vst [vmem:[%s554_s1 + $0xc] sm:$0xf] %v203_v2  ;;  %v215_v34 = vsel %vm433_vm2, %v183_v0, %v214_v24  ;;  %v212_v3 = vsel %vm433_vm2, %v182_v1, %v211_v26  ;;  %v341_v4 = vpop.permute.xlu0 %340 }
  0x8c   :  { %201 = vst [vmem:[%s554_s1 + $0x8] sm:$0xf] %v200_v37  ;;  %v343_v5 = vunpack.i.h.bf16 %v341_v4  ;;  %v342_v6 = vunpack.i.l.bf16 %v341_v4 }
  0x8d   :  { %216 = vst [vmem:[%s554_s1 + $0x1c] sm:$0xf] %v215_v34 }
  0x8e   :  { %213 = vst [vmem:[%s554_s1 + $0x18] sm:$0xf] %v212_v3  ;;  %v175_v7 = vmax.f32 %v421_v48, %v343_v5  ;;  %v174_v9 = vmax.f32 %v416_v45, %v342_v6 }
  0x90   :  { %v189_v12 = vpack.c.bf16 %v175_v7, %v175_v7  ;;  %v188_v13 = vpack.c.bf16 %v174_v9, %v174_v9 }
  0x92   :  { %v233_v14 = vsel %vm433_vm2, %v189_v12, %v232_v11  ;;  %v230_v17 = vsel %vm433_vm2, %v188_v13, %v229_v10 }
  0x93   :  { %234 = vst [vmem:[%s554_s1 + $0x34] sm:$0xf] %v233_v14 }
  0x94   :  { %231 = vst [vmem:[%s554_s1 + $0x30] sm:$0xf] %v230_v17 }

// kernel: mnist_net_forward.8
= control target key start
LH: loop header
LB: loop body
LE: loop exit
PB: predicated region body
PF: predicated region fallthrough
CT: control target
= control target key end

     0   :  { %s3714_s15 = smov 0   ;;  %s4676_s0 = inlined_call_operand.vmem [shape: bf16[2,304,8], index: 0, kind: input, shape index: {}]   ;;  %s4677_s1 = inlined_call_operand.vmem [shape: bf16[9,8,8], index: 1, kind: input, shape index: {}]   ;;  %s4678_s2 = inlined_call_operand.vmem [shape: f32[1,8], index: 2, kind: input, shape index: {}]   ;;  %s4679_s3 = inlined_call_operand.vmem [shape: f32[1,8], index: 3, kind: input, shape index: {}]   ;;  %s4680_s4 = inlined_call_operand.vmem [shape: bf16[2,256,8], index: 4, kind: output, shape index: {}]  }
   0x1 LB: > { %s3055_s16 = sadd.s32 4294967295, %s3686_s15   ;;  %p3059_p0 = scmp.ge.s32.totalorder %s3686_s15, 1  ;;  %s3686_s15 = sphi %s3714_s15, %s14_s15  }
   0x2   : > { %p162_p1 = scmp.lt.s32.totalorder %s3686_s15, 3 }
   0x4   : > { %p163_p2 = pnand %p3059_p0, %p162_p1 }
   0x6   : > { %166 = sbr.rel (%p163_p2) target bundleno = 741 (0x2e5), region = 36 }
   0xb   : > { %v3063_v0 = vld [vmem:[%s4677_s1 + $0x4] sm:$0xf]  ;;  %vm500_vm0 = vcmask 1043456   ;;  %p188_p3 = scmp.lt.s32.totalorder %s3055_s16, 1  ;;  %v3156_v2 = vld [vmem:[%s4677_s1 + $0x8] sm:$0xf] }
   0xc   : > { %v502_v1 = vsel %vm500_vm0, %v3063_v0, 0  ;;  %v3173_v3 = vld [vmem:[%s4677_s1 + $0xc] sm:$0xf]  ;;  %v806_v4 = vsel %vm500_vm0, %v3156_v2, 0  ;;  %v231_v6 = vld [vmem:[%s4677_s1] sm:$0xf] }
   0xd   : > { %3658 = vmatpush.bf16.msra.mxu1 %v502_v1  ;;  %3659 = vmatpush.bf16.msra.mxu2 %v502_v1  ;;  %s4696_s16 = smov (!%p188_p3, %s3055_s16), 1  ;;  %v1092_v5 = vsel %vm500_vm0, %v3173_v3, 0  ;;  %v626_v7 = vsel %vm500_vm0, %v231_v6, 0  ;;  %v3254_v8 = vld [vmem:[%s4677_s1 + $0x10] sm:$0xf]  ;;  %vm451_vm2 = vcmask 64512  }
   0xe   : > { %3660 = vmatpush.bf16.msra.mxu3 %v502_v1  ;;  %511 = vmatpush.bf16.msra.mxu0 %v502_v1  ;;  %s3661_s27 = smul.u32 152, %s4696_s16  ;;  %v1514_v9 = vsel %vm500_vm0, %v3254_v8, 0  ;;  %vm318_vm1 = vsmask.f32 7424  ;;  %vm723_vm3 = vcmask 1046528   ;;  %s3557_s19 = sshll.u32 %s4696_s16, 7 }
   0xf   : > { %s4392_s22 = scalar_lea.vmem %s4680_s4, %s3557_s19  ;;  %vm2967_vm5 = vcmask 60416  }
  0x10   : > { %s3748_s30 = scalar_lea.vmem %s4676_s0, %s3661_s27 }
  0x11   : > { %815 = vmatpush.bf16.msrb.mxu2 %v806_v4  ;;  %635 = vmatpush.bf16.msrb.mxu1 %v626_v7  ;;  %v3751_v10 = vld [vmem:[%s3748_s30 + $0x20] sm:$0xff]  ;;  %v3754_v11 = vld [vmem:[%s3748_s30 + $0x28] sm:$0xff]  ;;  %v3802_v45 = vld [vmem:[%s3748_s30 + $0x30] sm:$0xff] }
  0x12   : > { %1101 = vmatpush.bf16.msrb.mxu3 %v1092_v5  ;;  %1523 = vmatpush.bf16.msrb.mxu0 %v1514_v9  ;;  %v3757_v12 = vld [vmem:[%s3748_s30 + $0x40] sm:$0xff]  ;;  %v3760_v13 = vld [vmem:[%s3748_s30 + $0x48] sm:$0xff]  ;;  %v351_v16 = vshll.u32 %v3751_v10, 16  ;;  %v355_v17 = vshrl.u32 %v3751_v10, 16  ;;  %v359_v18 = vshll.u32 %v3754_v11, 16  ;;  %v3805_v46 = vld [vmem:[%s3748_s30 + $0x50] sm:$0xff] }
  0x13   : > { %v3763_v14 = vld [vmem:[%s3748_s30 + $0x60] sm:$0xff]  ;;  %v3766_v15 = vld [vmem:[%s3748_s30 + $0x68] sm:$0xff]  ;;  %v383_v19 = vshll.u32 %v3757_v12, 16  ;;  %v387_v22 = vshrl.u32 %v3757_v12, 16  ;;  %v391_v23 = vshll.u32 %v3760_v13, 16  ;;  %v3809_v48 = vld [vmem:[%s3748_s30 + $0x70] sm:$0xff] }
  0x14   : > { %v3773_v20 = vld [vmem:[%s3748_s30] sm:$0xff]   ;;  %v3776_v21 = vld [vmem:[%s3748_s30 + $0x8] sm:$0xff]  ;;  %v415_v24 = vshll.u32 %v3763_v14, 16  ;;  %v419_v25 = vshrl.u32 %v3763_v14, 16  ;;  %v3782_v26 = vrot.slane %v351_v16, 1  ;;  %v361_v27 = vrot.slane %v359_v18, 1 }
  0x15   : > { %v3784_v28 = vrot.slane %v383_v19, 1  ;;  %v423_v29 = vshll.u32 %v3766_v15, 16  ;;  %v393_v30 = vrot.slane %v391_v23, 1  ;;  %v320_v32 = vshrl.u32 %v3773_v20, 16  ;;  %v3813_v49 = vld [vmem:[%s3748_s30 + $0x10] sm:$0xff]  ;;  %v3831_v6 = vld [vmem:[%s3748_s30 + $0x38] sm:$0xff] }
  0x16   : > { %v3787_v31 = vrot.slane %v415_v24, 1  ;;  %v322_v33 = vshll.u32 %v3773_v20, 16  ;;  %v357_v34 = vor.u32 %v355_v17, %v3782_v26  ;;  %v327_v37 = vshll.u32 %v3776_v21, 16  ;;  %v3834_v7 = vld [vmem:[%s3748_s30 + $0x58] sm:$0xff] }
  0x17   : > { %v389_v35 = vor.u32 %v387_v22, %v3784_v28  ;;  %v425_v36 = vrot.slane %v423_v29, 1  ;;  %v363_v50 = vshrl.u32 %v3754_v11, 16  ;;  %v367_v51 = vshll.u32 %v3802_v45, 16  ;;  %v3837_v8 = vld [vmem:[%s3748_s30 + $0x78] sm:$0xff] }
  0x18   : > { %v421_v38 = vor.u32 %v419_v25, %v3787_v31  ;;  %v324_v39 = vrot.slane %v322_v33, 1  ;;  %v362_v40 = vsel %vm318_vm1, %v357_v34, %v361_v27  ;;  %v329_v42 = vrot.slane %v327_v37, 1  ;;  %v3841_v9 = vld [vmem:[%s3748_s30 + $0x18] sm:$0xff] }
  0x19   : > { %v394_v41 = vsel %vm318_vm1, %v389_v35, %v393_v30  ;;  %3128 = vmatmul.msk.bf16.vlgmr.msra.gmra.mxu1 %vm451_vm2, %v362_v40  ;;  %v395_v52 = vshrl.u32 %v3760_v13, 16  ;;  %v399_v53 = vshll.u32 %v3805_v46, 16  ;;  %v427_v54 = vshrl.u32 %v3766_v15, 16  ;;  %v232_v35 = vld [vmem:[%s3748_s30 + $0x80] sm:$0x1] }
  0x1a   : > { %3132 = vmatmul.msk.bf16.vlgmr.msra.gmra.mxu2 %vm451_vm2, %v394_v41  ;;  %v426_v43 = vsel %vm318_vm1, %v421_v38, %v425_v36  ;;  %v325_v44 = vor.u32 %v324_v39, %v320_v32  ;;  %v431_v55 = vshll.u32 %v3809_v48, 16  ;;  %v331_v56 = vshrl.u32 %v3776_v21, 16 }
  0x1b   : > { %3136 = vmatmul.msk.bf16.vlgmr.msra.gmra.mxu3 %vm451_vm2, %v426_v43  ;;  %v335_v57 = vshll.u32 %v3813_v49, 16  ;;  %v365_v58 = vor.u32 %v363_v50, %v361_v27  ;;  %v369_v59 = vrot.slane %v367_v51, 1  ;;  %v397_v60 = vor.u32 %v395_v52, %v393_v30  ;;  %v3348_v43 = vld [vmem:[%s4677_s1 + $0x18] sm:$0xf]  ;;  %v3429_v50 = vld [vmem:[%s4677_s1 + $0x1c] sm:$0xf] }
  0x1c   : > { %v330_v47 = vsel %vm318_vm1, %v325_v44, %v329_v42  ;;  %v401_v61 = vrot.slane %v399_v53, 1  ;;  %v429_v62 = vor.u32 %v427_v54, %v425_v36  ;;  %v433_v63 = vrot.slane %v431_v55, 1  ;;  %v3331_v51 = vld [vmem:[%s4677_s1 + $0x14] sm:$0xf]  ;;  %v3506_v52 = vld [vmem:[%s4677_s1 + $0x20] sm:$0xf] }
  0x1d   : > { %3124 = vmatmul.msk.bf16.vlgmr.msra.gmra.mxu0 %vm451_vm2, %v330_v47  ;;  %v333_v0 = vor.u32 %v331_v56, %v329_v42  ;;  %v337_v1 = vrot.slane %v335_v57, 1  ;;  %v370_v2 = vsel %vm318_vm1, %v365_v58, %v369_v59  ;;  %v371_v16 = vshrl.u32 %v3802_v45, 16 }
  0x1e   : > { %v402_v3 = vsel %vm318_vm1, %v397_v60, %v401_v61  ;;  %v434_v4 = vsel %vm318_vm1, %v429_v62, %v433_v63  ;;  %v375_v17 = vshll.u32 %v3831_v6, 16  ;;  %v403_v18 = vshrl.u32 %v3805_v46, 16 }
  0x1f   : > { %v338_v5 = vsel %vm318_vm1, %v333_v0, %v337_v1  ;;  %v407_v19 = vshll.u32 %v3834_v7, 16  ;;  %v435_v22 = vshrl.u32 %v3809_v48, 16  ;;  %v439_v23 = vshll.u32 %v3837_v8, 16 }
  0x20   : > { %v339_v24 = vshrl.u32 %v3813_v49, 16  ;;  %v343_v25 = vshll.u32 %v3841_v9, 16  ;;  %v373_v27 = vor.u32 %v371_v16, %v369_v59  ;;  %v377_v29 = vrot.slane %v375_v17, 1  ;;  %v3650_v16 = vld [vmem:[%s3748_s30 + $0x8] sm:$0xff]   ;;  %v3647_v17 = vld [vmem:[%s3748_s30] sm:$0xf0] }
  0x21   : > { %v405_v30 = vor.u32 %v403_v18, %v401_v61  ;;  %v409_v32 = vrot.slane %v407_v19, 1  ;;  %v437_v33 = vor.u32 %v435_v22, %v433_v63  ;;  %v441_v34 = vrot.slane %v439_v23, 1  ;;  %v3648_v18 = vld [vmem:[%s3748_s30] sm:$0xe] }
  0x22   : > { %v341_v36 = vor.u32 %v339_v24, %v337_v1  ;;  %v345_v37 = vrot.slane %v343_v25, 1  ;;  %v378_v38 = vsel %vm318_vm1, %v373_v27, %v377_v29  ;;  %v300_v41 = vunpack.c.l.b16 %v232_v35 }
  0x23   : > { %v410_v39 = vsel %vm318_vm1, %v405_v30, %v409_v32  ;;  %v442_v40 = vsel %vm318_vm1, %v437_v33, %v441_v34  ;;  %v2011_v47 = vsel %vm500_vm0, %v3348_v43, 0  ;;  %v2433_v53 = vsel %vm500_vm0, %v3429_v50, 0 }
  0x24   : > { %v346_v42 = vsel %vm318_vm1, %v341_v36, %v345_v37  ;;  %v3862_v44 = vpack.c.b16 %v300_v41, %v300_v41  ;;  %2020 = vmatpush.bf16.msra.mxu2 %v2011_v47  ;;  %v1725_v54 = vsel %vm500_vm0, %v3331_v51, 0  ;;  %v2644_v55 = vsel %vm500_vm0, %v3506_v52, 0  ;;  %2442 = vmatpush.bf16.msra.mxu3 %v2433_v53  ;;  %v3575_v53 = vld [vmem:[%s3748_s30 + $0x18] sm:$0xff] }
  0x25   : > { %v379_v56 = vshrl.u32 %v3831_v6, 16  ;;  %v411_v57 = vshrl.u32 %v3834_v7, 16  ;;  %1734 = vmatpush.bf16.msra.mxu1 %v1725_v54  ;;  %v443_v58 = vshrl.u32 %v3837_v8, 16  ;;  %2653 = vmatpush.bf16.msra.mxu0 %v2644_v55  ;;  %v347_v60 = vshrl.u32 %v3841_v9, 16  ;;  %v3939_v55 = vld [vmem:[%s3748_s30 + $0x28] sm:$0xff] }
  0x26   : > { %v447_v59 = vshll.u32 %v3862_v44, 16  ;;  %v3649_v19 = vor.u32 %v3648_v18, %v3647_v17  ;;  %v1334_v22 = vshrl.u32 %v3650_v16, 16  ;;  %v729_v50 = vrot.slane %v3841_v9, 1 }
  0x27   : > { %v381_v61 = vor.u32 %v379_v56, %v377_v29  ;;  %v413_v62 = vor.u32 %v411_v57, %v409_v32  ;;  %v445_v63 = vor.u32 %v443_v58, %v441_v34  ;;  %v349_v1 = vor.u32 %v347_v60, %v345_v37  ;;  %v3573_v32 = vld [vmem:[%s3748_s30 + $0x8] sm:$0xff]  ;;  %v3911_v34 = vld [vmem:[%s3748_s30 + $0x18] sm:$0xff] }
  0x28   : > { %v449_v0 = vrot.slane %v447_v59, 1  ;;  %v724_v25 = vrot.slane %v3649_v19, 1  ;;  %v1349_v36 = vshll.u32 %v3911_v34, 16  ;;  %v727_v37 = vrot.slane %v3813_v49, 1 }
  0x29   : > { %3129 = vmatmul.msk.bf16.gmra.mxu1 %vm451_vm2, %v370_v2  ;;  %v386_v2 = vsel %vm318_vm1, %v381_v61, %v3784_v28  ;;  %v3898_v28 = vld [vmem:[%s3748_s30 + $0x10] sm:$0xff]  ;;  %v1353_v43 = vshrl.u32 %v3911_v34, 16  ;;  %v1365_v57 = vshll.u32 %v3939_v55, 16  ;;  %v731_v58 = vrot.slane %v3751_v10, 1  ;;  %v3576_v61 = vld [vmem:[%s3748_s30 + $0x20] sm:$0xff] }
  0x2a   : > { %3133 = vmatmul.msk.bf16.gmra.mxu2 %vm451_vm2, %v402_v3  ;;  %v418_v3 = vsel %vm318_vm1, %v413_v62, %v3787_v31  ;;  %v1336_v31 = vshll.u32 %v3650_v16, 16  ;;  %v1341_v24 = vshll.u32 %v3898_v28, 16  ;;  %v1345_v35 = vshrl.u32 %v3898_v28, 16  ;;  %v3577_v16 = vld [vmem:[%s3748_s30 + $0x28] sm:$0xff] }
  0x2b   : > { %3137 = vmatmul.msk.bf16.gmra.mxu3 %vm451_vm2, %v434_v4  ;;  %v450_v4 = vsel %vm318_vm1, %v445_v63, %v449_v0  ;;  %v730_v52 = vsel %vm723_vm3, %v727_v37, %v729_v50  ;;  %v1367_v60 = vrot.slane %v1365_v57, 1  ;;  %v3953_v63 = vld [vmem:[%s3748_s30 + $0x30] sm:$0xff]  ;;  %v1369_v0 = vshrl.u32 %v3939_v55, 16  ;;  %v3579_v57 = vld [vmem:[%s3748_s30 + $0x38] sm:$0xff] }
  0x2c   : > { %v1338_v23 = vrot.slane %v1336_v31, 1  ;;  %v1343_v29 = vrot.slane %v1341_v24, 1 }
  0x2d   : > { %3125 = vmatmul.msk.bf16.gmra.mxu0 %vm451_vm2, %v338_v5  ;;  %v354_v5 = vsel %vm318_vm1, %v349_v1, %v3782_v26  ;;  %v725_v26 = vrot.slane %v3776_v21, 1  ;;  %v1373_v1 = vshll.u32 %v3953_v63, 16 }
  0x2e   : > { %v1339_v27 = vor.u32 %v1338_v23, %v1334_v22  ;;  %v3975_v22 = vld [vmem:[%s3748_s30 + $0x38] sm:$0xff] }
  0x2f   : > { %v726_v30 = vsel %vm723_vm3, %v724_v25, %v725_v26  ;;  %v1381_v25 = vshll.u32 %v3975_v22, 16 }
  0x30   : > { %v1344_v33 = vsel %vm318_vm1, %v1339_v27, %v1343_v29 }
  0x39   : > { %3130 = vmatmul.msk.bf16.gmra.mxu1 %vm451_vm2, %v378_v38  ;;  %v1347_v38 = vor.u32 %v1345_v35, %v1343_v29 }
  0x3a   : > { %3134 = vmatmul.msk.bf16.gmra.mxu2 %vm451_vm2, %v410_v39  ;;  %v728_v39 = vsel %vm723_vm3, %v725_v26, %v727_v37  ;;  %v735_v26 = vrot.slane %v3802_v45, 1 }
  0x3b   : > { %3138 = vmatmul.msk.bf16.gmra.mxu3 %vm451_vm2, %v442_v40  ;;  %v3574_v40 = vld [vmem:[%s3748_s30 + $0x10] sm:$0xff] }
  0x3d   : > { %3126 = vmatmul.msk.bf16.gmra.mxu0 %vm451_vm2, %v346_v42  ;;  %v3925_v42 = vld [vmem:[%s3748_s30 + $0x20] sm:$0xff] }
  0x3e   : > { %v1357_v47 = vshll.u32 %v3925_v42, 16  ;;  %v1361_v56 = vshrl.u32 %v3925_v42, 16 }
  0x49   : > { %3131 = vmatmul.msk.bf16.gmra.mxu1 %vm451_vm2, %v386_v2  ;;  %v733_v2 = vrot.slane %v3754_v11, 1 }
  0x4a   : > { %3135 = vmatmul.msk.bf16.gmra.mxu2 %vm451_vm2, %v418_v3  ;;  %v1371_v3 = vor.u32 %v1369_v0, %v1367_v60 }
  0x4b   : > { %3139 = vmatmul.msk.bf16.gmra.mxu3 %vm451_vm2, %v450_v4  ;;  %v1375_v4 = vrot.slane %v1373_v1, 1  ;;  %v736_v35 = vsel %vm723_vm3, %v733_v2, %v735_v26 }
  0x4d   : > { %3127 = vmatmul.msk.bf16.gmra.mxu0 %vm451_vm2, %v354_v5  ;;  %v734_v5 = vsel %vm723_vm3, %v731_v58, %v733_v2  ;;  %v1376_v18 = vsel %vm318_vm1, %v1371_v3, %v1375_v4  ;;  %v739_v2 = vrot.slane %v3757_v12, 1 }
  0x59   : > { %3140 = vmatmul.msk.bf16.vlgmr.msrb.gmra.mxu1 %vm451_vm2, %v3773_v20  ;;  %v1351_v20 = vrot.slane %v1349_v36, 1  ;;  %v3578_v36 = vld [vmem:[%s3748_s30 + $0x30] sm:$0xff] }
  0x5a   : > { %3157 = vmatmul.msk.bf16.vlgmr.msrb.gmra.mxu2 %vm451_vm2, %v726_v30 }
  0x5b   : > { %3238 = vmatmul.msk.bf16.vlgmr.msrb.gmra.mxu3 %vm451_vm2, %v3573_v32  ;;  %v1352_v41 = vsel %vm318_vm1, %v1347_v38, %v1351_v20  ;;  %v1355_v51 = vor.u32 %v1353_v43, %v1351_v20  ;;  %v1383_v32 = vrot.slane %v1381_v25, 1  ;;  %v3580_v25 = vld [vmem:[%s3748_s30 + $0x40] sm:$0xff] }
  0x5d   : > { %3315 = vmatmul.msk.bf16.vlgmr.msrb.gmra.mxu0 %vm451_vm2, %v1344_v33 }
  0x69   : > { %3141 = vmatmul.msk.bf16.gmra.mxu1 %vm451_vm2, %v3776_v21  ;;  %v1359_v21 = vrot.slane %v1357_v47, 1 }
  0x6a   : > { %3158 = vmatmul.msk.bf16.gmra.mxu2 %vm451_vm2, %v728_v39 }
  0x6b   : > { %3239 = vmatmul.msk.bf16.gmra.mxu3 %vm451_vm2, %v3574_v40  ;;  %v1360_v54 = vsel %vm318_vm1, %v1355_v51, %v1359_v21  ;;  %v1363_v59 = vor.u32 %v1361_v56, %v1359_v21  ;;  %v4005_v40 = vld [vmem:[%s3748_s30 + $0x40] sm:$0xff] }
  0x6c   : > { %v1389_v47 = vshll.u32 %v4005_v40, 16 }
  0x6d   : > { %3316 = vmatmul.msk.bf16.gmra.mxu0 %vm451_vm2, %v1352_v41  ;;  %v1368_v62 = vsel %vm318_vm1, %v1363_v59, %v1367_v60 }
  0x79   : > { %3142 = vmatmul.msk.bf16.gmra.mxu1 %vm451_vm2, %v3813_v49  ;;  %v732_v49 = vsel %vm723_vm3, %v729_v50, %v731_v58  ;;  %v737_v50 = vrot.slane %v3831_v6, 1 }
  0x7a   : > { %3159 = vmatmul.msk.bf16.gmra.mxu2 %vm451_vm2, %v730_v52 }
  0x7b   : > { %3240 = vmatmul.msk.bf16.gmra.mxu3 %vm451_vm2, %v3575_v53  ;;  %v1391_v53 = vrot.slane %v1389_v47, 1  ;;  %v738_v56 = vsel %vm723_vm3, %v735_v26, %v737_v50 }
  0x7d   : > { %3317 = vmatmul.msk.bf16.gmra.mxu0 %vm451_vm2, %v1360_v54 }
  0x89   : > { %3143 = vmatmul.msk.bf16.gmra.mxu1 %vm451_vm2, %v3841_v9 }
  0x8a   : > { %3160 = vmatmul.msk.bf16.gmra.mxu2 %vm451_vm2, %v732_v49 }
  0x8b   : > { %3241 = vmatmul.msk.bf16.gmra.mxu3 %vm451_vm2, %v3576_v61  ;;  %v4035_v61 = vld [vmem:[%s3748_s30 + $0x48] sm:$0xff] }
  0x8c   : > { %4683 = vst [vmem:[#allocation2_spill] sm:$0xff] %v4035_v61  ;;  %v1397_v1 = vshll.u32 %v4035_v61, 16 }
  0x8d   : > { %3318 = vmatmul.msk.bf16.gmra.mxu0 %vm451_vm2, %v1368_v62 }
  0x96   : > { %v3958_v9 = vpop.f32.mrf.mxu1 }
  0x99   : > { %3144 = vmatmul.msk.bf16.gmra.mxu1 %vm451_vm2, %v3751_v10  ;;  %v1377_v10 = vshrl.u32 %v3953_v63, 16 }
  0x9a   : > { %v3962_v17 = vpop.f32.mrf.mxu0  ;;  %3161 = vmatmul.msk.bf16.gmra.mxu2 %vm451_vm2, %v734_v5 }
  0x9b   : > { %3242 = vmatmul.msk.bf16.gmra.mxu3 %vm451_vm2, %v3577_v16  ;;  %v1379_v30 = vor.u32 %v1377_v10, %v1375_v4  ;;  %v1399_v16 = vrot.slane %v1397_v1, 1  ;;  %v740_v10 = vsel %vm723_vm3, %v737_v50, %v739_v2  ;;  %v741_v50 = vrot.slane %v3760_v13, 1  ;;  %v3581_v1 = vld [vmem:[%s3748_s30 + $0x48] sm:$0xff] }
  0x9d   : > { %3319 = vmatmul.msk.bf16.gmra.mxu0 %vm451_vm2, %v1376_v18  ;;  %v3970_v31 = vpop.f32.mrf.mxu2  ;;  %v1384_v38 = vsel %vm318_vm1, %v1379_v30, %v1383_v32 }
  0x9e   : > { %v3972_v19 = vpop.f32.mrf.mxu3  ;;  %v3977_v23 = vpop.f32.mrf.mxu1 }
  0xa2   : > { %v3979_v24 = vpop.f32.mrf.mxu0 }
  0xa5   : > { %v3984_v27 = vpop.f32.mrf.mxu2 }
  0xa6   : > { %v3986_v29 = vpop.f32.mrf.mxu3  ;;  %v3988_v33 = vpop.f32.mrf.mxu1 }
  0xa9   : > { %3145 = vmatmul.msk.bf16.gmra.mxu1 %vm451_vm2, %v3754_v11  ;;  %v1385_v11 = vshrl.u32 %v3975_v22, 16 }
  0xaa   : > { %v3992_v37 = vpop.f32.mrf.mxu0  ;;  %3162 = vmatmul.msk.bf16.gmra.mxu2 %vm451_vm2, %v736_v35 }
  0xab   : > { %3243 = vmatmul.msk.bf16.gmra.mxu3 %vm451_vm2, %v3578_v36  ;;  %v1387_v52 = vor.u32 %v1385_v11, %v1383_v32  ;;  %v4065_v36 = vld [vmem:[%s3748_s30 + $0x50] sm:$0xff] }
  0xac   : > { %4686 = vst [vmem:[#allocation5_spill] sm:$0xff] %v4065_v36  ;;  %v1405_v47 = vshll.u32 %v4065_v36, 16 }
  0xad   : > { %3320 = vmatmul.msk.bf16.gmra.mxu0 %vm451_vm2, %v1384_v38  ;;  %v4000_v20 = vpop.f32.mrf.mxu2  ;;  %v1392_v59 = vsel %vm318_vm1, %v1387_v52, %v1391_v53 }
  0xae   : > { %v4002_v39 = vpop.f32.mrf.mxu3  ;;  %v4007_v41 = vpop.f32.mrf.mxu1 }
  0xb2   : > { %v4009_v43 = vpop.f32.mrf.mxu0 }
  0xb5   : > { %v4014_v51 = vpop.f32.mrf.mxu2 }
  0xb6   : > { %v4016_v21 = vpop.f32.mrf.mxu3  ;;  %v4018_v54 = vpop.f32.mrf.mxu1 }
  0xb9   : > { %3146 = vmatmul.msk.bf16.gmra.mxu1 %vm451_vm2, %v3802_v45  ;;  %v1393_v45 = vshrl.u32 %v4005_v40, 16 }
  0xba   : > { %v4022_v58 = vpop.f32.mrf.mxu0  ;;  %3163 = vmatmul.msk.bf16.gmra.mxu2 %vm451_vm2, %v738_v56 }
  0xbb   : > { %3244 = vmatmul.msk.bf16.gmra.mxu3 %vm451_vm2, %v3579_v57  ;;  %v1395_v5 = vor.u32 %v1393_v45, %v1391_v53  ;;  %v1407_v57 = vrot.slane %v1405_v47, 1  ;;  %v742_v45 = vsel %vm723_vm3, %v739_v2, %v741_v50  ;;  %v4088_v47 = vld [vmem:[%s3748_s30 + $0x58] sm:$0xff] }
  0xbd   : > { %3321 = vmatmul.msk.bf16.gmra.mxu0 %vm451_vm2, %v1392_v59  ;;  %v4030_v60 = vpop.f32.mrf.mxu2  ;;  %v1400_v30 = vsel %vm318_vm1, %v1395_v5, %v1399_v16 }
  0xbe   : > { %v4032_v49 = vpop.f32.mrf.mxu3  ;;  %v4037_v62 = vpop.f32.mrf.mxu1 }
  0xc2   : > { %v4039_v0 = vpop.f32.mrf.mxu0 }
  0xc5   : > { %v4044_v3 = vpop.f32.mrf.mxu2 }
  0xc6   : > { %v4046_v4 = vpop.f32.mrf.mxu3  ;;  %v4048_v18 = vpop.f32.mrf.mxu1 }
  0xc7   : > { %4684 = vst [vmem:[#allocation3_spill] sm:$0xff] %v4046_v4 }
  0xc9   : > { %3147 = vmatmul.msk.bf16.gmra.mxu1 %vm451_vm2, %v3831_v6  ;;  %v1401_v6 = vshrl.u32 %v4035_v61, 16 }
  0xca   : > { %v4052_v26 = vpop.f32.mrf.mxu0  ;;  %3164 = vmatmul.msk.bf16.gmra.mxu2 %vm451_vm2, %v740_v10 }
  0xcb   : > { %3245 = vmatmul.msk.bf16.gmra.mxu3 %vm451_vm2, %v3580_v25  ;;  %v1403_v56 = vor.u32 %v1401_v6, %v1399_v16 }
  0xcd   : > { %3322 = vmatmul.msk.bf16.gmra.mxu0 %vm451_vm2, %v1400_v30  ;;  %v4060_v32 = vpop.f32.mrf.mxu2  ;;  %v1408_v25 = vsel %vm318_vm1, %v1403_v56, %v1407_v57 }
  0xce   : > { %v4062_v35 = vpop.f32.mrf.mxu3  ;;  %v4067_v38 = vpop.f32.mrf.mxu1 }
  0xcf   : > { %4685 = vst [vmem:[#allocation4_spill] sm:$0xff] %v4062_v35 }
  0xd2   : > { %v4069_v11 = vpop.f32.mrf.mxu0 }
  0xd5   : > { %v4074_v52 = vpop.f32.mrf.mxu2 }
  0xd6   : > { %v4076_v53 = vpop.f32.mrf.mxu3  ;;  %v637_v59 = vpop.f32.mrf.mxu1 }
  0xd7   : > { %4687 = vst [vmem:[#allocation6_spill] sm:$0xff] %v4076_v53  ;;  %v638_v5 = vadd.f32 %v637_v59, %v3962_v17 }
  0xd9   : > { %3148 = vmatmul.msk.bf16.gmra.mxu1 %vm451_vm2, %v3757_v12  ;;  %v1409_v12 = vshrl.u32 %v4065_v36, 16 }
  0xda   : > { %v1525_v10 = vpop.f32.mrf.mxu0  ;;  %3165 = vmatmul.msk.bf16.gmra.mxu2 %vm451_vm2, %v742_v45  ;;  %v1413_v45 = vshll.u32 %v4088_v47, 16 }
  0xdb   : > { %3246 = vmatmul.msk.bf16.gmra.mxu3 %vm451_vm2, %v3581_v1  ;;  %v743_v1 = vrot.slane %v3805_v46, 1 }
  0xdc   : > { %v1415_v4 = vrot.slane %v1413_v45, 1  ;;  %v1417_v45 = vshrl.u32 %v4088_v47, 16 }
  0xdd   : > { %3323 = vmatmul.msk.bf16.gmra.mxu0 %vm451_vm2, %v1408_v25  ;;  %v817_v16 = vpop.f32.mrf.mxu2 }
  0xde   : > { %v897_v30 = vadd.f32 %v817_v16, %v638_v5  ;;  %v1103_v6 = vpop.f32.mrf.mxu3  ;;  %v639_v2 = vpop.f32.mrf.mxu1  ;;  %v1411_v16 = vor.u32 %v1409_v12, %v1407_v57 }
  0xdf   : > { %v640_v59 = vadd.f32 %v639_v2, %v3979_v24 }
  0xe0   : > { %v1183_v17 = vadd.f32 %v1103_v6, %v897_v30  ;;  %v744_v30 = vsel %vm723_vm3, %v741_v50, %v743_v1  ;;  %v3582_v6 = vld [vmem:[%s3748_s30 + $0x50] sm:$0xff] }
  0xe2   : > { %v1527_v53 = vpop.f32.mrf.mxu0  ;;  %v4093_v56 = vadd.f32 %v1525_v10, %v1183_v17  ;;  %v1416_v10 = vsel %vm318_vm1, %v1411_v16, %v1415_v4 }
  0xe5   : > { %v819_v25 = vpop.f32.mrf.mxu2 }
  0xe6   : > { %v898_v35 = vadd.f32 %v819_v25, %v640_v59  ;;  %v1105_v5 = vpop.f32.mrf.mxu3  ;;  %v642_v61 = vpop.f32.mrf.mxu1 }
  0xe7   : > { %v643_v2 = vadd.f32 %v642_v61, %v3992_v37 }
  0xe8   : > { %v1184_v24 = vadd.f32 %v1105_v5, %v898_v35  ;;  %v3599_v35 = vld [vmem:[%s3748_s30 + $0x60] sm:$0xff] }
  0xe9   : > { %3149 = vmatmul.msk.bf16.gmra.mxu1 %vm451_vm2, %v3760_v13  ;;  %v1421_v25 = vshll.u32 %v3599_v35, 16 }
  0xea   : > { %v1530_v36 = vpop.f32.mrf.mxu0  ;;  %3166 = vmatmul.msk.bf16.gmra.mxu2 %vm451_vm2, %v744_v30  ;;  %v4103_v17 = vadd.f32 %v1527_v53, %v1184_v24  ;;  %v745_v53 = vrot.slane %v3834_v7, 1  ;;  %v1419_v24 = vor.u32 %v1417_v45, %v1415_v4  ;;  %v3600_v45 = vld [vmem:[%s3748_s30 + $0x68] sm:$0xff] }
  0xeb   : > { %3247 = vmatmul.msk.bf16.gmra.mxu3 %vm451_vm2, %v3582_v6 }
  0xed   : > { %3324 = vmatmul.msk.bf16.gmra.mxu0 %vm451_vm2, %v1416_v10  ;;  %v822_v57 = vpop.f32.mrf.mxu2 }
  0xee   : > { %v899_v50 = vadd.f32 %v822_v57, %v643_v2  ;;  %v1108_v59 = vpop.f32.mrf.mxu3  ;;  %v644_v37 = vpop.f32.mrf.mxu1  ;;  %v1423_v2 = vrot.slane %v1421_v25, 1  ;;  %v746_v57 = vsel %vm723_vm3, %v743_v1, %v745_v53 }
  0xef   : > { %v645_v12 = vadd.f32 %v644_v37, %v4009_v43 }
  0xf0   : > { %v1185_v61 = vadd.f32 %v1108_v59, %v899_v50  ;;  %v3583_v50 = vld [vmem:[%s3748_s30 + $0x58] sm:$0xff] }
  0xf2   : > { %v1532_v13 = vpop.f32.mrf.mxu0  ;;  %v4110_v5 = vadd.f32 %v1530_v36, %v1185_v61  ;;  %v1424_v36 = vsel %vm318_vm1, %v1419_v24, %v1423_v2 }
  0xf5   : > { %v824_v16 = vpop.f32.mrf.mxu2 }
  0xf6   : > { %v900_v30 = vadd.f32 %v824_v16, %v645_v12  ;;  %v1110_v6 = vpop.f32.mrf.mxu3  ;;  %v647_v10 = vpop.f32.mrf.mxu1 }
  0xf7   : > { %v648_v43 = vadd.f32 %v647_v10, %v4022_v58 }
  0xf8   : > { %v1186_v59 = vadd.f32 %v1110_v6, %v900_v30  ;;  %v1425_v30 = vshrl.u32 %v3599_v35, 16  ;;  %v1429_v6 = vshll.u32 %v3600_v45, 16 }
  0xf9   : > { %3150 = vmatmul.msk.bf16.gmra.mxu1 %vm451_vm2, %v3805_v46 }
  0xfa   : > { %v1535_v37 = vpop.f32.mrf.mxu0  ;;  %3167 = vmatmul.msk.bf16.gmra.mxu2 %vm451_vm2, %v746_v57  ;;  %v4120_v61 = vadd.f32 %v1532_v13, %v1186_v59  ;;  %v747_v13 = vrot.slane %v3763_v14, 1  ;;  %v1427_v59 = vor.u32 %v1425_v30, %v1423_v2 }
  0xfb   : > { %3248 = vmatmul.msk.bf16.gmra.mxu3 %vm451_vm2, %v3583_v50 }
  0xfc   : > { %4688 = vst [vmem:[#allocation7_spill] sm:$0xff] %v4120_v61  ;;  %v3584_v61 = vld [vmem:[%s3748_s30 + $0x60] sm:$0xff] }
  0xfd   : > { %3325 = vmatmul.msk.bf16.gmra.mxu0 %vm451_vm2, %v1424_v36  ;;  %v827_v4 = vpop.f32.mrf.mxu2  ;;  %v1431_v36 = vrot.slane %v1429_v6, 1  ;;  %v1433_v6 = vshrl.u32 %v3600_v45, 16 }
  0xfe   : > { %v901_v1 = vadd.f32 %v827_v4, %v648_v43  ;;  %v1113_v12 = vpop.f32.mrf.mxu3  ;;  %v649_v58 = vpop.f32.mrf.mxu1  ;;  %v748_v4 = vsel %vm723_vm3, %v745_v53, %v747_v13 }
  0xff   : > { %v650_v16 = vadd.f32 %v649_v58, %v4039_v0  ;;  %v1432_v35 = vsel %vm318_vm1, %v1427_v59, %v1431_v36 }
 0x100   : > { %v1187_v25 = vadd.f32 %v1113_v12, %v901_v1 }
 0x102   : > { %v1537_v46 = vpop.f32.mrf.mxu0  ;;  %v4126_v10 = vadd.f32 %v1535_v37, %v1187_v25  ;;  %v3601_v25 = vld [vmem:[%s3748_s30 + $0x70] sm:$0xff] }
 0x105   : > { %v829_v24 = vpop.f32.mrf.mxu2 }
 0x106   : > { %v902_v57 = vadd.f32 %v829_v24, %v650_v16  ;;  %v1115_v50 = vpop.f32.mrf.mxu3  ;;  %v652_v43 = vpop.f32.mrf.mxu1  ;;  %v1437_v24 = vshll.u32 %v3601_v25, 16 }
 0x107   : > { %v653_v0 = vadd.f32 %v652_v43, %v4052_v26  ;;  %v1435_v43 = vor.u32 %v1433_v6, %v1431_v36  ;;  %v1441_v6 = vshrl.u32 %v3601_v25, 16 }
 0x108   : > { %v1188_v1 = vadd.f32 %v1115_v50, %v902_v57 }
 0x109   : > { %3151 = vmatmul.msk.bf16.gmra.mxu1 %vm451_vm2, %v3834_v7 }
 0x10a   : > { %v1540_v12 = vpop.f32.mrf.mxu0  ;;  %3168 = vmatmul.msk.bf16.gmra.mxu2 %vm451_vm2, %v748_v4  ;;  %v4136_v37 = vadd.f32 %v1537_v46, %v1188_v1  ;;  %v749_v46 = vrot.slane %v3766_v15, 1  ;;  %v1439_v4 = vrot.slane %v1437_v24, 1 }
 0x10b   : > { %3249 = vmatmul.msk.bf16.gmra.mxu3 %vm451_vm2, %v3584_v61 }
 0x10d   : > { %3326 = vmatmul.msk.bf16.gmra.mxu0 %vm451_vm2, %v1432_v35  ;;  %v832_v2 = vpop.f32.mrf.mxu2  ;;  %v3585_v35 = vld [vmem:[%s3748_s30 + $0x68] sm:$0xff] }
 0x10e   : > { %v903_v53 = vadd.f32 %v832_v2, %v653_v0  ;;  %v1118_v58 = vpop.f32.mrf.mxu3  ;;  %v654_v26 = vpop.f32.mrf.mxu1  ;;  %v750_v0 = vsel %vm723_vm3, %v747_v13, %v749_v46 }
 0x10f   : > { %v655_v30 = vadd.f32 %v654_v26, %v4069_v11  ;;  %v1440_v11 = vsel %vm318_vm1, %v1435_v43, %v1439_v4  ;;  %v3602_v26 = vld [vmem:[%s3748_s30 + $0x78] sm:$0xff] }
 0x110   : > { %v1189_v16 = vadd.f32 %v1118_v58, %v903_v53  ;;  %v1445_v24 = vshll.u32 %v3602_v26, 16 }
 0x112   : > { %v1542_v7 = vpop.f32.mrf.mxu0  ;;  %v4142_v57 = vadd.f32 %v1540_v12, %v1189_v16 }
 0x115   : > { %v834_v50 = vpop.f32.mrf.mxu2 }
 0x116   : > { %v904_v61 = vadd.f32 %v834_v50, %v655_v30  ;;  %v1120_v59 = vpop.f32.mrf.mxu3  ;;  %v657_v1 = vpop.f32.mrf.mxu1 }
 0x117   : > { %v658_v36 = vadd.f32 %v657_v1, %v3958_v9  ;;  %v1443_v1 = vor.u32 %v1441_v6, %v1439_v4  ;;  %v1449_v6 = vshrl.u32 %v3602_v26, 16 }
 0x118   : > { %v1190_v2 = vadd.f32 %v1120_v59, %v904_v61 }
 0x119   : > { %3152 = vmatmul.msk.bf16.gmra.mxu1 %vm451_vm2, %v3763_v14 }
 0x11a   : > { %v1545_v53 = vpop.f32.mrf.mxu0  ;;  %3169 = vmatmul.msk.bf16.gmra.mxu2 %vm451_vm2, %v750_v0  ;;  %v4151_v45 = vadd.f32 %v1542_v7, %v1190_v2  ;;  %v751_v7 = vrot.slane %v3809_v48, 1  ;;  %v1447_v0 = vrot.slane %v1445_v24, 1 }
 0x11b   : > { %3250 = vmatmul.msk.bf16.gmra.mxu3 %vm451_vm2, %v3585_v35 }
 0x11c   : > { %v752_v2 = vsel %vm723_vm3, %v749_v46, %v751_v7  ;;  %v1448_v25 = vsel %vm318_vm1, %v1443_v1, %v1447_v0  ;;  %v1451_v1 = vor.u32 %v1449_v6, %v1447_v0 }
 0x11d   : > { %3327 = vmatmul.msk.bf16.gmra.mxu0 %vm451_vm2, %v1440_v11  ;;  %v837_v12 = vpop.f32.mrf.mxu2  ;;  %v3586_v11 = vld [vmem:[%s3748_s30 + $0x70] sm:$0xff] }
 0x11e   : > { %v905_v13 = vadd.f32 %v837_v12, %v658_v36  ;;  %v1123_v58 = vpop.f32.mrf.mxu3  ;;  %v659_v16 = vpop.f32.mrf.mxu1 }
 0x11f   : > { %v660_v61 = vadd.f32 %v659_v16, %v3977_v23 }
 0x120   : > { %v1191_v30 = vadd.f32 %v1123_v58, %v905_v13  ;;  %v3603_v58 = vld [vmem:[%s3748_s30 + $0x80] sm:$0xff] }
 0x121   : > { %v1453_v24 = vshll.u32 %v3603_v58, 16 }
 0x122   : > { %v1547_v14 = vpop.f32.mrf.mxu0  ;;  %v4157_v50 = vadd.f32 %v1545_v53, %v1191_v30 }
 0x125   : > { %v839_v59 = vpop.f32.mrf.mxu2 }
 0x126   : > { %v906_v9 = vadd.f32 %v839_v59, %v660_v61  ;;  %v1125_v43 = vpop.f32.mrf.mxu3  ;;  %v662_v35 = vpop.f32.mrf.mxu1 }
 0x127   : > { %v663_v4 = vadd.f32 %v662_v35, %v3988_v33  ;;  %v1455_v35 = vrot.slane %v1453_v24, 1  ;;  %v1457_v24 = vshrl.u32 %v3603_v58, 16  ;;  %v3588_v58 = vld [vmem:[%s3748_s30 + $0x80] sm:$0xff] }
 0x128   : > { %v1192_v36 = vadd.f32 %v1125_v43, %v906_v9 }
 0x129   : > { %3153 = vmatmul.msk.bf16.gmra.mxu1 %vm451_vm2, %v3766_v15  ;;  %v1456_v26 = vsel %vm318_vm1, %v1451_v1, %v1455_v35 }
 0x12a   : > { %v1550_v12 = vpop.f32.mrf.mxu0  ;;  %3170 = vmatmul.msk.bf16.gmra.mxu2 %vm451_vm2, %v752_v2  ;;  %v4167_v23 = vadd.f32 %v1547_v14, %v1192_v36  ;;  %v753_v14 = vrot.slane %v3837_v8, 1  ;;  %v3587_v36 = vld [vmem:[%s3748_s30 + $0x78] sm:$0xff] }
 0x12b   : > { %3251 = vmatmul.msk.bf16.gmra.mxu3 %vm451_vm2, %v3586_v11 }
 0x12c   : > { %v754_v11 = vsel %vm723_vm3, %v751_v7, %v753_v14 }
 0x12d   : > { %3328 = vmatmul.msk.bf16.gmra.mxu0 %vm451_vm2, %v1448_v25  ;;  %v842_v53 = vpop.f32.mrf.mxu2  ;;  %v1247_v25 = vld [vmem:[%s3748_s30 + $0x88] sm:$0x1] }
 0x12e   : > { %v907_v46 = vadd.f32 %v842_v53, %v663_v4  ;;  %v1128_v13 = vpop.f32.mrf.mxu3  ;;  %v664_v16 = vpop.f32.mrf.mxu1 }
 0x12f   : > { %v665_v59 = vadd.f32 %v664_v16, %v4007_v41  ;;  %v1315_v41 = vunpack.c.l.b16 %v1247_v25 }
 0x130   : > { %v1193_v15 = vadd.f32 %v1128_v13, %v907_v46 }
 0x131   : > { %v4189_v16 = vpack.c.b16 %v1315_v41, %v1315_v41  ;;  %v3652_v41 = vld [vmem:[%s3748_s30 + $0x8] sm:$0xe] }
 0x132   : > { %v1552_v30 = vpop.f32.mrf.mxu0  ;;  %v4173_v61 = vadd.f32 %v1550_v12, %v1193_v15 }
 0x135   : > { %v844_v33 = vpop.f32.mrf.mxu2 }
 0x136   : > { %v908_v9 = vadd.f32 %v844_v33, %v665_v59  ;;  %v1130_v43 = vpop.f32.mrf.mxu3  ;;  %v667_v2 = vpop.f32.mrf.mxu1  ;;  %v755_v33 = vrot.slane %v3862_v44, 1 }
 0x137   : > { %v668_v0 = vadd.f32 %v667_v2, %v4018_v54  ;;  %v1459_v2 = vor.u32 %v1457_v24, %v1455_v35  ;;  %v3655_v24 = vld [vmem:[%s3748_s30 + $0x10] sm:$0xf0] }
 0x138   : > { %v1194_v4 = vadd.f32 %v1130_v43, %v908_v9  ;;  %v756_v25 = vsel %vm723_vm3, %v753_v14, %v755_v33  ;;  %v3651_v14 = vld [vmem:[%s3748_s30 + $0x8] sm:$0xf0] }
 0x139   : > { %3154 = vmatmul.msk.bf16.gmra.mxu1 %vm451_vm2, %v3809_v48 }
 0x13a   : > { %v1555_v53 = vpop.f32.mrf.mxu0  ;;  %3171 = vmatmul.msk.bf16.gmra.mxu2 %vm451_vm2, %v754_v11  ;;  %v4184_v12 = vadd.f32 %v1552_v30, %v1194_v4  ;;  %v1461_v30 = vshll.u32 %v4189_v16, 16 }
 0x13b   : > { %3252 = vmatmul.msk.bf16.gmra.mxu3 %vm451_vm2, %v3587_v36 }
 0x13c   : > { %v1463_v11 = vrot.slane %v1461_v30, 1  ;;  %v3656_v30 = vld [vmem:[%s3748_s30 + $0x10] sm:$0xe] }
 0x13d   : > { %3329 = vmatmul.msk.bf16.gmra.mxu0 %vm451_vm2, %v1456_v26  ;;  %v847_v7 = vpop.f32.mrf.mxu2  ;;  %v3654_v26 = vld [vmem:[%s3748_s30 + $0x10] sm:$0xff]  }
 0x13e   : > { %v909_v46 = vadd.f32 %v847_v7, %v668_v0  ;;  %v1133_v13 = vpop.f32.mrf.mxu3  ;;  %v669_v48 = vpop.f32.mrf.mxu1  ;;  %v1464_v44 = vsel %vm318_vm1, %v1459_v2, %v1463_v11  ;;  %v4210_v0 = vld [vmem:[%s3748_s30 + $0x18] sm:$0xff]  ;;  %v2255_v7 = vshll.u32 %v3654_v26, 16  ;;  %v2253_v33 = vshrl.u32 %v3654_v26, 16 }
 0x13f   : > { %v670_v54 = vadd.f32 %v669_v48, %v4037_v62  ;;  %v1644_v11 = vrot.slane %v3898_v28, 1 }
 0x140   : > { %v1195_v15 = vadd.f32 %v1133_v13, %v909_v46 }
 0x142   : > { %v1557_v6 = vpop.f32.mrf.mxu0  ;;  %v4192_v59 = vadd.f32 %v1555_v53, %v1195_v15  ;;  %v3653_v15 = vor.u32 %v3652_v41, %v3651_v14  ;;  %v3604_v14 = vld [vmem:[%s3748_s30 + $0x10] sm:$0xff]  ;;  %v2563_v41 = vrot.slane %v4210_v0, 1 }
 0x144   : > { %v1643_v2 = vrot.slane %v3653_v15, 1  ;;  %v3621_v15 = vld [vmem:[%s3748_s30 + $0x20] sm:$0xff] }
 0x145   : > { %v849_v9 = vpop.f32.mrf.mxu2 }
 0x146   : > { %v910_v43 = vadd.f32 %v849_v9, %v670_v54  ;;  %v1135_v1 = vpop.f32.mrf.mxu3  ;;  %v672_v36 = vpop.f32.mrf.mxu1  ;;  %v2257_v54 = vrot.slane %v2255_v7, 1 }
 0x147   : > { %v673_v35 = vadd.f32 %v672_v36, %v4048_v18  ;;  %v2260_v18 = vshll.u32 %v4210_v0, 16 }
 0x148   : > { %v1196_v4 = vadd.f32 %v1135_v1, %v910_v43  ;;  %v3657_v43 = vor.u32 %v3656_v30, %v3655_v24 }
 0x149   : > { %3155 = vmatmul.msk.bf16.gmra.mxu1 %vm451_vm2, %v3837_v8 }
 0x14a   : > { %v1560_v53 = vpop.f32.mrf.mxu0  ;;  %3172 = vmatmul.msk.bf16.gmra.mxu2 %vm451_vm2, %v756_v25  ;;  %v4203_v62 = vadd.f32 %v1557_v6, %v1196_v4  ;;  %v2258_v25 = vor.u32 %v2257_v54, %v2253_v33  ;;  %v2562_v26 = vrot.slane %v3657_v43, 1  ;;  %v2268_v43 = vshll.u32 %v3621_v15, 16 }
 0x14b   : > { %3253 = vmatmul.msk.bf16.gmra.mxu3 %vm451_vm2, %v3588_v58  ;;  %v2262_v58 = vrot.slane %v2260_v18, 1  ;;  %v2264_v18 = vshrl.u32 %v4210_v0, 16 }
 0x14c   : > { %v2564_v28 = vsel %vm723_vm3, %v2562_v26, %v2563_v41  ;;  %v3605_v26 = vld [vmem:[%s3748_s30 + $0x18] sm:$0xff] }
 0x14d   : > { %3330 = vmatmul.msk.bf16.gmra.mxu0 %vm451_vm2, %v1464_v44  ;;  %v852_v8 = vpop.f32.mrf.mxu2 }
 0x14e   : > { %v911_v46 = vadd.f32 %v852_v8, %v673_v35  ;;  %v1138_v13 = vpop.f32.mrf.mxu3  ;;  %v674_v48 = vpop.f32.mrf.mxu1  ;;  %v1645_v8 = vsel %vm723_vm3, %v1643_v2, %v1644_v11 }
 0x14f   : > { %v675_v36 = vadd.f32 %v674_v48, %v4067_v38 }
 0x150   : > { %v1197_v6 = vadd.f32 %v1138_v13, %v911_v46  ;;  %v2263_v46 = vsel %vm318_vm1, %v2258_v25, %v2262_v58 }
 0x152   : > { %v1562_v9 = vpop.f32.mrf.mxu0  ;;  %v4216_v1 = vadd.f32 %v1560_v53, %v1197_v6 }
 0x155   : > { %v854_v4 = vpop.f32.mrf.mxu2 }
 0x156   : > { %v912_v44 = vadd.f32 %v854_v4, %v675_v36  ;;  %v1140_v35 = vpop.f32.mrf.mxu3  ;;  %v677_v7 = vpop.f32.mrf.mxu1  ;;  %v2270_v4 = vrot.slane %v2268_v43, 1 }
 0x157   : > { %v678_v48 = vadd.f32 %v677_v7, %v3970_v31  ;;  %v2266_v31 = vor.u32 %v2264_v18, %v2262_v58  ;;  %v2565_v7 = vrot.slane %v3621_v15, 1 }
 0x158   : > { %v1198_v53 = vadd.f32 %v1140_v35, %v912_v44 }
 0x159   : > { %3332 = vmatmul.msk.bf16.vlgmr.msra.gmra.mxu1 %vm451_vm2, %v1645_v8 }
 0x15a   : > { %v1565_v13 = vpop.f32.mrf.mxu0  ;;  %3413 = vmatmul.msk.bf16.vlgmr.msra.gmra.mxu2 %vm451_vm2, %v3604_v14  ;;  %v4227_v38 = vadd.f32 %v1562_v9, %v1198_v53  ;;  %v1646_v9 = vrot.slane %v3911_v34, 1  ;;  %v2566_v34 = vsel %vm723_vm3, %v2563_v41, %v2565_v7  ;;  %v1648_v41 = vrot.slane %v3925_v42, 1 }
 0x15b   : > { %3490 = vmatmul.msk.bf16.vlgmr.msra.gmra.mxu3 %vm451_vm2, %v2263_v46  ;;  %v2271_v46 = vsel %vm318_vm1, %v2266_v31, %v2270_v4 }
 0x15c   : > { %v1647_v53 = vsel %vm723_vm3, %v1644_v11, %v1646_v9 }
 0x15d   : > { %3507 = vmatmul.msk.bf16.vlgmr.msra.gmra.mxu0 %vm451_vm2, %v2564_v28  ;;  %v857_v24 = vpop.f32.mrf.mxu2  ;;  %v3622_v28 = vld [vmem:[%s3748_s30 + $0x28] sm:$0xff] }
 0x15e   : > { %v913_v30 = vadd.f32 %v857_v24, %v678_v48  ;;  %v1143_v6 = vpop.f32.mrf.mxu3  ;;  %v679_v33 = vpop.f32.mrf.mxu1 }
 0x15f   : > { %v680_v25 = vadd.f32 %v679_v33, %v3984_v27  ;;  %v2272_v33 = vshrl.u32 %v3621_v15, 16 }
 0x160   : > { %v1199_v54 = vadd.f32 %v1143_v6, %v913_v30 }
 0x162   : > { %v1567_v2 = vpop.f32.mrf.mxu0  ;;  %v4234_v36 = vadd.f32 %v1565_v13, %v1199_v54  ;;  %v2276_v54 = vshll.u32 %v3622_v28, 16 }
 0x165   : > { %v859_v44 = vpop.f32.mrf.mxu2 }
 0x166   : > { %v914_v35 = vadd.f32 %v859_v44, %v680_v25  ;;  %v1145_v14 = vpop.f32.mrf.mxu3  ;;  %v682_v8 = vpop.f32.mrf.mxu1  ;;  %v2274_v25 = vor.u32 %v2272_v33, %v2270_v4 }
 0x167   : > { %v683_v58 = vadd.f32 %v682_v8, %v4000_v20  ;;  %v2278_v20 = vrot.slane %v2276_v54, 1 }
 0x168   : > { %v1200_v0 = vadd.f32 %v1145_v14, %v914_v35  ;;  %v3606_v14 = vld [vmem:[%s3748_s30 + $0x20] sm:$0xff] }
 0x169   : > { %3333 = vmatmul.msk.bf16.gmra.mxu1 %vm451_vm2, %v1647_v53  ;;  %v1649_v53 = vsel %vm723_vm3, %v1646_v9, %v1648_v41 }
 0x16a   : > { %v1570_v13 = vpop.f32.mrf.mxu0  ;;  %3414 = vmatmul.msk.bf16.gmra.mxu2 %vm451_vm2, %v3605_v26  ;;  %v4244_v27 = vadd.f32 %v1567_v2, %v1200_v0  ;;  %v2567_v26 = vrot.slane %v3622_v28, 1  ;;  %v2279_v0 = vsel %vm318_vm1, %v2274_v25, %v2278_v20 }
 0x16b   : > { %3491 = vmatmul.msk.bf16.gmra.mxu3 %vm451_vm2, %v2271_v46 }
 0x16c   : > { %v2568_v42 = vsel %vm723_vm3, %v2565_v7, %v2567_v26  ;;  %v1650_v7 = vrot.slane %v3939_v55, 1 }
 0x16d   : > { %3508 = vmatmul.msk.bf16.gmra.mxu0 %vm451_vm2, %v2566_v34  ;;  %v862_v11 = vpop.f32.mrf.mxu2 }
 0x16e   : > { %v915_v48 = vadd.f32 %v862_v11, %v683_v58  ;;  %v1148_v24 = vpop.f32.mrf.mxu3  ;;  %v684_v30 = vpop.f32.mrf.mxu1 }
 0x16f   : > { %v685_v2 = vadd.f32 %v684_v30, %v4014_v51 }
 0x170   : > { %v1201_v6 = vadd.f32 %v1148_v24, %v915_v48  ;;  %v2280_v24 = vshrl.u32 %v3622_v28, 16 }
 0x172   : > { %v1572_v18 = vpop.f32.mrf.mxu0  ;;  %v4250_v43 = vadd.f32 %v1570_v13, %v1201_v6  ;;  %v3623_v13 = vld [vmem:[%s3748_s30 + $0x30] sm:$0xff] }
 0x173   : > { %v2284_v30 = vshll.u32 %v3623_v13, 16 }
 0x175   : > { %v864_v31 = vpop.f32.mrf.mxu2 }
 0x176   : > { %v916_v44 = vadd.f32 %v864_v31, %v685_v2  ;;  %v1150_v35 = vpop.f32.mrf.mxu3  ;;  %v687_v8 = vpop.f32.mrf.mxu1 }
 0x177   : > { %v688_v4 = vadd.f32 %v687_v8, %v4030_v60  ;;  %v2286_v60 = vrot.slane %v2284_v30, 1  ;;  %v1651_v8 = vsel %vm723_vm3, %v1648_v41, %v1650_v7 }
 0x178   : > { %v1202_v15 = vadd.f32 %v1150_v35, %v916_v44  ;;  %v3607_v44 = vld [vmem:[%s3748_s30 + $0x28] sm:$0xff]  ;;  %v2569_v35 = vrot.slane %v3623_v13, 1 }
 0x179   : > { %3334 = vmatmul.msk.bf16.gmra.mxu1 %vm451_vm2, %v1649_v53 }
 0x17a   : > { %v1575_v46 = vpop.f32.mrf.mxu0  ;;  %3415 = vmatmul.msk.bf16.gmra.mxu2 %vm451_vm2, %v3606_v14  ;;  %v4260_v51 = vadd.f32 %v1572_v18, %v1202_v15  ;;  %v2282_v18 = vor.u32 %v2280_v24, %v2278_v20  ;;  %v2570_v55 = vsel %vm723_vm3, %v2567_v26, %v2569_v35  ;;  %v1652_v26 = vrot.slane %v3953_v63, 1 }
 0x17b   : > { %3492 = vmatmul.msk.bf16.gmra.mxu3 %vm451_vm2, %v2279_v0  ;;  %v3624_v0 = vld [vmem:[%s3748_s30 + $0x38] sm:$0xff] }
 0x17c   : > { %v2287_v53 = vsel %vm318_vm1, %v2282_v18, %v2286_v60 }
 0x17d   : > { %3509 = vmatmul.msk.bf16.gmra.mxu0 %vm451_vm2, %v2568_v42  ;;  %v867_v9 = vpop.f32.mrf.mxu2 }
 0x17e   : > { %v917_v34 = vadd.f32 %v867_v9, %v688_v4  ;;  %v1153_v58 = vpop.f32.mrf.mxu3  ;;  %v689_v11 = vpop.f32.mrf.mxu1 }
 0x17f   : > { %v690_v54 = vadd.f32 %v689_v11, %v4044_v3 }
 0x180   : > { %v1203_v48 = vadd.f32 %v1153_v58, %v917_v34  ;;  %v2288_v34 = vshrl.u32 %v3623_v13, 16  ;;  %v2292_v58 = vshll.u32 %v3624_v0, 16 }
 0x182   : > { %v1577_v6 = vpop.f32.mrf.mxu0  ;;  %v4266_v33 = vadd.f32 %v1575_v46, %v1203_v48  ;;  %v2290_v30 = vor.u32 %v2288_v34, %v2286_v60 }
 0x185   : > { %v869_v2 = vpop.f32.mrf.mxu2 }
 0x186   : > { %v918_v25 = vadd.f32 %v869_v2, %v690_v54  ;;  %v1155_v31 = vpop.f32.mrf.mxu3  ;;  %v692_v14 = vpop.f32.mrf.mxu1  ;;  %v3608_v2 = vld [vmem:[%s3748_s30 + $0x30] sm:$0xff] }
 0x187   : > { %v693_v20 = vadd.f32 %v692_v14, %v4060_v32  ;;  %v2294_v32 = vrot.slane %v2292_v58, 1 }
 0x188   : > { %v1204_v28 = vadd.f32 %v1155_v31, %v918_v25  ;;  %v2571_v25 = vrot.slane %v3624_v0, 1 }
 0x189   : > { %3335 = vmatmul.msk.bf16.gmra.mxu1 %vm451_vm2, %v1651_v8  ;;  %v2295_v14 = vsel %vm318_vm1, %v2290_v30, %v2294_v32  ;;  %v3609_v30 = vld [vmem:[%s3748_s30 + $0x38] sm:$0xff] }
 0x18a   : > { %v1580_v15 = vpop.f32.mrf.mxu0  ;;  %3416 = vmatmul.msk.bf16.gmra.mxu2 %vm451_vm2, %v3607_v44  ;;  %v4276_v3 = vadd.f32 %v1577_v6, %v1204_v28  ;;  %v1653_v44 = vsel %vm723_vm3, %v1650_v7, %v1652_v26  ;;  %v2572_v63 = vsel %vm723_vm3, %v2569_v35, %v2571_v25  ;;  %v3625_v28 = vld [vmem:[%s3748_s30 + $0x40] sm:$0xff]  ;;  %v1654_v35 = vrot.slane %v3975_v22, 1 }
 0x18b   : > { %3493 = vmatmul.msk.bf16.gmra.mxu3 %vm451_vm2, %v2287_v53 }
 0x18d   : > { %3510 = vmatmul.msk.bf16.gmra.mxu0 %vm451_vm2, %v2570_v55  ;;  %v872_v41 = vpop.f32.mrf.mxu2 }
 0x18e   : > { %v919_v46 = vadd.f32 %v872_v41, %v693_v20  ;;  %v1158_v42 = vpop.f32.mrf.mxu3  ;;  %v694_v4 = vpop.f32.mrf.mxu1  ;;  %v2296_v41 = vshrl.u32 %v3624_v0, 16 }
 0x18f   : > { %v695_v24 = vadd.f32 %v694_v4, %v4074_v52 }
 0x190   : > { %v1205_v9 = vadd.f32 %v1158_v42, %v919_v46  ;;  %v2300_v46 = vshll.u32 %v3625_v28, 16  ;;  %v2298_v34 = vor.u32 %v2296_v41, %v2294_v32 }
 0x192   : > { %v1582_v11 = vpop.f32.mrf.mxu0  ;;  %v4282_v48 = vadd.f32 %v1580_v15, %v1205_v9 }
 0x195   : > { %v874_v6 = vpop.f32.mrf.mxu2 }
 0x196   : > { %v920_v54 = vadd.f32 %v874_v6, %v695_v24  ;;  %v1160_v18 = vpop.f32.mrf.mxu3  ;;  %v697_v31 = vpop.f32.mrf.mxu1  ;;  %v2573_v6 = vrot.slane %v3625_v28, 1 }
 0x197   : > { %v698_v60 = vadd.f32 %v697_v31, %v3972_v19  ;;  %v2302_v19 = vrot.slane %v2300_v46, 1 }
 0x198   : > { %v1206_v13 = vadd.f32 %v1160_v18, %v920_v54  ;;  %v1655_v18 = vsel %vm723_vm3, %v1652_v26, %v1654_v35  ;;  %v2574_v22 = vsel %vm723_vm3, %v2571_v25, %v2573_v6  ;;  %v1656_v25 = vrot.slane %v4005_v40, 1 }
 0x199   : > { %3336 = vmatmul.msk.bf16.gmra.mxu1 %vm451_vm2, %v1653_v44  ;;  %v3626_v44 = vld [vmem:[%s3748_s30 + $0x48] sm:$0xff] }
 0x19a   : > { %v1585_v8 = vpop.f32.mrf.mxu0  ;;  %3417 = vmatmul.msk.bf16.gmra.mxu2 %vm451_vm2, %v3608_v2  ;;  %v4292_v52 = vadd.f32 %v1582_v11, %v1206_v13  ;;  %v2303_v2 = vsel %vm318_vm1, %v2298_v34, %v2302_v19  ;;  %v2575_v34 = vrot.slane %v3626_v44, 1 }
 0x19b   : > { %3494 = vmatmul.msk.bf16.gmra.mxu3 %vm451_vm2, %v2295_v14 }
 0x19c   : > { %v2576_v40 = vsel %vm723_vm3, %v2573_v6, %v2575_v34  ;;  %v4689_v6 = vld [vmem:[#allocation2_spill] sm:$0xff] }
 0x19d   : > { %3511 = vmatmul.msk.bf16.gmra.mxu0 %vm451_vm2, %v2572_v63  ;;  %v877_v7 = vpop.f32.mrf.mxu2 }
 0x19e   : > { %v921_v53 = vadd.f32 %v877_v7, %v698_v60  ;;  %v1163_v15 = vpop.f32.mrf.mxu3  ;;  %v699_v55 = vpop.f32.mrf.mxu1  ;;  %v2304_v60 = vshrl.u32 %v3625_v28, 16  ;;  %v2308_v7 = vshll.u32 %v3626_v44, 16 }
 0x19f   : > { %v700_v9 = vadd.f32 %v699_v55, %v3986_v29 }
 0x1a0   : > { %v1207_v20 = vadd.f32 %v1163_v15, %v921_v53 }
 0x1a2   : > { %v1587_v42 = vpop.f32.mrf.mxu0  ;;  %v4298_v4 = vadd.f32 %v1585_v8, %v1207_v20  ;;  %v2306_v20 = vor.u32 %v2304_v60, %v2302_v19 }
 0x1a5   : > { %v879_v58 = vpop.f32.mrf.mxu2 }
 0x1a6   : > { %v922_v11 = vadd.f32 %v879_v58, %v700_v9  ;;  %v1165_v24 = vpop.f32.mrf.mxu3  ;;  %v702_v54 = vpop.f32.mrf.mxu1  ;;  %v3610_v9 = vld [vmem:[%s3748_s30 + $0x40] sm:$0xff] }
 0x1a7   : > { %v703_v32 = vadd.f32 %v702_v54, %v4002_v39  ;;  %v2310_v39 = vrot.slane %v2308_v7, 1  ;;  %v3627_v54 = vld [vmem:[%s3748_s30 + $0x50] sm:$0xff] }
 0x1a8   : > { %v1208_v0 = vadd.f32 %v1165_v24, %v922_v11  ;;  %v1657_v11 = vsel %vm723_vm3, %v1654_v35, %v1656_v25 }
 0x1a9   : > { %3337 = vmatmul.msk.bf16.gmra.mxu1 %vm451_vm2, %v1655_v18  ;;  %v2311_v24 = vsel %vm318_vm1, %v2306_v20, %v2310_v39  ;;  %v3611_v20 = vld [vmem:[%s3748_s30 + $0x48] sm:$0xff] }
 0x1aa   : > { %v1590_v31 = vpop.f32.mrf.mxu0  ;;  %3418 = vmatmul.msk.bf16.gmra.mxu2 %vm451_vm2, %v3609_v30  ;;  %v4308_v29 = vadd.f32 %v1587_v42, %v1208_v0 }
 0x1ab   : > { %3495 = vmatmul.msk.bf16.gmra.mxu3 %vm451_vm2, %v2303_v2 }
 0x1ad   : > { %3512 = vmatmul.msk.bf16.gmra.mxu0 %vm451_vm2, %v2574_v22  ;;  %v882_v26 = vpop.f32.mrf.mxu2  ;;  %v2312_v22 = vshrl.u32 %v3626_v44, 16 }
 0x1ae   : > { %v923_v13 = vadd.f32 %v882_v26, %v703_v32  ;;  %v1168_v14 = vpop.f32.mrf.mxu3  ;;  %v704_v8 = vpop.f32.mrf.mxu1  ;;  %v2316_v32 = vshll.u32 %v3627_v54, 16 }
 0x1af   : > { %v705_v55 = vadd.f32 %v704_v8, %v4016_v21  ;;  %v4690_v8 = vld [vmem:[#allocation3_spill] sm:$0xff]  ;;  %v2314_v60 = vor.u32 %v2312_v22, %v2310_v39  ;;  %v4692_v22 = vld [vmem:[#allocation5_spill] sm:$0xff] }
 0x1b0   : > { %v1209_v63 = vadd.f32 %v1168_v14, %v923_v13  ;;  %v1658_v14 = vrot.slane %v4689_v6, 1 }
 0x1b2   : > { %v1592_v53 = vpop.f32.mrf.mxu0  ;;  %v4314_v15 = vadd.f32 %v1590_v31, %v1209_v63 }
 0x1b5   : > { %v884_v41 = vpop.f32.mrf.mxu2 }
 0x1b6   : > { %v924_v46 = vadd.f32 %v884_v41, %v705_v55  ;;  %v1170_v42 = vpop.f32.mrf.mxu3  ;;  %v707_v58 = vpop.f32.mrf.mxu1  ;;  %v2577_v41 = vrot.slane %v3627_v54, 1 }
 0x1b7   : > { %v708_v19 = vadd.f32 %v707_v58, %v4032_v49  ;;  %v2318_v49 = vrot.slane %v2316_v32, 1  ;;  %v1660_v32 = vrot.slane %v4692_v22, 1 }
 0x1b8   : > { %v1210_v28 = vadd.f32 %v1170_v42, %v924_v46  ;;  %v1659_v42 = vsel %vm723_vm3, %v1656_v25, %v1658_v14  ;;  %v2578_v39 = vsel %vm723_vm3, %v2575_v34, %v2577_v41 }
 0x1b9   : > { %3338 = vmatmul.msk.bf16.gmra.mxu1 %vm451_vm2, %v1657_v11 }
 0x1ba   : > { %v1595_v30 = vpop.f32.mrf.mxu0  ;;  %3419 = vmatmul.msk.bf16.gmra.mxu2 %vm451_vm2, %v3610_v9  ;;  %v4324_v21 = vadd.f32 %v1592_v53, %v1210_v28  ;;  %v2319_v9 = vsel %vm318_vm1, %v2314_v60, %v2318_v49  ;;  %v4691_v28 = vld [vmem:[#allocation4_spill] sm:$0xff] }
 0x1bb   : > { %3496 = vmatmul.msk.bf16.gmra.mxu3 %vm451_vm2, %v2311_v24 }
 0x1bd   : > { %3513 = vmatmul.msk.bf16.gmra.mxu0 %vm451_vm2, %v2576_v40  ;;  %v887_v35 = vpop.f32.mrf.mxu2 }
 0x1be   : > { %v925_v18 = vadd.f32 %v887_v35, %v708_v19  ;;  %v1173_v0 = vpop.f32.mrf.mxu3  ;;  %v709_v2 = vpop.f32.mrf.mxu1 }
 0x1bf   : > { %v710_v63 = vadd.f32 %v709_v2, %v4690_v8 }
 0x1c0   : > { %v1211_v31 = vadd.f32 %v1173_v0, %v925_v18  ;;  %v2320_v0 = vshrl.u32 %v3627_v54, 16  ;;  %v1661_v54 = vsel %vm723_vm3, %v1658_v14, %v1660_v32 }
 0x1c2   : > { %v1597_v26 = vpop.f32.mrf.mxu0  ;;  %v4330_v13 = vadd.f32 %v1595_v30, %v1211_v31  ;;  %v4345_v30 = vld [vmem:[%s3748_s30 + $0x58] sm:$0xff]  ;;  %v2322_v8 = vor.u32 %v2320_v0, %v2318_v49  ;;  %v4378_v0 = vld [vmem:[%s4679_s3] ss:$0 sm:$0xff] }
 0x1c3   : > { %v2324_v2 = vshll.u32 %v4345_v30, 16 }
 0x1c5   : > { %v889_v7 = vpop.f32.mrf.mxu2 }
 0x1c6   : > { %v926_v53 = vadd.f32 %v889_v7, %v710_v63  ;;  %v1175_v55 = vpop.f32.mrf.mxu3  ;;  %v712_v46 = vpop.f32.mrf.mxu1  ;;  %v2326_v63 = vrot.slane %v2324_v2, 1 }
 0x1c7   : > { %v713_v24 = vadd.f32 %v712_v46, %v4691_v28  ;;  %v4365_v28 = vld [vmem:[%s3748_s30 + $0x60] sm:$0xff] }
 0x1c8   : > { %v1212_v44 = vadd.f32 %v1175_v55, %v926_v53  ;;  %v3612_v55 = vld [vmem:[%s3748_s30 + $0x50] sm:$0xff] }
 0x1c9   : > { %3339 = vmatmul.msk.bf16.gmra.mxu1 %vm451_vm2, %v1659_v42 }
 0x1ca   : > { %v1600_v58 = vpop.f32.mrf.mxu0  ;;  %3420 = vmatmul.msk.bf16.gmra.mxu2 %vm451_vm2, %v3611_v20  ;;  %v4340_v11 = vadd.f32 %v1597_v26, %v1212_v44  ;;  %v4693_v26 = vld [vmem:[#allocation6_spill] sm:$0xff]  ;;  %v2579_v20 = vrot.slane %v4345_v30, 1  ;;  %v2327_v44 = vsel %vm318_vm1, %v2322_v8, %v2326_v63 }
 0x1cb   : > { %3497 = vmatmul.msk.bf16.gmra.mxu3 %vm451_vm2, %v2319_v9 }
 0x1cc   : > { %v2580_v49 = vsel %vm723_vm3, %v2577_v41, %v2579_v20  ;;  %v4371_v41 = vld [vmem:[%s4678_s2] ss:$0 sm:$0xff] }
 0x1cd   : > { %3514 = vmatmul.msk.bf16.gmra.mxu0 %vm451_vm2, %v2578_v39  ;;  %v892_v25 = vpop.f32.mrf.mxu2 }
 0x1ce   : > { %v927_v40 = vadd.f32 %v892_v25, %v713_v24  ;;  %v1178_v19 = vpop.f32.mrf.mxu3  ;;  %v714_v35 = vpop.f32.mrf.mxu1 }
 0x1cf   : > { %v715_v6 = vadd.f32 %v714_v35, %v4693_v26  ;;  %v2328_v35 = vshrl.u32 %v4345_v30, 16 }
 0x1d0   : > { %v1213_v18 = vadd.f32 %v1178_v19, %v927_v40 }
 0x1d2   : > { %v1602_v34 = vpop.f32.mrf.mxu0  ;;  %v4349_v31 = vadd.f32 %v1600_v58, %v1213_v18 }
 0x1d5   : > { %v894_v60 = vpop.f32.mrf.mxu2 }
 0x1d6   : > { %v928_v7 = vadd.f32 %v894_v60, %v715_v6  ;;  %v1180_v53 = vpop.f32.mrf.mxu3  ;;  %v1736_v46 = vpop.f32.mrf.mxu1  ;;  %v2330_v6 = vor.u32 %v2328_v35, %v2326_v63 }
 0x1d7   : > { %v1816_v39 = vadd.f32 %v1736_v46, %v4093_v56  ;;  %v2332_v56 = vshll.u32 %v4365_v28, 16  ;;  %v2581_v46 = vrot.slane %v4365_v28, 1 }
 0x1d8   : > { %v1214_v42 = vadd.f32 %v1180_v53, %v928_v7 }
 0x1d9   : > { %3340 = vmatmul.msk.bf16.gmra.mxu1 %vm451_vm2, %v1661_v54  ;;  %v2334_v8 = vrot.slane %v2332_v56, 1 }
 0x1da   : > { %v2655_v9 = vpop.f32.mrf.mxu0  ;;  %3421 = vmatmul.msk.bf16.gmra.mxu2 %vm451_vm2, %v3612_v55  ;;  %v4360_v58 = vadd.f32 %v1602_v34, %v1214_v42  ;;  %v1662_v34 = vrot.slane %v4088_v47, 1  ;;  %v3613_v55 = vld [vmem:[%s3748_s30 + $0x58] sm:$0xff] }
 0x1db   : > { %3498 = vmatmul.msk.bf16.gmra.mxu3 %vm451_vm2, %v2327_v44  ;;  %v2335_v44 = vsel %vm318_vm1, %v2330_v6, %v2334_v8 }
 0x1dc   : > { %v1663_v42 = vsel %vm723_vm3, %v1660_v32, %v1662_v34  ;;  %v2582_v32 = vsel %vm723_vm3, %v2579_v20, %v2581_v46 }
 0x1dd   : > { %3515 = vmatmul.msk.bf16.gmra.mxu0 %vm451_vm2, %v2580_v49  ;;  %v2022_v14 = vpop.f32.mrf.mxu2 }
 0x1de   : > { %v2102_v24 = vadd.f32 %v2022_v14, %v1816_v39  ;;  %v2444_v25 = vpop.f32.mrf.mxu3  ;;  %v1738_v40 = vpop.f32.mrf.mxu1 }
 0x1df   : > { %v1817_v26 = vadd.f32 %v1738_v40, %v4103_v17  ;;  %v3688_v17 = vmov 0.0  }
 0x1e0   : > { %v2524_v19 = vadd.f32 %v2444_v25, %v2102_v24  ;;  %v4404_v25 = vld [vmem:[%s3748_s30 + $0x68] sm:$0xff] }
 0x1e2   : > { %v2735_v18 = vadd.f32 %v2655_v9, %v2524_v19  ;;  %v2657_v2 = vpop.f32.mrf.mxu0 }
 0x1e4   : > { %v2771_v22 = vmul.f32 %v4371_v41, %v2735_v18 }
 0x1e5   : > { %v2024_v60 = vpop.f32.mrf.mxu2 }
 0x1e6   : > { %v2807_v30 = vadd.f32 %v4378_v0, %v2771_v22  ;;  %v2103_v7 = vadd.f32 %v2024_v60, %v1817_v26  ;;  %v2446_v53 = vpop.f32.mrf.mxu3  ;;  %v1741_v54 = vpop.f32.mrf.mxu1  ;;  %v2340_v22 = vshll.u32 %v4404_v25, 16 }
 0x1e7   : > { %v1818_v24 = vadd.f32 %v1741_v54, %v4110_v5 }
 0x1e8   : > { %vm2839_vm4 = vcmp.ge.f32.partialorder %v2807_v30, 1.0  ;;  %v2525_v47 = vadd.f32 %v2446_v53, %v2103_v7  ;;  %v3673_v30 = vld [vmem:[%s3748_s30 + $0x60] sm:$0xff] }
 0x1e9   : > { %v3523_v63 = vsel %vm2839_vm4, 1.0, %v3688_v17  ;;  %3341 = vmatmul.msk.bf16.gmra.mxu1 %vm451_vm2, %v1663_v42  ;;  %v1664_v7 = vrot.slane %v3673_v30, 1  ;;  %v2344_v30 = vshrl.u32 %v4404_v25, 16 }
 0x1ea   : > { %v2935_v9 = vpack.c.bf16 %v3523_v63, %v3523_v63  ;;  %v2736_v49 = vadd.f32 %v2657_v2, %v2525_v47  ;;  %v2660_v39 = vpop.f32.mrf.mxu0  ;;  %3422 = vmatmul.msk.bf16.gmra.mxu2 %vm451_vm2, %v3613_v55  ;;  %v2336_v2 = vshrl.u32 %v4365_v28, 16  ;;  %v4694_v55 = vld [vmem:[#allocation7_spill] sm:$0xff]  ;;  %v2342_v47 = vrot.slane %v2340_v22, 1 }
 0x1eb   : > { %3499 = vmatmul.msk.bf16.gmra.mxu3 %vm451_vm2, %v2335_v44 }
 0x1ec   : > { %2968 = vst.msk [vmem:[%s4392_s22] sm:$0xf] %vm2967_vm5, %v2935_v9  ;;  %v2772_v14 = vmul.f32 %v4371_v41, %v2736_v49  ;;  %v2338_v42 = vor.u32 %v2336_v2, %v2334_v8  ;;  %v3614_v49 = vld [vmem:[%s3748_s30 + $0x60] sm:$0xff]  ;;  %v4431_v2 = vld [vmem:[%s3748_s30 + $0x70] sm:$0xff] }
 0x1ed   : > { %3516 = vmatmul.msk.bf16.gmra.mxu0 %vm451_vm2, %v2582_v32  ;;  %v2027_v40 = vpop.f32.mrf.mxu2 }
 0x1ee   : > { %v2808_v19 = vadd.f32 %v4378_v0, %v2772_v14  ;;  %v2104_v35 = vadd.f32 %v2027_v40, %v1818_v24  ;;  %v2449_v56 = vpop.f32.mrf.mxu3  ;;  %v1743_v20 = vpop.f32.mrf.mxu1  ;;  %v1665_v14 = vsel %vm723_vm3, %v1662_v34, %v1664_v7  ;;  %v2343_v40 = vsel %vm318_vm1, %v2338_v42, %v2342_v47 }
 0x1ef   : > { %v1819_v54 = vadd.f32 %v1743_v20, %v4694_v55 }
 0x1f0   : > { %vm2840_vm6 = vcmp.ge.f32.partialorder %v2808_v19, 1.0  ;;  %v2526_v18 = vadd.f32 %v2449_v56, %v2104_v35 }
 0x1f1   : > { %v3524_v5 = vsel %vm2840_vm6, 1.0, %v3688_v17 }
 0x1f2   : > { %v2936_v26 = vpack.c.bf16 %v3524_v5, %v3524_v5  ;;  %v2737_v6 = vadd.f32 %v2660_v39, %v2526_v18  ;;  %v2662_v60 = vpop.f32.mrf.mxu0  ;;  %v2583_v39 = vrot.slane %v4404_v25, 1 }
 0x1f4   : > { %2969 = vst.msk [vmem:[%s4392_s22 + $0x4] sm:$0xf] %vm2967_vm5, %v2936_v26  ;;  %v2773_v53 = vmul.f32 %v4371_v41, %v2737_v6  ;;  %v2584_v20 = vsel %vm723_vm3, %v2581_v46, %v2583_v39 }
 0x1f5   : > { %v2029_v44 = vpop.f32.mrf.mxu2 }
 0x1f6   : > { %v2809_v28 = vadd.f32 %v4378_v0, %v2773_v53  ;;  %v2105_v63 = vadd.f32 %v2029_v44, %v1819_v54  ;;  %v2451_v9 = vpop.f32.mrf.mxu3  ;;  %v1746_v32 = vpop.f32.mrf.mxu1  ;;  %v2348_v53 = vshll.u32 %v4431_v2, 16  ;;  %v3674_v44 = vld [vmem:[%s3748_s30 + $0x68] sm:$0xff] }
 0x1f7   : > { %v1820_v18 = vadd.f32 %v1746_v32, %v4126_v10 }
 0x1f8   : > { %vm2841_vm7 = vcmp.ge.f32.partialorder %v2809_v28, 1.0  ;;  %v2527_v24 = vadd.f32 %v2451_v9, %v2105_v63  ;;  %v1666_v28 = vrot.slane %v3674_v44, 1  ;;  %v2350_v32 = vrot.slane %v2348_v53, 1 }
 0x1f9   : > { %v3525_v8 = vsel %vm2841_vm7, 1.0, %v3688_v17  ;;  %3342 = vmatmul.msk.bf16.gmra.mxu1 %vm451_vm2, %v1665_v14 }
 0x1fa   : > { %v2937_v19 = vpack.c.bf16 %v3525_v8, %v3525_v8  ;;  %v2738_v35 = vadd.f32 %v2662_v60, %v2527_v24  ;;  %v2665_v56 = vpop.f32.mrf.mxu0  ;;  %3423 = vmatmul.msk.bf16.gmra.mxu2 %vm451_vm2, %v3614_v49  ;;  %v2346_v49 = vor.u32 %v2344_v30, %v2342_v47  ;;  %v3615_v8 = vld [vmem:[%s3748_s30 + $0x68] sm:$0xff] }
 0x1fb   : > { %3500 = vmatmul.msk.bf16.gmra.mxu3 %vm451_vm2, %v2343_v40 }
 0x1fc   : > { %2970 = vst.msk [vmem:[%s4392_s22 + $0x8] sm:$0xf] %vm2967_vm5, %v2937_v19  ;;  %v2774_v34 = vmul.f32 %v4371_v41, %v2738_v35  ;;  %v2585_v19 = vrot.slane %v4431_v2, 1 }
 0x1fd   : > { %3517 = vmatmul.msk.bf16.gmra.mxu0 %vm451_vm2, %v2584_v20  ;;  %v2032_v22 = vpop.f32.mrf.mxu2 }
 0x1fe   : > { %v2810_v5 = vadd.f32 %v4378_v0, %v2774_v34  ;;  %v2106_v26 = vadd.f32 %v2032_v22, %v1820_v18  ;;  %v2454_v6 = vpop.f32.mrf.mxu3  ;;  %v1748_v46 = vpop.f32.mrf.mxu1  ;;  %v2351_v34 = vsel %vm318_vm1, %v2346_v49, %v2350_v32 }
 0x1ff   : > { %v1821_v9 = vadd.f32 %v1748_v46, %v4136_v37 }
 0x200   : > { %vm2842_vm8 = vcmp.ge.f32.partialorder %v2810_v5, 1.0  ;;  %v2528_v60 = vadd.f32 %v2454_v6, %v2106_v26  ;;  %v2586_v5 = vsel %vm723_vm3, %v2583_v39, %v2585_v19  ;;  %v4458_v6 = vld [vmem:[%s3748_s30 + $0x78] sm:$0xff] }
 0x201   : > { %v3526_v10 = vsel %vm2842_vm8, 1.0, %v3688_v17 }
 0x202   : > { %v2938_v55 = vpack.c.bf16 %v3526_v10, %v3526_v10  ;;  %v2739_v54 = vadd.f32 %v2665_v56, %v2528_v60  ;;  %v2667_v42 = vpop.f32.mrf.mxu0  ;;  %v1667_v56 = vsel %vm723_vm3, %v1664_v7, %v1666_v28 }
 0x204   : > { %2971 = vst.msk [vmem:[%s4392_s22 + $0xc] sm:$0xf] %vm2967_vm5, %v2938_v55  ;;  %v2775_v63 = vmul.f32 %v4371_v41, %v2739_v54  ;;  %v2352_v55 = vshrl.u32 %v4431_v2, 16  ;;  %v2356_v54 = vshll.u32 %v4458_v6, 16 }
 0x205   : > { %v2034_v14 = vpop.f32.mrf.mxu2 }
 0x206   : > { %v2811_v25 = vadd.f32 %v4378_v0, %v2775_v63  ;;  %v2107_v24 = vadd.f32 %v2034_v14, %v1821_v9  ;;  %v2456_v40 = vpop.f32.mrf.mxu3  ;;  %v1751_v35 = vpop.f32.mrf.mxu1  ;;  %v3675_v9 = vld [vmem:[%s3748_s30 + $0x70] sm:$0xff] }
 0x207   : > { %v1822_v26 = vadd.f32 %v1751_v35, %v4142_v57  ;;  %v1668_v49 = vrot.slane %v3675_v9, 1  ;;  %v3676_v9 = vld [vmem:[%s3748_s30 + $0x78] sm:$0xff] }
 0x208   : > { %vm2843_vm9 = vcmp.ge.f32.partialorder %v2811_v25, 1.0  ;;  %v2529_v20 = vadd.f32 %v2456_v40, %v2107_v24  ;;  %v2354_v24 = vor.u32 %v2352_v55, %v2350_v32  ;;  %v2358_v40 = vrot.slane %v2356_v54, 1 }
 0x209   : > { %v3527_v37 = vsel %vm2843_vm9, 1.0, %v3688_v17  ;;  %3343 = vmatmul.msk.bf16.gmra.mxu1 %vm451_vm2, %v1667_v56  ;;  %v2360_v54 = vshrl.u32 %v4458_v6, 16 }
 0x20a   : > { %v2939_v47 = vpack.c.bf16 %v3527_v37, %v3527_v37  ;;  %v2740_v18 = vadd.f32 %v2667_v42, %v2529_v20  ;;  %v2670_v22 = vpop.f32.mrf.mxu0  ;;  %3424 = vmatmul.msk.bf16.gmra.mxu2 %vm451_vm2, %v3615_v8  ;;  %v3616_v20 = vld [vmem:[%s3748_s30 + $0x70] sm:$0xff] }
 0x20b   : > { %3501 = vmatmul.msk.bf16.gmra.mxu3 %vm451_vm2, %v2351_v34  ;;  %v2587_v34 = vrot.slane %v4458_v6, 1 }
 0x20c   : > { %2972 = vst.msk [vmem:[%s4392_s22 + $0x10] sm:$0xf] %vm2967_vm5, %v2939_v47  ;;  %v2776_v7 = vmul.f32 %v4371_v41, %v2740_v18  ;;  %v1669_v47 = vsel %vm723_vm3, %v1666_v28, %v1668_v49 }
 0x20d   : > { %3518 = vmatmul.msk.bf16.gmra.mxu0 %vm451_vm2, %v2586_v5  ;;  %v2037_v46 = vpop.f32.mrf.mxu2 }
 0x20e   : > { %v2812_v60 = vadd.f32 %v4378_v0, %v2776_v7  ;;  %v2108_v30 = vadd.f32 %v2037_v46, %v1822_v26  ;;  %v2459_v53 = vpop.f32.mrf.mxu3  ;;  %v1753_v39 = vpop.f32.mrf.mxu1  ;;  %v2588_v26 = vsel %vm723_vm3, %v2585_v19, %v2587_v34 }
 0x20f   : > { %v1823_v25 = vadd.f32 %v1753_v39, %v4151_v45 }
 0x210   : > { %vm2844_vm10 = vcmp.ge.f32.partialorder %v2812_v60, 1.0  ;;  %v2530_v10 = vadd.f32 %v2459_v53, %v2108_v30  ;;  %v4485_v60 = vld [vmem:[%s3748_s30 + $0x80] sm:$0xff] }
 0x211   : > { %v3528_v57 = vsel %vm2844_vm10, 1.0, %v3688_v17 }
 0x212   : > { %v2940_v42 = vpack.c.bf16 %v3528_v57, %v3528_v57  ;;  %v2741_v44 = vadd.f32 %v2670_v22, %v2530_v10  ;;  %v2672_v63 = vpop.f32.mrf.mxu0  ;;  %v2359_v22 = vsel %vm318_vm1, %v2354_v24, %v2358_v40  ;;  %v2364_v57 = vshll.u32 %v4485_v60, 16 }
 0x214   : > { %2973 = vst.msk [vmem:[%s4392_s22 + $0x14] sm:$0xf] %vm2967_vm5, %v2940_v42  ;;  %v2777_v14 = vmul.f32 %v4371_v41, %v2741_v44 }
 0x215   : > { %v2039_v8 = vpop.f32.mrf.mxu2 }
 0x216   : > { %v2813_v2 = vadd.f32 %v4378_v0, %v2777_v14  ;;  %v2109_v35 = vadd.f32 %v2039_v8, %v1823_v25  ;;  %v2461_v56 = vpop.f32.mrf.mxu3  ;;  %v1756_v37 = vpop.f32.mrf.mxu1  ;;  %v1670_v14 = vrot.slane %v3676_v9, 1  ;;  %v2362_v8 = vor.u32 %v2360_v54, %v2358_v40 }
 0x217   : > { %v1824_v46 = vadd.f32 %v1756_v37, %v4157_v50  ;;  %v3617_v37 = vld [vmem:[%s3748_s30 + $0x78] sm:$0xff] }
 0x218   : > { %vm2845_vm11 = vcmp.ge.f32.partialorder %v2813_v2, 1.0  ;;  %v2531_v18 = vadd.f32 %v2461_v56, %v2109_v35  ;;  %v2366_v2 = vrot.slane %v2364_v57, 1 }
 0x219   : > { %v3529_v45 = vsel %vm2845_vm11, 1.0, %v3688_v17  ;;  %3344 = vmatmul.msk.bf16.gmra.mxu1 %vm451_vm2, %v1669_v47  ;;  %v2589_v47 = vrot.slane %v4485_v60, 1 }
 0x21a   : > { %v2941_v32 = vpack.c.bf16 %v3529_v45, %v3529_v45  ;;  %v2742_v5 = vadd.f32 %v2672_v63, %v2531_v18  ;;  %v2675_v7 = vpop.f32.mrf.mxu0  ;;  %3425 = vmatmul.msk.bf16.gmra.mxu2 %vm451_vm2, %v3616_v20 }
 0x21b   : > { %3502 = vmatmul.msk.bf16.gmra.mxu3 %vm451_vm2, %v2359_v22  ;;  %v1671_v22 = vsel %vm723_vm3, %v1668_v49, %v1670_v14 }
 0x21c   : > { %2974 = vst.msk [vmem:[%s4392_s22 + $0x18] sm:$0xf] %vm2967_vm5, %v2941_v32  ;;  %v2778_v28 = vmul.f32 %v4371_v41, %v2742_v5  ;;  %v2367_v32 = vsel %vm318_vm1, %v2362_v8, %v2366_v2 }
 0x21d   : > { %3519 = vmatmul.msk.bf16.gmra.mxu0 %vm451_vm2, %v2588_v26  ;;  %v2042_v30 = vpop.f32.mrf.mxu2  ;;  %v2590_v26 = vsel %vm723_vm3, %v2587_v34, %v2589_v47 }
 0x21e   : > { %v2814_v53 = vadd.f32 %v4378_v0, %v2778_v28  ;;  %v2110_v39 = vadd.f32 %v2042_v30, %v1824_v46  ;;  %v2464_v10 = vpop.f32.mrf.mxu3  ;;  %v1758_v19 = vpop.f32.mrf.mxu1  ;;  %v4512_v46 = vld [vmem:[%s3748_s30 + $0x88] sm:$0xff] }
 0x21f   : > { %v1825_v24 = vadd.f32 %v1758_v19, %v4167_v23  ;;  %v2372_v54 = vshll.u32 %v4512_v46, 16 }
 0x220   : > { %vm2846_vm12 = vcmp.ge.f32.partialorder %v2814_v53, 1.0  ;;  %v2532_v55 = vadd.f32 %v2464_v10, %v2110_v39 }
 0x221   : > { %v3530_v50 = vsel %vm2846_vm12, 1.0, %v3688_v17  ;;  %v2374_v8 = vrot.slane %v2372_v54, 1 }
 0x222   : > { %v2942_v42 = vpack.c.bf16 %v3530_v50, %v3530_v50  ;;  %v2743_v44 = vadd.f32 %v2675_v7, %v2532_v55  ;;  %v2677_v63 = vpop.f32.mrf.mxu0  ;;  %v2368_v55 = vshrl.u32 %v4485_v60, 16  ;;  %v2166_v60 = vld [vmem:[%s3748_s30 + $0x90] sm:$0x1] }
 0x224   : > { %2975 = vst.msk [vmem:[%s4392_s22 + $0x1c] sm:$0xf] %vm2967_vm5, %v2942_v42  ;;  %v2779_v25 = vmul.f32 %v4371_v41, %v2743_v44  ;;  %v3677_v44 = vld [vmem:[%s3748_s30 + $0x80] sm:$0xff] }
 0x225   : > { %v2044_v35 = vpop.f32.mrf.mxu2 }
 0x226   : > { %v2815_v6 = vadd.f32 %v4378_v0, %v2779_v25  ;;  %v2111_v56 = vadd.f32 %v2044_v35, %v1825_v24  ;;  %v2466_v20 = vpop.f32.mrf.mxu3  ;;  %v1761_v18 = vpop.f32.mrf.mxu1  ;;  %v2370_v24 = vor.u32 %v2368_v55, %v2366_v2 }
 0x227   : > { %v1826_v28 = vadd.f32 %v1761_v18, %v4173_v61  ;;  %v2591_v18 = vrot.slane %v4512_v46, 1 }
 0x228   : > { %vm2847_vm13 = vcmp.ge.f32.partialorder %v2815_v6, 1.0  ;;  %v2533_v45 = vadd.f32 %v2466_v20, %v2111_v56 }
 0x229   : > { %v3531_v23 = vsel %vm2847_vm13, 1.0, %v3688_v17  ;;  %3345 = vmatmul.msk.bf16.gmra.mxu1 %vm451_vm2, %v1671_v22 }
 0x22a   : > { %v2943_v40 = vpack.c.bf16 %v3531_v23, %v3531_v23  ;;  %v2744_v5 = vadd.f32 %v2677_v63, %v2533_v45  ;;  %v2680_v7 = vpop.f32.mrf.mxu0  ;;  %3426 = vmatmul.msk.bf16.gmra.mxu2 %vm451_vm2, %v3617_v37  ;;  %v1672_v63 = vrot.slane %v3677_v44, 1  ;;  %v3618_v37 = vld [vmem:[%s3748_s30 + $0x80] sm:$0xff]  ;;  %v2375_v23 = vsel %vm318_vm1, %v2370_v24, %v2374_v8 }
 0x22b   : > { %3503 = vmatmul.msk.bf16.gmra.mxu3 %vm451_vm2, %v2367_v32 }
 0x22c   : > { %2976 = vst.msk [vmem:[%s4392_s22 + $0x20] sm:$0xf] %vm2967_vm5, %v2943_v40  ;;  %v2780_v49 = vmul.f32 %v4371_v41, %v2744_v5  ;;  %v1673_v45 = vsel %vm723_vm3, %v1670_v14, %v1672_v63 }
 0x22d   : > { %3520 = vmatmul.msk.bf16.gmra.mxu0 %vm451_vm2, %v2590_v26  ;;  %v2047_v30 = vpop.f32.mrf.mxu2  ;;  %v2592_v26 = vsel %vm723_vm3, %v2589_v47, %v2591_v18 }
 0x22e   : > { %v2816_v53 = vadd.f32 %v4378_v0, %v2780_v49  ;;  %v2112_v39 = vadd.f32 %v2047_v30, %v1826_v28  ;;  %v2469_v10 = vpop.f32.mrf.mxu3  ;;  %v1763_v34 = vpop.f32.mrf.mxu1 }
 0x22f   : > { %v1827_v25 = vadd.f32 %v1763_v34, %v4184_v12  ;;  %v2234_v12 = vunpack.c.l.b16 %v2166_v60 }
 0x230   : > { %vm2848_vm14 = vcmp.ge.f32.partialorder %v2816_v53, 1.0  ;;  %v2534_v19 = vadd.f32 %v2469_v10, %v2112_v39 }
 0x231   : > { %v3532_v61 = vsel %vm2848_vm14, 1.0, %v3688_v17  ;;  %v2251_v28 = vpack.c.b16 %v2234_v12, %v2234_v12 }
 0x232   : > { %v2944_v57 = vpack.c.bf16 %v3532_v61, %v3532_v61  ;;  %v2745_v50 = vadd.f32 %v2680_v7, %v2534_v19  ;;  %v2682_v42 = vpop.f32.mrf.mxu0  ;;  %v2376_v19 = vshrl.u32 %v4512_v46, 16 }
 0x233   : > { %v2380_v55 = vshll.u32 %v2251_v28, 16 }
 0x234   : > { %2977 = vst.msk [vmem:[%s4392_s22 + $0x24] sm:$0xf] %vm2967_vm5, %v2944_v57  ;;  %v2781_v9 = vmul.f32 %v4371_v41, %v2745_v50  ;;  %v1674_v50 = vrot.slane %v4189_v16, 1 }
 0x235   : > { %v2049_v35 = vpop.f32.mrf.mxu2 }
 0x236   : > { %v2817_v6 = vadd.f32 %v4378_v0, %v2781_v9  ;;  %v2113_v56 = vadd.f32 %v2049_v35, %v1827_v25  ;;  %v2471_v20 = vpop.f32.mrf.mxu3  ;;  %v1766_v22 = vpop.f32.mrf.mxu1  ;;  %v2378_v9 = vor.u32 %v2376_v19, %v2374_v8  ;;  %v2382_v25 = vrot.slane %v2380_v55, 1 }
 0x237   : > { %v1828_v49 = vadd.f32 %v1766_v22, %v4192_v59 }
 0x238   : > { %vm2849_vm15 = vcmp.ge.f32.partialorder %v2817_v6, 1.0  ;;  %v2535_v32 = vadd.f32 %v2471_v20, %v2113_v56  ;;  %v3619_v6 = vld [vmem:[%s3748_s30 + $0x88] sm:$0xff]  ;;  %v2593_v56 = vrot.slane %v2251_v28, 1  ;;  %v2383_v22 = vsel %vm318_vm1, %v2378_v9, %v2382_v25 }
 0x239   : > { %v3533_v2 = vsel %vm2849_vm15, 1.0, %v3688_v17  ;;  %3346 = vmatmul.msk.bf16.gmra.mxu1 %vm451_vm2, %v1673_v45 }
 0x23a   : > { %v2945_v40 = vpack.c.bf16 %v3533_v2, %v3533_v2  ;;  %v2746_v5 = vadd.f32 %v2682_v42, %v2535_v32  ;;  %v2685_v7 = vpop.f32.mrf.mxu0  ;;  %3427 = vmatmul.msk.bf16.gmra.mxu2 %vm451_vm2, %v3618_v37  ;;  %v1675_v37 = vsel %vm723_vm3, %v1672_v63, %v1674_v50 }
 0x23b   : > { %3504 = vmatmul.msk.bf16.gmra.mxu3 %vm451_vm2, %v2375_v23  ;;  %v2594_v23 = vsel %vm723_vm3, %v2591_v18, %v2593_v56 }
 0x23c   : > { %2978 = vst.msk [vmem:[%s4392_s22 + $0x28] sm:$0xf] %vm2967_vm5, %v2945_v40  ;;  %v2782_v14 = vmul.f32 %v4371_v41, %v2746_v5 }
 0x23d   : > { %3521 = vmatmul.msk.bf16.gmra.mxu0 %vm451_vm2, %v2592_v26  ;;  %v2052_v30 = vpop.f32.mrf.mxu2 }
 0x23e   : > { %v2818_v53 = vadd.f32 %v4378_v0, %v2782_v14  ;;  %v2114_v39 = vadd.f32 %v2052_v30, %v1828_v49  ;;  %v2474_v10 = vpop.f32.mrf.mxu3  ;;  %v1768_v34 = vpop.f32.mrf.mxu1 }
 0x23f   : > { %v1829_v44 = vadd.f32 %v1768_v34, %v4203_v62 }
 0x240   : > { %vm2850_vm0 = vcmp.ge.f32.partialorder %v2818_v53, 1.0  ;;  %v2536_v47 = vadd.f32 %v2474_v10, %v2114_v39 }
 0x241   : > { %v3534_v54 = vsel %vm2850_vm0, 1.0, %v3688_v17 }
 0x242   : > { %v2946_v61 = vpack.c.bf16 %v3534_v54, %v3534_v54  ;;  %v2747_v59 = vadd.f32 %v2685_v7, %v2536_v47  ;;  %v2687_v57 = vpop.f32.mrf.mxu0 }
 0x244   : > { %2979 = vst.msk [vmem:[%s4392_s22 + $0x2c] sm:$0xf] %vm2967_vm5, %v2946_v61  ;;  %v2783_v42 = vmul.f32 %v4371_v41, %v2747_v59 }
 0x245   : > { %v2054_v24 = vpop.f32.mrf.mxu2 }
 0x246   : > { %v2819_v46 = vadd.f32 %v4378_v0, %v2783_v42  ;;  %v2115_v35 = vadd.f32 %v2054_v24, %v1829_v44  ;;  %v2476_v60 = vpop.f32.mrf.mxu3  ;;  %v1771_v20 = vpop.f32.mrf.mxu1 }
 0x247   : > { %v1830_v12 = vadd.f32 %v1771_v20, %v4216_v1 }
 0x248   : > { %vm2851_vm4 = vcmp.ge.f32.partialorder %v2819_v46, 1.0  ;;  %v2537_v16 = vadd.f32 %v2476_v60, %v2115_v35 }
 0x249   : > { %v3535_v45 = vsel %vm2851_vm4, 1.0, %v3688_v17  ;;  %3347 = vmatmul.msk.bf16.gmra.mxu1 %vm451_vm2, %v1675_v37 }
 0x24a   : > { %v2947_v62 = vpack.c.bf16 %v3535_v45, %v3535_v45  ;;  %v2748_v8 = vadd.f32 %v2687_v57, %v2537_v16  ;;  %v2690_v32 = vpop.f32.mrf.mxu0  ;;  %3428 = vmatmul.msk.bf16.gmra.mxu2 %vm451_vm2, %v3619_v6 }
 0x24b   : > { %3505 = vmatmul.msk.bf16.gmra.mxu3 %vm451_vm2, %v2383_v22 }
 0x24c   : > { %2980 = vst.msk [vmem:[%s4392_s22 + $0x30] sm:$0xf] %vm2967_vm5, %v2947_v62  ;;  %v2784_v63 = vmul.f32 %v4371_v41, %v2748_v8 }
 0x24d   : > { %3522 = vmatmul.msk.bf16.gmra.mxu0 %vm451_vm2, %v2594_v23  ;;  %v2057_v2 = vpop.f32.mrf.mxu2 }
 0x24e   : > { %v2820_v40 = vadd.f32 %v4378_v0, %v2784_v63  ;;  %v2116_v5 = vadd.f32 %v2057_v2, %v1830_v12  ;;  %v2479_v7 = vpop.f32.mrf.mxu3  ;;  %v1773_v26 = vpop.f32.mrf.mxu1 }
 0x24f   : > { %v1831_v53 = vadd.f32 %v1773_v26, %v4227_v38 }
 0x250   : > { %vm2852_vm1 = vcmp.ge.f32.partialorder %v2820_v40, 1.0  ;;  %v2538_v14 = vadd.f32 %v2479_v7, %v2116_v5 }
 0x251   : > { %v3536_v18 = vsel %vm2852_vm1, 1.0, %v3688_v17 }
 0x252   : > { %v2948_v49 = vpack.c.bf16 %v3536_v18, %v3536_v18  ;;  %v2749_v28 = vadd.f32 %v2690_v32, %v2538_v14  ;;  %v2692_v30 = vpop.f32.mrf.mxu0 }
 0x254   : > { %2981 = vst.msk [vmem:[%s4392_s22 + $0x34] sm:$0xf] %vm2967_vm5, %v2948_v49  ;;  %v2785_v1 = vmul.f32 %v4371_v41, %v2749_v28 }
 0x255   : > { %v2059_v39 = vpop.f32.mrf.mxu2 }
 0x256   : > { %v2821_v10 = vadd.f32 %v4378_v0, %v2785_v1  ;;  %v2117_v34 = vadd.f32 %v2059_v39, %v1831_v53  ;;  %v2481_v47 = vpop.f32.mrf.mxu3  ;;  %v1776_v19 = vpop.f32.mrf.mxu1 }
 0x257   : > { %v1832_v38 = vadd.f32 %v1776_v19, %v4234_v36 }
 0x258   : > { %vm2853_vm2 = vcmp.ge.f32.partialorder %v2821_v10, 1.0  ;;  %v2539_v55 = vadd.f32 %v2481_v47, %v2117_v34 }
 0x259   : > { %v3537_v54 = vsel %vm2853_vm2, 1.0, %v3688_v17 }
 0x25a   : > { %v2949_v61 = vpack.c.bf16 %v3537_v54, %v3537_v54  ;;  %v2750_v59 = vadd.f32 %v2692_v30, %v2539_v55  ;;  %v2695_v57 = vpop.f32.mrf.mxu0 }
 0x25c   : > { %2982 = vst.msk [vmem:[%s4392_s22 + $0x38] sm:$0xf] %vm2967_vm5, %v2949_v61  ;;  %v2786_v50 = vmul.f32 %v4371_v41, %v2750_v59 }
 0x25d   : > { %v2062_v42 = vpop.f32.mrf.mxu2 }
 0x25e   : > { %v2822_v44 = vadd.f32 %v4378_v0, %v2786_v50  ;;  %v2118_v9 = vadd.f32 %v2062_v42, %v1832_v38  ;;  %v2484_v25 = vpop.f32.mrf.mxu3  ;;  %v1778_v24 = vpop.f32.mrf.mxu1 }
 0x25f   : > { %v1833_v36 = vadd.f32 %v1778_v24, %v4244_v27 }
 0x260   : > { %vm2854_vm3 = vcmp.ge.f32.partialorder %v2822_v44, 1.0  ;;  %v2540_v46 = vadd.f32 %v2484_v25, %v2118_v9 }
 0x261   : > { %v3538_v35 = vsel %vm2854_vm3, 1.0, %v3688_v17 }
 0x262   : > { %v2950_v60 = vpack.c.bf16 %v3538_v35, %v3538_v35  ;;  %v2751_v6 = vadd.f32 %v2695_v57, %v2540_v46  ;;  %v2697_v56 = vpop.f32.mrf.mxu0 }
 0x264   : > { %2983 = vst.msk [vmem:[%s4392_s22 + $0x3c] sm:$0xf] %vm2967_vm5, %v2950_v60  ;;  %v2787_v20 = vmul.f32 %v4371_v41, %v2751_v6 }
 0x265   : > { %v2064_v37 = vpop.f32.mrf.mxu2 }
 0x266   : > { %v2823_v16 = vadd.f32 %v4378_v0, %v2787_v20  ;;  %v2119_v22 = vadd.f32 %v2064_v37, %v1833_v36  ;;  %v2486_v45 = vpop.f32.mrf.mxu3  ;;  %v1781_v62 = vpop.f32.mrf.mxu1 }
 0x267   : > { %v1834_v27 = vadd.f32 %v1781_v62, %v4250_v43 }
 0x268   : > { %vm2855_vm6 = vcmp.ge.f32.partialorder %v2823_v16, 1.0  ;;  %v2541_v8 = vadd.f32 %v2486_v45, %v2119_v22 }
 0x269   : > { %v3539_v32 = vsel %vm2855_vm6, 1.0, %v3688_v17 }
 0x26a   : > { %v2951_v23 = vpack.c.bf16 %v3539_v32, %v3539_v32  ;;  %v2752_v63 = vadd.f32 %v2697_v56, %v2541_v8  ;;  %v2700_v12 = vpop.f32.mrf.mxu0 }
 0x26c   : > { %2984 = vst.msk [vmem:[%s4392_s22 + $0x40] sm:$0xf] %vm2967_vm5, %v2951_v23  ;;  %v2788_v2 = vmul.f32 %v4371_v41, %v2752_v63 }
 0x26d   : > { %v2067_v40 = vpop.f32.mrf.mxu2 }
 0x26e   : > { %v2824_v5 = vadd.f32 %v4378_v0, %v2788_v2  ;;  %v2120_v7 = vadd.f32 %v2067_v40, %v1834_v27  ;;  %v2489_v26 = vpop.f32.mrf.mxu3  ;;  %v1783_v14 = vpop.f32.mrf.mxu1 }
 0x26f   : > { %v1835_v43 = vadd.f32 %v1783_v14, %v4260_v51 }
 0x270   : > { %vm2856_vm7 = vcmp.ge.f32.partialorder %v2824_v5, 1.0  ;;  %v2542_v18 = vadd.f32 %v2489_v26, %v2120_v7 }
 0x271   : > { %v3540_v49 = vsel %vm2856_vm7, 1.0, %v3688_v17 }
 0x272   : > { %v2952_v28 = vpack.c.bf16 %v3540_v49, %v3540_v49  ;;  %v2753_v30 = vadd.f32 %v2700_v12, %v2542_v18  ;;  %v2702_v1 = vpop.f32.mrf.mxu0 }
 0x274   : > { %2985 = vst.msk [vmem:[%s4392_s22 + $0x44] sm:$0xf] %vm2967_vm5, %v2952_v28  ;;  %v2789_v53 = vmul.f32 %v4371_v41, %v2753_v30 }
 0x275   : > { %v2069_v39 = vpop.f32.mrf.mxu2 }
 0x276   : > { %v2825_v10 = vadd.f32 %v4378_v0, %v2789_v53  ;;  %v2121_v34 = vadd.f32 %v2069_v39, %v1835_v43  ;;  %v2491_v47 = vpop.f32.mrf.mxu3  ;;  %v1786_v19 = vpop.f32.mrf.mxu1 }
 0x277   : > { %v1836_v51 = vadd.f32 %v1786_v19, %v4266_v33 }
 0x278   : > { %vm2857_vm8 = vcmp.ge.f32.partialorder %v2825_v10, 1.0  ;;  %v2543_v55 = vadd.f32 %v2491_v47, %v2121_v34 }
 0x279   : > { %v3541_v54 = vsel %vm2857_vm8, 1.0, %v3688_v17 }
 0x27a   : > { %v2953_v61 = vpack.c.bf16 %v3541_v54, %v3541_v54  ;;  %v2754_v59 = vadd.f32 %v2702_v1, %v2543_v55  ;;  %v2705_v57 = vpop.f32.mrf.mxu0 }
 0x27c   : > { %2986 = vst.msk [vmem:[%s4392_s22 + $0x48] sm:$0xf] %vm2967_vm5, %v2953_v61  ;;  %v2790_v50 = vmul.f32 %v4371_v41, %v2754_v59 }
 0x27d   : > { %v2072_v38 = vpop.f32.mrf.mxu2 }
 0x27e   : > { %v2826_v42 = vadd.f32 %v4378_v0, %v2790_v50  ;;  %v2122_v44 = vadd.f32 %v2072_v38, %v1836_v51  ;;  %v2494_v9 = vpop.f32.mrf.mxu3  ;;  %v1788_v25 = vpop.f32.mrf.mxu1 }
 0x27f   : > { %v1837_v33 = vadd.f32 %v1788_v25, %v4276_v3 }
 0x280   : > { %vm2858_vm9 = vcmp.ge.f32.partialorder %v2826_v42, 1.0  ;;  %v2544_v24 = vadd.f32 %v2494_v9, %v2122_v44 }
 0x281   : > { %v3542_v46 = vsel %vm2858_vm9, 1.0, %v3688_v17 }
 0x282   : > { %v2954_v35 = vpack.c.bf16 %v3542_v46, %v3542_v46  ;;  %v2755_v60 = vadd.f32 %v2705_v57, %v2544_v24  ;;  %v2707_v6 = vpop.f32.mrf.mxu0 }
 0x284   : > { %2987 = vst.msk [vmem:[%s4392_s22 + $0x4c] sm:$0xf] %vm2967_vm5, %v2954_v35  ;;  %v2791_v56 = vmul.f32 %v4371_v41, %v2755_v60 }
 0x285   : > { %v2074_v20 = vpop.f32.mrf.mxu2 }
 0x286   : > { %v2827_v36 = vadd.f32 %v4378_v0, %v2791_v56  ;;  %v2123_v37 = vadd.f32 %v2074_v20, %v1837_v33  ;;  %v2496_v16 = vpop.f32.mrf.mxu3  ;;  %v1791_v22 = vpop.f32.mrf.mxu1 }
 0x287   : > { %v1838_v3 = vadd.f32 %v1791_v22, %v4282_v48 }
 0x288   : > { %vm2859_vm10 = vcmp.ge.f32.partialorder %v2827_v36, 1.0  ;;  %v2545_v45 = vadd.f32 %v2496_v16, %v2123_v37 }
 0x289   : > { %v3543_v62 = vsel %vm2859_vm10, 1.0, %v3688_v17 }
 0x28a   : > { %v2955_v8 = vpack.c.bf16 %v3543_v62, %v3543_v62  ;;  %v2756_v32 = vadd.f32 %v2707_v6, %v2545_v45  ;;  %v2710_v23 = vpop.f32.mrf.mxu0 }
 0x28c   : > { %2988 = vst.msk [vmem:[%s4392_s22 + $0x50] sm:$0xf] %vm2967_vm5, %v2955_v8  ;;  %v2792_v63 = vmul.f32 %v4371_v41, %v2756_v32 }
 0x28d   : > { %v2077_v12 = vpop.f32.mrf.mxu2 }
 0x28e   : > { %v2828_v2 = vadd.f32 %v4378_v0, %v2792_v63  ;;  %v2124_v27 = vadd.f32 %v2077_v12, %v1838_v3  ;;  %v2499_v40 = vpop.f32.mrf.mxu3  ;;  %v1793_v5 = vpop.f32.mrf.mxu1 }
 0x28f   : > { %v1839_v48 = vadd.f32 %v1793_v5, %v4292_v52 }
 0x290   : > { %vm2860_vm11 = vcmp.ge.f32.partialorder %v2828_v2, 1.0  ;;  %v2546_v7 = vadd.f32 %v2499_v40, %v2124_v27 }
 0x291   : > { %v3544_v26 = vsel %vm2860_vm11, 1.0, %v3688_v17 }
 0x292   : > { %v2956_v14 = vpack.c.bf16 %v3544_v26, %v3544_v26  ;;  %v2757_v18 = vadd.f32 %v2710_v23, %v2546_v7  ;;  %v2712_v49 = vpop.f32.mrf.mxu0 }
 0x294   : > { %2989 = vst.msk [vmem:[%s4392_s22 + $0x54] sm:$0xf] %vm2967_vm5, %v2956_v14  ;;  %v2793_v28 = vmul.f32 %v4371_v41, %v2757_v18 }
 0x295   : > { %v2079_v30 = vpop.f32.mrf.mxu2 }
 0x296   : > { %v2829_v1 = vadd.f32 %v4378_v0, %v2793_v28  ;;  %v2125_v53 = vadd.f32 %v2079_v30, %v1839_v48  ;;  %v2501_v43 = vpop.f32.mrf.mxu3  ;;  %v1796_v39 = vpop.f32.mrf.mxu1 }
 0x297   : > { %v1840_v52 = vadd.f32 %v1796_v39, %v4298_v4 }
 0x298   : > { %vm2861_vm12 = vcmp.ge.f32.partialorder %v2829_v1, 1.0  ;;  %v2547_v10 = vadd.f32 %v2501_v43, %v2125_v53 }
 0x299   : > { %v3545_v34 = vsel %vm2861_vm12, 1.0, %v3688_v17 }
 0x29a   : > { %v2957_v47 = vpack.c.bf16 %v3545_v34, %v3545_v34  ;;  %v2758_v19 = vadd.f32 %v2712_v49, %v2547_v10  ;;  %v2715_v55 = vpop.f32.mrf.mxu0 }
 0x29c   : > { %2990 = vst.msk [vmem:[%s4392_s22 + $0x58] sm:$0xf] %vm2967_vm5, %v2957_v47  ;;  %v2794_v54 = vmul.f32 %v4371_v41, %v2758_v19 }
 0x29d   : > { %v2082_v61 = vpop.f32.mrf.mxu2 }
 0x29e   : > { %v2830_v59 = vadd.f32 %v4378_v0, %v2794_v54  ;;  %v2126_v57 = vadd.f32 %v2082_v61, %v1840_v52  ;;  %v2504_v50 = vpop.f32.mrf.mxu3  ;;  %v1798_v51 = vpop.f32.mrf.mxu1 }
 0x29f   : > { %v1841_v4 = vadd.f32 %v1798_v51, %v4308_v29 }
 0x2a0   : > { %vm2862_vm13 = vcmp.ge.f32.partialorder %v2830_v59, 1.0  ;;  %v2548_v38 = vadd.f32 %v2504_v50, %v2126_v57 }
 0x2a1   : > { %v3546_v42 = vsel %vm2862_vm13, 1.0, %v3688_v17 }
 0x2a2   : > { %v2958_v44 = vpack.c.bf16 %v3546_v42, %v3546_v42  ;;  %v2759_v9 = vadd.f32 %v2715_v55, %v2548_v38  ;;  %v2717_v25 = vpop.f32.mrf.mxu0 }
 0x2a4   : > { %2991 = vst.msk [vmem:[%s4392_s22 + $0x5c] sm:$0xf] %vm2967_vm5, %v2958_v44  ;;  %v2795_v24 = vmul.f32 %v4371_v41, %v2759_v9 }
 0x2a5   : > { %v2084_v46 = vpop.f32.mrf.mxu2 }
 0x2a6   : > { %v2831_v35 = vadd.f32 %v4378_v0, %v2795_v24  ;;  %v2127_v60 = vadd.f32 %v2084_v46, %v1841_v4  ;;  %v2506_v6 = vpop.f32.mrf.mxu3  ;;  %v1801_v56 = vpop.f32.mrf.mxu1  ;;  %v3679_v46 = vld [vmem:[%s4679_s3] ss:$0 sm:$0xff] }
 0x2a7   : > { %v1842_v29 = vadd.f32 %v1801_v56, %v4314_v15 }
 0x2a8   : > { %vm2863_vm14 = vcmp.ge.f32.partialorder %v2831_v35, 1.0  ;;  %v2549_v33 = vadd.f32 %v2506_v6, %v2127_v60 }
 0x2a9   : > { %v3547_v20 = vsel %vm2863_vm14, 1.0, %v3688_v17 }
 0x2aa   : > { %v2959_v36 = vpack.c.bf16 %v3547_v20, %v3547_v20  ;;  %v2760_v37 = vadd.f32 %v2717_v25, %v2549_v33  ;;  %v2720_v16 = vpop.f32.mrf.mxu0 }
 0x2ac   : > { %2992 = vst.msk [vmem:[%s4392_s22 + $0x60] sm:$0xf] %vm2967_vm5, %v2959_v36  ;;  %v2796_v22 = vmul.f32 %v4371_v41, %v2760_v37 }
 0x2ad   : > { %v2087_v45 = vpop.f32.mrf.mxu2 }
 0x2ae   : > { %v2832_v62 = vadd.f32 %v4378_v0, %v2796_v22  ;;  %v2128_v8 = vadd.f32 %v2087_v45, %v1842_v29  ;;  %v2509_v32 = vpop.f32.mrf.mxu3  ;;  %v1803_v23 = vpop.f32.mrf.mxu1 }
 0x2af   : > { %v1843_v15 = vadd.f32 %v1803_v23, %v4324_v21 }
 0x2b0   : > { %vm2864_vm15 = vcmp.ge.f32.partialorder %v2832_v62, 1.0  ;;  %v2550_v63 = vadd.f32 %v2509_v32, %v2128_v8 }
 0x2b1   : > { %v3548_v3 = vsel %vm2864_vm15, 1.0, %v3688_v17 }
 0x2b2   : > { %v2960_v12 = vpack.c.bf16 %v3548_v3, %v3548_v3  ;;  %v2761_v2 = vadd.f32 %v2720_v16, %v2550_v63  ;;  %v2722_v27 = vpop.f32.mrf.mxu0 }
 0x2b4   : > { %2993 = vst.msk [vmem:[%s4392_s22 + $0x64] sm:$0xf] %vm2967_vm5, %v2960_v12  ;;  %v2797_v40 = vmul.f32 %v4371_v41, %v2761_v2 }
 0x2b5   : > { %v2089_v5 = vpop.f32.mrf.mxu2 }
 0x2b6   : > { %v2833_v7 = vadd.f32 %v4378_v0, %v2797_v40  ;;  %v2129_v26 = vadd.f32 %v2089_v5, %v1843_v15  ;;  %v2511_v14 = vpop.f32.mrf.mxu3  ;;  %v1806_v18 = vpop.f32.mrf.mxu1 }
 0x2b7   : > { %v1844_v21 = vadd.f32 %v1806_v18, %v4330_v13 }
 0x2b8   : > { %vm2865_vm0 = vcmp.ge.f32.partialorder %v2833_v7, 1.0  ;;  %v2551_v49 = vadd.f32 %v2511_v14, %v2129_v26 }
 0x2b9   : > { %v3549_v28 = vsel %vm2865_vm0, 1.0, %v3688_v17 }
 0x2ba   : > { %v2961_v48 = vpack.c.bf16 %v3549_v28, %v3549_v28  ;;  %v2762_v30 = vadd.f32 %v2722_v27, %v2551_v49  ;;  %v2725_v1 = vpop.f32.mrf.mxu0 }
 0x2bc   : > { %2994 = vst.msk [vmem:[%s4392_s22 + $0x68] sm:$0xf] %vm2967_vm5, %v2961_v48  ;;  %v2798_v53 = vmul.f32 %v4371_v41, %v2762_v30 }
 0x2bd   : > { %v2092_v43 = vpop.f32.mrf.mxu2 }
 0x2be   : > { %v2834_v39 = vadd.f32 %v4378_v0, %v2798_v53  ;;  %v2130_v10 = vadd.f32 %v2092_v43, %v1844_v21  ;;  %v2514_v34 = vpop.f32.mrf.mxu3  ;;  %v1808_v47 = vpop.f32.mrf.mxu1 }
 0x2bf   : > { %v1845_v59 = vadd.f32 %v1808_v47, %v4340_v11  ;;  %v3678_v11 = vld [vmem:[%s4678_s2] ss:$0 sm:$0xff] }
 0x2c0   : > { %vm2866_vm4 = vcmp.ge.f32.partialorder %v2834_v39, 1.0  ;;  %v2552_v19 = vadd.f32 %v2514_v34, %v2130_v10 }
 0x2c1   : > { %v3550_v55 = vsel %vm2866_vm4, 1.0, %v3688_v17 }
 0x2c2   : > { %v2962_v54 = vpack.c.bf16 %v3550_v55, %v3550_v55  ;;  %v2763_v52 = vadd.f32 %v2725_v1, %v2552_v19  ;;  %v2727_v13 = vpop.f32.mrf.mxu0 }
 0x2c4   : > { %2995 = vst.msk [vmem:[%s4392_s22 + $0x6c] sm:$0xf] %vm2967_vm5, %v2962_v54  ;;  %v2799_v61 = vmul.f32 %v4371_v41, %v2763_v52 }
 0x2c5   : > { %v2094_v57 = vpop.f32.mrf.mxu2 }
 0x2c6   : > { %v2835_v50 = vadd.f32 %v4378_v0, %v2799_v61  ;;  %v2131_v51 = vadd.f32 %v2094_v57, %v1845_v59  ;;  %v2516_v38 = vpop.f32.mrf.mxu3  ;;  %v1811_v42 = vpop.f32.mrf.mxu1 }
 0x2c7   : > { %v1846_v4 = vadd.f32 %v1811_v42, %v4349_v31 }
 0x2c8   : > { %vm2867_vm1 = vcmp.ge.f32.partialorder %v2835_v50, 1.0  ;;  %v2553_v44 = vadd.f32 %v2516_v38, %v2131_v51 }
 0x2c9   : > { %v3551_v9 = vsel %vm2867_vm1, 1.0, %v3688_v17 }
 0x2ca   : > { %v2963_v25 = vpack.c.bf16 %v3551_v9, %v3551_v9  ;;  %v2764_v24 = vadd.f32 %v2727_v13, %v2553_v44  ;;  %v2730_v56 = vpop.f32.mrf.mxu0 }
 0x2cc   : > { %2996 = vst.msk [vmem:[%s4392_s22 + $0x70] sm:$0xf] %vm2967_vm5, %v2963_v25  ;;  %v2800_v41 = vmul.f32 %v3678_v11, %v2764_v24 }
 0x2cd   : > { %v2097_v0 = vpop.f32.mrf.mxu2 }
 0x2ce   : > { %v2836_v35 = vadd.f32 %v3679_v46, %v2800_v41  ;;  %v2132_v60 = vadd.f32 %v2097_v0, %v1846_v4  ;;  %v2519_v6 = vpop.f32.mrf.mxu3  ;;  %v1813_v36 = vpop.f32.mrf.mxu1 }
 0x2cf   : > { %v1847_v22 = vadd.f32 %v1813_v36, %v4360_v58 }
 0x2d0   : > { %vm2868_vm2 = vcmp.ge.f32.partialorder %v2836_v35, 1.0  ;;  %v2554_v33 = vadd.f32 %v2519_v6, %v2132_v60 }
 0x2d1   : > { %v3552_v20 = vsel %vm2868_vm2, 1.0, %v3688_v17 }
 0x2d2   : > { %v2964_v37 = vpack.c.bf16 %v3552_v20, %v3552_v20  ;;  %v2765_v16 = vadd.f32 %v2730_v56, %v2554_v33  ;;  %v2732_v63 = vpop.f32.mrf.mxu0 }
 0x2d4   : > { %2997 = vst.msk [vmem:[%s4392_s22 + $0x74] sm:$0xf] %vm2967_vm5, %v2964_v37  ;;  %v2801_v31 = vmul.f32 %v3678_v11, %v2765_v16 }
 0x2d5   : > { %v2099_v29 = vpop.f32.mrf.mxu2 }
 0x2d6   : > { %v2837_v45 = vadd.f32 %v3679_v46, %v2801_v31  ;;  %v2133_v62 = vadd.f32 %v2099_v29, %v1847_v22  ;;  %v2521_v8 = vpop.f32.mrf.mxu3 }
 0x2d8   : > { %vm2869_vm3 = vcmp.ge.f32.partialorder %v2837_v45, 1.0  ;;  %v2555_v32 = vadd.f32 %v2521_v8, %v2133_v62 }
 0x2d9   : > { %v3553_v23 = vsel %vm2869_vm3, 1.0, %v3688_v17 }
 0x2da   : > { %v2965_v3 = vpack.c.bf16 %v3553_v23, %v3553_v23  ;;  %v2766_v12 = vadd.f32 %v2732_v63, %v2555_v32 }
 0x2dc   : > { %2998 = vst.msk [vmem:[%s4392_s22 + $0x78] sm:$0xf] %vm2967_vm5, %v2965_v3  ;;  %v2802_v2 = vmul.f32 %v3678_v11, %v2766_v12 }
 0x2de   : > { %v2838_v27 = vadd.f32 %v3679_v46, %v2802_v2 }
 0x2e0   : > { %vm2870_vm6 = vcmp.ge.f32.partialorder %v2838_v27, 1.0 }
 0x2e1   : > { %v3554_v40 = vsel %vm2870_vm6, 1.0, %v3688_v17 }
 0x2e2   : > { %v2966_v58 = vpack.c.bf16 %v3554_v40, %v3554_v40 }
 0x2e4   : > { %2999 = vst.msk [vmem:[%s4392_s22 + $0x7c] sm:$0xf] %vm2967_vm5, %v2966_v58 }
 0x2e5 PF: > { %s14_s15 = sadd.s32 1, %s3686_s15  }
 0x2e6   : > { %p11_p4 = scmp.ge.s32.totalorder %s14_s15, 4  }
 0x2e8   :  { %13 = sbr.rel (!%p11_p4) target bundleno = 1 (0x1), region = 74 }

// kernel: mnist_net_forward.10
= control target key start
LH: loop header
LB: loop body
LE: loop exit
PB: predicated region body
PF: predicated region fallthrough
CT: control target
= control target key end

     0   :  { %s2271_s15 = smov 0   ;;  %s2273_s16 = smov 0   ;;  %s2844_s0 = inlined_call_operand.vmem [shape: bf16[16,392], index: 0, kind: input, shape index: {}]   ;;  %s2845_s1 = inlined_call_operand.vmem [shape: bf16[392,2048], index: 1, kind: input, shape index: {}]   ;;  %s2846_s2 = inlined_call_operand.vmem [shape: f32[1,2048], index: 2, kind: input, shape index: {}]   ;;  %s2847_s3 = inlined_call_operand.vmem [shape: f32[1,2048], index: 3, kind: input, shape index: {}]   ;;  %s2848_s4 = inlined_call_operand.vmem [shape: bf16[16,2048], index: 4, kind: output, shape index: {}]  }
   0x1   :  { %s2275_s17 = smov 0   ;;  %s2277_s18 = smov 0  }
   0x2   :  { %s2279_s19 = smov 0  }
   0x3 LB: > { %s29_s20 = sadd.s32 1, %s2239_s18  ;;  %s1632_s21 = sadd.s32 4294967295, %s2243_s19   ;;  %s2243_s19 = sphi %s2279_s19, %s14_s19   ;;  %s2239_s18 = sphi %s2277_s18, %s2853_s18   ;;  %s2235_s17 = sphi %s2275_s17, %s2852_s17   ;;  %s2231_s16 = sphi %s2273_s16, %s2851_s16   ;;  %s2227_s15 = sphi %s2271_s15, %s2850_s15  }
   0x4   : > { %p31_p0 = scmp.ge.s32.totalorder %s29_s20, 4  ;;  %p77_p1 = scmp.ne.s32.totalorder %s2231_s16, %s2227_s15 }
   0x5   : > { %p78_p2 = scmp.eq.s32.totalorder %s2243_s19, 0  ;;  %p161_p4 = scmp.eq.s32.totalorder %s1632_s21, 3 }
   0x6   : > { %s2855_s20 = smov (%p31_p0, %s29_s20), 0  ;;  %s70_s23 = sadd.s32 1, %s2231_s16 }
   0x7   : > { %p79_p3 = por %p78_p2, %p77_p1  ;;  %s66_s22 = ssub.s32 %s2239_s18, %s2855_s20 }
   0x8   : > { %p68_p5 = scmp.eq.s32.totalorder %s66_s22, 0  ;;  %p2306_p6 = por %p161_p4, %p77_p1 }
   0x9   : > { %p1636_p7 = scmp.ge.s32.totalorder %s2243_s19, 4 }
   0xa   : > { %s2311_s25 = scalar_select %p68_p5, %s2231_s16, %s70_s23  }
   0xb   : > { %198 = sbr.rel (%p1636_p7) target bundleno = 118 (0x76), region = 20 }
  0x10   : > { %201 = sbr.rel (!%p79_p3) target bundleno = 118 (0x76), region = 24  ;;  %s203_s26 = sand.u32 (%p79_p3), 1, %s2231_s16  }
  0x11   : > { %s2060_s27 = sshll.u32 (%p79_p3), %s2239_s18, 4  ;;  %s2162_s28 = smul.u32 (%p79_p3), 784, %s203_s26 }
  0x12   : > { %s2319_s5 = scalar_lea.vmem (%p79_p3), %s2845_s1, %s2060_s27 }
  0x13   : > { %v224_v0 = vld [vmem:[%s2319_s5] sm:$0xff] (%p79_p3)  ;;  %v226_v1 = vld [vmem:[%s2319_s5 + $0x8] sm:$0xff] (%p79_p3)  ;;  %s2324_s6 = scalar_lea.vmem (%p79_p3), [#allocation3], %s2162_s28 }
  0x14   : > { %v228_v2 = vld [vmem:[%s2319_s5 + $0x40] sm:$0xff] (%p79_p3)  ;;  %225 = vst [vmem:[%s2324_s6] sm:$0xff] (%p79_p3), %v224_v0  ;;  %v230_v3 = vld [vmem:[%s2319_s5 + $0x48] sm:$0xff] (%p79_p3) }
  0x15   : > { %227 = vst [vmem:[%s2324_s6 + $0x8] sm:$0xff] %v226_v1  ;;  %v232_v4 = vld [vmem:[%s2319_s5 + $0x80] sm:$0xff]  ;;  %v234_v5 = vld [vmem:[%s2319_s5 + $0x88] sm:$0xff] }
  0x16   : > { %229 = vst [vmem:[%s2324_s6 + $0x10] sm:$0xff] %v228_v2  ;;  %v236_v6 = vld [vmem:[%s2319_s5 + $0xc0] sm:$0xff]  ;;  %v238_v7 = vld [vmem:[%s2319_s5 + $0xc8] sm:$0xff] }
  0x17   : > { %231 = vst [vmem:[%s2324_s6 + $0x18] sm:$0xff] %v230_v3  ;;  %v240_v8 = vld [vmem:[%s2319_s5 + $0x100] sm:$0xff]  ;;  %v242_v9 = vld [vmem:[%s2319_s5 + $0x108] sm:$0xff] }
  0x18   : > { %233 = vst [vmem:[%s2324_s6 + $0x20] sm:$0xff] %v232_v4  ;;  %v244_v10 = vld [vmem:[%s2319_s5 + $0x140] sm:$0xff]  ;;  %v246_v11 = vld [vmem:[%s2319_s5 + $0x148] sm:$0xff] }
  0x19   : > { %235 = vst [vmem:[%s2324_s6 + $0x28] sm:$0xff] %v234_v5  ;;  %v248_v12 = vld [vmem:[%s2319_s5 + $0x180] sm:$0xff]  ;;  %v250_v13 = vld [vmem:[%s2319_s5 + $0x188] sm:$0xff] }
  0x1a   : > { %237 = vst [vmem:[%s2324_s6 + $0x30] sm:$0xff] %v236_v6  ;;  %v252_v14 = vld [vmem:[%s2319_s5 + $0x1c0] sm:$0xff]  ;;  %v254_v15 = vld [vmem:[%s2319_s5 + $0x1c8] sm:$0xff] }
  0x1b   : > { %239 = vst [vmem:[%s2324_s6 + $0x38] sm:$0xff] %v238_v7  ;;  %v256_v16 = vld [vmem:[%s2319_s5 + $0x200] sm:$0xff]  ;;  %v258_v17 = vld [vmem:[%s2319_s5 + $0x208] sm:$0xff] }
  0x1c   : > { %241 = vst [vmem:[%s2324_s6 + $0x40] sm:$0xff] %v240_v8  ;;  %v260_v18 = vld [vmem:[%s2319_s5 + $0x240] sm:$0xff]  ;;  %v262_v19 = vld [vmem:[%s2319_s5 + $0x248] sm:$0xff] }
  0x1d   : > { %243 = vst [vmem:[%s2324_s6 + $0x48] sm:$0xff] %v242_v9  ;;  %v264_v20 = vld [vmem:[%s2319_s5 + $0x280] sm:$0xff]  ;;  %v266_v21 = vld [vmem:[%s2319_s5 + $0x288] sm:$0xff] }
  0x1e   : > { %245 = vst [vmem:[%s2324_s6 + $0x50] sm:$0xff] %v244_v10  ;;  %v268_v22 = vld [vmem:[%s2319_s5 + $0x2c0] sm:$0xff]  ;;  %v270_v23 = vld [vmem:[%s2319_s5 + $0x2c8] sm:$0xff] }
  0x1f   : > { %247 = vst [vmem:[%s2324_s6 + $0x58] sm:$0xff] %v246_v11  ;;  %v272_v24 = vld [vmem:[%s2319_s5 + $0x300] sm:$0xff]  ;;  %v274_v25 = vld [vmem:[%s2319_s5 + $0x308] sm:$0xff] }
  0x20   : > { %249 = vst [vmem:[%s2324_s6 + $0x60] sm:$0xff] %v248_v12  ;;  %v276_v26 = vld [vmem:[%s2319_s5 + $0x340] sm:$0xff]  ;;  %v278_v27 = vld [vmem:[%s2319_s5 + $0x348] sm:$0xff] }
  0x21   : > { %251 = vst [vmem:[%s2324_s6 + $0x68] sm:$0xff] %v250_v13  ;;  %v280_v28 = vld [vmem:[%s2319_s5 + $0x380] sm:$0xff]  ;;  %v282_v29 = vld [vmem:[%s2319_s5 + $0x388] sm:$0xff] }
  0x22   : > { %253 = vst [vmem:[%s2324_s6 + $0x70] sm:$0xff] %v252_v14  ;;  %v284_v30 = vld [vmem:[%s2319_s5 + $0x3c0] sm:$0xff]  ;;  %v286_v31 = vld [vmem:[%s2319_s5 + $0x3c8] sm:$0xff] }
  0x23   : > { %255 = vst [vmem:[%s2324_s6 + $0x78] sm:$0xff] %v254_v15  ;;  %v288_v32 = vld [vmem:[%s2319_s5 + $0x400] sm:$0xff]  ;;  %v290_v33 = vld [vmem:[%s2319_s5 + $0x408] sm:$0xff] }
  0x24   : > { %257 = vst [vmem:[%s2324_s6 + $0x80] sm:$0xff] %v256_v16  ;;  %v292_v34 = vld [vmem:[%s2319_s5 + $0x440] sm:$0xff]  ;;  %v294_v35 = vld [vmem:[%s2319_s5 + $0x448] sm:$0xff] }
  0x25   : > { %259 = vst [vmem:[%s2324_s6 + $0x88] sm:$0xff] %v258_v17  ;;  %v296_v36 = vld [vmem:[%s2319_s5 + $0x480] sm:$0xff]  ;;  %v298_v37 = vld [vmem:[%s2319_s5 + $0x488] sm:$0xff] }
  0x26   : > { %261 = vst [vmem:[%s2324_s6 + $0x90] sm:$0xff] %v260_v18  ;;  %v300_v38 = vld [vmem:[%s2319_s5 + $0x4c0] sm:$0xff]  ;;  %v302_v39 = vld [vmem:[%s2319_s5 + $0x4c8] sm:$0xff] }
  0x27   : > { %263 = vst [vmem:[%s2324_s6 + $0x98] sm:$0xff] %v262_v19  ;;  %v304_v40 = vld [vmem:[%s2319_s5 + $0x500] sm:$0xff]  ;;  %v306_v41 = vld [vmem:[%s2319_s5 + $0x508] sm:$0xff] }
  0x28   : > { %265 = vst [vmem:[%s2324_s6 + $0xa0] sm:$0xff] %v264_v20  ;;  %v308_v42 = vld [vmem:[%s2319_s5 + $0x540] sm:$0xff]  ;;  %v310_v43 = vld [vmem:[%s2319_s5 + $0x548] sm:$0xff] }
  0x29   : > { %267 = vst [vmem:[%s2324_s6 + $0xa8] sm:$0xff] %v266_v21  ;;  %v312_v44 = vld [vmem:[%s2319_s5 + $0x580] sm:$0xff]  ;;  %v314_v45 = vld [vmem:[%s2319_s5 + $0x588] sm:$0xff] }
  0x2a   : > { %269 = vst [vmem:[%s2324_s6 + $0xb0] sm:$0xff] %v268_v22  ;;  %v316_v46 = vld [vmem:[%s2319_s5 + $0x5c0] sm:$0xff]  ;;  %v318_v47 = vld [vmem:[%s2319_s5 + $0x5c8] sm:$0xff] }
  0x2b   : > { %271 = vst [vmem:[%s2324_s6 + $0xb8] sm:$0xff] %v270_v23  ;;  %v320_v48 = vld [vmem:[%s2319_s5 + $0x600] sm:$0xff]  ;;  %v322_v49 = vld [vmem:[%s2319_s5 + $0x608] sm:$0xff] }
  0x2c   : > { %273 = vst [vmem:[%s2324_s6 + $0xc0] sm:$0xff] %v272_v24  ;;  %v324_v50 = vld [vmem:[%s2319_s5 + $0x640] sm:$0xff]  ;;  %v326_v51 = vld [vmem:[%s2319_s5 + $0x648] sm:$0xff] }
  0x2d   : > { %275 = vst [vmem:[%s2324_s6 + $0xc8] sm:$0xff] %v274_v25  ;;  %v328_v52 = vld [vmem:[%s2319_s5 + $0x680] sm:$0xff]  ;;  %v330_v53 = vld [vmem:[%s2319_s5 + $0x688] sm:$0xff] }
  0x2e   : > { %277 = vst [vmem:[%s2324_s6 + $0xd0] sm:$0xff] %v276_v26  ;;  %v332_v54 = vld [vmem:[%s2319_s5 + $0x6c0] sm:$0xff]  ;;  %v334_v55 = vld [vmem:[%s2319_s5 + $0x6c8] sm:$0xff] }
  0x2f   : > { %279 = vst [vmem:[%s2324_s6 + $0xd8] sm:$0xff] %v278_v27  ;;  %v336_v56 = vld [vmem:[%s2319_s5 + $0x700] sm:$0xff]  ;;  %v338_v57 = vld [vmem:[%s2319_s5 + $0x708] sm:$0xff] }
  0x30   : > { %281 = vst [vmem:[%s2324_s6 + $0xe0] sm:$0xff] %v280_v28  ;;  %v340_v58 = vld [vmem:[%s2319_s5 + $0x740] sm:$0xff]  ;;  %v342_v59 = vld [vmem:[%s2319_s5 + $0x748] sm:$0xff] }
  0x31   : > { %283 = vst [vmem:[%s2324_s6 + $0xe8] sm:$0xff] %v282_v29  ;;  %v344_v60 = vld [vmem:[%s2319_s5 + $0x780] sm:$0xff]  ;;  %v346_v61 = vld [vmem:[%s2319_s5 + $0x788] sm:$0xff] }
  0x32   : > { %285 = vst [vmem:[%s2324_s6 + $0xf0] sm:$0xff] %v284_v30  ;;  %v348_v62 = vld [vmem:[%s2319_s5 + $0x7c0] sm:$0xff]  ;;  %v350_v63 = vld [vmem:[%s2319_s5 + $0x7c8] sm:$0xff] }
  0x33   : > { %287 = vst [vmem:[%s2324_s6 + $0xf8] sm:$0xff] %v286_v31  ;;  %v352_v0 = vld [vmem:[%s2319_s5 + $0x800] sm:$0xff]  ;;  %v354_v1 = vld [vmem:[%s2319_s5 + $0x808] sm:$0xff] }
  0x34   : > { %289 = vst [vmem:[%s2324_s6 + $0x100] sm:$0xff] %v288_v32  ;;  %v356_v2 = vld [vmem:[%s2319_s5 + $0x840] sm:$0xff]  ;;  %v358_v3 = vld [vmem:[%s2319_s5 + $0x848] sm:$0xff] }
  0x35   : > { %291 = vst [vmem:[%s2324_s6 + $0x108] sm:$0xff] %v290_v33  ;;  %v360_v4 = vld [vmem:[%s2319_s5 + $0x880] sm:$0xff]  ;;  %v362_v5 = vld [vmem:[%s2319_s5 + $0x888] sm:$0xff] }
  0x36   : > { %293 = vst [vmem:[%s2324_s6 + $0x110] sm:$0xff] %v292_v34  ;;  %v364_v6 = vld [vmem:[%s2319_s5 + $0x8c0] sm:$0xff]  ;;  %v366_v7 = vld [vmem:[%s2319_s5 + $0x8c8] sm:$0xff] }
  0x37   : > { %295 = vst [vmem:[%s2324_s6 + $0x118] sm:$0xff] %v294_v35  ;;  %v368_v8 = vld [vmem:[%s2319_s5 + $0x900] sm:$0xff]  ;;  %v370_v9 = vld [vmem:[%s2319_s5 + $0x908] sm:$0xff] }
  0x38   : > { %297 = vst [vmem:[%s2324_s6 + $0x120] sm:$0xff] %v296_v36  ;;  %v372_v10 = vld [vmem:[%s2319_s5 + $0x940] sm:$0xff]  ;;  %v374_v11 = vld [vmem:[%s2319_s5 + $0x948] sm:$0xff] }
  0x39   : > { %299 = vst [vmem:[%s2324_s6 + $0x128] sm:$0xff] %v298_v37  ;;  %v376_v12 = vld [vmem:[%s2319_s5 + $0x980] sm:$0xff]  ;;  %v378_v13 = vld [vmem:[%s2319_s5 + $0x988] sm:$0xff] }
  0x3a   : > { %301 = vst [vmem:[%s2324_s6 + $0x130] sm:$0xff] %v300_v38  ;;  %v380_v14 = vld [vmem:[%s2319_s5 + $0x9c0] sm:$0xff]  ;;  %v382_v15 = vld [vmem:[%s2319_s5 + $0x9c8] sm:$0xff] }
  0x3b   : > { %303 = vst [vmem:[%s2324_s6 + $0x138] sm:$0xff] %v302_v39  ;;  %v384_v16 = vld [vmem:[%s2319_s5 + $0xa00] sm:$0xff]  ;;  %v386_v17 = vld [vmem:[%s2319_s5 + $0xa08] sm:$0xff] }
  0x3c   : > { %305 = vst [vmem:[%s2324_s6 + $0x140] sm:$0xff] %v304_v40  ;;  %v388_v18 = vld [vmem:[%s2319_s5 + $0xa40] sm:$0xff]  ;;  %v390_v19 = vld [vmem:[%s2319_s5 + $0xa48] sm:$0xff] }
  0x3d   : > { %307 = vst [vmem:[%s2324_s6 + $0x148] sm:$0xff] %v306_v41  ;;  %v392_v20 = vld [vmem:[%s2319_s5 + $0xa80] sm:$0xff]  ;;  %v394_v21 = vld [vmem:[%s2319_s5 + $0xa88] sm:$0xff] }
  0x3e   : > { %309 = vst [vmem:[%s2324_s6 + $0x150] sm:$0xff] %v308_v42  ;;  %v396_v22 = vld [vmem:[%s2319_s5 + $0xac0] sm:$0xff]  ;;  %v398_v23 = vld [vmem:[%s2319_s5 + $0xac8] sm:$0xff] }
  0x3f   : > { %311 = vst [vmem:[%s2324_s6 + $0x158] sm:$0xff] %v310_v43  ;;  %v400_v24 = vld [vmem:[%s2319_s5 + $0xb00] sm:$0xff]  ;;  %v402_v25 = vld [vmem:[%s2319_s5 + $0xb08] sm:$0xff] }
  0x40   : > { %313 = vst [vmem:[%s2324_s6 + $0x160] sm:$0xff] %v312_v44  ;;  %v404_v26 = vld [vmem:[%s2319_s5 + $0xb40] sm:$0xff]  ;;  %v406_v27 = vld [vmem:[%s2319_s5 + $0xb48] sm:$0xff] }
  0x41   : > { %315 = vst [vmem:[%s2324_s6 + $0x168] sm:$0xff] %v314_v45  ;;  %v408_v28 = vld [vmem:[%s2319_s5 + $0xb80] sm:$0xff]  ;;  %v410_v29 = vld [vmem:[%s2319_s5 + $0xb88] sm:$0xff] }
  0x42   : > { %317 = vst [vmem:[%s2324_s6 + $0x170] sm:$0xff] %v316_v46  ;;  %v412_v30 = vld [vmem:[%s2319_s5 + $0xbc0] sm:$0xff]  ;;  %v414_v31 = vld [vmem:[%s2319_s5 + $0xbc8] sm:$0xff] }
  0x43   : > { %319 = vst [vmem:[%s2324_s6 + $0x178] sm:$0xff] %v318_v47  ;;  %v416_v32 = vld [vmem:[%s2319_s5 + $0xc00] sm:$0xff]  ;;  %v418_v33 = vld [vmem:[%s2319_s5 + $0xc08] sm:$0xff] }
  0x44   : > { %321 = vst [vmem:[%s2324_s6 + $0x180] sm:$0xff] %v320_v48 }
  0x45   : > { %323 = vst [vmem:[%s2324_s6 + $0x188] sm:$0xff] %v322_v49 }
  0x46   : > { %325 = vst [vmem:[%s2324_s6 + $0x190] sm:$0xff] %v324_v50 }
  0x47   : > { %327 = vst [vmem:[%s2324_s6 + $0x198] sm:$0xff] %v326_v51 }
  0x48   : > { %329 = vst [vmem:[%s2324_s6 + $0x1a0] sm:$0xff] %v328_v52 }
  0x49   : > { %331 = vst [vmem:[%s2324_s6 + $0x1a8] sm:$0xff] %v330_v53 }
  0x4a   : > { %333 = vst [vmem:[%s2324_s6 + $0x1b0] sm:$0xff] %v332_v54 }
  0x4b   : > { %335 = vst [vmem:[%s2324_s6 + $0x1b8] sm:$0xff] %v334_v55 }
  0x4c   : > { %337 = vst [vmem:[%s2324_s6 + $0x1c0] sm:$0xff] %v336_v56 }
  0x4d   : > { %339 = vst [vmem:[%s2324_s6 + $0x1c8] sm:$0xff] %v338_v57 }
  0x4e   : > { %341 = vst [vmem:[%s2324_s6 + $0x1d0] sm:$0xff] %v340_v58 }
  0x4f   : > { %343 = vst [vmem:[%s2324_s6 + $0x1d8] sm:$0xff] %v342_v59 }
  0x50   : > { %345 = vst [vmem:[%s2324_s6 + $0x1e0] sm:$0xff] %v344_v60 }
  0x51   : > { %347 = vst [vmem:[%s2324_s6 + $0x1e8] sm:$0xff] %v346_v61 }
  0x52   : > { %349 = vst [vmem:[%s2324_s6 + $0x1f0] sm:$0xff] %v348_v62 }
  0x53   : > { %351 = vst [vmem:[%s2324_s6 + $0x1f8] sm:$0xff] %v350_v63 }
  0x54   : > { %353 = vst [vmem:[%s2324_s6 + $0x200] sm:$0xff] %v352_v0 }
  0x55   : > { %355 = vst [vmem:[%s2324_s6 + $0x208] sm:$0xff] %v354_v1 }
  0x56   : > { %357 = vst [vmem:[%s2324_s6 + $0x210] sm:$0xff] %v356_v2 }
  0x57   : > { %359 = vst [vmem:[%s2324_s6 + $0x218] sm:$0xff] %v358_v3 }
  0x58   : > { %361 = vst [vmem:[%s2324_s6 + $0x220] sm:$0xff] %v360_v4 }
  0x59   : > { %363 = vst [vmem:[%s2324_s6 + $0x228] sm:$0xff] %v362_v5 }
  0x5a   : > { %365 = vst [vmem:[%s2324_s6 + $0x230] sm:$0xff] %v364_v6 }
  0x5b   : > { %367 = vst [vmem:[%s2324_s6 + $0x238] sm:$0xff] %v366_v7 }
  0x5c   : > { %369 = vst [vmem:[%s2324_s6 + $0x240] sm:$0xff] %v368_v8 }
  0x5d   : > { %371 = vst [vmem:[%s2324_s6 + $0x248] sm:$0xff] %v370_v9 }
  0x5e   : > { %373 = vst [vmem:[%s2324_s6 + $0x250] sm:$0xff] %v372_v10 }
  0x5f   : > { %375 = vst [vmem:[%s2324_s6 + $0x258] sm:$0xff] %v374_v11 }
  0x60   : > { %377 = vst [vmem:[%s2324_s6 + $0x260] sm:$0xff] %v376_v12 }
  0x61   : > { %379 = vst [vmem:[%s2324_s6 + $0x268] sm:$0xff] %v378_v13 }
  0x62   : > { %381 = vst [vmem:[%s2324_s6 + $0x270] sm:$0xff] %v380_v14 }
  0x63   : > { %383 = vst [vmem:[%s2324_s6 + $0x278] sm:$0xff] %v382_v15 }
  0x64   : > { %385 = vst [vmem:[%s2324_s6 + $0x280] sm:$0xff] %v384_v16 }
  0x65   : > { %387 = vst [vmem:[%s2324_s6 + $0x288] sm:$0xff] %v386_v17 }
  0x66   : > { %389 = vst [vmem:[%s2324_s6 + $0x290] sm:$0xff] %v388_v18 }
  0x67   : > { %391 = vst [vmem:[%s2324_s6 + $0x298] sm:$0xff] %v390_v19 }
  0x68   : > { %393 = vst [vmem:[%s2324_s6 + $0x2a0] sm:$0xff] %v392_v20 }
  0x69   : > { %395 = vst [vmem:[%s2324_s6 + $0x2a8] sm:$0xff] %v394_v21 }
  0x6a   : > { %397 = vst [vmem:[%s2324_s6 + $0x2b0] sm:$0xff] %v396_v22 }
  0x6b   : > { %399 = vst [vmem:[%s2324_s6 + $0x2b8] sm:$0xff] %v398_v23 }
  0x6c   : > { %401 = vst [vmem:[%s2324_s6 + $0x2c0] sm:$0xff] %v400_v24 }
  0x6d   : > { %403 = vst [vmem:[%s2324_s6 + $0x2c8] sm:$0xff] %v402_v25 }
  0x6e   : > { %405 = vst [vmem:[%s2324_s6 + $0x2d0] sm:$0xff] %v404_v26 }
  0x6f   : > { %407 = vst [vmem:[%s2324_s6 + $0x2d8] sm:$0xff] %v406_v27 }
  0x70   : > { %409 = vst [vmem:[%s2324_s6 + $0x2e0] sm:$0xff] %v408_v28 }
  0x71   : > { %411 = vst [vmem:[%s2324_s6 + $0x2e8] sm:$0xff] %v410_v29 }
  0x72   : > { %413 = vst [vmem:[%s2324_s6 + $0x2f0] sm:$0xff] %v412_v30 }
  0x73   : > { %415 = vst [vmem:[%s2324_s6 + $0x2f8] sm:$0xff] %v414_v31 }
  0x74   : > { %417 = vst [vmem:[%s2324_s6 + $0x300] sm:$0xff] %v416_v32 }
  0x75   : > { %419 = vst [vmem:[%s2324_s6 + $0x308] sm:$0xff] %v418_v33 }
  0x76 PF: > { %p1639_p8 = scmp.ge.s32.totalorder %s2243_s19, 1  ;;  %p440_p9 = scmp.lt.s32.totalorder %s2243_s19, 5 }
  0x78   : > { %p441_p10 = pnand %p1639_p8, %p440_p9 }
  0x79   : > { %s447_s7 = sand.u32 (!%p441_p10), 1, %s2227_s15  }
  0x7a   : > { %444 = sbr.rel (%p441_p10) target bundleno = 398 (0x18e), region = 55  ;;  %s1640_s22 = sshll.u32 (!%p441_p10), %s447_s7, 5 }
  0x7b   : > { %s2163_s8 = smul.u32 (!%p441_p10), 784, %s447_s7  ;;  %s2803_s23 = scalar_lea.vmem (!%p441_p10), [#allocation4], %s1640_s22 }
  0x7d   : > { %s2524_s9 = scalar_lea.vmem (!%p441_p10), [#allocation3], %s2163_s8 }
  0x7f   : > { %v1773_v34 = vld [vmem:[%s2524_s9 + $0xe0] sm:$0xf]  ;;  %v2095_v35 = vld [vmem:[%s2524_s9 + $0xec] sm:$0xf0]  ;;  %vm1151_vm0 = vcmask 1043456   ;;  %vm1147_vm1 = vcmask 64512  }
  0x80   : > { %v2029_v36 = vld [vmem:[%s2524_s9 + $0x2e0] sm:$0xf]  ;;  %v1774_v37 = vor.u32 %v2095_v35, %v1773_v34  ;;  %v2159_v38 = vld [vmem:[%s2524_s9 + $0x2ec] sm:$0xf0]  ;;  %v2062_v46 = vld [vmem:[%s2844_s0 + $0xc] sm:$0xf] }
  0x81   : > { %v1901_v39 = vld [vmem:[%s2524_s9 + $0x1e0] sm:$0xf]  ;;  %v2127_v40 = vld [vmem:[%s2524_s9 + $0x1ec] sm:$0xf0]  ;;  %v2030_v41 = vor.u32 %v2159_v38, %v2029_v36  ;;  %v1655_v47 = vld [vmem:[%s2844_s0 + $0x18] sm:$0xf0] }
  0x82   : > { %v1902_v42 = vor.u32 %v2127_v40, %v1901_v39  ;;  %v2533_v43 = vld [vmem:[%s2524_s9 + $0x300] sm:$0xff]  ;;  %v2091_v45 = vld [vmem:[%s2524_s9 + $0xcc] sm:$0xf0]  ;;  %1164 = vmatpush.bf16.msra.mxu0 %v1774_v37  ;;  %v1775_v54 = vld [vmem:[%s2524_s9 + $0xf0] sm:$0xf0]  ;;  %v2559_v6 = vor.u32 %v2062_v46, %v1655_v47  ;;  %s2161_s15 = sshll.u32 (%p2306_p6), %s2235_s17, 4 }
  0x83   : > { %v1757_v44 = vld [vmem:[%s2524_s9 + $0xc0] sm:$0xf]  ;;  %v947_v48 = vunpack.c.l.b16 %v2533_v43  ;;  %v2155_v51 = vld [vmem:[%s2524_s9 + $0x2cc] sm:$0xf0]  ;;  %v2093_v52 = vld [vmem:[%s2524_s9 + $0xe4] sm:$0xf]  ;;  %1192 = vmatpush.bf16.msra.mxu2 %v2030_v41  ;;  %v948_v31 = vunpack.c.h.b16 %v2533_v43  ;;  %s1495_s27 = scalar_lea.vmem (%p2306_p6), %s2848_s4, %s2161_s15 }
  0x84   : > { %v1758_v49 = vor.u32 %v2091_v45, %v1757_v44  ;;  %v2013_v50 = vld [vmem:[%s2524_s9 + $0x2c0] sm:$0xf]  ;;  %1178 = vmatpush.bf16.msra.mxu1 %v1902_v42  ;;  %v2123_v56 = vld [vmem:[%s2524_s9 + $0x1cc] sm:$0xf0]  ;;  %v1778_v58 = vor.u32 %v2093_v52, %v1775_v54  ;;  %v2089_v0 = vld [vmem:[%s2524_s9 + $0xc4] sm:$0xf] }
  0x85   : > { %v2014_v53 = vor.u32 %v2155_v51, %v2013_v50  ;;  %v1885_v55 = vld [vmem:[%s2524_s9 + $0x1c0] sm:$0xf]  ;;  %v1047_v57 = vpack.c.b16 %v947_v48, %v947_v48  ;;  %v2087_v61 = vld [vmem:[%s2524_s9 + $0xac] sm:$0xf0]  ;;  %v1759_v1 = vld [vmem:[%s2524_s9 + $0xd0] sm:$0xf0]  ;;  %v1048_v44 = vpack.c.b16 %v948_v31, %v948_v31 }
  0x86   : > { %v1886_v59 = vor.u32 %v2123_v56, %v1885_v55  ;;  %v1741_v60 = vld [vmem:[%s2524_s9 + $0xa0] sm:$0xf]  ;;  %v2151_v63 = vld [vmem:[%s2524_s9 + $0x2ac] sm:$0xf0]  ;;  %1165 = vmatpush.bf16.msra.mxu0 %v1758_v49  ;;  %v1762_v10 = vor.u32 %v2089_v0, %v1759_v1  ;;  %v2085_v14 = vld [vmem:[%s2524_s9 + $0xa4] sm:$0xf] }
  0x87   : > { %v1997_v62 = vld [vmem:[%s2524_s9 + $0x2a0] sm:$0xf]  ;;  %v1153_v2 = vsel %vm1151_vm0, %v1047_v57, 0  ;;  %v1742_v3 = vor.u32 %v2087_v61, %v1741_v60  ;;  %v2119_v5 = vld [vmem:[%s2524_s9 + $0x1ac] sm:$0xf0]  ;;  %1193 = vmatpush.bf16.msra.mxu2 %v2014_v53 }
  0x88   : > { %v1869_v4 = vld [vmem:[%s2524_s9 + $0x1a0] sm:$0xf]  ;;  %1213 = vmatpush.bf16.msra.mxu3 %v1153_v2  ;;  %v1998_v7 = vor.u32 %v2151_v63, %v1997_v62  ;;  %v2083_v9 = vld [vmem:[%s2524_s9 + $0x8c] sm:$0xf0]  ;;  %1179 = vmatpush.bf16.msra.mxu1 %v1886_v59  ;;  %v1743_v15 = vld [vmem:[%s2524_s9 + $0xb0] sm:$0xf0] }
  0x89   : > { %v1725_v8 = vld [vmem:[%s2524_s9 + $0x80] sm:$0xf]  ;;  %v1870_v11 = vor.u32 %v2119_v5, %v1869_v4  ;;  %v2147_v13 = vld [vmem:[%s2524_s9 + $0x28c] sm:$0xf0]  ;;  %v1746_v22 = vor.u32 %v2085_v14, %v1743_v15  ;;  %v2081_v26 = vld [vmem:[%s2524_s9 + $0x84] sm:$0xf] }
  0x8a   : > { %v1981_v12 = vld [vmem:[%s2524_s9 + $0x280] sm:$0xf]  ;;  %v2115_v17 = vld [vmem:[%s2524_s9 + $0x18c] sm:$0xf0]  ;;  %1166 = vmatpush.bf16.msra.mxu0 %v1742_v3  ;;  %v1726_v18 = vor.u32 %v2083_v9, %v1725_v8  ;;  %v1727_v27 = vld [vmem:[%s2524_s9 + $0x90] sm:$0xf0] }
  0x8b   : > { %v1853_v16 = vld [vmem:[%s2524_s9 + $0x180] sm:$0xf]  ;;  %2043 = vmatmul.msk.bf16.vlgmr.msra.gmra.mxu3 %vm1147_vm1, %v2559_v6  ;;  %1194 = vmatpush.bf16.msra.mxu2 %v1998_v7  ;;  %v1982_v19 = vor.u32 %v2147_v13, %v1981_v12  ;;  %v2079_v21 = vld [vmem:[%s2524_s9 + $0x6c] sm:$0xf0]  ;;  %v1730_v35 = vor.u32 %v2081_v26, %v1727_v27  ;;  %v2077_v39 = vld [vmem:[%s2524_s9 + $0x64] sm:$0xf] }
  0x8c   : > { %1220 = vmatpush.bf16.msrb.mxu3 %v1778_v58  ;;  %v1709_v20 = vld [vmem:[%s2524_s9 + $0x60] sm:$0xf]  ;;  %1180 = vmatpush.bf16.msra.mxu1 %v1870_v11  ;;  %v1854_v23 = vor.u32 %v2115_v17, %v1853_v16  ;;  %v2143_v25 = vld [vmem:[%s2524_s9 + $0x26c] sm:$0xf0]  ;;  %v1711_v40 = vld [vmem:[%s2524_s9 + $0x70] sm:$0xf0] }
  0x8d   : > { %v1965_v24 = vld [vmem:[%s2524_s9 + $0x260] sm:$0xf]  ;;  %v2111_v29 = vld [vmem:[%s2524_s9 + $0x16c] sm:$0xf0]  ;;  %v1710_v30 = vor.u32 %v2079_v21, %v1709_v20  ;;  %v1714_v48 = vor.u32 %v2077_v39, %v1711_v40  ;;  %v2073_v52 = vld [vmem:[%s2524_s9 + $0x44] sm:$0xf] }
  0x8e   : > { %v1837_v28 = vld [vmem:[%s2524_s9 + $0x160] sm:$0xf]  ;;  %1167 = vmatpush.bf16.msra.mxu0 %v1726_v18  ;;  %v1966_v32 = vor.u32 %v2143_v25, %v1965_v24  ;;  %v2075_v34 = vld [vmem:[%s2524_s9 + $0x4c] sm:$0xf0]  ;;  %v1695_v53 = vld [vmem:[%s2524_s9 + $0x50] sm:$0xf0] }
  0x8f   : > { %1195 = vmatpush.bf16.msra.mxu2 %v1982_v19  ;;  %v1693_v33 = vld [vmem:[%s2524_s9 + $0x40] sm:$0xf]  ;;  %v1838_v36 = vor.u32 %v2111_v29, %v1837_v28  ;;  %v2139_v38 = vld [vmem:[%s2524_s9 + $0x24c] sm:$0xf0]  ;;  %v1156_v59 = vsel %vm1151_vm0, %v1048_v44, 0  ;;  %v1698_v0 = vor.u32 %v2073_v52, %v1695_v53 }
  0x90   : > { %1221 = vmatpush.bf16.msrb.mxu3 %v1762_v10  ;;  %1181 = vmatpush.bf16.msra.mxu1 %v1854_v23  ;;  %v1949_v37 = vld [vmem:[%s2524_s9 + $0x240] sm:$0xf]  ;;  %v2107_v42 = vld [vmem:[%s2524_s9 + $0x14c] sm:$0xf0]  ;;  %v1694_v43 = vor.u32 %v2075_v34, %v1693_v33  ;;  %v2069_v63 = vld [vmem:[%s2524_s9 + $0x24] sm:$0xf] }
  0x91   : > { %v1821_v41 = vld [vmem:[%s2524_s9 + $0x140] sm:$0xf]  ;;  %v1950_v45 = vor.u32 %v2139_v38, %v1949_v37  ;;  %v2071_v47 = vld [vmem:[%s2524_s9 + $0x2c] sm:$0xf0]  ;;  %v1679_v2 = vld [vmem:[%s2524_s9 + $0x30] sm:$0xf0] }
  0x92   : > { %1168 = vmatpush.bf16.msra.mxu0 %v1710_v30  ;;  %v1677_v46 = vld [vmem:[%s2524_s9 + $0x20] sm:$0xf]  ;;  %v1822_v49 = vor.u32 %v2107_v42, %v1821_v41  ;;  %v2135_v51 = vld [vmem:[%s2524_s9 + $0x22c] sm:$0xf0]  ;;  %v2125_v3 = vld [vmem:[%s2524_s9 + $0x1e4] sm:$0xf]  ;;  %v1682_v20 = vor.u32 %v2069_v63, %v1679_v2 }
  0x93   : > { %1196 = vmatpush.bf16.msra.mxu2 %v1966_v32  ;;  %v1933_v50 = vld [vmem:[%s2524_s9 + $0x220] sm:$0xf]  ;;  %v2103_v55 = vld [vmem:[%s2524_s9 + $0x12c] sm:$0xf0]  ;;  %v1678_v56 = vor.u32 %v2071_v47, %v1677_v46  ;;  %v1903_v4 = vld [vmem:[%s2524_s9 + $0x1f0] sm:$0xf0] }
  0x94   : > { %1222 = vmatpush.bf16.msrb.mxu3 %v1746_v22  ;;  %1182 = vmatpush.bf16.msra.mxu1 %v1838_v36  ;;  %v1805_v54 = vld [vmem:[%s2524_s9 + $0x120] sm:$0xf]  ;;  %v2067_v58 = vld [vmem:[%s2524_s9 + $0xc] sm:$0xf0]  ;;  %v1934_v60 = vor.u32 %v2135_v51, %v1933_v50  ;;  %v2157_v8 = vld [vmem:[%s2524_s9 + $0x2e4] sm:$0xf]  ;;  %v1906_v14 = vor.u32 %v2125_v3, %v1903_v4 }
  0x95   : > { %v1661_v57 = vld [vmem:[%s2524_s9] sm:$0xf]  ;;  %v2131_v62 = vld [vmem:[%s2524_s9 + $0x20c] sm:$0xf0]  ;;  %v1806_v1 = vor.u32 %v2103_v55, %v1805_v54  ;;  %v2031_v10 = vld [vmem:[%s2524_s9 + $0x2f0] sm:$0xf0] }
  0x96   : > { %1169 = vmatpush.bf16.msra.mxu0 %v1694_v43  ;;  %v1917_v61 = vld [vmem:[%s2524_s9 + $0x200] sm:$0xf]  ;;  %v2099_v7 = vld [vmem:[%s2524_s9 + $0x10c] sm:$0xf0]  ;;  %v1662_v9 = vor.u32 %v2067_v58, %v1661_v57  ;;  %v1653_v11 = vld [vmem:[%s2844_s0 + $0x8] sm:$0xf]  ;;  %v2034_v25 = vor.u32 %v2157_v8, %v2031_v10 }
  0x97   : > { %1197 = vmatpush.bf16.msra.mxu2 %v1950_v45  ;;  %v1789_v5 = vld [vmem:[%s2524_s9 + $0x100] sm:$0xf]  ;;  %v2064_v12 = vld [vmem:[%s2844_s0 + $0x14] sm:$0xf0]  ;;  %v1918_v13 = vor.u32 %v2131_v62, %v1917_v61  ;;  %v2065_v15 = vld [vmem:[%s2524_s9 + $0x4] sm:$0xf] }
  0x98   : > { %1223 = vmatpush.bf16.msrb.mxu3 %v1730_v35  ;;  %1183 = vmatpush.bf16.msra.mxu1 %v1822_v49  ;;  %v1663_v16 = vld [vmem:[%s2524_s9 + $0x10] sm:$0xf0]  ;;  %v1909_v17 = vld [vmem:[%s2524_s9 + $0x1e8] sm:$0xf]  ;;  %v1645_v18 = vld [vmem:[%s2844_s0] sm:$0xf]  ;;  %v1790_v21 = vor.u32 %v2099_v7, %v1789_v5  ;;  %v2634_v29 = vor.u32 %v2064_v12, %v1653_v11 }
  0x99   : > { %v2063_v19 = vld [vmem:[%s2844_s0 + $0xc] sm:$0xf0]  ;;  %v2128_v22 = vld [vmem:[%s2524_s9 + $0x1f4] sm:$0xf0]  ;;  %v2121_v23 = vld [vmem:[%s2524_s9 + $0x1c4] sm:$0xf]  ;;  %v1666_v37 = vor.u32 %v2065_v15, %v1663_v16 }
  0x9a   : > { %1170 = vmatpush.bf16.msra.mxu0 %v1678_v56  ;;  %v1887_v24 = vld [vmem:[%s2524_s9 + $0x1d0] sm:$0xf0]  ;;  %v1781_v26 = vld [vmem:[%s2524_s9 + $0xe8] sm:$0xf]  ;;  %v2096_v30 = vld [vmem:[%s2524_s9 + $0xf4] sm:$0xf0]  ;;  %v2639_v33 = vor.u32 %v2063_v19, %v1645_v18  ;;  %v1910_v34 = vor.u32 %v2128_v22, %v1909_v17 }
  0x9b   : > { %1198 = vmatpush.bf16.msra.mxu2 %v1934_v60  ;;  %v2061_v27 = vld [vmem:[%s2844_s0 + $0x4] sm:$0xf]  ;;  %v1647_v28 = vld [vmem:[%s2844_s0 + $0x10] sm:$0xf0]  ;;  %v1890_v35 = vor.u32 %v2121_v23, %v1887_v24  ;;  %v1893_v36 = vld [vmem:[%s2524_s9 + $0x1c8] sm:$0xf]  ;;  %v1782_v42 = vor.u32 %v2096_v30, %v1781_v26 }
  0x9c   : > { %1224 = vmatpush.bf16.msrb.mxu3 %v1714_v48  ;;  %1184 = vmatpush.bf16.msra.mxu1 %v1806_v1  ;;  %v2153_v31 = vld [vmem:[%s2524_s9 + $0x2c4] sm:$0xf]  ;;  %v2015_v32 = vld [vmem:[%s2524_s9 + $0x2d0] sm:$0xf0]  ;;  %v2642_v38 = vor.u32 %v2061_v27, %v1647_v28  ;;  %v2124_v39 = vld [vmem:[%s2524_s9 + $0x1d4] sm:$0xf0] }
  0x9d   : > { %v2117_v40 = vld [vmem:[%s2524_s9 + $0x1a4] sm:$0xf]  ;;  %v1871_v41 = vld [vmem:[%s2524_s9 + $0x1b0] sm:$0xf0]  ;;  %v2018_v43 = vor.u32 %v2153_v31, %v2015_v32  ;;  %v1765_v44 = vld [vmem:[%s2524_s9 + $0xc8] sm:$0xf]  ;;  %v1894_v48 = vor.u32 %v2124_v39, %v1893_v36 }
  0x9e   : > { %1171 = vmatpush.bf16.msra.mxu0 %v1662_v9  ;;  %v2092_v45 = vld [vmem:[%s2524_s9 + $0xd4] sm:$0xf0]  ;;  %v2149_v46 = vld [vmem:[%s2524_s9 + $0x2a4] sm:$0xf]  ;;  %v1999_v47 = vld [vmem:[%s2524_s9 + $0x2b0] sm:$0xf0]  ;;  %v1874_v49 = vor.u32 %v2117_v40, %v1871_v41 }
  0x9f   : > { %1199 = vmatpush.bf16.msra.mxu2 %v1918_v13  ;;  %v1877_v50 = vld [vmem:[%s2524_s9 + $0x1a8] sm:$0xf]  ;;  %v2120_v51 = vld [vmem:[%s2524_s9 + $0x1b4] sm:$0xf0]  ;;  %v2113_v52 = vld [vmem:[%s2524_s9 + $0x184] sm:$0xf]  ;;  %v1766_v54 = vor.u32 %v2092_v45, %v1765_v44  ;;  %v2002_v55 = vor.u32 %v2149_v46, %v1999_v47 }
  0xa0   : > { %1225 = vmatpush.bf16.msrb.mxu3 %v1698_v0  ;;  %1185 = vmatpush.bf16.msra.mxu1 %v1790_v21  ;;  %v1855_v53 = vld [vmem:[%s2524_s9 + $0x190] sm:$0xf0]  ;;  %v1749_v56 = vld [vmem:[%s2524_s9 + $0xa8] sm:$0xf]  ;;  %v2088_v57 = vld [vmem:[%s2524_s9 + $0xb4] sm:$0xf0]  ;;  %v1878_v60 = vor.u32 %v2120_v51, %v1877_v50 }
  0xa1   : > { %1172 = vmatmul.bf16.vlgmr.msra.gmra.mxu0 %v2639_v33  ;;  %v2145_v58 = vld [vmem:[%s2524_s9 + $0x284] sm:$0xf]  ;;  %v1858_v61 = vor.u32 %v2113_v52, %v1855_v53  ;;  %v1861_v62 = vld [vmem:[%s2524_s9 + $0x188] sm:$0xf]  ;;  %v2116_v63 = vld [vmem:[%s2524_s9 + $0x194] sm:$0xf0]  ;;  %v1750_v2 = vor.u32 %v2088_v57, %v1749_v56 }
  0xa2   : > { %1234 = vmatpush.bf16.msrb.mxu0 %v1906_v14  ;;  %1200 = vmatmul.bf16.vlgmr.msra.gmra.mxu2 %v2634_v29  ;;  %v2109_v0 = vld [vmem:[%s2524_s9 + $0x164] sm:$0xf]  ;;  %v1839_v1 = vld [vmem:[%s2524_s9 + $0x170] sm:$0xf0]  ;;  %v1733_v4 = vld [vmem:[%s2524_s9 + $0x88] sm:$0xf]  ;;  %v1862_v9 = vor.u32 %v2116_v63, %v1861_v62 }
  0xa3   : > { %1269 = vmatpush.bf16.msrb.mxu2 %v1156_v59  ;;  %1186 = vmatmul.bf16.vlgmr.msra.gmra.mxu1 %v2642_v38  ;;  %v1983_v59 = vld [vmem:[%s2524_s9 + $0x290] sm:$0xf0]  ;;  %v2084_v5 = vld [vmem:[%s2524_s9 + $0x94] sm:$0xf0]  ;;  %v2141_v7 = vld [vmem:[%s2524_s9 + $0x264] sm:$0xf]  ;;  %v1842_v10 = vor.u32 %v2109_v0, %v1839_v1 }
  0xa4   : > { %1226 = vmatpush.bf16.msrb.mxu3 %v1682_v20  ;;  %1248 = vmatpush.bf16.msrb.mxu1 %v2034_v25  ;;  %v1986_v3 = vor.u32 %v2145_v58, %v1983_v59  ;;  %v1967_v8 = vld [vmem:[%s2524_s9 + $0x270] sm:$0xf0]  ;;  %v1845_v11 = vld [vmem:[%s2524_s9 + $0x168] sm:$0xf]  ;;  %v2112_v12 = vld [vmem:[%s2524_s9 + $0x174] sm:$0xf0]  ;;  %v1734_v15 = vor.u32 %v2084_v5, %v1733_v4 }
  0xa5   : > { %v2105_v13 = vld [vmem:[%s2524_s9 + $0x144] sm:$0xf]  ;;  %v1823_v14 = vld [vmem:[%s2524_s9 + $0x150] sm:$0xf0]  ;;  %v1970_v16 = vor.u32 %v2141_v7, %v1967_v8  ;;  %v1717_v17 = vld [vmem:[%s2524_s9 + $0x68] sm:$0xf]  ;;  %v1846_v21 = vor.u32 %v2112_v12, %v1845_v11 }
  0xa6   : > { %1235 = vmatpush.bf16.msrb.mxu0 %v1890_v35  ;;  %v2080_v18 = vld [vmem:[%s2524_s9 + $0x74] sm:$0xf0]  ;;  %v2137_v19 = vld [vmem:[%s2524_s9 + $0x244] sm:$0xf]  ;;  %v1951_v20 = vld [vmem:[%s2524_s9 + $0x250] sm:$0xf0]  ;;  %v1826_v22 = vor.u32 %v2105_v13, %v1823_v14 }
  0xa7   : > { %1290 = vmatpush.bf16.msra.mxu2 %v1910_v34  ;;  %v1829_v23 = vld [vmem:[%s2524_s9 + $0x148] sm:$0xf]  ;;  %v2108_v24 = vld [vmem:[%s2524_s9 + $0x154] sm:$0xf0]  ;;  %v2101_v25 = vld [vmem:[%s2524_s9 + $0x124] sm:$0xf]  ;;  %v1718_v28 = vor.u32 %v2080_v18, %v1717_v17  ;;  %v1954_v30 = vor.u32 %v2137_v19, %v1951_v20 }
  0xa8   : > { %1227 = vmatpush.bf16.msrb.mxu3 %v1666_v37  ;;  %1249 = vmatpush.bf16.msrb.mxu1 %v2018_v43  ;;  %v1807_v26 = vld [vmem:[%s2524_s9 + $0x130] sm:$0xf0]  ;;  %v2684_v27 = vld [vmem:[%s2524_s9 + $0x308] sm:$0xff]  ;;  %v2076_v32 = vld [vmem:[%s2524_s9 + $0x54] sm:$0xf0]  ;;  %v1830_v36 = vor.u32 %v2108_v24, %v1829_v23 }
  0xa9   : > { %v1701_v31 = vld [vmem:[%s2524_s9 + $0x48] sm:$0xf]  ;;  %v2133_v34 = vld [vmem:[%s2524_s9 + $0x224] sm:$0xf]  ;;  %v1935_v35 = vld [vmem:[%s2524_s9 + $0x230] sm:$0xf0]  ;;  %v1810_v37 = vor.u32 %v2101_v25, %v1807_v26  ;;  %v949_v40 = vunpack.c.l.b16 %v2684_v27 }
  0xaa   : > { %1236 = vmatpush.bf16.msrb.mxu0 %v1874_v49  ;;  %v1813_v39 = vld [vmem:[%s2524_s9 + $0x128] sm:$0xf]  ;;  %v2104_v41 = vld [vmem:[%s2524_s9 + $0x134] sm:$0xf0]  ;;  %v1791_v43 = vld [vmem:[%s2524_s9 + $0x110] sm:$0xf0]  ;;  %v1702_v44 = vor.u32 %v2076_v32, %v1701_v31  ;;  %v1938_v45 = vor.u32 %v2133_v34, %v1935_v35 }
  0xab   : > { %1291 = vmatpush.bf16.msra.mxu2 %v1894_v48  ;;  %1228 = vmatmul.bf16.vlgmr.msrb.gmra.mxu3 %v2639_v33  ;;  %v1685_v46 = vld [vmem:[%s2524_s9 + $0x28] sm:$0xf]  ;;  %v2160_v48 = vld [vmem:[%s2524_s9 + $0x2f4] sm:$0xf0]  ;;  %v2129_v50 = vld [vmem:[%s2524_s9 + $0x204] sm:$0xf]  ;;  %v1814_v52 = vor.u32 %v2104_v41, %v1813_v39 }
  0xac   : > { %1276 = vmatpush.bf16.msra.mxu3 %v1782_v42  ;;  %1250 = vmatpush.bf16.msrb.mxu1 %v2002_v55  ;;  %v2097_v42 = vld [vmem:[%s2524_s9 + $0x104] sm:$0xf]  ;;  %v2037_v47 = vld [vmem:[%s2524_s9 + $0x2e8] sm:$0xf]  ;;  %v2072_v49 = vld [vmem:[%s2524_s9 + $0x34] sm:$0xf0]  ;;  %v1049_v55 = vpack.c.b16 %v949_v40, %v949_v40 }
  0xad   : > { %v1919_v51 = vld [vmem:[%s2524_s9 + $0x210] sm:$0xf0]  ;;  %v1794_v53 = vor.u32 %v2097_v42, %v1791_v43  ;;  %v2038_v56 = vor.u32 %v2160_v48, %v2037_v47  ;;  %v2100_v57 = vld [vmem:[%s2524_s9 + $0x114] sm:$0xf0]  ;;  %v1669_v58 = vld [vmem:[%s2524_s9 + $0x8] sm:$0xf] }
  0xae   : > { %1237 = vmatpush.bf16.msrb.mxu0 %v1858_v61  ;;  %v2068_v59 = vld [vmem:[%s2524_s9 + $0x14] sm:$0xf0]  ;;  %v1922_v61 = vor.u32 %v2129_v50, %v1919_v51  ;;  %v2158_v62 = vld [vmem:[%s2524_s9 + $0x2ec] sm:$0xf]  ;;  %v2039_v63 = vld [vmem:[%s2524_s9 + $0x2f8] sm:$0xf0] }
  0xaf   : > { %1292 = vmatpush.bf16.msra.mxu2 %v1878_v60  ;;  %v1686_v60 = vor.u32 %v2072_v49, %v1685_v46  ;;  %v2021_v0 = vld [vmem:[%s2524_s9 + $0x2c8] sm:$0xf]  ;;  %v2156_v1 = vld [vmem:[%s2524_s9 + $0x2d4] sm:$0xf0]  ;;  %v1159_v5 = vsel %vm1151_vm0, %v1049_v55, 0 }
  0xb0   : > { %1277 = vmatpush.bf16.msra.mxu3 %v1766_v54  ;;  %1251 = vmatpush.bf16.msrb.mxu1 %v1986_v3  ;;  %v1797_v54 = vld [vmem:[%s2524_s9 + $0x108] sm:$0xf]  ;;  %v1783_v3 = vld [vmem:[%s2524_s9 + $0xf8] sm:$0xf0]  ;;  %v2126_v7 = vld [vmem:[%s2524_s9 + $0x1ec] sm:$0xf]  ;;  %v2022_v11 = vor.u32 %v2156_v1, %v2021_v0 }
  0xb1   : > { %v1798_v4 = vor.u32 %v2100_v57, %v1797_v54  ;;  %v1911_v8 = vld [vmem:[%s2524_s9 + $0x1f8] sm:$0xf0]  ;;  %v2154_v12 = vld [vmem:[%s2524_s9 + $0x2cc] sm:$0xf]  ;;  %v2152_v17 = vld [vmem:[%s2524_s9 + $0x2b4] sm:$0xf0] }
  0xb2   : > { %1238 = vmatpush.bf16.msrb.mxu0 %v1842_v10  ;;  %2044 = vmatmul.msk.bf16.vlgmr.msrb.gmra.mxu2 %vm1147_vm1, %v2559_v6  ;;  %v1670_v10 = vor.u32 %v2068_v59, %v1669_v58  ;;  %v2023_v13 = vld [vmem:[%s2524_s9 + $0x2d8] sm:$0xf0]  ;;  %v2090_v18 = vld [vmem:[%s2524_s9 + $0xcc] sm:$0xf]  ;;  %v2148_v31 = vld [vmem:[%s2524_s9 + $0x294] sm:$0xf0] }
  0xb3   : > { %1293 = vmatpush.bf16.msra.mxu2 %v1862_v9  ;;  %v2042_v9 = vor.u32 %v2158_v62, %v2039_v63  ;;  %v1767_v19 = vld [vmem:[%s2524_s9 + $0xd8] sm:$0xf0]  ;;  %v2122_v20 = vld [vmem:[%s2524_s9 + $0x1cc] sm:$0xf]  ;;  %v2140_v57 = vld [vmem:[%s2524_s9 + $0x254] sm:$0xf0] }
  0xb4   : > { %1278 = vmatpush.bf16.msra.mxu3 %v1750_v2  ;;  %1252 = vmatpush.bf16.msrb.mxu1 %v1970_v16  ;;  %v2094_v2 = vld [vmem:[%s2524_s9 + $0xec] sm:$0xf]  ;;  %v2005_v16 = vld [vmem:[%s2524_s9 + $0x2a8] sm:$0xf]  ;;  %v2007_v25 = vld [vmem:[%s2524_s9 + $0x2b8] sm:$0xf0]  ;;  %v1770_v26 = vor.u32 %v2090_v18, %v1767_v19 }
  0xb5   : > { %v1786_v14 = vor.u32 %v2094_v2, %v1783_v3  ;;  %v2006_v23 = vor.u32 %v2152_v17, %v2005_v16  ;;  %v2150_v24 = vld [vmem:[%s2524_s9 + $0x2ac] sm:$0xf]  ;;  %v1751_v34 = vld [vmem:[%s2524_s9 + $0xb8] sm:$0xf0]  ;;  %v1925_v18 = vld [vmem:[%s2524_s9 + $0x208] sm:$0xf] }
  0xb6   : > { %1239 = vmatpush.bf16.msrb.mxu0 %v1826_v22  ;;  %v2026_v22 = vor.u32 %v2154_v12, %v2023_v13  ;;  %v2086_v32 = vld [vmem:[%s2524_s9 + $0xac] sm:$0xf]  ;;  %v1991_v41 = vld [vmem:[%s2524_s9 + $0x298] sm:$0xf0]  ;;  %v950_v12 = vunpack.c.h.b16 %v2684_v27  ;;  %v2132_v19 = vld [vmem:[%s2524_s9 + $0x214] sm:$0xf0] }
  0xb7   : > { %1294 = vmatpush.bf16.msra.mxu2 %v1846_v21  ;;  %v1895_v21 = vld [vmem:[%s2524_s9 + $0x1d8] sm:$0xf0]  ;;  %v2118_v35 = vld [vmem:[%s2524_s9 + $0x1ac] sm:$0xf]  ;;  %v1754_v42 = vor.u32 %v2086_v32, %v1751_v34 }
  0xb8   : > { %1279 = vmatpush.bf16.msra.mxu3 %v1734_v15  ;;  %1253 = vmatpush.bf16.msrb.mxu1 %v1954_v30  ;;  %v1914_v15 = vor.u32 %v2126_v7, %v1911_v8  ;;  %v1989_v30 = vld [vmem:[%s2524_s9 + $0x288] sm:$0xf]  ;;  %v2146_v40 = vld [vmem:[%s2524_s9 + $0x28c] sm:$0xf]  ;;  %v1735_v47 = vld [vmem:[%s2524_s9 + $0x98] sm:$0xf0] }
  0xb9   : > { %v1990_v39 = vor.u32 %v2148_v31, %v1989_v30  ;;  %v2082_v46 = vld [vmem:[%s2524_s9 + $0x8c] sm:$0xf]  ;;  %v1863_v49 = vld [vmem:[%s2524_s9 + $0x198] sm:$0xf0]  ;;  %v1994_v50 = vor.u32 %v2146_v40, %v1991_v41 }
  0xba   : > { %1240 = vmatpush.bf16.msrb.mxu0 %v1810_v37  ;;  %v2010_v37 = vor.u32 %v2150_v24, %v2007_v25  ;;  %v2114_v48 = vld [vmem:[%s2524_s9 + $0x18c] sm:$0xf]  ;;  %v1738_v54 = vor.u32 %v2082_v46, %v1735_v47  ;;  %v1719_v59 = vld [vmem:[%s2524_s9 + $0x78] sm:$0xf0]  ;;  %v1050_v24 = vpack.c.b16 %v950_v12, %v950_v12  ;;  %v1926_v25 = vor.u32 %v2132_v19, %v1925_v18 }
  0xbb   : > { %1295 = vmatpush.bf16.msra.mxu2 %v1830_v36  ;;  %v1879_v36 = vld [vmem:[%s2524_s9 + $0x1b8] sm:$0xf0]  ;;  %v1866_v55 = vor.u32 %v2114_v48, %v1863_v49  ;;  %v2078_v58 = vld [vmem:[%s2524_s9 + $0x6c] sm:$0xf]  ;;  %v2245_v12 = vmov 0.0  }
  0xbc   : > { %1280 = vmatpush.bf16.msra.mxu3 %v1718_v28  ;;  %1254 = vmatpush.bf16.msrb.mxu1 %v1938_v45  ;;  %v1898_v28 = vor.u32 %v2122_v20, %v1895_v21  ;;  %v1882_v43 = vor.u32 %v2118_v35, %v1879_v36  ;;  %v2144_v45 = vld [vmem:[%s2524_s9 + $0x274] sm:$0xf0]  ;;  %v2138_v0 = vld [vmem:[%s2524_s9 + $0x24c] sm:$0xf]  ;;  %v1959_v1 = vld [vmem:[%s2524_s9 + $0x258] sm:$0xf0]  ;;  %v1722_v2 = vor.u32 %v2078_v58, %v1719_v59 }
  0xbd   : > { %v2074_v7 = vld [vmem:[%s2524_s9 + $0x4c] sm:$0xf]  ;;  %v1703_v8 = vld [vmem:[%s2524_s9 + $0x58] sm:$0xf0] }
  0xbe   : > { %1241 = vmatpush.bf16.msrb.mxu0 %v1794_v53  ;;  %v1975_v53 = vld [vmem:[%s2524_s9 + $0x278] sm:$0xf0]  ;;  %v1706_v16 = vor.u32 %v2074_v7, %v1703_v8  ;;  %v2070_v20 = vld [vmem:[%s2524_s9 + $0x2c] sm:$0xf] }
  0xbf   : > { %1296 = vmatpush.bf16.msra.mxu2 %v1814_v52  ;;  %v2142_v52 = vld [vmem:[%s2524_s9 + $0x26c] sm:$0xf]  ;;  %v1687_v21 = vld [vmem:[%s2524_s9 + $0x38] sm:$0xf0] }
  0xc0   : > { %1281 = vmatpush.bf16.msra.mxu3 %v1702_v44  ;;  %1255 = vmatpush.bf16.msrb.mxu1 %v1922_v61  ;;  %v1973_v44 = vld [vmem:[%s2524_s9 + $0x268] sm:$0xf]  ;;  %v1847_v61 = vld [vmem:[%s2524_s9 + $0x178] sm:$0xf0]  ;;  %v1978_v62 = vor.u32 %v2142_v52, %v1975_v53  ;;  %v1690_v30 = vor.u32 %v2070_v20, %v1687_v21  ;;  %v2066_v32 = vld [vmem:[%s2524_s9 + $0xc] sm:$0xf] }
  0xc1   : > { %1242 = vmatmul.bf16.vlgmr.msrb.gmra.mxu0 %v2642_v38  ;;  %v1974_v51 = vor.u32 %v2144_v45, %v1973_v44  ;;  %v1815_v27 = vld [vmem:[%s2524_s9 + $0x138] sm:$0xf0]  ;;  %v2098_v35 = vld [vmem:[%s2524_s9 + $0x10c] sm:$0xf] }
  0xc2   : > { %1304 = vmatpush.bf16.msra.mxu0 %v2038_v56  ;;  %v1957_v56 = vld [vmem:[%s2524_s9 + $0x248] sm:$0xf]  ;;  %v1671_v34 = vld [vmem:[%s2524_s9 + $0x18] sm:$0xf0] }
  0xc3   : > { %1297 = vmatpush.bf16.msra.mxu2 %v1798_v4  ;;  %1256 = vmatmul.bf16.vlgmr.msrb.gmra.mxu1 %v2634_v29  ;;  %v1958_v63 = vor.u32 %v2140_v57, %v1957_v56  ;;  %v1941_v4 = vld [vmem:[%s2524_s9 + $0x228] sm:$0xf]  ;;  %v1799_v36 = vld [vmem:[%s2524_s9 + $0x118] sm:$0xf0]  ;;  %v1674_v40 = vor.u32 %v2066_v32, %v1671_v34 }
  0xc4   : > { %1282 = vmatpush.bf16.msra.mxu3 %v1686_v60  ;;  %1325 = vmatpush.bf16.msra.mxu1 %v1159_v5  ;;  %v2110_v60 = vld [vmem:[%s2524_s9 + $0x16c] sm:$0xf]  ;;  %v2136_v5 = vld [vmem:[%s2524_s9 + $0x234] sm:$0xf0]  ;;  %v1802_v41 = vor.u32 %v2098_v35, %v1799_v36 }
  0xc5   : > { %v1850_v3 = vor.u32 %v2110_v60, %v1847_v61  ;;  %v1942_v13 = vor.u32 %v2136_v5, %v1941_v4 }
  0xc6   : > { %1305 = vmatpush.bf16.msra.mxu0 %v2022_v11  ;;  %1298 = vmatmul.bf16.vlgmr.msra.gmra.mxu2 %v2642_v38  ;;  %v1962_v11 = vor.u32 %v2138_v0, %v1959_v1 }
  0xc7   : > { %1360 = vmatpush.bf16.msrb.mxu2 %v2042_v9  ;;  %v2106_v9 = vld [vmem:[%s2524_s9 + $0x14c] sm:$0xf] }
  0xc8   : > { %1283 = vmatpush.bf16.msra.mxu3 %v1670_v10  ;;  %1346 = vmatpush.bf16.msrb.mxu1 %v1914_v15  ;;  %v1831_v10 = vld [vmem:[%s2524_s9 + $0x158] sm:$0xf0] }
  0xc9   : > { %v1943_v15 = vld [vmem:[%s2524_s9 + $0x238] sm:$0xf0]  ;;  %v1834_v17 = vor.u32 %v2106_v9, %v1831_v10 }
  0xca   : > { %1306 = vmatpush.bf16.msra.mxu0 %v2006_v23 }
  0xcb   : > { %1361 = vmatpush.bf16.msrb.mxu2 %v2026_v22  ;;  %1284 = vmatmul.bf16.vlgmr.msra.gmra.mxu3 %v2639_v33  ;;  %v2102_v22 = vld [vmem:[%s2524_s9 + $0x12c] sm:$0xf] }
  0xcc   : > { %1332 = vmatpush.bf16.msrb.mxu3 %v1786_v14  ;;  %1347 = vmatpush.bf16.msrb.mxu1 %v1898_v28  ;;  %v2134_v14 = vld [vmem:[%s2524_s9 + $0x22c] sm:$0xf]  ;;  %v1927_v28 = vld [vmem:[%s2524_s9 + $0x218] sm:$0xf0]  ;;  %v1818_v31 = vor.u32 %v2102_v22, %v1815_v27 }
  0xcd   : > { %v1946_v23 = vor.u32 %v2134_v14, %v1943_v15 }
  0xce   : > { %1307 = vmatpush.bf16.msra.mxu0 %v1990_v39  ;;  %v1162_v39 = vsel %vm1151_vm0, %v1050_v24, 0 }
  0xcf   : > { %1362 = vmatpush.bf16.msrb.mxu2 %v2010_v37 }
  0xd0   : > { %1333 = vmatpush.bf16.msrb.mxu3 %v1770_v26  ;;  %1348 = vmatpush.bf16.msrb.mxu1 %v1882_v43  ;;  %v2130_v26 = vld [vmem:[%s2524_s9 + $0x20c] sm:$0xf]  ;;  %s1641_s9 = sshll.u32 %s2235_s17, 2 }
  0xd1   : > { %v1930_v37 = vor.u32 %v2130_v26, %v1927_v28  ;;  %p504_p11 = scmp.lt.s32.totalorder %s1641_s9, 15 }
  0xd2   : > { %1308 = vmatpush.bf16.msra.mxu0 %v1974_v51 }
  0xd3   : > { %1363 = vmatpush.bf16.msrb.mxu2 %v1994_v50  ;;  %2045 = vmatmul.msk.bf16.vlgmr.msra.gmra.mxu1 %vm1147_vm1, %v2559_v6  ;;  %s2857_s9 = smov (!%p504_p11, %s1641_s9), 15 }
  0xd4   : > { %1334 = vmatpush.bf16.msrb.mxu3 %v1754_v42  ;;  %1349 = vmatpush.bf16.msrb.mxu1 %v1866_v55  ;;  %s506_s12 = scalar_lea.vmem %s2846_s2, %s2857_s9  ;;  %s511_s21 = scalar_lea.vmem %s2847_s3, %s2857_s9 }
  0xd5   : > { %v2788_v48 = vld [vmem:[%s506_s12] sm:$0xf] }
  0xd6   : > { %1309 = vmatpush.bf16.msra.mxu0 %v1958_v63  ;;  %v1417_v51 = vperm.slane %v2788_v48, 0  ;;  %v2794_v53 = vld [vmem:[%s511_s21] sm:$0xf] }
  0xd7   : > { %1364 = vmatpush.bf16.msrb.mxu2 %v1978_v62  ;;  %v1435_v56 = vperm.slane %v2794_v53, 0  ;;  %v1418_v62 = vperm.slane %v2788_v48, 1 }
  0xd8   : > { %1335 = vmatpush.bf16.msrb.mxu3 %v1738_v54  ;;  %1350 = vmatpush.bf16.msrb.mxu1 %v1850_v3 }
  0xda   : > { %1310 = vmatpush.bf16.msra.mxu0 %v1942_v13 }
  0xdb   : > { %1365 = vmatpush.bf16.msrb.mxu2 %v1962_v11 }
  0xdc   : > { %1336 = vmatpush.bf16.msrb.mxu3 %v1722_v2  ;;  %1351 = vmatpush.bf16.msrb.mxu1 %v1834_v17  ;;  %v1436_v2 = vperm.slane %v2794_v53, 1 }
  0xde   : > { %1311 = vmatpush.bf16.msra.mxu0 %v1926_v25 }
  0xdf   : > { %1366 = vmatpush.bf16.msrb.mxu2 %v1946_v23 }
  0xe0   : > { %1337 = vmatpush.bf16.msrb.mxu3 %v1706_v16  ;;  %1352 = vmatpush.bf16.msrb.mxu1 %v1818_v31 }
  0xe1   : > { %1312 = vmatmul.bf16.vlgmr.msra.gmra.mxu0 %v2634_v29 }
  0xe2   : > { %1381 = vmatpush.bf16.msrb.mxu0 %v1162_v39 }
  0xe3   : > { %1367 = vmatpush.bf16.msrb.mxu2 %v1930_v37  ;;  %v1419_v37 = vperm.slane %v2788_v48, 2 }
  0xe4   : > { %1338 = vmatpush.bf16.msrb.mxu3 %v1690_v30  ;;  %1353 = vmatpush.bf16.msrb.mxu1 %v1802_v41 }
  0xe6   : > { %1368 = vmatmul.bf16.vlgmr.msrb.gmra.mxu2 %v2634_v29 }
  0xe7   : > { %1354 = vmatmul.bf16.vlgmr.msrb.gmra.mxu1 %v2642_v38 }
  0xe8   : > { %1339 = vmatpush.bf16.msrb.mxu3 %v1674_v40 }
  0xeb   : > { %1340 = vmatmul.bf16.vlgmr.msrb.gmra.mxu3 %v2639_v33 }
  0xf1   : > { %2046 = vmatmul.msk.bf16.vlgmr.msrb.gmra.mxu0 %vm1147_vm1, %v2559_v6 }
 0x10e   : > { %v1215_v42 = vpop.f32.mrf.mxu3 }
 0x116   : > { %v1217_v46 = vpop.f32.mrf.mxu3 }
 0x11e   : > { %v1173_v43 = vpop.f32.mrf.mxu0 }
 0x120   : > { %v1187_v44 = vpop.f32.mrf.mxu1 }
 0x121   : > { %v1188_v47 = vadd.f32 %v1187_v44, %v1173_v43 }
 0x125   : > { %v1201_v45 = vpop.f32.mrf.mxu2 }
 0x126   : > { %v1175_v29 = vpop.f32.mrf.mxu0  ;;  %v1202_v33 = vadd.f32 %v1201_v45, %v1188_v47  ;;  %v1437_v45 = vperm.slane %v2794_v53, 2 }
 0x128   : > { %v1189_v38 = vpop.f32.mrf.mxu1  ;;  %v1216_v50 = vadd.f32 %v1215_v42, %v1202_v33 }
 0x129   : > { %v1190_v52 = vadd.f32 %v1189_v38, %v1175_v29  ;;  %v1420_v29 = vperm.slane %v2788_v48, 3 }
 0x12a   : > { %v1425_v55 = vmul.f32 %v1417_v51, %v1216_v50  ;;  %v1438_v50 = vperm.slane %v2794_v53, 3 }
 0x12c   : > { %v1443_v63 = vadd.f32 %v1435_v56, %v1425_v55 }
 0x12d   : > { %v1203_v49 = vpop.f32.mrf.mxu2 }
 0x12e   : > { %v1229_v6 = vpop.f32.mrf.mxu3  ;;  %v1204_v57 = vadd.f32 %v1203_v49, %v1190_v52  ;;  %vm1451_vm2 = vcmp.ge.f32.partialorder %v1443_v63, 1.0 }
 0x12f   : > { %v2047_v13 = vsel %vm1451_vm2, 1.0, %v2245_v12 }
 0x130   : > { %v1218_v0 = vadd.f32 %v1217_v46, %v1204_v57 }
 0x132   : > { %v1429_v7 = vmul.f32 %v1417_v51, %v1218_v0 }
 0x134   : > { %v1447_v16 = vadd.f32 %v1435_v56, %v1429_v7 }
 0x135   : > { %v1271_v60 = vpop.f32.mrf.mxu2 }
 0x136   : > { %v1231_v3 = vpop.f32.mrf.mxu3  ;;  %vm1455_vm4 = vcmp.ge.f32.partialorder %v1447_v16, 1.0 }
 0x137   : > { %v2051_v22 = vsel %vm1455_vm4, 1.0, %v2245_v12 }
 0x13d   : > { %v1273_v15 = vpop.f32.mrf.mxu2 }
 0x13e   : > { %v1243_v54 = vpop.f32.mrf.mxu0 }
 0x13f   : > { %v1244_v58 = vadd.f32 %v1243_v54, %v1229_v6 }
 0x140   : > { %v1257_v59 = vpop.f32.mrf.mxu1 }
 0x141   : > { %v1258_v61 = vadd.f32 %v1257_v59, %v1244_v58 }
 0x143   : > { %v1272_v1 = vadd.f32 %v1271_v60, %v1258_v61 }
 0x145   : > { %v1426_v4 = vmul.f32 %v1418_v62, %v1272_v1 }
 0x146   : > { %v1245_v5 = vpop.f32.mrf.mxu0 }
 0x147   : > { %v1444_v8 = vadd.f32 %v1436_v2, %v1426_v4  ;;  %v1246_v9 = vadd.f32 %v1245_v5, %v1231_v3 }
 0x148   : > { %v1259_v10 = vpop.f32.mrf.mxu1 }
 0x149   : > { %vm1452_vm3 = vcmp.ge.f32.partialorder %v1444_v8, 1.0  ;;  %v1260_v11 = vadd.f32 %v1259_v10, %v1246_v9  ;;  %v1299_v25 = vpop.f32.mrf.mxu2 }
 0x14a   : > { %v2048_v14 = vsel %vm1452_vm3, 1.0, %v2245_v12 }
 0x14b   : > { %v1475_v17 = vpack.c.bf16 %v2048_v14, %v2047_v13  ;;  %v1274_v18 = vadd.f32 %v1273_v15, %v1260_v11 }
 0x14d   : > { %1479 = vst [vmem:[%s2803_s23] sm:$0xff] %v1475_v17  ;;  %v1430_v19 = vmul.f32 %v1418_v62, %v1274_v18 }
 0x14e   : > { %v1285_v24 = vpop.f32.mrf.mxu3 }
 0x14f   : > { %v1448_v20 = vadd.f32 %v1436_v2, %v1430_v19  ;;  %v1300_v30 = vadd.f32 %v1299_v25, %v1285_v24 }
 0x150   : > { %v1327_v21 = vpop.f32.mrf.mxu1 }
 0x151   : > { %vm1456_vm5 = vcmp.ge.f32.partialorder %v1448_v20, 1.0  ;;  %v1301_v32 = vpop.f32.mrf.mxu2 }
 0x152   : > { %v2052_v27 = vsel %vm1456_vm5, 1.0, %v2245_v12 }
 0x153   : > { %v1477_v23 = vpack.c.bf16 %v2052_v27, %v2051_v22 }
 0x154   : > { %v1508_v5 = vld [vmem:[%s2803_s23] sm:$0xff] (%p2306_p6) }
 0x155   : > { %1481 = vst [vmem:[%s2803_s23 + $0x10] sm:$0xff] %v1477_v23 }
 0x156   : > { %v1287_v31 = vpop.f32.mrf.mxu3  ;;  %1509 = vst [vmem:[%s1495_s27] sm:$0xff] (%p2306_p6), %v1508_v5 }
 0x157   : > { %v1302_v40 = vadd.f32 %v1301_v32, %v1287_v31 }
 0x158   : > { %v1329_v26 = vpop.f32.mrf.mxu1 }
 0x15c   : > { %v1512_v8 = vld [vmem:[%s2803_s23 + $0x10] sm:$0xff] (%p2306_p6) }
 0x15d   : > { %1513 = vst [vmem:[%s1495_s27 + $0x40] sm:$0xff] (%p2306_p6), %v1512_v8 }
 0x15e   : > { %v1313_v28 = vpop.f32.mrf.mxu0 }
 0x15f   : > { %v1314_v34 = vadd.f32 %v1313_v28, %v1300_v30 }
 0x161   : > { %v1328_v36 = vadd.f32 %v1327_v21, %v1314_v34 }
 0x163   : > { %v1427_v44 = vmul.f32 %v1419_v37, %v1328_v36 }
 0x164   : > { %v1355_v39 = vpop.f32.mrf.mxu1 }
 0x165   : > { %v1445_v38 = vadd.f32 %v1437_v45, %v1427_v44 }
 0x166   : > { %v1315_v35 = vpop.f32.mrf.mxu0 }
 0x167   : > { %v1316_v46 = vadd.f32 %v1315_v35, %v1302_v40  ;;  %vm1453_vm6 = vcmp.ge.f32.partialorder %v1445_v38, 1.0 }
 0x168   : > { %v2049_v48 = vsel %vm1453_vm6, 1.0, %v2245_v12 }
 0x169   : > { %v1369_v42 = vpop.f32.mrf.mxu2  ;;  %v1330_v49 = vadd.f32 %v1329_v26, %v1316_v46 }
 0x16b   : > { %v1431_v56 = vmul.f32 %v1419_v37, %v1330_v49 }
 0x16c   : > { %v1357_v51 = vpop.f32.mrf.mxu1 }
 0x16d   : > { %v1449_v62 = vadd.f32 %v1437_v45, %v1431_v56 }
 0x16e   : > { %v1341_v41 = vpop.f32.mrf.mxu3  ;;  %v1383_v33 = vpop.f32.mrf.mxu0 }
 0x16f   : > { %v1356_v43 = vadd.f32 %v1355_v39, %v1341_v41  ;;  %vm1457_vm8 = vcmp.ge.f32.partialorder %v1449_v62, 1.0 }
 0x170   : > { %v2053_v2 = vsel %vm1457_vm8, 1.0, %v2245_v12 }
 0x171   : > { %v1370_v47 = vadd.f32 %v1369_v42, %v1356_v43  ;;  %v1371_v58 = vpop.f32.mrf.mxu2 }
 0x173   : > { %v1384_v6 = vadd.f32 %v1383_v33, %v1370_v47 }
 0x175   : > { %v1428_v52 = vmul.f32 %v1420_v29, %v1384_v6 }
 0x176   : > { %v1343_v54 = vpop.f32.mrf.mxu3  ;;  %v1385_v61 = vpop.f32.mrf.mxu0 }
 0x177   : > { %v1358_v55 = vadd.f32 %v1357_v51, %v1343_v54  ;;  %v1446_v57 = vadd.f32 %v1438_v50, %v1428_v52 }
 0x179   : > { %vm1454_vm7 = vcmp.ge.f32.partialorder %v1446_v57, 1.0  ;;  %v1372_v59 = vadd.f32 %v1371_v58, %v1358_v55 }
 0x17a   : > { %v2050_v60 = vsel %vm1454_vm7, 1.0, %v2245_v12 }
 0x17b   : > { %v1476_v63 = vpack.c.bf16 %v2050_v60, %v2049_v48  ;;  %v1386_v53 = vadd.f32 %v1385_v61, %v1372_v59 }
 0x17d   : > { %1480 = vst [vmem:[%s2803_s23 + $0x8] sm:$0xff] %v1476_v63  ;;  %v1432_v0 = vmul.f32 %v1420_v29, %v1386_v53 }
 0x17f   : > { %v1450_v1 = vadd.f32 %v1438_v50, %v1432_v0 }
 0x181   : > { %vm1458_vm9 = vcmp.ge.f32.partialorder %v1450_v1, 1.0  ;;  %1489 = sbr.rel (!%p2306_p6) target bundleno = 398 (0x18e), region = 71 }
 0x182   : > { %v2054_v3 = vsel %vm1458_vm9, 1.0, %v2245_v12 }
 0x183   : > { %v1478_v4 = vpack.c.bf16 %v2054_v3, %v2053_v2 }
 0x184   : > { %v1510_v7 = vld [vmem:[%s2803_s23 + $0x8] sm:$0xff] (%p2306_p6) }
 0x185   : > { %1482 = vst [vmem:[%s2803_s23 + $0x18] sm:$0xff] %v1478_v4 }
 0x186   : > { %1511 = vst [vmem:[%s1495_s27 + $0x8] sm:$0xff] %v1510_v7 }
 0x18c   : > { %v1514_v9 = vld [vmem:[%s2803_s23 + $0x18] sm:$0xff] }
 0x18d   : > { %1515 = vst [vmem:[%s1495_s27 + $0x48] sm:$0xff] %v1514_v9 }
 0x18e PF: > { %s14_s19 = sadd.s32 1, %s2243_s19   ;;  %s2850_s15 = smov %s2231_s16 }
 0x18f   : > { %p11_p12 = scmp.ge.s32.totalorder %s14_s19, 6   ;;  %s2851_s16 = smov %s2311_s25 }
 0x190   : > { %s2852_s17 = smov %s2239_s18  ;;  %s2853_s18 = smov %s2855_s20 }
 0x191   :  { %13 = sbr.rel (!%p11_p12) target bundleno = 3 (0x3), region = 134 }

// kernel: mnist_net_forward.11
= control target key start
LH: loop header
LB: loop body
LE: loop exit
PB: predicated region body
PF: predicated region fallthrough
CT: control target
= control target key end

     0   :  { %s2767_s1 = inlined_call_operand.vmem [shape: bf16[2048,128], index: 1, kind: input, shape index: {}]   ;;  %s2768_s0 = inlined_call_operand.vmem [shape: bf16[16,2048], index: 0, kind: input, shape index: {}]   ;;  %s2769_s2 = inlined_call_operand.vmem [shape: f32[1,128], index: 2, kind: input, shape index: {}]   ;;  %s2770_s3 = inlined_call_operand.vmem [shape: bf16[128,128], index: 3, kind: input, shape index: {}]   ;;  %s2771_s4 = inlined_call_operand.vmem [shape: f32[16,128], index: 4, kind: output, shape index: {}]  }
   0x1   :  { %v2097_v0 = vld [vmem:[%s2767_s1 + $0x38] sm:$0xff]  ;;  %v2096_v4 = vld [vmem:[%s2767_s1 + $0x30] sm:$0xff]  ;;  %v2095_v8 = vld [vmem:[%s2767_s1 + $0x28] sm:$0xff] }
   0x2   :  { %v2105_v1 = vld [vmem:[%s2767_s1 + $0x78] sm:$0xff]  ;;  %1137 = vmatpush.bf16.msra.mxu0 %v2097_v0  ;;  %v2104_v5 = vld [vmem:[%s2767_s1 + $0x70] sm:$0xff]  ;;  %v2103_v9 = vld [vmem:[%s2767_s1 + $0x68] sm:$0xff] }
   0x3   :  { %v2113_v2 = vld [vmem:[%s2767_s1 + $0xb8] sm:$0xff]  ;;  %1151 = vmatpush.bf16.msra.mxu1 %v2105_v1  ;;  %v2112_v6 = vld [vmem:[%s2767_s1 + $0xb0] sm:$0xff]  ;;  %v2111_v10 = vld [vmem:[%s2767_s1 + $0xa8] sm:$0xff] }
   0x4   :  { %v2121_v3 = vld [vmem:[%s2767_s1 + $0xf8] sm:$0xff]  ;;  %1165 = vmatpush.bf16.msra.mxu2 %v2113_v2  ;;  %v2120_v7 = vld [vmem:[%s2767_s1 + $0xf0] sm:$0xff]  ;;  %v2119_v11 = vld [vmem:[%s2767_s1 + $0xe8] sm:$0xff] }
   0x5   :  { %1179 = vmatpush.bf16.msra.mxu3 %v2121_v3  ;;  %v2094_v12 = vld [vmem:[%s2767_s1 + $0x20] sm:$0xff]  ;;  %v2093_v16 = vld [vmem:[%s2767_s1 + $0x18] sm:$0xff]  ;;  %v2092_v20 = vld [vmem:[%s2767_s1 + $0x10] sm:$0xff] }
   0x6   :  { %1138 = vmatpush.bf16.msra.mxu0 %v2096_v4  ;;  %v2102_v13 = vld [vmem:[%s2767_s1 + $0x60] sm:$0xff]  ;;  %v2101_v17 = vld [vmem:[%s2767_s1 + $0x58] sm:$0xff]  ;;  %v2100_v21 = vld [vmem:[%s2767_s1 + $0x50] sm:$0xff] }
   0x7   :  { %1152 = vmatpush.bf16.msra.mxu1 %v2104_v5  ;;  %v2110_v14 = vld [vmem:[%s2767_s1 + $0xa0] sm:$0xff]  ;;  %v2109_v18 = vld [vmem:[%s2767_s1 + $0x98] sm:$0xff]  ;;  %v2108_v22 = vld [vmem:[%s2767_s1 + $0x90] sm:$0xff] }
   0x8   :  { %1166 = vmatpush.bf16.msra.mxu2 %v2112_v6  ;;  %v2118_v15 = vld [vmem:[%s2767_s1 + $0xe0] sm:$0xff]  ;;  %v2117_v19 = vld [vmem:[%s2767_s1 + $0xd8] sm:$0xff]  ;;  %v2116_v23 = vld [vmem:[%s2767_s1 + $0xd0] sm:$0xff] }
   0x9   :  { %1180 = vmatpush.bf16.msra.mxu3 %v2120_v7  ;;  %v2091_v24 = vld [vmem:[%s2767_s1 + $0x8] sm:$0xff]  ;;  %v2090_v28 = vld [vmem:[%s2767_s1] sm:$0xff]  ;;  %v2129_v32 = vld [vmem:[%s2767_s1 + $0x138] sm:$0xff] }
   0xa   :  { %1139 = vmatpush.bf16.msra.mxu0 %v2095_v8  ;;  %v2099_v25 = vld [vmem:[%s2767_s1 + $0x48] sm:$0xff]  ;;  %v2098_v29 = vld [vmem:[%s2767_s1 + $0x40] sm:$0xff]  ;;  %v2137_v33 = vld [vmem:[%s2767_s1 + $0x178] sm:$0xff] }
   0xb   :  { %1153 = vmatpush.bf16.msra.mxu1 %v2103_v9  ;;  %v2107_v26 = vld [vmem:[%s2767_s1 + $0x88] sm:$0xff]  ;;  %v2106_v30 = vld [vmem:[%s2767_s1 + $0x80] sm:$0xff]  ;;  %v2145_v42 = vld [vmem:[%s2767_s1 + $0x1b8] sm:$0xff] }
   0xc   :  { %1167 = vmatpush.bf16.msra.mxu2 %v2111_v10  ;;  %v2115_v27 = vld [vmem:[%s2767_s1 + $0xc8] sm:$0xff]  ;;  %v2114_v31 = vld [vmem:[%s2767_s1 + $0xc0] sm:$0xff]  ;;  %v2153_v43 = vld [vmem:[%s2767_s1 + $0x1f8] sm:$0xff] }
   0xd   :  { %1181 = vmatpush.bf16.msra.mxu3 %v2119_v11  ;;  %v1464_v34 = vld [vmem:[%s2768_s0] sm:$0xf]  ;;  %v1472_v36 = vld [vmem:[%s2768_s0 + $0x8] sm:$0xf]  ;;  %v2074_v38 = vld [vmem:[%s2768_s0 + $0x4] sm:$0xf] }
   0xe   :  { %1140 = vmatpush.bf16.msra.mxu0 %v2094_v12  ;;  %v2082_v35 = vld [vmem:[%s2768_s0 + $0x3c] sm:$0xf0]  ;;  %v2083_v37 = vld [vmem:[%s2768_s0 + $0x44] sm:$0xf0]  ;;  %v1466_v39 = vld [vmem:[%s2768_s0 + $0x40] sm:$0xf0] }
   0xf   :  { %1154 = vmatpush.bf16.msra.mxu1 %v2102_v13  ;;  %v2075_v40 = vld [vmem:[%s2768_s0 + $0xc] sm:$0xf]  ;;  %v1465_v44 = vor.u32 %v2082_v35, %v1464_v34  ;;  %v1473_v45 = vor.u32 %v2083_v37, %v1472_v36  ;;  %v1469_v46 = vor.u32 %v2074_v38, %v1466_v39  ;;  %v2128_v48 = vld [vmem:[%s2767_s1 + $0x130] sm:$0xff]  ;;  %v2126_v56 = vld [vmem:[%s2767_s1 + $0x120] sm:$0xff] }
  0x10   :  { %1168 = vmatpush.bf16.msra.mxu2 %v2110_v14  ;;  %v1474_v41 = vld [vmem:[%s2768_s0 + $0x48] sm:$0xf0]  ;;  %v2136_v49 = vld [vmem:[%s2767_s1 + $0x170] sm:$0xff]  ;;  %v2134_v57 = vld [vmem:[%s2767_s1 + $0x160] sm:$0xff] }
  0x11   :  { %1182 = vmatpush.bf16.msra.mxu3 %v2118_v15  ;;  %v1477_v47 = vor.u32 %v2075_v40, %v1474_v41  ;;  %v2144_v50 = vld [vmem:[%s2767_s1 + $0x1b0] sm:$0xff]  ;;  %v2127_v52 = vld [vmem:[%s2767_s1 + $0x128] sm:$0xff]  ;;  %v2142_v58 = vld [vmem:[%s2767_s1 + $0x1a0] sm:$0xff] }
  0x12   :  { %1141 = vmatpush.bf16.msra.mxu0 %v2093_v16  ;;  %v2152_v51 = vld [vmem:[%s2767_s1 + $0x1f0] sm:$0xff]  ;;  %v2135_v53 = vld [vmem:[%s2767_s1 + $0x168] sm:$0xff]  ;;  %v2150_v59 = vld [vmem:[%s2767_s1 + $0x1e0] sm:$0xff] }
  0x13   :  { %1155 = vmatpush.bf16.msra.mxu1 %v2101_v17  ;;  %v2143_v54 = vld [vmem:[%s2767_s1 + $0x1a8] sm:$0xff]  ;;  %v2125_v60 = vld [vmem:[%s2767_s1 + $0x118] sm:$0xff]  ;;  %v2124_v0 = vld [vmem:[%s2767_s1 + $0x110] sm:$0xff] }
  0x14   :  { %1169 = vmatpush.bf16.msra.mxu2 %v2109_v18  ;;  %v2151_v55 = vld [vmem:[%s2767_s1 + $0x1e8] sm:$0xff]  ;;  %v2133_v61 = vld [vmem:[%s2767_s1 + $0x158] sm:$0xff]  ;;  %v2132_v1 = vld [vmem:[%s2767_s1 + $0x150] sm:$0xff] }
  0x15   :  { %1183 = vmatpush.bf16.msra.mxu3 %v2117_v19  ;;  %v2141_v62 = vld [vmem:[%s2767_s1 + $0x198] sm:$0xff]  ;;  %v2140_v2 = vld [vmem:[%s2767_s1 + $0x190] sm:$0xff]  ;;  %v2123_v4 = vld [vmem:[%s2767_s1 + $0x108] sm:$0xff] }
  0x16   :  { %1142 = vmatpush.bf16.msra.mxu0 %v2092_v20  ;;  %v2149_v63 = vld [vmem:[%s2767_s1 + $0x1d8] sm:$0xff]  ;;  %v2148_v3 = vld [vmem:[%s2767_s1 + $0x1d0] sm:$0xff]  ;;  %v2131_v5 = vld [vmem:[%s2767_s1 + $0x148] sm:$0xff] }
  0x17   :  { %1156 = vmatpush.bf16.msra.mxu1 %v2100_v21  ;;  %v2139_v6 = vld [vmem:[%s2767_s1 + $0x188] sm:$0xff]  ;;  %v2122_v8 = vld [vmem:[%s2767_s1 + $0x100] sm:$0xff]  ;;  %v2161_v12 = vld [vmem:[%s2767_s1 + $0x238] sm:$0xff] }
  0x18   :  { %1170 = vmatpush.bf16.msra.mxu2 %v2108_v22  ;;  %v2147_v7 = vld [vmem:[%s2767_s1 + $0x1c8] sm:$0xff]  ;;  %v2130_v9 = vld [vmem:[%s2767_s1 + $0x140] sm:$0xff]  ;;  %v2169_v13 = vld [vmem:[%s2767_s1 + $0x278] sm:$0xff] }
  0x19   :  { %1184 = vmatpush.bf16.msra.mxu3 %v2116_v23  ;;  %v2138_v10 = vld [vmem:[%s2767_s1 + $0x180] sm:$0xff]  ;;  %v1480_v14 = vld [vmem:[%s2768_s0 + $0x10] sm:$0xf]  ;;  %v1488_v16 = vld [vmem:[%s2768_s0 + $0x18] sm:$0xf] }
  0x1a   :  { %1143 = vmatpush.bf16.msra.mxu0 %v2091_v24  ;;  %v2146_v11 = vld [vmem:[%s2767_s1 + $0x1c0] sm:$0xff]  ;;  %v2084_v15 = vld [vmem:[%s2768_s0 + $0x4c] sm:$0xf0]  ;;  %v2085_v17 = vld [vmem:[%s2768_s0 + $0x54] sm:$0xf0] }
  0x1b   :  { %1157 = vmatpush.bf16.msra.mxu1 %v2099_v25  ;;  %v2076_v18 = vld [vmem:[%s2768_s0 + $0x14] sm:$0xf]  ;;  %v2077_v20 = vld [vmem:[%s2768_s0 + $0x1c] sm:$0xf]  ;;  %v1481_v24 = vor.u32 %v2084_v15, %v1480_v14  ;;  %v1489_v25 = vor.u32 %v2085_v17, %v1488_v16  ;;  %v2175_v34 = vld [vmem:[%s2767_s1 + $0x2a8] sm:$0xff] }
  0x1c   :  { %1171 = vmatpush.bf16.msra.mxu2 %v2107_v26  ;;  %v1482_v19 = vld [vmem:[%s2768_s0 + $0x50] sm:$0xf0]  ;;  %v1490_v21 = vld [vmem:[%s2768_s0 + $0x58] sm:$0xf0]  ;;  %v2183_v35 = vld [vmem:[%s2767_s1 + $0x2e8] sm:$0xff] }
  0x1d   :  { %1185 = vmatpush.bf16.msra.mxu3 %v2115_v27  ;;  %v2177_v22 = vld [vmem:[%s2767_s1 + $0x2b8] sm:$0xff]  ;;  %v1485_v26 = vor.u32 %v2076_v18, %v1482_v19  ;;  %v1493_v27 = vor.u32 %v2077_v20, %v1490_v21  ;;  %v2158_v36 = vld [vmem:[%s2767_s1 + $0x220] sm:$0xff]  ;;  %v2207_v14 = vld [vmem:[%s2767_s1 + $0x3a8] sm:$0xff] }
  0x1e   :  { %1144 = vmatpush.bf16.msra.mxu0 %v2090_v28  ;;  %v2185_v23 = vld [vmem:[%s2767_s1 + $0x2f8] sm:$0xff]  ;;  %v2160_v28 = vld [vmem:[%s2767_s1 + $0x230] sm:$0xff]  ;;  %v2166_v37 = vld [vmem:[%s2767_s1 + $0x260] sm:$0xff] }
  0x1f   :  { %1158 = vmatpush.bf16.msra.mxu1 %v2098_v29  ;;  %v2168_v29 = vld [vmem:[%s2767_s1 + $0x270] sm:$0xff]  ;;  %v2174_v38 = vld [vmem:[%s2767_s1 + $0x2a0] sm:$0xff]  ;;  %v2157_v40 = vld [vmem:[%s2767_s1 + $0x218] sm:$0xff] }
  0x20   :  { %1172 = vmatpush.bf16.msra.mxu2 %v2106_v30  ;;  %v2176_v30 = vld [vmem:[%s2767_s1 + $0x2b0] sm:$0xff]  ;;  %v2182_v39 = vld [vmem:[%s2767_s1 + $0x2e0] sm:$0xff]  ;;  %v2165_v41 = vld [vmem:[%s2767_s1 + $0x258] sm:$0xff] }
  0x21   :  { %1186 = vmatpush.bf16.msra.mxu3 %v2114_v31  ;;  %1145 = vmatmul.bf16.vlgmr.msra.gmra.mxu0 %v1465_v44  ;;  %v2184_v31 = vld [vmem:[%s2767_s1 + $0x2f0] sm:$0xff]  ;;  %v2215_v15 = vld [vmem:[%s2767_s1 + $0x3e8] sm:$0xff]  ;;  %v2190_v16 = vld [vmem:[%s2767_s1 + $0x320] sm:$0xff] }
  0x22   :  { %1193 = vmatpush.bf16.msrb.mxu0 %v2129_v32  ;;  %1159 = vmatmul.bf16.vlgmr.msra.gmra.mxu1 %v1469_v46  ;;  %v2159_v32 = vld [vmem:[%s2767_s1 + $0x228] sm:$0xff]  ;;  %v2156_v44 = vld [vmem:[%s2767_s1 + $0x210] sm:$0xff]  ;;  %v2198_v17 = vld [vmem:[%s2767_s1 + $0x360] sm:$0xff] }
  0x23   :  { %1207 = vmatpush.bf16.msrb.mxu1 %v2137_v33  ;;  %1173 = vmatmul.bf16.vlgmr.msra.gmra.mxu2 %v1473_v45  ;;  %v2167_v33 = vld [vmem:[%s2767_s1 + $0x268] sm:$0xff]  ;;  %v2164_v45 = vld [vmem:[%s2767_s1 + $0x250] sm:$0xff]  ;;  %v2206_v18 = vld [vmem:[%s2767_s1 + $0x3a0] sm:$0xff] }
  0x24   :  { %1221 = vmatpush.bf16.msrb.mxu2 %v2145_v42  ;;  %1187 = vmatmul.bf16.vlgmr.msra.gmra.mxu3 %v1477_v47  ;;  %v2173_v42 = vld [vmem:[%s2767_s1 + $0x298] sm:$0xff]  ;;  %v2172_v46 = vld [vmem:[%s2767_s1 + $0x290] sm:$0xff]  ;;  %v2214_v19 = vld [vmem:[%s2767_s1 + $0x3e0] sm:$0xff] }
  0x25   :  { %1235 = vmatpush.bf16.msrb.mxu3 %v2153_v43  ;;  %v2181_v43 = vld [vmem:[%s2767_s1 + $0x2d8] sm:$0xff]  ;;  %v2180_v47 = vld [vmem:[%s2767_s1 + $0x2d0] sm:$0xff] }
  0x26   :  { %1194 = vmatpush.bf16.msrb.mxu0 %v2128_v48  ;;  %v2155_v48 = vld [vmem:[%s2767_s1 + $0x208] sm:$0xff]  ;;  %v2189_v20 = vld [vmem:[%s2767_s1 + $0x318] sm:$0xff] }
  0x27   :  { %1208 = vmatpush.bf16.msrb.mxu1 %v2136_v49  ;;  %v2163_v49 = vld [vmem:[%s2767_s1 + $0x248] sm:$0xff]  ;;  %v2197_v21 = vld [vmem:[%s2767_s1 + $0x358] sm:$0xff] }
  0x28   :  { %1222 = vmatpush.bf16.msrb.mxu2 %v2144_v50  ;;  %v2171_v50 = vld [vmem:[%s2767_s1 + $0x288] sm:$0xff] }
  0x29   :  { %1236 = vmatpush.bf16.msrb.mxu3 %v2152_v51  ;;  %v2179_v51 = vld [vmem:[%s2767_s1 + $0x2c8] sm:$0xff] }
  0x2a   :  { %1195 = vmatpush.bf16.msrb.mxu0 %v2127_v52  ;;  %v2154_v52 = vld [vmem:[%s2767_s1 + $0x200] sm:$0xff] }
  0x2b   :  { %1209 = vmatpush.bf16.msrb.mxu1 %v2135_v53  ;;  %v2162_v53 = vld [vmem:[%s2767_s1 + $0x240] sm:$0xff] }
  0x2c   :  { %1223 = vmatpush.bf16.msrb.mxu2 %v2143_v54  ;;  %v2170_v54 = vld [vmem:[%s2767_s1 + $0x280] sm:$0xff] }
  0x2d   :  { %1237 = vmatpush.bf16.msrb.mxu3 %v2151_v55  ;;  %v2178_v55 = vld [vmem:[%s2767_s1 + $0x2c0] sm:$0xff] }
  0x2e   :  { %1196 = vmatpush.bf16.msrb.mxu0 %v2126_v56  ;;  %v2193_v56 = vld [vmem:[%s2767_s1 + $0x338] sm:$0xff] }
  0x2f   :  { %1210 = vmatpush.bf16.msrb.mxu1 %v2134_v57  ;;  %v2201_v57 = vld [vmem:[%s2767_s1 + $0x378] sm:$0xff] }
  0x30   :  { %1224 = vmatpush.bf16.msrb.mxu2 %v2142_v58  ;;  %v1496_v58 = vld [vmem:[%s2768_s0 + $0x20] sm:$0xf] }
  0x31   :  { %1238 = vmatpush.bf16.msrb.mxu3 %v2150_v59  ;;  %v2086_v59 = vld [vmem:[%s2768_s0 + $0x5c] sm:$0xf0] }
  0x32   :  { %1197 = vmatpush.bf16.msrb.mxu0 %v2125_v60  ;;  %v1504_v60 = vld [vmem:[%s2768_s0 + $0x28] sm:$0xf] }
  0x33   :  { %1211 = vmatpush.bf16.msrb.mxu1 %v2133_v61  ;;  %v2087_v61 = vld [vmem:[%s2768_s0 + $0x64] sm:$0xf0] }
  0x34   :  { %1225 = vmatpush.bf16.msrb.mxu2 %v2141_v62  ;;  %v2078_v62 = vld [vmem:[%s2768_s0 + $0x24] sm:$0xf] }
  0x35   :  { %1239 = vmatpush.bf16.msrb.mxu3 %v2149_v63  ;;  %v1498_v63 = vld [vmem:[%s2768_s0 + $0x60] sm:$0xf0] }
  0x36   :  { %1198 = vmatpush.bf16.msrb.mxu0 %v2124_v0  ;;  %v2079_v0 = vld [vmem:[%s2768_s0 + $0x2c] sm:$0xf] }
  0x37   :  { %1212 = vmatpush.bf16.msrb.mxu1 %v2132_v1  ;;  %v1506_v1 = vld [vmem:[%s2768_s0 + $0x68] sm:$0xf0] }
  0x38   :  { %1226 = vmatpush.bf16.msrb.mxu2 %v2140_v2  ;;  %v2209_v2 = vld [vmem:[%s2767_s1 + $0x3b8] sm:$0xff] }
  0x39   :  { %1240 = vmatpush.bf16.msrb.mxu3 %v2148_v3  ;;  %v2217_v3 = vld [vmem:[%s2767_s1 + $0x3f8] sm:$0xff] }
  0x3a   :  { %1199 = vmatpush.bf16.msrb.mxu0 %v2123_v4  ;;  %v1497_v4 = vor.u32 %v2086_v59, %v1496_v58 }
  0x3b   :  { %1213 = vmatpush.bf16.msrb.mxu1 %v2131_v5  ;;  %v1505_v5 = vor.u32 %v2087_v61, %v1504_v60 }
  0x3c   :  { %1227 = vmatpush.bf16.msrb.mxu2 %v2139_v6  ;;  %v1501_v6 = vor.u32 %v2078_v62, %v1498_v63  ;;  %v2223_v62 = vld [vmem:[%s2770_s3 + $0x28] sm:$0xff] }
  0x3d   :  { %1241 = vmatpush.bf16.msrb.mxu3 %v2147_v7  ;;  %v1509_v7 = vor.u32 %v2079_v0, %v1506_v1 }
  0x3e   :  { %1200 = vmatpush.bf16.msrb.mxu0 %v2122_v8  ;;  %v2192_v8 = vld [vmem:[%s2767_s1 + $0x330] sm:$0xff] }
  0x3f   :  { %1214 = vmatpush.bf16.msrb.mxu1 %v2130_v9  ;;  %v2200_v9 = vld [vmem:[%s2767_s1 + $0x370] sm:$0xff] }
  0x40   :  { %1228 = vmatpush.bf16.msrb.mxu2 %v2138_v10  ;;  %v2208_v10 = vld [vmem:[%s2767_s1 + $0x3b0] sm:$0xff] }
  0x41   :  { %1242 = vmatpush.bf16.msrb.mxu3 %v2146_v11  ;;  %1201 = vmatmul.bf16.vlgmr.msrb.gmra.mxu0 %v1481_v24  ;;  %v2216_v11 = vld [vmem:[%s2767_s1 + $0x3f0] sm:$0xff] }
  0x42   :  { %1249 = vmatpush.bf16.msra.mxu0 %v2161_v12  ;;  %1215 = vmatmul.bf16.vlgmr.msrb.gmra.mxu1 %v1485_v26  ;;  %v2191_v12 = vld [vmem:[%s2767_s1 + $0x328] sm:$0xff]  ;;  %v2188_v24 = vld [vmem:[%s2767_s1 + $0x310] sm:$0xff] }
  0x43   :  { %1263 = vmatpush.bf16.msra.mxu1 %v2169_v13  ;;  %1229 = vmatmul.bf16.vlgmr.msrb.gmra.mxu2 %v1489_v25  ;;  %v2199_v13 = vld [vmem:[%s2767_s1 + $0x368] sm:$0xff]  ;;  %v2196_v25 = vld [vmem:[%s2767_s1 + $0x350] sm:$0xff] }
  0x44   :  { %1277 = vmatpush.bf16.msra.mxu2 %v2177_v22  ;;  %1243 = vmatmul.bf16.vlgmr.msrb.gmra.mxu3 %v1493_v27  ;;  %v2205_v22 = vld [vmem:[%s2767_s1 + $0x398] sm:$0xff]  ;;  %v2204_v26 = vld [vmem:[%s2767_s1 + $0x390] sm:$0xff] }
  0x45   :  { %1291 = vmatpush.bf16.msra.mxu3 %v2185_v23  ;;  %v2213_v23 = vld [vmem:[%s2767_s1 + $0x3d8] sm:$0xff]  ;;  %v2212_v27 = vld [vmem:[%s2767_s1 + $0x3d0] sm:$0xff] }
  0x46   :  { %1250 = vmatpush.bf16.msra.mxu0 %v2160_v28  ;;  %v2187_v28 = vld [vmem:[%s2767_s1 + $0x308] sm:$0xff] }
  0x47   :  { %1264 = vmatpush.bf16.msra.mxu1 %v2168_v29  ;;  %v2195_v29 = vld [vmem:[%s2767_s1 + $0x348] sm:$0xff] }
  0x48   :  { %1278 = vmatpush.bf16.msra.mxu2 %v2176_v30  ;;  %v2203_v30 = vld [vmem:[%s2767_s1 + $0x388] sm:$0xff] }
  0x49   :  { %1292 = vmatpush.bf16.msra.mxu3 %v2184_v31  ;;  %v2211_v31 = vld [vmem:[%s2767_s1 + $0x3c8] sm:$0xff] }
  0x4a   :  { %1251 = vmatpush.bf16.msra.mxu0 %v2159_v32  ;;  %v2186_v32 = vld [vmem:[%s2767_s1 + $0x300] sm:$0xff] }
  0x4b   :  { %1265 = vmatpush.bf16.msra.mxu1 %v2167_v33  ;;  %v2194_v33 = vld [vmem:[%s2767_s1 + $0x340] sm:$0xff] }
  0x4c   :  { %1279 = vmatpush.bf16.msra.mxu2 %v2175_v34  ;;  %v2202_v34 = vld [vmem:[%s2767_s1 + $0x380] sm:$0xff] }
  0x4d   :  { %1293 = vmatpush.bf16.msra.mxu3 %v2183_v35  ;;  %v2210_v35 = vld [vmem:[%s2767_s1 + $0x3c0] sm:$0xff] }
  0x4e   :  { %1252 = vmatpush.bf16.msra.mxu0 %v2158_v36  ;;  %v1512_v36 = vld [vmem:[%s2768_s0 + $0x30] sm:$0xf] }
  0x4f   :  { %1266 = vmatpush.bf16.msra.mxu1 %v2166_v37  ;;  %v2088_v37 = vld [vmem:[%s2768_s0 + $0x6c] sm:$0xf0] }
  0x50   :  { %1280 = vmatpush.bf16.msra.mxu2 %v2174_v38  ;;  %v2080_v38 = vld [vmem:[%s2768_s0 + $0x34] sm:$0xf] }
  0x51   :  { %1294 = vmatpush.bf16.msra.mxu3 %v2182_v39  ;;  %v1514_v39 = vld [vmem:[%s2768_s0 + $0x70] sm:$0xf0] }
  0x52   :  { %1253 = vmatpush.bf16.msra.mxu0 %v2157_v40  ;;  %v1520_v40 = vld [vmem:[%s2768_s0 + $0x38] sm:$0xf] }
  0x53   :  { %1267 = vmatpush.bf16.msra.mxu1 %v2165_v41  ;;  %v2089_v41 = vld [vmem:[%s2768_s0 + $0x74] sm:$0xf0] }
  0x54   :  { %1281 = vmatpush.bf16.msra.mxu2 %v2173_v42  ;;  %v2081_v42 = vld [vmem:[%s2768_s0 + $0x3c] sm:$0xf] }
  0x55   :  { %1295 = vmatpush.bf16.msra.mxu3 %v2181_v43  ;;  %v1522_v43 = vld [vmem:[%s2768_s0 + $0x78] sm:$0xf0] }
  0x56   :  { %1254 = vmatpush.bf16.msra.mxu0 %v2156_v44  ;;  %v1513_v44 = vor.u32 %v2088_v37, %v1512_v36 }
  0x57   :  { %1268 = vmatpush.bf16.msra.mxu1 %v2164_v45  ;;  %v1517_v45 = vor.u32 %v2080_v38, %v1514_v39 }
  0x58   :  { %1282 = vmatpush.bf16.msra.mxu2 %v2172_v46  ;;  %v1521_v46 = vor.u32 %v2089_v41, %v1520_v40 }
  0x59   :  { %1296 = vmatpush.bf16.msra.mxu3 %v2180_v47  ;;  %v1525_v47 = vor.u32 %v2081_v42, %v1522_v43 }
  0x5a   :  { %1255 = vmatpush.bf16.msra.mxu0 %v2155_v48 }
  0x5b   :  { %1269 = vmatpush.bf16.msra.mxu1 %v2163_v49 }
  0x5c   :  { %1283 = vmatpush.bf16.msra.mxu2 %v2171_v50 }
  0x5d   :  { %1297 = vmatpush.bf16.msra.mxu3 %v2179_v51 }
  0x5e   :  { %1256 = vmatpush.bf16.msra.mxu0 %v2154_v52 }
  0x5f   :  { %1270 = vmatpush.bf16.msra.mxu1 %v2162_v53  ;;  %v2225_v53 = vld [vmem:[%s2770_s3 + $0x38] sm:$0xff] }
  0x60   :  { %1284 = vmatpush.bf16.msra.mxu2 %v2170_v54 }
  0x61   :  { %1298 = vmatpush.bf16.msra.mxu3 %v2178_v55  ;;  %1257 = vmatmul.bf16.vlgmr.msra.gmra.mxu0 %v1497_v4  ;;  %v2224_v55 = vld [vmem:[%s2770_s3 + $0x30] sm:$0xff] }
  0x62   :  { %1305 = vmatpush.bf16.msrb.mxu0 %v2193_v56  ;;  %1271 = vmatmul.bf16.vlgmr.msra.gmra.mxu1 %v1501_v6 }
  0x63   :  { %1319 = vmatpush.bf16.msrb.mxu1 %v2201_v57  ;;  %1285 = vmatmul.bf16.vlgmr.msra.gmra.mxu2 %v1505_v5 }
  0x64   :  { %1333 = vmatpush.bf16.msrb.mxu2 %v2209_v2  ;;  %1299 = vmatmul.bf16.vlgmr.msra.gmra.mxu3 %v1509_v7  ;;  %v2222_v2 = vld [vmem:[%s2770_s3 + $0x20] sm:$0xff]  ;;  %v2221_v7 = vld [vmem:[%s2770_s3 + $0x18] sm:$0xff] }
  0x65   :  { %1347 = vmatpush.bf16.msrb.mxu3 %v2217_v3 }
  0x66   :  { %1306 = vmatpush.bf16.msrb.mxu0 %v2192_v8 }
  0x67   :  { %1320 = vmatpush.bf16.msrb.mxu1 %v2200_v9 }
  0x68   :  { %1334 = vmatpush.bf16.msrb.mxu2 %v2208_v10 }
  0x69   :  { %1348 = vmatpush.bf16.msrb.mxu3 %v2216_v11 }
  0x6a   :  { %1307 = vmatpush.bf16.msrb.mxu0 %v2191_v12  ;;  %v2220_v12 = vld [vmem:[%s2770_s3 + $0x10] sm:$0xff] }
  0x6b   :  { %1321 = vmatpush.bf16.msrb.mxu1 %v2199_v13 }
  0x6c   :  { %1335 = vmatpush.bf16.msrb.mxu2 %v2207_v14 }
  0x6d   :  { %1349 = vmatpush.bf16.msrb.mxu3 %v2215_v15 }
  0x6e   :  { %1308 = vmatpush.bf16.msrb.mxu0 %v2190_v16 }
  0x6f   :  { %1322 = vmatpush.bf16.msrb.mxu1 %v2198_v17  ;;  %v2219_v17 = vld [vmem:[%s2770_s3 + $0x8] sm:$0xff] }
  0x70   :  { %1336 = vmatpush.bf16.msrb.mxu2 %v2206_v18 }
  0x71   :  { %1350 = vmatpush.bf16.msrb.mxu3 %v2214_v19 }
  0x72   :  { %1309 = vmatpush.bf16.msrb.mxu0 %v2189_v20 }
  0x73   :  { %1323 = vmatpush.bf16.msrb.mxu1 %v2197_v21 }
  0x74   :  { %1337 = vmatpush.bf16.msrb.mxu2 %v2205_v22  ;;  %v2218_v22 = vld [vmem:[%s2770_s3] sm:$0xff] }
  0x75   :  { %1351 = vmatpush.bf16.msrb.mxu3 %v2213_v23 }
  0x76   :  { %1310 = vmatpush.bf16.msrb.mxu0 %v2188_v24 }
  0x77   :  { %1324 = vmatpush.bf16.msrb.mxu1 %v2196_v25 }
  0x78   :  { %1338 = vmatpush.bf16.msrb.mxu2 %v2204_v26 }
  0x79   :  { %1352 = vmatpush.bf16.msrb.mxu3 %v2212_v27 }
  0x7a   :  { %1311 = vmatpush.bf16.msrb.mxu0 %v2187_v28 }
  0x7b   :  { %1325 = vmatpush.bf16.msrb.mxu1 %v2195_v29 }
  0x7c   :  { %1339 = vmatpush.bf16.msrb.mxu2 %v2203_v30 }
  0x7d   :  { %1353 = vmatpush.bf16.msrb.mxu3 %v2211_v31 }
  0x7e   :  { %1312 = vmatpush.bf16.msrb.mxu0 %v2186_v32 }
  0x7f   :  { %1326 = vmatpush.bf16.msrb.mxu1 %v2194_v33 }
  0x80   :  { %1340 = vmatpush.bf16.msrb.mxu2 %v2202_v34 }
  0x81   :  { %1354 = vmatpush.bf16.msrb.mxu3 %v2210_v35  ;;  %1313 = vmatmul.bf16.vlgmr.msrb.gmra.mxu0 %v1513_v44 }
  0x82   :  { %1327 = vmatmul.bf16.vlgmr.msrb.gmra.mxu1 %v1517_v45  ;;  %1440 = vmatpush.bf16.msra.mxu0 %v2225_v53 }
  0x83   :  { %1341 = vmatmul.bf16.vlgmr.msrb.gmra.mxu2 %v1521_v46 }
  0x84   :  { %1355 = vmatmul.bf16.vlgmr.msrb.gmra.mxu3 %v1525_v47 }
  0x86   :  { %1441 = vmatpush.bf16.msra.mxu0 %v2224_v55 }
  0x8a   :  { %1442 = vmatpush.bf16.msra.mxu0 %v2223_v62 }
  0x8e   :  { %1443 = vmatpush.bf16.msra.mxu0 %v2222_v2 }
  0x92   :  { %1444 = vmatpush.bf16.msra.mxu0 %v2221_v7 }
  0x96   :  { %1445 = vmatpush.bf16.msra.mxu0 %v2220_v12 }
  0x9a   :  { %1446 = vmatpush.bf16.msra.mxu0 %v2219_v17 }
  0x9e   :  { %v1146_v48 = vpop.f32.mrf.mxu0  ;;  %1447 = vmatpush.bf16.msra.mxu0 %v2218_v22 }
  0x9f   :  { %v1160_v49 = vpop.f32.mrf.mxu1 }
  0xa0   :  { %v1161_v58 = vadd.f32 %v1160_v49, %v1146_v48 }
  0xa6   :  { %v1174_v50 = vpop.f32.mrf.mxu2  ;;  %v1148_v52 = vpop.f32.mrf.mxu0 }
  0xa7   :  { %v1188_v51 = vpop.f32.mrf.mxu3  ;;  %v1162_v54 = vpop.f32.mrf.mxu1  ;;  %v1175_v61 = vadd.f32 %v1174_v50, %v1161_v58 }
  0xa8   :  { %v1163_v4 = vadd.f32 %v1162_v54, %v1148_v52  ;;  %v2227_v52 = vld [vmem:[%s2769_s2] ss:$0 sm:$0xff] }
  0xa9   :  { %v1189_v1 = vadd.f32 %v1188_v51, %v1175_v61 }
  0xae   :  { %v1176_v56 = vpop.f32.mrf.mxu2 }
  0xaf   :  { %v1190_v57 = vpop.f32.mrf.mxu3  ;;  %v1177_v8 = vadd.f32 %v1176_v56, %v1163_v4 }
  0xb1   :  { %v1191_v14 = vadd.f32 %v1190_v57, %v1177_v8 }
  0xbe   :  { %v1202_v59 = vpop.f32.mrf.mxu0 }
  0xbf   :  { %v1216_v60 = vpop.f32.mrf.mxu1  ;;  %v1203_v5 = vadd.f32 %v1202_v59, %v1189_v1  ;;  %v2228_v59 = vmov 1.0|1.0  }
  0xc1   :  { %v1217_v9 = vadd.f32 %v1216_v60, %v1203_v5 }
  0xc6   :  { %v1230_v63 = vpop.f32.mrf.mxu2  ;;  %v1204_v3 = vpop.f32.mrf.mxu0 }
  0xc7   :  { %v1244_v0 = vpop.f32.mrf.mxu3  ;;  %v1218_v6 = vpop.f32.mrf.mxu1  ;;  %v1231_v15 = vadd.f32 %v1230_v63, %v1217_v9  ;;  %v1205_v18 = vadd.f32 %v1204_v3, %v1191_v14 }
  0xc9   :  { %v1245_v19 = vadd.f32 %v1244_v0, %v1231_v15  ;;  %v1219_v23 = vadd.f32 %v1218_v6, %v1205_v18 }
  0xce   :  { %v1232_v10 = vpop.f32.mrf.mxu2 }
  0xcf   :  { %v1246_v11 = vpop.f32.mrf.mxu3  ;;  %v1233_v25 = vadd.f32 %v1232_v10, %v1219_v23 }
  0xd1   :  { %v1247_v29 = vadd.f32 %v1246_v11, %v1233_v25 }
  0xde   :  { %v1258_v13 = vpop.f32.mrf.mxu0 }
  0xdf   :  { %v1272_v16 = vpop.f32.mrf.mxu1  ;;  %v1259_v24 = vadd.f32 %v1258_v13, %v1245_v19 }
  0xe1   :  { %v1273_v27 = vadd.f32 %v1272_v16, %v1259_v24 }
  0xe6   :  { %v1286_v20 = vpop.f32.mrf.mxu2  ;;  %v1260_v26 = vpop.f32.mrf.mxu0 }
  0xe7   :  { %v1300_v21 = vpop.f32.mrf.mxu3  ;;  %v1274_v28 = vpop.f32.mrf.mxu1  ;;  %v1287_v30 = vadd.f32 %v1286_v20, %v1273_v27  ;;  %v1261_v31 = vadd.f32 %v1260_v26, %v1247_v29 }
  0xe9   :  { %v1301_v34 = vadd.f32 %v1300_v21, %v1287_v30  ;;  %v1275_v36 = vadd.f32 %v1274_v28, %v1261_v31 }
  0xee   :  { %v1288_v32 = vpop.f32.mrf.mxu2 }
  0xef   :  { %v1302_v33 = vpop.f32.mrf.mxu3  ;;  %v1289_v39 = vadd.f32 %v1288_v32, %v1275_v36 }
  0xf1   :  { %v1303_v43 = vadd.f32 %v1302_v33, %v1289_v39 }
  0xfe   :  { %v1314_v35 = vpop.f32.mrf.mxu0 }
  0xff   :  { %v1315_v37 = vadd.f32 %v1314_v35, %v1301_v34  ;;  %v1328_v38 = vpop.f32.mrf.mxu1 }
 0x101   :  { %v1329_v40 = vadd.f32 %v1328_v38, %v1315_v37 }
 0x106   :  { %v1342_v41 = vpop.f32.mrf.mxu2  ;;  %v1316_v45 = vpop.f32.mrf.mxu0 }
 0x107   :  { %v1356_v42 = vpop.f32.mrf.mxu3  ;;  %v1343_v44 = vadd.f32 %v1342_v41, %v1329_v40  ;;  %v1317_v46 = vadd.f32 %v1316_v45, %v1303_v43  ;;  %v1330_v48 = vpop.f32.mrf.mxu1 }
 0x109   :  { %v1357_v47 = vadd.f32 %v1356_v42, %v1343_v44  ;;  %v1331_v49 = vadd.f32 %v1330_v48, %v1317_v46 }
 0x10b   :  { %v1361_v51 = vmul.f32 0.5, %v1357_v47 }
 0x10d   :  { %v1367_v56 = vadd.f32 %v2227_v52, %v1361_v51 }
 0x10e   :  { %v1344_v50 = vpop.f32.mrf.mxu2 }
 0x10f   :  { %v1345_v53 = vadd.f32 %v1344_v50, %v1331_v49  ;;  %v1358_v54 = vpop.f32.mrf.mxu3  ;;  %vm1369_vm0 = vcmp.ge.f32.partialorder %v1367_v56, 1.0 }
 0x111   :  { %v1359_v55 = vadd.f32 %v1358_v54, %v1345_v53 }
 0x113   :  { %v1362_v57 = vmul.f32 0.5, %v1359_v55 }
 0x115   :  { %v1368_v58 = vadd.f32 %v2227_v52, %v1362_v57 }
 0x117   :  { %vm1370_vm1 = vcmp.ge.f32.partialorder %v1368_v58, 1.0 }
 0x118   :  { %vm2072_vm2 = vmpackc.low %vm1370_vm1, %vm1369_vm0 }
 0x119   :  { %2073 = vmatmul.msk.bf16.vlgmr.msra.gmra.mxu0 %vm2072_vm2, %v2228_v59 }
 0x196   :  { %v1449_v60 = vpop.f32.mrf.mxu0 }
 0x197   :  { %v1454_v61 = vmul.f32 0.1, %v1449_v60 }
 0x199   :  { %1456 = vst [vmem:[%s2771_s4] sm:$0xff] %v1454_v61 }
 0x19e   :  { %v1451_v62 = vpop.f32.mrf.mxu0 }
 0x19f   :  { %v1455_v63 = vmul.f32 0.1, %v1451_v62 }
 0x1a1   :  { %1457 = vst [vmem:[%s2771_s4 + $0x8] sm:$0xff] %v1455_v63 }

</bundles_post_ra>
